<compile_context>
chip_gen: v7x
topology: tpu7x:2x2x1
jax: 0.10.0
libtpu: 0.0.40
codegen_flags: <defaults>
</compile_context>

<pallas_src>
import functools
import numpy as np

import jax
import jax.numpy as jnp
from jax import lax
from jax.experimental import pallas as pl
from jax.experimental.pallas import tpu as pltpu


# ----------------------------------------------------------------------------
# Config (small, deterministic, consistent with the module's args)
# ----------------------------------------------------------------------------
DIM_HIDDEN = 64            # args.dim_hidden
D_MODEL = 2 * DIM_HIDDEN   # transformer d_model = 128
TF_HEAD = 4                # args.tf_head
TF_LAYER = 2               # args.tf_layer
DIM_FF = 2048              # nn.TransformerEncoderLayer default dim_feedforward
FF_CHUNK = 512             # FFN intermediate-dim chunk size
MASK_RATIO = 0.25          # args.mask_ratio (>0 so masking actually happens)
K_HOP = 4
NUM_BATCHES = 2
NODES_PER_MODALITY_PER_BATCH = 16  # same node count for every modality
LN_EPS = 1e-5


# ----------------------------------------------------------------------------
# Pallas kernels
# ----------------------------------------------------------------------------
def _layer_norm(x, gamma, beta, eps=LN_EPS):
    """f32 LayerNorm over the last axis (matches nn.LayerNorm, eps=1e-5)."""
    mean = jnp.mean(x, axis=-1, keepdims=True)
    var = jnp.mean((x - mean) ** 2, axis=-1, keepdims=True)
    return (x - mean) * jax.lax.rsqrt(var + eps) * gamma + beta


def encoder_kernel(x_ref,
                   wqkv_ref, bqkv_ref, wo_ref, bo_ref, g1_ref, be1_ref,
                   w1_ref, b1_ref, w2_ref, b2_ref, g2_ref, be2_ref,
                   out_ref, attn_ref,
                   *, num_heads, num_layers, ff_chunk):
    """Full nn.TransformerEncoder (post-LN, ReLU FFN, eval mode), all layers.

    Weights are bf16 (MXU-native); accumulation, softmax and LayerNorm are f32.
    Attention probabilities are emitted lane-dense as (S, num_heads*S).
    NOTE: weights here are stored (in, out); real PyTorch checkpoints keep
    nn.Linear / in_proj_weight as (out, in) and must be transposed at load.
    """
    x = x_ref[0].astype(jnp.float32)                  # (S, D)
    S, D = x.shape
    hd = D // num_heads
    dim_ff = w1_ref.shape[2]
    scale = 1.0 / float(np.sqrt(hd))

    for l in range(num_layers):
        xb = x.astype(jnp.bfloat16)

        # Packed Q/K/V projection: one (S,D)x(D,3D) matmul.
        qkv = jnp.dot(xb, wqkv_ref[l],
                      preferred_element_type=jnp.float32) + bqkv_ref[l]
        q = qkv[:, :D]
        k = qkv[:, D:2 * D]
        v = qkv[:, 2 * D:]

        probs_heads = []
        attn_acc = jnp.zeros((S, D), jnp.float32)
        for h in range(num_heads):
            sl = slice(h * hd, (h + 1) * hd)
            qh = q[:, sl].astype(jnp.bfloat16)
            kh = k[:, sl].astype(jnp.bfloat16)
            vh = v[:, sl].astype(jnp.bfloat16)
            # scores = q @ k^T / sqrt(hd)   (contract on hd; no explicit .T)
            sc = lax.dot_general(qh, kh, (((1,), (1,)), ((), ())),
                                 preferred_element_type=jnp.float32) * scale
            sc = sc - jnp.max(sc, axis=-1, keepdims=True)
            e = jnp.exp(sc)
            p = e / jnp.sum(e, axis=-1, keepdims=True)            # f32 softmax
            probs_heads.append(p)
            ctx = jnp.dot(p.astype(jnp.bfloat16), vh,
                          preferred_element_type=jnp.float32)     # (S, hd)
            # Fold output projection per head:
            #   concat_h(ctx_h) @ Wo == sum_h ctx_h @ Wo[h*hd:(h+1)*hd, :]
            attn_acc = attn_acc + jnp.dot(
                ctx.astype(jnp.bfloat16), wo_ref[l, sl, :],
                preferred_element_type=jnp.float32)

        # Lane-dense attention-buffer store: (S, H*S) = (64, 256).
        # TODO(synk): PyTorch MultiheadAttention default averages attention
        # weights over heads; per-head probabilities are emitted here.
        attn_ref[0, l] = jnp.concatenate(
            probs_heads, axis=-1).astype(attn_ref.dtype)

        attn_out = attn_acc + bo_ref[l]
        y = _layer_norm(x + attn_out, g1_ref[l], be1_ref[l])      # post-LN 1

        # FFN chunked over the 2048-wide intermediate dim (no big intermediate).
        yb = y.astype(jnp.bfloat16)
        ff = jnp.zeros((S, D), jnp.float32)
        for c0 in range(0, dim_ff, ff_chunk):
            hcol = jnp.dot(yb, w1_ref[l, :, c0:c0 + ff_chunk],
                           preferred_element_type=jnp.float32)
            hcol = jnp.maximum(hcol + b1_ref[l, :, c0:c0 + ff_chunk], 0.0)
            ff = ff + jnp.dot(hcol.astype(jnp.bfloat16),
                              w2_ref[l, c0:c0 + ff_chunk, :],
                              preferred_element_type=jnp.float32)
        ff = ff + b2_ref[l]

        x = _layer_norm(y + ff, g2_ref[l], be2_ref[l])            # post-LN 2

    out_ref[0] = x.astype(out_ref.dtype)


def pred_prob_kernel(x_ref, w1_ref, b1_ref, w2_ref, b2_ref, w3_ref, b3_ref,
                     out_ref):
    """DeepGate pred_prob head: MLP(2dh -> dh -> dh -> 1) + sigmoid.

    w1 is zero-padded over the hs half so the kernel takes full 128-wide
    (hs|hf) token rows (lane-dense) and only the hf half contributes.
    One grid step per head; all 5 heads run in a single pallas_call.
    """
    x = x_ref[0].astype(jnp.bfloat16)
    h = jnp.dot(x, w1_ref[0], preferred_element_type=jnp.float32) + b1_ref[0]
    h = jnp.maximum(h, 0.0)
    h = jnp.dot(h.astype(jnp.bfloat16), w2_ref[0],
                preferred_element_type=jnp.float32) + b2_ref[0]
    h = jnp.maximum(h, 0.0)
    logits = jnp.dot(h.astype(jnp.bfloat16), w3_ref[0],
                     preferred_element_type=jnp.float32) + b3_ref[0]
    out_ref[0] = jax.nn.sigmoid(logits).astype(out_ref.dtype)


# ----------------------------------------------------------------------------
# Wrappers around pallas_call
# ----------------------------------------------------------------------------
_TF_WEIGHT_NAMES = ('wqkv', 'bqkv', 'wo', 'bo', 'g1', 'be1',
                    'w1', 'b1', 'w2', 'b2', 'g2', 'be2')


def transformer_encoder(x, tf_params, num_heads, num_layers):
    """x: (B, S, D) f32 -> (out (B,S,D) f32, [attn (B,H,S,S)] per layer)."""
    B, S, D = x.shape
    HxS = num_heads * S

    operands = [x]
    in_specs = [pl.BlockSpec((1, S, D), lambda b: (b, 0, 0))]
    for name in _TF_WEIGHT_NAMES:
        w = tf_params[name]                                   # (L, ..., ...) 3D
        operands.append(w)
        in_specs.append(pl.BlockSpec(w.shape, lambda b: (0, 0, 0)))

    out_shapes = (jax.ShapeDtypeStruct((B, S, D), jnp.float32),
                  jax.ShapeDtypeStruct((B, num_layers, S, HxS), jnp.float32))
    out_specs = (pl.BlockSpec((1, S, D), lambda b: (b, 0, 0)),
                 pl.BlockSpec((1, num_layers, S, HxS), lambda b: (b, 0, 0, 0)))

    out, attn_dense = pl.pallas_call(
        functools.partial(encoder_kernel, num_heads=num_heads,
                          num_layers=num_layers, ff_chunk=FF_CHUNK),
        out_shape=out_shapes,
        grid=(B,),
        in_specs=in_specs,
        out_specs=out_specs,
        compiler_params=pltpu.CompilerParams(
            dimension_semantics=("parallel",)),
    )(*operands)

    # (B, L, S, H*S) -> per-layer (B, H, S, S)
    attn = attn_dense.reshape(B, num_layers, S, num_heads, S)
    attn = attn.transpose(0, 1, 3, 2, 4)
    attn_buffers = [attn[:, l] for l in range(num_layers)]
    return out, attn_buffers


def pred_prob_heads(x_stacked, w1, b1, w2, b2, w3, b3):
    """x_stacked: (G, N, 2*dh) -> (G, N, 1) probabilities, one grid step/head."""
    G, N, Din = x_stacked.shape
    dh = w2.shape[1]
    return pl.pallas_call(
        pred_prob_kernel,
        out_shape=jax.ShapeDtypeStruct((G, N, 1), jnp.float32),
        grid=(G,),
        in_specs=[
            pl.BlockSpec((1, N, Din), lambda i: (i, 0, 0)),
            pl.BlockSpec((1, Din, dh), lambda i: (i, 0, 0)),
            pl.BlockSpec((1, 1, dh), lambda i: (i, 0, 0)),
            pl.BlockSpec((1, dh, dh), lambda i: (i, 0, 0)),
            pl.BlockSpec((1, 1, dh), lambda i: (i, 0, 0)),
            pl.BlockSpec((1, dh, 1), lambda i: (i, 0, 0)),
            pl.BlockSpec((1, 1, 1), lambda i: (i, 0, 0)),
        ],
        out_specs=pl.BlockSpec((1, N, 1), lambda i: (i, 0, 0)),
        compiler_params=pltpu.CompilerParams(
            dimension_semantics=("parallel",)),
    )(x_stacked, w1, b1, w2, b2, w3, b3)


# ----------------------------------------------------------------------------
# Parameter construction (deterministic synthetic init)
# ----------------------------------------------------------------------------
def init_transformer_params(key, num_layers, d_model, dim_ff):
    """Stacked (leading layer dim) transformer weights; matmul weights in bf16."""
    s = 0.02

    def one_layer(k):
        ks = jax.random.split(k, 4)
        return {
            'wqkv': jax.random.normal(ks[0], (d_model, 3 * d_model), jnp.float32) * s,
            'bqkv': jnp.zeros((1, 3 * d_model), jnp.float32),
            'wo': jax.random.normal(ks[1], (d_model, d_model), jnp.float32) * s,
            'bo': jnp.zeros((1, d_model), jnp.float32),
            'g1': jnp.ones((1, d_model), jnp.float32),
            'be1': jnp.zeros((1, d_model), jnp.float32),
            'w1': jax.random.normal(ks[2], (d_model, dim_ff), jnp.float32) * s,
            'b1': jnp.zeros((1, dim_ff), jnp.float32),
            'w2': jax.random.normal(ks[3], (dim_ff, d_model), jnp.float32) * s,
            'b2': jnp.zeros((1, d_model), jnp.float32),
            'g2': jnp.ones((1, d_model), jnp.float32),
            'be2': jnp.zeros((1, d_model), jnp.float32),
        }

    per_layer = [one_layer(k) for k in jax.random.split(key, num_layers)]
    stacked = {name: jnp.stack([p[name] for p in per_layer], axis=0)
               for name in per_layer[0]}
    for name in ('wqkv', 'wo', 'w1', 'w2'):        # bf16 MXU path for weights
        stacked[name] = stacked[name].astype(jnp.bfloat16)
    return stacked


def init_pred_prob(key, dim_hidden):
    ks = jax.random.split(key, 3)
    s = 0.1
    return {
        'w1': jax.random.normal(ks[0], (dim_hidden, dim_hidden), jnp.float32) * s,
        'b1': jnp.zeros((1, dim_hidden), jnp.float32),
        'w2': jax.random.normal(ks[1], (dim_hidden, dim_hidden), jnp.float32) * s,
        'b2': jnp.zeros((1, dim_hidden), jnp.float32),
        'w3': jax.random.normal(ks[2], (dim_hidden, 1), jnp.float32) * s,
        'b3': jnp.zeros((1, 1), jnp.float32),
    }


# ----------------------------------------------------------------------------
# Host-side glue: masking with k-hop fan-in expansion (graph preprocessing)
# ----------------------------------------------------------------------------
def mask_tokens_host(tokens, edge_index, mask_token, mask_ratio, k_hop,
                     dim_hidden, key):
    """Replicates TopModel.mask_tokens on the host.

    Returns (masked_tokens (N, 2*dh), mask_indices np.ndarray or None).
    """
    if mask_ratio == 0:
        return tokens, None
    seq_len = tokens.shape[0]
    perm = np.asarray(jax.random.permutation(key, seq_len))
    seed = perm[:int(mask_ratio * seq_len)]
    mask_indices = set(seed.tolist())
    current = set(seed.tolist())
    src, dst = edge_index[0], edge_index[1]
    # TODO(synk): `subgraph(current_nodes, edge_index, dim=1)` is an external
    # helper; here fan-in = sources of edges whose destination is in the set.
    for _ in range(k_hop):
        fanin = set(src[np.isin(dst, list(current))].tolist())
        current = fanin
        mask_indices |= fanin
    mask_indices = np.array(sorted(mask_indices), dtype=np.int64)

    flag = np.zeros(seq_len, dtype=bool)
    flag[mask_indices] = True
    flag = jnp.asarray(flag)

    hs_part = tokens[:, :dim_hidden]
    hf_part = tokens[:, dim_hidden:]
    hf_masked = jnp.where(flag[:, None], mask_token, hf_part)
    masked_tokens = jnp.concatenate([hs_part, hf_masked], axis=1)
    return masked_tokens, mask_indices


# ----------------------------------------------------------------------------
# TopModel forward (JAX orchestration + Pallas compute)
# ----------------------------------------------------------------------------
def top_model_forward(embeddings, edge_index, params, key):
    """embeddings: dict modality -> (hs (N, dh), hf (N, dh)), all detached."""
    dh = DIM_HIDDEN
    tokens = {m: jnp.concatenate([hs, hf], axis=1)
              for m, (hs, hf) in embeddings.items()}

    selected_modality = 'mig'
    selected_tokens = tokens[selected_modality]

    masked_tokens, mask_indices = mask_tokens_host(
        selected_tokens, edge_index, params['mask_token'],
        MASK_RATIO, K_HOP, dh, key)

    # Per-batch token slabs: [masked_mig | aig | xmg | xag]  (mig branch order)
    n = NODES_PER_MODALITY_PER_BATCH
    batch_slabs = []
    for b in range(NUM_BATCHES):
        sl = slice(b * n, (b + 1) * n)
        batch_all = jnp.concatenate(
            [masked_tokens[sl], tokens['aig'][sl],
             tokens['xmg'][sl], tokens['xag'][sl]], axis=0)
        batch_slabs.append(batch_all)
    all_tokens = jnp.stack(batch_slabs, axis=0)          # (B, 4n, D)

    transformer_out, attention_buffer = transformer_encoder(
        all_tokens, params['tf_layers'], TF_HEAD, TF_LAYER)

    # First n rows of each batch are the predicted masked-modality tokens.
    mcm_predicted_tokens = transformer_out[:, :n, :].reshape(
        NUM_BATCHES * n, D_MODEL)

    # Fused pred_prob heads: [masked (mig encoder), aig, mig, xmg, xag].
    # Every head consumes full lane-dense (hs|hf) 128-wide rows; w1 is
    # zero-padded on the hs half so only hf contributes (== pred_prob(hf)).
    pp = params['pred_prob']
    head_params = [pp[selected_modality], pp['aig'], pp['mig'], pp['xmg'], pp['xag']]
    w1 = jnp.stack(
        [jnp.concatenate([jnp.zeros((dh, dh), jnp.float32), p['w1']], axis=0)
         for p in head_params], axis=0).astype(jnp.bfloat16)      # (5, 2dh, dh)
    b1 = jnp.stack([p['b1'] for p in head_params], axis=0)
    w2 = jnp.stack([p['w2'] for p in head_params], axis=0).astype(jnp.bfloat16)
    b2 = jnp.stack([p['b2'] for p in head_params], axis=0)
    w3 = jnp.stack([p['w3'] for p in head_params], axis=0).astype(jnp.bfloat16)
    b3 = jnp.stack([p['b3'] for p in head_params], axis=0)
    x_stacked = jnp.stack(
        [mcm_predicted_tokens, tokens['aig'], tokens['mig'],
         tokens['xmg'], tokens['xag']], axis=0)                   # (5, N, 2dh)

    probs = pred_prob_heads(x_stacked, w1, b1, w2, b2, w3, b3)    # (5, N, 1)
    masked_prob = probs[0]
    aig_prob = probs[1]
    mig_prob = probs[2]
    xmg_prob = probs[3]
    xag_prob = probs[4]

    token_names = (['masked_mig'] * n + ['aig'] * n + ['xmg'] * n + ['xag'] * n)
    return (mcm_predicted_tokens, mask_indices, selected_tokens, masked_prob,
            aig_prob, mig_prob, xmg_prob, xag_prob,
            {'attentions': attention_buffer, 'token_names': token_names})


# ----------------------------------------------------------------------------
# Main
# ----------------------------------------------------------------------------
if __name__ == "__main__":
    root = jax.random.PRNGKey(0)
    keys = jax.random.split(root, 16)

    n_total = NUM_BATCHES * NODES_PER_MODALITY_PER_BATCH  # 32 nodes / modality

    # Synthetic detached DeepGate encoder outputs (hs, hf) per modality.
    # TODO(synk): DeepGate_{Aig,Mig,Xmg,Xag} are external checkpoint-loaded GNNs
    # with no reference implementation; their (detached) outputs are synthesized.
    modalities = ['aig', 'mig', 'xmg', 'xag']
    embeddings = {}
    for i, m in enumerate(modalities):
        hs = jax.random.normal(keys[2 * i], (n_total, DIM_HIDDEN), jnp.float32)
        hf = jax.random.normal(keys[2 * i + 1], (n_total, DIM_HIDDEN), jnp.float32)
        embeddings[m] = (hs, hf)

    # Synthetic mig-graph edge_index (src -> dst, per-batch chains).
    edges = []
    for b in range(NUM_BATCHES):
        off = b * NODES_PER_MODALITY_PER_BATCH
        for i in range(NODES_PER_MODALITY_PER_BATCH - 1):
            edges.append((off + i, off + i + 1))
        for i in range(NODES_PER_MODALITY_PER_BATCH - 2):
            edges.append((off + i, off + i + 2))
    edge_index = np.array(edges, dtype=np.int64).T       # (2, E)

    # Parameters.
    params = {
        'mask_token': jax.random.normal(keys[8], (1, DIM_HIDDEN), jnp.float32),
        'tf_layers': init_transformer_params(keys[9], TF_LAYER, D_MODEL, DIM_FF),
        'pred_prob': {m: init_pred_prob(k, DIM_HIDDEN)
                      for m, k in zip(modalities,
                                      jax.random.split(keys[10], 4))},
    }

    outputs = top_model_forward(embeddings, edge_index, params, keys[11])

    (mcm_predicted_tokens, mask_indices, selected_tokens, masked_prob,
     aig_prob, mig_prob, xmg_prob, xag_prob, attn_dict) = outputs

    jax.block_until_ready(mcm_predicted_tokens)
    jax.block_until_ready(masked_prob)
    jax.block_until_ready(aig_prob)
    jax.block_until_ready(attn_dict['attentions'][-1])

    assert mcm_predicted_tokens.shape == (n_total, D_MODEL)
    assert masked_prob.shape == (n_total, 1)
    assert aig_prob.shape == (n_total, 1)
    assert attn_dict['attentions'][0].shape == (
        NUM_BATCHES, TF_HEAD, 4 * NODES_PER_MODALITY_PER_BATCH,
        4 * NODES_PER_MODALITY_PER_BATCH)
    assert bool(jnp.all(jnp.isfinite(mcm_predicted_tokens)))
    assert bool(jnp.all((masked_prob >= 0) & (masked_prob <= 1)))

    print("KERNEL_OK")
</pallas_src>

<mosaic_0001>
module attributes {stable_mosaic.version = 11 : i64} {
  func.func @encoder_kernel(%arg0: i32, %arg1: memref<1x64x128xf32, #tpu.memory_space<vmem>>, %arg2: memref<2x128x384xbf16, #tpu.memory_space<vmem>>, %arg3: memref<2x1x384xf32, #tpu.memory_space<vmem>>, %arg4: memref<2x128x128xbf16, #tpu.memory_space<vmem>>, %arg5: memref<2x1x128xf32, #tpu.memory_space<vmem>>, %arg6: memref<2x1x128xf32, #tpu.memory_space<vmem>>, %arg7: memref<2x1x128xf32, #tpu.memory_space<vmem>>, %arg8: memref<2x128x2048xbf16, #tpu.memory_space<vmem>>, %arg9: memref<2x1x2048xf32, #tpu.memory_space<vmem>>, %arg10: memref<2x2048x128xbf16, #tpu.memory_space<vmem>>, %arg11: memref<2x1x128xf32, #tpu.memory_space<vmem>>, %arg12: memref<2x1x128xf32, #tpu.memory_space<vmem>>, %arg13: memref<2x1x128xf32, #tpu.memory_space<vmem>>, %arg14: memref<1x64x128xf32, #tpu.memory_space<vmem>>, %arg15: memref<1x2x64x256xf32, #tpu.memory_space<vmem>>) attributes {dimension_semantics = [#tpu.dimension_semantics<parallel>], iteration_bounds = array<i64: 2>, scalar_prefetch = 0 : i64, scratch_operands = 0 : i64, tpu.core_type = #tpu.core_type<tc>, window_params = [{transform_indices = @transform_0, window_bounds = array<i64: 1, 64, 128>}, {pipeline_mode = #tpu.pipeline_mode<synchronous>, transform_indices = @transform_1, window_bounds = array<i64: 2, 128, 384>}, {pipeline_mode = #tpu.pipeline_mode<synchronous>, transform_indices = @transform_2, window_bounds = array<i64: 2, 1, 384>}, {pipeline_mode = #tpu.pipeline_mode<synchronous>, transform_indices = @transform_3, window_bounds = array<i64: 2, 128, 128>}, {pipeline_mode = #tpu.pipeline_mode<synchronous>, transform_indices = @transform_4, window_bounds = array<i64: 2, 1, 128>}, {pipeline_mode = #tpu.pipeline_mode<synchronous>, transform_indices = @transform_5, window_bounds = array<i64: 2, 1, 128>}, {pipeline_mode = #tpu.pipeline_mode<synchronous>, transform_indices = @transform_6, window_bounds = array<i64: 2, 1, 128>}, {pipeline_mode = #tpu.pipeline_mode<synchronous>, transform_indices = @transform_7, window_bounds = array<i64: 2, 128, 2048>}, {pipeline_mode = #tpu.pipeline_mode<synchronous>, transform_indices = @transform_8, window_bounds = array<i64: 2, 1, 2048>}, {pipeline_mode = #tpu.pipeline_mode<synchronous>, transform_indices = @transform_9, window_bounds = array<i64: 2, 2048, 128>}, {pipeline_mode = #tpu.pipeline_mode<synchronous>, transform_indices = @transform_10, window_bounds = array<i64: 2, 1, 128>}, {pipeline_mode = #tpu.pipeline_mode<synchronous>, transform_indices = @transform_11, window_bounds = array<i64: 2, 1, 128>}, {pipeline_mode = #tpu.pipeline_mode<synchronous>, transform_indices = @transform_12, window_bounds = array<i64: 2, 1, 128>}, {transform_indices = @transform_13, window_bounds = array<i64: 1, 64, 128>}, {transform_indices = @transform_14, window_bounds = array<i64: 1, 2, 64, 256>}]} {
    %c0 = arith.constant 0 : index
    %c0_0 = arith.constant 0 : index
    %c0_1 = arith.constant 0 : index
    %0 = vector.load %arg1[%c0, %c0_0, %c0_1] : memref<1x64x128xf32, #tpu.memory_space<vmem>>, vector<1x64x128xf32>
    %1 = vector.shape_cast %0 : vector<1x64x128xf32> to vector<64x128xf32>
    %2 = arith.truncf %1 : vector<64x128xf32> to vector<64x128xbf16>
    %c0_2 = arith.constant 0 : index
    %c0_3 = arith.constant 0 : index
    %c0_4 = arith.constant 0 : index
    %3 = vector.load %arg2[%c0_2, %c0_3, %c0_4] : memref<2x128x384xbf16, #tpu.memory_space<vmem>>, vector<1x128x384xbf16>
    %4 = vector.shape_cast %3 : vector<1x128x384xbf16> to vector<128x384xbf16>
    %cst = arith.constant dense<0.000000e+00> : vector<64x384xf32>
    %5 = tpu.matmul %2, %4, %cst {dimension_numbers = #tpu.dot_dimension_numbers<[1], [0], [0], [1], [0, 0, 1, 1], [], []>} : vector<64x128xbf16>, vector<128x384xbf16>, vector<64x384xf32> -> vector<64x384xf32>
    %c0_5 = arith.constant 0 : index
    %c0_6 = arith.constant 0 : index
    %c0_7 = arith.constant 0 : index
    %6 = vector.load %arg3[%c0_5, %c0_6, %c0_7] : memref<2x1x384xf32, #tpu.memory_space<vmem>>, vector<1x1x384xf32>
    %7 = vector.shape_cast %6 : vector<1x1x384xf32> to vector<1x384xf32>
    %8 = vector.broadcast %7 : vector<1x384xf32> to vector<64x384xf32>
    %9 = arith.addf %5, %8 : vector<64x384xf32>
    %10 = vector.extract_strided_slice %9 {offsets = [0, 0], sizes = [64, 128], strides = [1, 1]} : vector<64x384xf32> to vector<64x128xf32>
    %11 = vector.extract_strided_slice %9 {offsets = [0, 128], sizes = [64, 128], strides = [1, 1]} : vector<64x384xf32> to vector<64x128xf32>
    %12 = vector.extract_strided_slice %9 {offsets = [0, 256], sizes = [64, 128], strides = [1, 1]} : vector<64x384xf32> to vector<64x128xf32>
    %cst_8 = arith.constant 0.000000e+00 : f32
    %13 = vector.broadcast %cst_8 : f32 to vector<64x128xf32>
    %14 = vector.extract_strided_slice %10 {offsets = [0, 0], sizes = [64, 32], strides = [1, 1]} : vector<64x128xf32> to vector<64x32xf32>
    %15 = arith.truncf %14 : vector<64x32xf32> to vector<64x32xbf16>
    %16 = vector.extract_strided_slice %11 {offsets = [0, 0], sizes = [64, 32], strides = [1, 1]} : vector<64x128xf32> to vector<64x32xf32>
    %17 = arith.truncf %16 : vector<64x32xf32> to vector<64x32xbf16>
    %18 = vector.extract_strided_slice %12 {offsets = [0, 0], sizes = [64, 32], strides = [1, 1]} : vector<64x128xf32> to vector<64x32xf32>
    %19 = arith.truncf %18 : vector<64x32xf32> to vector<64x32xbf16>
    %cst_9 = arith.constant dense<0.000000e+00> : vector<64x64xf32>
    %20 = tpu.matmul %15, %17, %cst_9 {dimension_numbers = #tpu.dot_dimension_numbers<[1], [1], [0], [0], [0, 0, 1, 0], [], []>} : vector<64x32xbf16>, vector<64x32xbf16>, vector<64x64xf32> -> vector<64x64xf32>
    %cst_10 = arith.constant 0.176776692 : f32
    %21 = vector.broadcast %cst_10 : f32 to vector<64x64xf32>
    %22 = arith.mulf %20, %21 : vector<64x64xf32>
    %cst_11 = arith.constant dense<0xFF800000> : vector<64xf32>
    %23 = vector.multi_reduction <maximumf>, %22, %cst_11 [1] : vector<64x64xf32> to vector<64xf32>
    %24 = vector.shape_cast %23 : vector<64xf32> to vector<64x1xf32>
    %25 = vector.broadcast %24 : vector<64x1xf32> to vector<64x64xf32>
    %26 = arith.subf %22, %25 : vector<64x64xf32>
    %27 = math.exp %26 : vector<64x64xf32>
    %cst_12 = arith.constant dense<0.000000e+00> : vector<64xf32>
    %28 = vector.multi_reduction <add>, %27, %cst_12 [1] : vector<64x64xf32> to vector<64xf32>
    %29 = vector.shape_cast %28 : vector<64xf32> to vector<64x1xf32>
    %30 = vector.broadcast %29 : vector<64x1xf32> to vector<64x64xf32>
    %31 = arith.divf %27, %30 : vector<64x64xf32>
    %32 = arith.truncf %31 : vector<64x64xf32> to vector<64x64xbf16>
    %cst_13 = arith.constant dense<0.000000e+00> : vector<64x32xf32>
    %33 = tpu.matmul %32, %19, %cst_13 {dimension_numbers = #tpu.dot_dimension_numbers<[1], [0], [0], [1], [0, 0, 1, 1], [], []>} : vector<64x64xbf16>, vector<64x32xbf16>, vector<64x32xf32> -> vector<64x32xf32>
    %34 = arith.truncf %33 : vector<64x32xf32> to vector<64x32xbf16>
    %c0_14 = arith.constant 0 : index
    %c0_15 = arith.constant 0 : index
    %c0_16 = arith.constant 0 : index
    %35 = vector.load %arg4[%c0_14, %c0_15, %c0_16] : memref<2x128x128xbf16, #tpu.memory_space<vmem>>, vector<1x32x128xbf16>
    %36 = vector.shape_cast %35 : vector<1x32x128xbf16> to vector<32x128xbf16>
    %cst_17 = arith.constant dense<0.000000e+00> : vector<64x128xf32>
    %37 = tpu.matmul %34, %36, %cst_17 {dimension_numbers = #tpu.dot_dimension_numbers<[1], [0], [0], [1], [0, 0, 1, 1], [], []>} : vector<64x32xbf16>, vector<32x128xbf16>, vector<64x128xf32> -> vector<64x128xf32>
    %38 = arith.addf %13, %37 : vector<64x128xf32>
    %39 = vector.extract_strided_slice %10 {offsets = [0, 32], sizes = [64, 32], strides = [1, 1]} : vector<64x128xf32> to vector<64x32xf32>
    %40 = arith.truncf %39 : vector<64x32xf32> to vector<64x32xbf16>
    %41 = vector.extract_strided_slice %11 {offsets = [0, 32], sizes = [64, 32], strides = [1, 1]} : vector<64x128xf32> to vector<64x32xf32>
    %42 = arith.truncf %41 : vector<64x32xf32> to vector<64x32xbf16>
    %43 = vector.extract_strided_slice %12 {offsets = [0, 32], sizes = [64, 32], strides = [1, 1]} : vector<64x128xf32> to vector<64x32xf32>
    %44 = arith.truncf %43 : vector<64x32xf32> to vector<64x32xbf16>
    %cst_18 = arith.constant dense<0.000000e+00> : vector<64x64xf32>
    %45 = tpu.matmul %40, %42, %cst_18 {dimension_numbers = #tpu.dot_dimension_numbers<[1], [1], [0], [0], [0, 0, 1, 0], [], []>} : vector<64x32xbf16>, vector<64x32xbf16>, vector<64x64xf32> -> vector<64x64xf32>
    %cst_19 = arith.constant 0.176776692 : f32
    %46 = vector.broadcast %cst_19 : f32 to vector<64x64xf32>
    %47 = arith.mulf %45, %46 : vector<64x64xf32>
    %cst_20 = arith.constant dense<0xFF800000> : vector<64xf32>
    %48 = vector.multi_reduction <maximumf>, %47, %cst_20 [1] : vector<64x64xf32> to vector<64xf32>
    %49 = vector.shape_cast %48 : vector<64xf32> to vector<64x1xf32>
    %50 = vector.broadcast %49 : vector<64x1xf32> to vector<64x64xf32>
    %51 = arith.subf %47, %50 : vector<64x64xf32>
    %52 = math.exp %51 : vector<64x64xf32>
    %cst_21 = arith.constant dense<0.000000e+00> : vector<64xf32>
    %53 = vector.multi_reduction <add>, %52, %cst_21 [1] : vector<64x64xf32> to vector<64xf32>
    %54 = vector.shape_cast %53 : vector<64xf32> to vector<64x1xf32>
    %55 = vector.broadcast %54 : vector<64x1xf32> to vector<64x64xf32>
    %56 = arith.divf %52, %55 : vector<64x64xf32>
    %57 = arith.truncf %56 : vector<64x64xf32> to vector<64x64xbf16>
    %cst_22 = arith.constant dense<0.000000e+00> : vector<64x32xf32>
    %58 = tpu.matmul %57, %44, %cst_22 {dimension_numbers = #tpu.dot_dimension_numbers<[1], [0], [0], [1], [0, 0, 1, 1], [], []>} : vector<64x64xbf16>, vector<64x32xbf16>, vector<64x32xf32> -> vector<64x32xf32>
    %59 = arith.truncf %58 : vector<64x32xf32> to vector<64x32xbf16>
    %c0_23 = arith.constant 0 : index
    %c32 = arith.constant 32 : index
    %c0_24 = arith.constant 0 : index
    %60 = vector.load %arg4[%c0_23, %c32, %c0_24] : memref<2x128x128xbf16, #tpu.memory_space<vmem>>, vector<1x32x128xbf16>
    %61 = vector.shape_cast %60 : vector<1x32x128xbf16> to vector<32x128xbf16>
    %cst_25 = arith.constant dense<0.000000e+00> : vector<64x128xf32>
    %62 = tpu.matmul %59, %61, %cst_25 {dimension_numbers = #tpu.dot_dimension_numbers<[1], [0], [0], [1], [0, 0, 1, 1], [], []>} : vector<64x32xbf16>, vector<32x128xbf16>, vector<64x128xf32> -> vector<64x128xf32>
    %63 = arith.addf %38, %62 : vector<64x128xf32>
    %64 = vector.extract_strided_slice %10 {offsets = [0, 64], sizes = [64, 32], strides = [1, 1]} : vector<64x128xf32> to vector<64x32xf32>
    %65 = arith.truncf %64 : vector<64x32xf32> to vector<64x32xbf16>
    %66 = vector.extract_strided_slice %11 {offsets = [0, 64], sizes = [64, 32], strides = [1, 1]} : vector<64x128xf32> to vector<64x32xf32>
    %67 = arith.truncf %66 : vector<64x32xf32> to vector<64x32xbf16>
    %68 = vector.extract_strided_slice %12 {offsets = [0, 64], sizes = [64, 32], strides = [1, 1]} : vector<64x128xf32> to vector<64x32xf32>
    %69 = arith.truncf %68 : vector<64x32xf32> to vector<64x32xbf16>
    %cst_26 = arith.constant dense<0.000000e+00> : vector<64x64xf32>
    %70 = tpu.matmul %65, %67, %cst_26 {dimension_numbers = #tpu.dot_dimension_numbers<[1], [1], [0], [0], [0, 0, 1, 0], [], []>} : vector<64x32xbf16>, vector<64x32xbf16>, vector<64x64xf32> -> vector<64x64xf32>
    %cst_27 = arith.constant 0.176776692 : f32
    %71 = vector.broadcast %cst_27 : f32 to vector<64x64xf32>
    %72 = arith.mulf %70, %71 : vector<64x64xf32>
    %cst_28 = arith.constant dense<0xFF800000> : vector<64xf32>
    %73 = vector.multi_reduction <maximumf>, %72, %cst_28 [1] : vector<64x64xf32> to vector<64xf32>
    %74 = vector.shape_cast %73 : vector<64xf32> to vector<64x1xf32>
    %75 = vector.broadcast %74 : vector<64x1xf32> to vector<64x64xf32>
    %76 = arith.subf %72, %75 : vector<64x64xf32>
    %77 = math.exp %76 : vector<64x64xf32>
    %cst_29 = arith.constant dense<0.000000e+00> : vector<64xf32>
    %78 = vector.multi_reduction <add>, %77, %cst_29 [1] : vector<64x64xf32> to vector<64xf32>
    %79 = vector.shape_cast %78 : vector<64xf32> to vector<64x1xf32>
    %80 = vector.broadcast %79 : vector<64x1xf32> to vector<64x64xf32>
    %81 = arith.divf %77, %80 : vector<64x64xf32>
    %82 = arith.truncf %81 : vector<64x64xf32> to vector<64x64xbf16>
    %cst_30 = arith.constant dense<0.000000e+00> : vector<64x32xf32>
    %83 = tpu.matmul %82, %69, %cst_30 {dimension_numbers = #tpu.dot_dimension_numbers<[1], [0], [0], [1], [0, 0, 1, 1], [], []>} : vector<64x64xbf16>, vector<64x32xbf16>, vector<64x32xf32> -> vector<64x32xf32>
    %84 = arith.truncf %83 : vector<64x32xf32> to vector<64x32xbf16>
    %c0_31 = arith.constant 0 : index
    %c64 = arith.constant 64 : index
    %c0_32 = arith.constant 0 : index
    %85 = vector.load %arg4[%c0_31, %c64, %c0_32] : memref<2x128x128xbf16, #tpu.memory_space<vmem>>, vector<1x32x128xbf16>
    %86 = vector.shape_cast %85 : vector<1x32x128xbf16> to vector<32x128xbf16>
    %cst_33 = arith.constant dense<0.000000e+00> : vector<64x128xf32>
    %87 = tpu.matmul %84, %86, %cst_33 {dimension_numbers = #tpu.dot_dimension_numbers<[1], [0], [0], [1], [0, 0, 1, 1], [], []>} : vector<64x32xbf16>, vector<32x128xbf16>, vector<64x128xf32> -> vector<64x128xf32>
    %88 = arith.addf %63, %87 : vector<64x128xf32>
    %89 = vector.extract_strided_slice %10 {offsets = [0, 96], sizes = [64, 32], strides = [1, 1]} : vector<64x128xf32> to vector<64x32xf32>
    %90 = arith.truncf %89 : vector<64x32xf32> to vector<64x32xbf16>
    %91 = vector.extract_strided_slice %11 {offsets = [0, 96], sizes = [64, 32], strides = [1, 1]} : vector<64x128xf32> to vector<64x32xf32>
    %92 = arith.truncf %91 : vector<64x32xf32> to vector<64x32xbf16>
    %93 = vector.extract_strided_slice %12 {offsets = [0, 96], sizes = [64, 32], strides = [1, 1]} : vector<64x128xf32> to vector<64x32xf32>
    %94 = arith.truncf %93 : vector<64x32xf32> to vector<64x32xbf16>
    %cst_34 = arith.constant dense<0.000000e+00> : vector<64x64xf32>
    %95 = tpu.matmul %90, %92, %cst_34 {dimension_numbers = #tpu.dot_dimension_numbers<[1], [1], [0], [0], [0, 0, 1, 0], [], []>} : vector<64x32xbf16>, vector<64x32xbf16>, vector<64x64xf32> -> vector<64x64xf32>
    %cst_35 = arith.constant 0.176776692 : f32
    %96 = vector.broadcast %cst_35 : f32 to vector<64x64xf32>
    %97 = arith.mulf %95, %96 : vector<64x64xf32>
    %cst_36 = arith.constant dense<0xFF800000> : vector<64xf32>
    %98 = vector.multi_reduction <maximumf>, %97, %cst_36 [1] : vector<64x64xf32> to vector<64xf32>
    %99 = vector.shape_cast %98 : vector<64xf32> to vector<64x1xf32>
    %100 = vector.broadcast %99 : vector<64x1xf32> to vector<64x64xf32>
    %101 = arith.subf %97, %100 : vector<64x64xf32>
    %102 = math.exp %101 : vector<64x64xf32>
    %cst_37 = arith.constant dense<0.000000e+00> : vector<64xf32>
    %103 = vector.multi_reduction <add>, %102, %cst_37 [1] : vector<64x64xf32> to vector<64xf32>
    %104 = vector.shape_cast %103 : vector<64xf32> to vector<64x1xf32>
    %105 = vector.broadcast %104 : vector<64x1xf32> to vector<64x64xf32>
    %106 = arith.divf %102, %105 : vector<64x64xf32>
    %107 = arith.truncf %106 : vector<64x64xf32> to vector<64x64xbf16>
    %cst_38 = arith.constant dense<0.000000e+00> : vector<64x32xf32>
    %108 = tpu.matmul %107, %94, %cst_38 {dimension_numbers = #tpu.dot_dimension_numbers<[1], [0], [0], [1], [0, 0, 1, 1], [], []>} : vector<64x64xbf16>, vector<64x32xbf16>, vector<64x32xf32> -> vector<64x32xf32>
    %109 = arith.truncf %108 : vector<64x32xf32> to vector<64x32xbf16>
    %c0_39 = arith.constant 0 : index
    %c96 = arith.constant 96 : index
    %c0_40 = arith.constant 0 : index
    %110 = vector.load %arg4[%c0_39, %c96, %c0_40] : memref<2x128x128xbf16, #tpu.memory_space<vmem>>, vector<1x32x128xbf16>
    %111 = vector.shape_cast %110 : vector<1x32x128xbf16> to vector<32x128xbf16>
    %cst_41 = arith.constant dense<0.000000e+00> : vector<64x128xf32>
    %112 = tpu.matmul %109, %111, %cst_41 {dimension_numbers = #tpu.dot_dimension_numbers<[1], [0], [0], [1], [0, 0, 1, 1], [], []>} : vector<64x32xbf16>, vector<32x128xbf16>, vector<64x128xf32> -> vector<64x128xf32>
    %113 = arith.addf %88, %112 : vector<64x128xf32>
    %114 = tpu.concatenate %31, %56, %81, %106 in 1 : vector<64x64xf32>, vector<64x64xf32>, vector<64x64xf32>, vector<64x64xf32> -> vector<64x256xf32>
    %c0_42 = arith.constant 0 : index
    %c0_43 = arith.constant 0 : index
    %c0_44 = arith.constant 0 : index
    %c0_45 = arith.constant 0 : index
    %115 = vector.load %arg15[%c0_42, %c0_43, %c0_44, %c0_45] : memref<1x2x64x256xf32, #tpu.memory_space<vmem>>, vector<1x1x64x256xf32>
    %116 = vector.shape_cast %115 : vector<1x1x64x256xf32> to vector<64x256xf32>
    %117 = vector.shape_cast %114 : vector<64x256xf32> to vector<1x1x64x256xf32>
    tpu.vector_store %arg15[%c0_42, %c0_43, %c0_44, %c0_45], %117 {strides = array<i32>} : memref<1x2x64x256xf32, #tpu.memory_space<vmem>>, vector<1x1x64x256xf32>,
    %c0_46 = arith.constant 0 : index
    %c0_47 = arith.constant 0 : index
    %c0_48 = arith.constant 0 : index
    %118 = vector.load %arg5[%c0_46, %c0_47, %c0_48] : memref<2x1x128xf32, #tpu.memory_space<vmem>>, vector<1x1x128xf32>
    %119 = vector.shape_cast %118 : vector<1x1x128xf32> to vector<1x128xf32>
    %120 = vector.broadcast %119 : vector<1x128xf32> to vector<64x128xf32>
    %121 = arith.addf %113, %120 : vector<64x128xf32>
    %122 = arith.addf %1, %121 : vector<64x128xf32>
    %c0_49 = arith.constant 0 : index
    %c0_50 = arith.constant 0 : index
    %c0_51 = arith.constant 0 : index
    %123 = vector.load %arg6[%c0_49, %c0_50, %c0_51] : memref<2x1x128xf32, #tpu.memory_space<vmem>>, vector<1x1x128xf32>
    %124 = vector.shape_cast %123 : vector<1x1x128xf32> to vector<1x128xf32>
    %c0_52 = arith.constant 0 : index
    %c0_53 = arith.constant 0 : index
    %c0_54 = arith.constant 0 : index
    %125 = vector.load %arg7[%c0_52, %c0_53, %c0_54] : memref<2x1x128xf32, #tpu.memory_space<vmem>>, vector<1x1x128xf32>
    %126 = vector.shape_cast %125 : vector<1x1x128xf32> to vector<1x128xf32>
    %cst_55 = arith.constant dense<0.000000e+00> : vector<64xf32>
    %127 = vector.multi_reduction <add>, %122, %cst_55 [1] : vector<64x128xf32> to vector<64xf32>
    %128 = vector.shape_cast %127 : vector<64xf32> to vector<64x1xf32>
    %cst_56 = arith.constant 1.280000e+02 : f32
    %129 = vector.broadcast %cst_56 : f32 to vector<64x1xf32>
    %130 = arith.divf %128, %129 : vector<64x1xf32>
    %131 = vector.broadcast %130 : vector<64x1xf32> to vector<64x128xf32>
    %132 = arith.subf %122, %131 : vector<64x128xf32>
    %133 = arith.mulf %132, %132 : vector<64x128xf32>
    %cst_57 = arith.constant dense<0.000000e+00> : vector<64xf32>
    %134 = vector.multi_reduction <add>, %133, %cst_57 [1] : vector<64x128xf32> to vector<64xf32>
    %135 = vector.shape_cast %134 : vector<64xf32> to vector<64x1xf32>
    %cst_58 = arith.constant 1.280000e+02 : f32
    %136 = vector.broadcast %cst_58 : f32 to vector<64x1xf32>
    %137 = arith.divf %135, %136 : vector<64x1xf32>
    %138 = vector.broadcast %130 : vector<64x1xf32> to vector<64x128xf32>
    %139 = arith.subf %122, %138 : vector<64x128xf32>
    %cst_59 = arith.constant 9.99999974E-6 : f32
    %140 = vector.broadcast %cst_59 : f32 to vector<64x1xf32>
    %141 = arith.addf %137, %140 : vector<64x1xf32>
    %142 = math.rsqrt %141 : vector<64x1xf32>
    %143 = vector.broadcast %142 : vector<64x1xf32> to vector<64x128xf32>
    %144 = arith.mulf %139, %143 : vector<64x128xf32>
    %145 = vector.broadcast %124 : vector<1x128xf32> to vector<64x128xf32>
    %146 = arith.mulf %144, %145 : vector<64x128xf32>
    %147 = vector.broadcast %126 : vector<1x128xf32> to vector<64x128xf32>
    %148 = arith.addf %146, %147 : vector<64x128xf32>
    %149 = arith.truncf %148 : vector<64x128xf32> to vector<64x128xbf16>
    %cst_60 = arith.constant 0.000000e+00 : f32
    %150 = vector.broadcast %cst_60 : f32 to vector<64x128xf32>
    %c0_61 = arith.constant 0 : index
    %c0_62 = arith.constant 0 : index
    %c0_63 = arith.constant 0 : index
    %151 = vector.load %arg8[%c0_61, %c0_62, %c0_63] : memref<2x128x2048xbf16, #tpu.memory_space<vmem>>, vector<1x128x512xbf16>
    %152 = vector.shape_cast %151 : vector<1x128x512xbf16> to vector<128x512xbf16>
    %cst_64 = arith.constant dense<0.000000e+00> : vector<64x512xf32>
    %153 = tpu.matmul %149, %152, %cst_64 {dimension_numbers = #tpu.dot_dimension_numbers<[1], [0], [0], [1], [0, 0, 1, 1], [], []>} : vector<64x128xbf16>, vector<128x512xbf16>, vector<64x512xf32> -> vector<64x512xf32>
    %c0_65 = arith.constant 0 : index
    %c0_66 = arith.constant 0 : index
    %c0_67 = arith.constant 0 : index
    %154 = vector.load %arg9[%c0_65, %c0_66, %c0_67] : memref<2x1x2048xf32, #tpu.memory_space<vmem>>, vector<1x1x512xf32>
    %155 = vector.shape_cast %154 : vector<1x1x512xf32> to vector<1x512xf32>
    %156 = vector.broadcast %155 : vector<1x512xf32> to vector<64x512xf32>
    %157 = arith.addf %153, %156 : vector<64x512xf32>
    %cst_68 = arith.constant 0.000000e+00 : f32
    %158 = vector.broadcast %cst_68 : f32 to vector<64x512xf32>
    %159 = arith.maximumf %157, %158 : vector<64x512xf32>
    %160 = arith.truncf %159 : vector<64x512xf32> to vector<64x512xbf16>
    %c0_69 = arith.constant 0 : index
    %c0_70 = arith.constant 0 : index
    %c0_71 = arith.constant 0 : index
    %161 = vector.load %arg10[%c0_69, %c0_70, %c0_71] : memref<2x2048x128xbf16, #tpu.memory_space<vmem>>, vector<1x512x128xbf16>
    %162 = vector.shape_cast %161 : vector<1x512x128xbf16> to vector<512x128xbf16>
    %cst_72 = arith.constant dense<0.000000e+00> : vector<64x128xf32>
    %163 = tpu.matmul %160, %162, %cst_72 {dimension_numbers = #tpu.dot_dimension_numbers<[1], [0], [0], [1], [0, 0, 1, 1], [], []>} : vector<64x512xbf16>, vector<512x128xbf16>, vector<64x128xf32> -> vector<64x128xf32>
    %164 = arith.addf %150, %163 : vector<64x128xf32>
    %c0_73 = arith.constant 0 : index
    %c0_74 = arith.constant 0 : index
    %c512 = arith.constant 512 : index
    %165 = vector.load %arg8[%c0_73, %c0_74, %c512] : memref<2x128x2048xbf16, #tpu.memory_space<vmem>>, vector<1x128x512xbf16>
    %166 = vector.shape_cast %165 : vector<1x128x512xbf16> to vector<128x512xbf16>
    %cst_75 = arith.constant dense<0.000000e+00> : vector<64x512xf32>
    %167 = tpu.matmul %149, %166, %cst_75 {dimension_numbers = #tpu.dot_dimension_numbers<[1], [0], [0], [1], [0, 0, 1, 1], [], []>} : vector<64x128xbf16>, vector<128x512xbf16>, vector<64x512xf32> -> vector<64x512xf32>
    %c0_76 = arith.constant 0 : index
    %c0_77 = arith.constant 0 : index
    %c512_78 = arith.constant 512 : index
    %168 = vector.load %arg9[%c0_76, %c0_77, %c512_78] : memref<2x1x2048xf32, #tpu.memory_space<vmem>>, vector<1x1x512xf32>
    %169 = vector.shape_cast %168 : vector<1x1x512xf32> to vector<1x512xf32>
    %170 = vector.broadcast %169 : vector<1x512xf32> to vector<64x512xf32>
    %171 = arith.addf %167, %170 : vector<64x512xf32>
    %cst_79 = arith.constant 0.000000e+00 : f32
    %172 = vector.broadcast %cst_79 : f32 to vector<64x512xf32>
    %173 = arith.maximumf %171, %172 : vector<64x512xf32>
    %174 = arith.truncf %173 : vector<64x512xf32> to vector<64x512xbf16>
    %c0_80 = arith.constant 0 : index
    %c512_81 = arith.constant 512 : index
    %c0_82 = arith.constant 0 : index
    %175 = vector.load %arg10[%c0_80, %c512_81, %c0_82] : memref<2x2048x128xbf16, #tpu.memory_space<vmem>>, vector<1x512x128xbf16>
    %176 = vector.shape_cast %175 : vector<1x512x128xbf16> to vector<512x128xbf16>
    %cst_83 = arith.constant dense<0.000000e+00> : vector<64x128xf32>
    %177 = tpu.matmul %174, %176, %cst_83 {dimension_numbers = #tpu.dot_dimension_numbers<[1], [0], [0], [1], [0, 0, 1, 1], [], []>} : vector<64x512xbf16>, vector<512x128xbf16>, vector<64x128xf32> -> vector<64x128xf32>
    %178 = arith.addf %164, %177 : vector<64x128xf32>
    %c0_84 = arith.constant 0 : index
    %c0_85 = arith.constant 0 : index
    %c1024 = arith.constant 1024 : index
    %179 = vector.load %arg8[%c0_84, %c0_85, %c1024] : memref<2x128x2048xbf16, #tpu.memory_space<vmem>>, vector<1x128x512xbf16>
    %180 = vector.shape_cast %179 : vector<1x128x512xbf16> to vector<128x512xbf16>
    %cst_86 = arith.constant dense<0.000000e+00> : vector<64x512xf32>
    %181 = tpu.matmul %149, %180, %cst_86 {dimension_numbers = #tpu.dot_dimension_numbers<[1], [0], [0], [1], [0, 0, 1, 1], [], []>} : vector<64x128xbf16>, vector<128x512xbf16>, vector<64x512xf32> -> vector<64x512xf32>
    %c0_87 = arith.constant 0 : index
    %c0_88 = arith.constant 0 : index
    %c1024_89 = arith.constant 1024 : index
    %182 = vector.load %arg9[%c0_87, %c0_88, %c1024_89] : memref<2x1x2048xf32, #tpu.memory_space<vmem>>, vector<1x1x512xf32>
    %183 = vector.shape_cast %182 : vector<1x1x512xf32> to vector<1x512xf32>
    %184 = vector.broadcast %183 : vector<1x512xf32> to vector<64x512xf32>
    %185 = arith.addf %181, %184 : vector<64x512xf32>
    %cst_90 = arith.constant 0.000000e+00 : f32
    %186 = vector.broadcast %cst_90 : f32 to vector<64x512xf32>
    %187 = arith.maximumf %185, %186 : vector<64x512xf32>
    %188 = arith.truncf %187 : vector<64x512xf32> to vector<64x512xbf16>
    %c0_91 = arith.constant 0 : index
    %c1024_92 = arith.constant 1024 : index
    %c0_93 = arith.constant 0 : index
    %189 = vector.load %arg10[%c0_91, %c1024_92, %c0_93] : memref<2x2048x128xbf16, #tpu.memory_space<vmem>>, vector<1x512x128xbf16>
    %190 = vector.shape_cast %189 : vector<1x512x128xbf16> to vector<512x128xbf16>
    %cst_94 = arith.constant dense<0.000000e+00> : vector<64x128xf32>
    %191 = tpu.matmul %188, %190, %cst_94 {dimension_numbers = #tpu.dot_dimension_numbers<[1], [0], [0], [1], [0, 0, 1, 1], [], []>} : vector<64x512xbf16>, vector<512x128xbf16>, vector<64x128xf32> -> vector<64x128xf32>
    %192 = arith.addf %178, %191 : vector<64x128xf32>
    %c0_95 = arith.constant 0 : index
    %c0_96 = arith.constant 0 : index
    %c1536 = arith.constant 1536 : index
    %193 = vector.load %arg8[%c0_95, %c0_96, %c1536] : memref<2x128x2048xbf16, #tpu.memory_space<vmem>>, vector<1x128x512xbf16>
    %194 = vector.shape_cast %193 : vector<1x128x512xbf16> to vector<128x512xbf16>
    %cst_97 = arith.constant dense<0.000000e+00> : vector<64x512xf32>
    %195 = tpu.matmul %149, %194, %cst_97 {dimension_numbers = #tpu.dot_dimension_numbers<[1], [0], [0], [1], [0, 0, 1, 1], [], []>} : vector<64x128xbf16>, vector<128x512xbf16>, vector<64x512xf32> -> vector<64x512xf32>
    %c0_98 = arith.constant 0 : index
    %c0_99 = arith.constant 0 : index
    %c1536_100 = arith.constant 1536 : index
    %196 = vector.load %arg9[%c0_98, %c0_99, %c1536_100] : memref<2x1x2048xf32, #tpu.memory_space<vmem>>, vector<1x1x512xf32>
    %197 = vector.shape_cast %196 : vector<1x1x512xf32> to vector<1x512xf32>
    %198 = vector.broadcast %197 : vector<1x512xf32> to vector<64x512xf32>
    %199 = arith.addf %195, %198 : vector<64x512xf32>
    %cst_101 = arith.constant 0.000000e+00 : f32
    %200 = vector.broadcast %cst_101 : f32 to vector<64x512xf32>
    %201 = arith.maximumf %199, %200 : vector<64x512xf32>
    %202 = arith.truncf %201 : vector<64x512xf32> to vector<64x512xbf16>
    %c0_102 = arith.constant 0 : index
    %c1536_103 = arith.constant 1536 : index
    %c0_104 = arith.constant 0 : index
    %203 = vector.load %arg10[%c0_102, %c1536_103, %c0_104] : memref<2x2048x128xbf16, #tpu.memory_space<vmem>>, vector<1x512x128xbf16>
    %204 = vector.shape_cast %203 : vector<1x512x128xbf16> to vector<512x128xbf16>
    %cst_105 = arith.constant dense<0.000000e+00> : vector<64x128xf32>
    %205 = tpu.matmul %202, %204, %cst_105 {dimension_numbers = #tpu.dot_dimension_numbers<[1], [0], [0], [1], [0, 0, 1, 1], [], []>} : vector<64x512xbf16>, vector<512x128xbf16>, vector<64x128xf32> -> vector<64x128xf32>
    %206 = arith.addf %192, %205 : vector<64x128xf32>
    %c0_106 = arith.constant 0 : index
    %c0_107 = arith.constant 0 : index
    %c0_108 = arith.constant 0 : index
    %207 = vector.load %arg11[%c0_106, %c0_107, %c0_108] : memref<2x1x128xf32, #tpu.memory_space<vmem>>, vector<1x1x128xf32>
    %208 = vector.shape_cast %207 : vector<1x1x128xf32> to vector<1x128xf32>
    %209 = vector.broadcast %208 : vector<1x128xf32> to vector<64x128xf32>
    %210 = arith.addf %206, %209 : vector<64x128xf32>
    %211 = arith.addf %148, %210 : vector<64x128xf32>
    %c0_109 = arith.constant 0 : index
    %c0_110 = arith.constant 0 : index
    %c0_111 = arith.constant 0 : index
    %212 = vector.load %arg12[%c0_109, %c0_110, %c0_111] : memref<2x1x128xf32, #tpu.memory_space<vmem>>, vector<1x1x128xf32>
    %213 = vector.shape_cast %212 : vector<1x1x128xf32> to vector<1x128xf32>
    %c0_112 = arith.constant 0 : index
    %c0_113 = arith.constant 0 : index
    %c0_114 = arith.constant 0 : index
    %214 = vector.load %arg13[%c0_112, %c0_113, %c0_114] : memref<2x1x128xf32, #tpu.memory_space<vmem>>, vector<1x1x128xf32>
    %215 = vector.shape_cast %214 : vector<1x1x128xf32> to vector<1x128xf32>
    %cst_115 = arith.constant dense<0.000000e+00> : vector<64xf32>
    %216 = vector.multi_reduction <add>, %211, %cst_115 [1] : vector<64x128xf32> to vector<64xf32>
    %217 = vector.shape_cast %216 : vector<64xf32> to vector<64x1xf32>
    %cst_116 = arith.constant 1.280000e+02 : f32
    %218 = vector.broadcast %cst_116 : f32 to vector<64x1xf32>
    %219 = arith.divf %217, %218 : vector<64x1xf32>
    %220 = vector.broadcast %219 : vector<64x1xf32> to vector<64x128xf32>
    %221 = arith.subf %211, %220 : vector<64x128xf32>
    %222 = arith.mulf %221, %221 : vector<64x128xf32>
    %cst_117 = arith.constant dense<0.000000e+00> : vector<64xf32>
    %223 = vector.multi_reduction <add>, %222, %cst_117 [1] : vector<64x128xf32> to vector<64xf32>
    %224 = vector.shape_cast %223 : vector<64xf32> to vector<64x1xf32>
    %cst_118 = arith.constant 1.280000e+02 : f32
    %225 = vector.broadcast %cst_118 : f32 to vector<64x1xf32>
    %226 = arith.divf %224, %225 : vector<64x1xf32>
    %227 = vector.broadcast %219 : vector<64x1xf32> to vector<64x128xf32>
    %228 = arith.subf %211, %227 : vector<64x128xf32>
    %cst_119 = arith.constant 9.99999974E-6 : f32
    %229 = vector.broadcast %cst_119 : f32 to vector<64x1xf32>
    %230 = arith.addf %226, %229 : vector<64x1xf32>
    %231 = math.rsqrt %230 : vector<64x1xf32>
    %232 = vector.broadcast %231 : vector<64x1xf32> to vector<64x128xf32>
    %233 = arith.mulf %228, %232 : vector<64x128xf32>
    %234 = vector.broadcast %213 : vector<1x128xf32> to vector<64x128xf32>
    %235 = arith.mulf %233, %234 : vector<64x128xf32>
    %236 = vector.broadcast %215 : vector<1x128xf32> to vector<64x128xf32>
    %237 = arith.addf %235, %236 : vector<64x128xf32>
    %238 = arith.truncf %237 : vector<64x128xf32> to vector<64x128xbf16>
    %c1 = arith.constant 1 : index
    %c0_120 = arith.constant 0 : index
    %c0_121 = arith.constant 0 : index
    %239 = vector.load %arg2[%c1, %c0_120, %c0_121] : memref<2x128x384xbf16, #tpu.memory_space<vmem>>, vector<1x128x384xbf16>
    %240 = vector.shape_cast %239 : vector<1x128x384xbf16> to vector<128x384xbf16>
    %cst_122 = arith.constant dense<0.000000e+00> : vector<64x384xf32>
    %241 = tpu.matmul %238, %240, %cst_122 {dimension_numbers = #tpu.dot_dimension_numbers<[1], [0], [0], [1], [0, 0, 1, 1], [], []>} : vector<64x128xbf16>, vector<128x384xbf16>, vector<64x384xf32> -> vector<64x384xf32>
    %c1_123 = arith.constant 1 : index
    %c0_124 = arith.constant 0 : index
    %c0_125 = arith.constant 0 : index
    %242 = vector.load %arg3[%c1_123, %c0_124, %c0_125] : memref<2x1x384xf32, #tpu.memory_space<vmem>>, vector<1x1x384xf32>
    %243 = vector.shape_cast %242 : vector<1x1x384xf32> to vector<1x384xf32>
    %244 = vector.broadcast %243 : vector<1x384xf32> to vector<64x384xf32>
    %245 = arith.addf %241, %244 : vector<64x384xf32>
    %246 = vector.extract_strided_slice %245 {offsets = [0, 0], sizes = [64, 128], strides = [1, 1]} : vector<64x384xf32> to vector<64x128xf32>
    %247 = vector.extract_strided_slice %245 {offsets = [0, 128], sizes = [64, 128], strides = [1, 1]} : vector<64x384xf32> to vector<64x128xf32>
    %248 = vector.extract_strided_slice %245 {offsets = [0, 256], sizes = [64, 128], strides = [1, 1]} : vector<64x384xf32> to vector<64x128xf32>
    %cst_126 = arith.constant 0.000000e+00 : f32
    %249 = vector.broadcast %cst_126 : f32 to vector<64x128xf32>
    %250 = vector.extract_strided_slice %246 {offsets = [0, 0], sizes = [64, 32], strides = [1, 1]} : vector<64x128xf32> to vector<64x32xf32>
    %251 = arith.truncf %250 : vector<64x32xf32> to vector<64x32xbf16>
    %252 = vector.extract_strided_slice %247 {offsets = [0, 0], sizes = [64, 32], strides = [1, 1]} : vector<64x128xf32> to vector<64x32xf32>
    %253 = arith.truncf %252 : vector<64x32xf32> to vector<64x32xbf16>
    %254 = vector.extract_strided_slice %248 {offsets = [0, 0], sizes = [64, 32], strides = [1, 1]} : vector<64x128xf32> to vector<64x32xf32>
    %255 = arith.truncf %254 : vector<64x32xf32> to vector<64x32xbf16>
    %cst_127 = arith.constant dense<0.000000e+00> : vector<64x64xf32>
    %256 = tpu.matmul %251, %253, %cst_127 {dimension_numbers = #tpu.dot_dimension_numbers<[1], [1], [0], [0], [0, 0, 1, 0], [], []>} : vector<64x32xbf16>, vector<64x32xbf16>, vector<64x64xf32> -> vector<64x64xf32>
    %cst_128 = arith.constant 0.176776692 : f32
    %257 = vector.broadcast %cst_128 : f32 to vector<64x64xf32>
    %258 = arith.mulf %256, %257 : vector<64x64xf32>
    %cst_129 = arith.constant dense<0xFF800000> : vector<64xf32>
    %259 = vector.multi_reduction <maximumf>, %258, %cst_129 [1] : vector<64x64xf32> to vector<64xf32>
    %260 = vector.shape_cast %259 : vector<64xf32> to vector<64x1xf32>
    %261 = vector.broadcast %260 : vector<64x1xf32> to vector<64x64xf32>
    %262 = arith.subf %258, %261 : vector<64x64xf32>
    %263 = math.exp %262 : vector<64x64xf32>
    %cst_130 = arith.constant dense<0.000000e+00> : vector<64xf32>
    %264 = vector.multi_reduction <add>, %263, %cst_130 [1] : vector<64x64xf32> to vector<64xf32>
    %265 = vector.shape_cast %264 : vector<64xf32> to vector<64x1xf32>
    %266 = vector.broadcast %265 : vector<64x1xf32> to vector<64x64xf32>
    %267 = arith.divf %263, %266 : vector<64x64xf32>
    %268 = arith.truncf %267 : vector<64x64xf32> to vector<64x64xbf16>
    %cst_131 = arith.constant dense<0.000000e+00> : vector<64x32xf32>
    %269 = tpu.matmul %268, %255, %cst_131 {dimension_numbers = #tpu.dot_dimension_numbers<[1], [0], [0], [1], [0, 0, 1, 1], [], []>} : vector<64x64xbf16>, vector<64x32xbf16>, vector<64x32xf32> -> vector<64x32xf32>
    %270 = arith.truncf %269 : vector<64x32xf32> to vector<64x32xbf16>
    %c1_132 = arith.constant 1 : index
    %c0_133 = arith.constant 0 : index
    %c0_134 = arith.constant 0 : index
    %271 = vector.load %arg4[%c1_132, %c0_133, %c0_134] : memref<2x128x128xbf16, #tpu.memory_space<vmem>>, vector<1x32x128xbf16>
    %272 = vector.shape_cast %271 : vector<1x32x128xbf16> to vector<32x128xbf16>
    %cst_135 = arith.constant dense<0.000000e+00> : vector<64x128xf32>
    %273 = tpu.matmul %270, %272, %cst_135 {dimension_numbers = #tpu.dot_dimension_numbers<[1], [0], [0], [1], [0, 0, 1, 1], [], []>} : vector<64x32xbf16>, vector<32x128xbf16>, vector<64x128xf32> -> vector<64x128xf32>
    %274 = arith.addf %249, %273 : vector<64x128xf32>
    %275 = vector.extract_strided_slice %246 {offsets = [0, 32], sizes = [64, 32], strides = [1, 1]} : vector<64x128xf32> to vector<64x32xf32>
    %276 = arith.truncf %275 : vector<64x32xf32> to vector<64x32xbf16>
    %277 = vector.extract_strided_slice %247 {offsets = [0, 32], sizes = [64, 32], strides = [1, 1]} : vector<64x128xf32> to vector<64x32xf32>
    %278 = arith.truncf %277 : vector<64x32xf32> to vector<64x32xbf16>
    %279 = vector.extract_strided_slice %248 {offsets = [0, 32], sizes = [64, 32], strides = [1, 1]} : vector<64x128xf32> to vector<64x32xf32>
    %280 = arith.truncf %279 : vector<64x32xf32> to vector<64x32xbf16>
    %cst_136 = arith.constant dense<0.000000e+00> : vector<64x64xf32>
    %281 = tpu.matmul %276, %278, %cst_136 {dimension_numbers = #tpu.dot_dimension_numbers<[1], [1], [0], [0], [0, 0, 1, 0], [], []>} : vector<64x32xbf16>, vector<64x32xbf16>, vector<64x64xf32> -> vector<64x64xf32>
    %cst_137 = arith.constant 0.176776692 : f32
    %282 = vector.broadcast %cst_137 : f32 to vector<64x64xf32>
    %283 = arith.mulf %281, %282 : vector<64x64xf32>
    %cst_138 = arith.constant dense<0xFF800000> : vector<64xf32>
    %284 = vector.multi_reduction <maximumf>, %283, %cst_138 [1] : vector<64x64xf32> to vector<64xf32>
    %285 = vector.shape_cast %284 : vector<64xf32> to vector<64x1xf32>
    %286 = vector.broadcast %285 : vector<64x1xf32> to vector<64x64xf32>
    %287 = arith.subf %283, %286 : vector<64x64xf32>
    %288 = math.exp %287 : vector<64x64xf32>
    %cst_139 = arith.constant dense<0.000000e+00> : vector<64xf32>
    %289 = vector.multi_reduction <add>, %288, %cst_139 [1] : vector<64x64xf32> to vector<64xf32>
    %290 = vector.shape_cast %289 : vector<64xf32> to vector<64x1xf32>
    %291 = vector.broadcast %290 : vector<64x1xf32> to vector<64x64xf32>
    %292 = arith.divf %288, %291 : vector<64x64xf32>
    %293 = arith.truncf %292 : vector<64x64xf32> to vector<64x64xbf16>
    %cst_140 = arith.constant dense<0.000000e+00> : vector<64x32xf32>
    %294 = tpu.matmul %293, %280, %cst_140 {dimension_numbers = #tpu.dot_dimension_numbers<[1], [0], [0], [1], [0, 0, 1, 1], [], []>} : vector<64x64xbf16>, vector<64x32xbf16>, vector<64x32xf32> -> vector<64x32xf32>
    %295 = arith.truncf %294 : vector<64x32xf32> to vector<64x32xbf16>
    %c1_141 = arith.constant 1 : index
    %c32_142 = arith.constant 32 : index
    %c0_143 = arith.constant 0 : index
    %296 = vector.load %arg4[%c1_141, %c32_142, %c0_143] : memref<2x128x128xbf16, #tpu.memory_space<vmem>>, vector<1x32x128xbf16>
    %297 = vector.shape_cast %296 : vector<1x32x128xbf16> to vector<32x128xbf16>
    %cst_144 = arith.constant dense<0.000000e+00> : vector<64x128xf32>
    %298 = tpu.matmul %295, %297, %cst_144 {dimension_numbers = #tpu.dot_dimension_numbers<[1], [0], [0], [1], [0, 0, 1, 1], [], []>} : vector<64x32xbf16>, vector<32x128xbf16>, vector<64x128xf32> -> vector<64x128xf32>
    %299 = arith.addf %274, %298 : vector<64x128xf32>
    %300 = vector.extract_strided_slice %246 {offsets = [0, 64], sizes = [64, 32], strides = [1, 1]} : vector<64x128xf32> to vector<64x32xf32>
    %301 = arith.truncf %300 : vector<64x32xf32> to vector<64x32xbf16>
    %302 = vector.extract_strided_slice %247 {offsets = [0, 64], sizes = [64, 32], strides = [1, 1]} : vector<64x128xf32> to vector<64x32xf32>
    %303 = arith.truncf %302 : vector<64x32xf32> to vector<64x32xbf16>
    %304 = vector.extract_strided_slice %248 {offsets = [0, 64], sizes = [64, 32], strides = [1, 1]} : vector<64x128xf32> to vector<64x32xf32>
    %305 = arith.truncf %304 : vector<64x32xf32> to vector<64x32xbf16>
    %cst_145 = arith.constant dense<0.000000e+00> : vector<64x64xf32>
    %306 = tpu.matmul %301, %303, %cst_145 {dimension_numbers = #tpu.dot_dimension_numbers<[1], [1], [0], [0], [0, 0, 1, 0], [], []>} : vector<64x32xbf16>, vector<64x32xbf16>, vector<64x64xf32> -> vector<64x64xf32>
    %cst_146 = arith.constant 0.176776692 : f32
    %307 = vector.broadcast %cst_146 : f32 to vector<64x64xf32>
    %308 = arith.mulf %306, %307 : vector<64x64xf32>
    %cst_147 = arith.constant dense<0xFF800000> : vector<64xf32>
    %309 = vector.multi_reduction <maximumf>, %308, %cst_147 [1] : vector<64x64xf32> to vector<64xf32>
    %310 = vector.shape_cast %309 : vector<64xf32> to vector<64x1xf32>
    %311 = vector.broadcast %310 : vector<64x1xf32> to vector<64x64xf32>
    %312 = arith.subf %308, %311 : vector<64x64xf32>
    %313 = math.exp %312 : vector<64x64xf32>
    %cst_148 = arith.constant dense<0.000000e+00> : vector<64xf32>
    %314 = vector.multi_reduction <add>, %313, %cst_148 [1] : vector<64x64xf32> to vector<64xf32>
    %315 = vector.shape_cast %314 : vector<64xf32> to vector<64x1xf32>
    %316 = vector.broadcast %315 : vector<64x1xf32> to vector<64x64xf32>
    %317 = arith.divf %313, %316 : vector<64x64xf32>
    %318 = arith.truncf %317 : vector<64x64xf32> to vector<64x64xbf16>
    %cst_149 = arith.constant dense<0.000000e+00> : vector<64x32xf32>
    %319 = tpu.matmul %318, %305, %cst_149 {dimension_numbers = #tpu.dot_dimension_numbers<[1], [0], [0], [1], [0, 0, 1, 1], [], []>} : vector<64x64xbf16>, vector<64x32xbf16>, vector<64x32xf32> -> vector<64x32xf32>
    %320 = arith.truncf %319 : vector<64x32xf32> to vector<64x32xbf16>
    %c1_150 = arith.constant 1 : index
    %c64_151 = arith.constant 64 : index
    %c0_152 = arith.constant 0 : index
    %321 = vector.load %arg4[%c1_150, %c64_151, %c0_152] : memref<2x128x128xbf16, #tpu.memory_space<vmem>>, vector<1x32x128xbf16>
    %322 = vector.shape_cast %321 : vector<1x32x128xbf16> to vector<32x128xbf16>
    %cst_153 = arith.constant dense<0.000000e+00> : vector<64x128xf32>
    %323 = tpu.matmul %320, %322, %cst_153 {dimension_numbers = #tpu.dot_dimension_numbers<[1], [0], [0], [1], [0, 0, 1, 1], [], []>} : vector<64x32xbf16>, vector<32x128xbf16>, vector<64x128xf32> -> vector<64x128xf32>
    %324 = arith.addf %299, %323 : vector<64x128xf32>
    %325 = vector.extract_strided_slice %246 {offsets = [0, 96], sizes = [64, 32], strides = [1, 1]} : vector<64x128xf32> to vector<64x32xf32>
    %326 = arith.truncf %325 : vector<64x32xf32> to vector<64x32xbf16>
    %327 = vector.extract_strided_slice %247 {offsets = [0, 96], sizes = [64, 32], strides = [1, 1]} : vector<64x128xf32> to vector<64x32xf32>
    %328 = arith.truncf %327 : vector<64x32xf32> to vector<64x32xbf16>
    %329 = vector.extract_strided_slice %248 {offsets = [0, 96], sizes = [64, 32], strides = [1, 1]} : vector<64x128xf32> to vector<64x32xf32>
    %330 = arith.truncf %329 : vector<64x32xf32> to vector<64x32xbf16>
    %cst_154 = arith.constant dense<0.000000e+00> : vector<64x64xf32>
    %331 = tpu.matmul %326, %328, %cst_154 {dimension_numbers = #tpu.dot_dimension_numbers<[1], [1], [0], [0], [0, 0, 1, 0], [], []>} : vector<64x32xbf16>, vector<64x32xbf16>, vector<64x64xf32> -> vector<64x64xf32>
    %cst_155 = arith.constant 0.176776692 : f32
    %332 = vector.broadcast %cst_155 : f32 to vector<64x64xf32>
    %333 = arith.mulf %331, %332 : vector<64x64xf32>
    %cst_156 = arith.constant dense<0xFF800000> : vector<64xf32>
    %334 = vector.multi_reduction <maximumf>, %333, %cst_156 [1] : vector<64x64xf32> to vector<64xf32>
    %335 = vector.shape_cast %334 : vector<64xf32> to vector<64x1xf32>
    %336 = vector.broadcast %335 : vector<64x1xf32> to vector<64x64xf32>
    %337 = arith.subf %333, %336 : vector<64x64xf32>
    %338 = math.exp %337 : vector<64x64xf32>
    %cst_157 = arith.constant dense<0.000000e+00> : vector<64xf32>
    %339 = vector.multi_reduction <add>, %338, %cst_157 [1] : vector<64x64xf32> to vector<64xf32>
    %340 = vector.shape_cast %339 : vector<64xf32> to vector<64x1xf32>
    %341 = vector.broadcast %340 : vector<64x1xf32> to vector<64x64xf32>
    %342 = arith.divf %338, %341 : vector<64x64xf32>
    %343 = arith.truncf %342 : vector<64x64xf32> to vector<64x64xbf16>
    %cst_158 = arith.constant dense<0.000000e+00> : vector<64x32xf32>
    %344 = tpu.matmul %343, %330, %cst_158 {dimension_numbers = #tpu.dot_dimension_numbers<[1], [0], [0], [1], [0, 0, 1, 1], [], []>} : vector<64x64xbf16>, vector<64x32xbf16>, vector<64x32xf32> -> vector<64x32xf32>
    %345 = arith.truncf %344 : vector<64x32xf32> to vector<64x32xbf16>
    %c1_159 = arith.constant 1 : index
    %c96_160 = arith.constant 96 : index
    %c0_161 = arith.constant 0 : index
    %346 = vector.load %arg4[%c1_159, %c96_160, %c0_161] : memref<2x128x128xbf16, #tpu.memory_space<vmem>>, vector<1x32x128xbf16>
    %347 = vector.shape_cast %346 : vector<1x32x128xbf16> to vector<32x128xbf16>
    %cst_162 = arith.constant dense<0.000000e+00> : vector<64x128xf32>
    %348 = tpu.matmul %345, %347, %cst_162 {dimension_numbers = #tpu.dot_dimension_numbers<[1], [0], [0], [1], [0, 0, 1, 1], [], []>} : vector<64x32xbf16>, vector<32x128xbf16>, vector<64x128xf32> -> vector<64x128xf32>
    %349 = arith.addf %324, %348 : vector<64x128xf32>
    %350 = tpu.concatenate %267, %292, %317, %342 in 1 : vector<64x64xf32>, vector<64x64xf32>, vector<64x64xf32>, vector<64x64xf32> -> vector<64x256xf32>
    %c0_163 = arith.constant 0 : index
    %c1_164 = arith.constant 1 : index
    %c0_165 = arith.constant 0 : index
    %c0_166 = arith.constant 0 : index
    %351 = vector.load %arg15[%c0_163, %c1_164, %c0_165, %c0_166] : memref<1x2x64x256xf32, #tpu.memory_space<vmem>>, vector<1x1x64x256xf32>
    %352 = vector.shape_cast %351 : vector<1x1x64x256xf32> to vector<64x256xf32>
    %353 = vector.shape_cast %350 : vector<64x256xf32> to vector<1x1x64x256xf32>
    tpu.vector_store %arg15[%c0_163, %c1_164, %c0_165, %c0_166], %353 {strides = array<i32>} : memref<1x2x64x256xf32, #tpu.memory_space<vmem>>, vector<1x1x64x256xf32>,
    %c1_167 = arith.constant 1 : index
    %c0_168 = arith.constant 0 : index
    %c0_169 = arith.constant 0 : index
    %354 = vector.load %arg5[%c1_167, %c0_168, %c0_169] : memref<2x1x128xf32, #tpu.memory_space<vmem>>, vector<1x1x128xf32>
    %355 = vector.shape_cast %354 : vector<1x1x128xf32> to vector<1x128xf32>
    %356 = vector.broadcast %355 : vector<1x128xf32> to vector<64x128xf32>
    %357 = arith.addf %349, %356 : vector<64x128xf32>
    %358 = arith.addf %237, %357 : vector<64x128xf32>
    %c1_170 = arith.constant 1 : index
    %c0_171 = arith.constant 0 : index
    %c0_172 = arith.constant 0 : index
    %359 = vector.load %arg6[%c1_170, %c0_171, %c0_172] : memref<2x1x128xf32, #tpu.memory_space<vmem>>, vector<1x1x128xf32>
    %360 = vector.shape_cast %359 : vector<1x1x128xf32> to vector<1x128xf32>
    %c1_173 = arith.constant 1 : index
    %c0_174 = arith.constant 0 : index
    %c0_175 = arith.constant 0 : index
    %361 = vector.load %arg7[%c1_173, %c0_174, %c0_175] : memref<2x1x128xf32, #tpu.memory_space<vmem>>, vector<1x1x128xf32>
    %362 = vector.shape_cast %361 : vector<1x1x128xf32> to vector<1x128xf32>
    %cst_176 = arith.constant dense<0.000000e+00> : vector<64xf32>
    %363 = vector.multi_reduction <add>, %358, %cst_176 [1] : vector<64x128xf32> to vector<64xf32>
    %364 = vector.shape_cast %363 : vector<64xf32> to vector<64x1xf32>
    %cst_177 = arith.constant 1.280000e+02 : f32
    %365 = vector.broadcast %cst_177 : f32 to vector<64x1xf32>
    %366 = arith.divf %364, %365 : vector<64x1xf32>
    %367 = vector.broadcast %366 : vector<64x1xf32> to vector<64x128xf32>
    %368 = arith.subf %358, %367 : vector<64x128xf32>
    %369 = arith.mulf %368, %368 : vector<64x128xf32>
    %cst_178 = arith.constant dense<0.000000e+00> : vector<64xf32>
    %370 = vector.multi_reduction <add>, %369, %cst_178 [1] : vector<64x128xf32> to vector<64xf32>
    %371 = vector.shape_cast %370 : vector<64xf32> to vector<64x1xf32>
    %cst_179 = arith.constant 1.280000e+02 : f32
    %372 = vector.broadcast %cst_179 : f32 to vector<64x1xf32>
    %373 = arith.divf %371, %372 : vector<64x1xf32>
    %374 = vector.broadcast %366 : vector<64x1xf32> to vector<64x128xf32>
    %375 = arith.subf %358, %374 : vector<64x128xf32>
    %cst_180 = arith.constant 9.99999974E-6 : f32
    %376 = vector.broadcast %cst_180 : f32 to vector<64x1xf32>
    %377 = arith.addf %373, %376 : vector<64x1xf32>
    %378 = math.rsqrt %377 : vector<64x1xf32>
    %379 = vector.broadcast %378 : vector<64x1xf32> to vector<64x128xf32>
    %380 = arith.mulf %375, %379 : vector<64x128xf32>
    %381 = vector.broadcast %360 : vector<1x128xf32> to vector<64x128xf32>
    %382 = arith.mulf %380, %381 : vector<64x128xf32>
    %383 = vector.broadcast %362 : vector<1x128xf32> to vector<64x128xf32>
    %384 = arith.addf %382, %383 : vector<64x128xf32>
    %385 = arith.truncf %384 : vector<64x128xf32> to vector<64x128xbf16>
    %cst_181 = arith.constant 0.000000e+00 : f32
    %386 = vector.broadcast %cst_181 : f32 to vector<64x128xf32>
    %c1_182 = arith.constant 1 : index
    %c0_183 = arith.constant 0 : index
    %c0_184 = arith.constant 0 : index
    %387 = vector.load %arg8[%c1_182, %c0_183, %c0_184] : memref<2x128x2048xbf16, #tpu.memory_space<vmem>>, vector<1x128x512xbf16>
    %388 = vector.shape_cast %387 : vector<1x128x512xbf16> to vector<128x512xbf16>
    %cst_185 = arith.constant dense<0.000000e+00> : vector<64x512xf32>
    %389 = tpu.matmul %385, %388, %cst_185 {dimension_numbers = #tpu.dot_dimension_numbers<[1], [0], [0], [1], [0, 0, 1, 1], [], []>} : vector<64x128xbf16>, vector<128x512xbf16>, vector<64x512xf32> -> vector<64x512xf32>
    %c1_186 = arith.constant 1 : index
    %c0_187 = arith.constant 0 : index
    %c0_188 = arith.constant 0 : index
    %390 = vector.load %arg9[%c1_186, %c0_187, %c0_188] : memref<2x1x2048xf32, #tpu.memory_space<vmem>>, vector<1x1x512xf32>
    %391 = vector.shape_cast %390 : vector<1x1x512xf32> to vector<1x512xf32>
    %392 = vector.broadcast %391 : vector<1x512xf32> to vector<64x512xf32>
    %393 = arith.addf %389, %392 : vector<64x512xf32>
    %cst_189 = arith.constant 0.000000e+00 : f32
    %394 = vector.broadcast %cst_189 : f32 to vector<64x512xf32>
    %395 = arith.maximumf %393, %394 : vector<64x512xf32>
    %396 = arith.truncf %395 : vector<64x512xf32> to vector<64x512xbf16>
    %c1_190 = arith.constant 1 : index
    %c0_191 = arith.constant 0 : index
    %c0_192 = arith.constant 0 : index
    %397 = vector.load %arg10[%c1_190, %c0_191, %c0_192] : memref<2x2048x128xbf16, #tpu.memory_space<vmem>>, vector<1x512x128xbf16>
    %398 = vector.shape_cast %397 : vector<1x512x128xbf16> to vector<512x128xbf16>
    %cst_193 = arith.constant dense<0.000000e+00> : vector<64x128xf32>
    %399 = tpu.matmul %396, %398, %cst_193 {dimension_numbers = #tpu.dot_dimension_numbers<[1], [0], [0], [1], [0, 0, 1, 1], [], []>} : vector<64x512xbf16>, vector<512x128xbf16>, vector<64x128xf32> -> vector<64x128xf32>
    %400 = arith.addf %386, %399 : vector<64x128xf32>
    %c1_194 = arith.constant 1 : index
    %c0_195 = arith.constant 0 : index
    %c512_196 = arith.constant 512 : index
    %401 = vector.load %arg8[%c1_194, %c0_195, %c512_196] : memref<2x128x2048xbf16, #tpu.memory_space<vmem>>, vector<1x128x512xbf16>
    %402 = vector.shape_cast %401 : vector<1x128x512xbf16> to vector<128x512xbf16>
    %cst_197 = arith.constant dense<0.000000e+00> : vector<64x512xf32>
    %403 = tpu.matmul %385, %402, %cst_197 {dimension_numbers = #tpu.dot_dimension_numbers<[1], [0], [0], [1], [0, 0, 1, 1], [], []>} : vector<64x128xbf16>, vector<128x512xbf16>, vector<64x512xf32> -> vector<64x512xf32>
    %c1_198 = arith.constant 1 : index
    %c0_199 = arith.constant 0 : index
    %c512_200 = arith.constant 512 : index
    %404 = vector.load %arg9[%c1_198, %c0_199, %c512_200] : memref<2x1x2048xf32, #tpu.memory_space<vmem>>, vector<1x1x512xf32>
    %405 = vector.shape_cast %404 : vector<1x1x512xf32> to vector<1x512xf32>
    %406 = vector.broadcast %405 : vector<1x512xf32> to vector<64x512xf32>
    %407 = arith.addf %403, %406 : vector<64x512xf32>
    %cst_201 = arith.constant 0.000000e+00 : f32
    %408 = vector.broadcast %cst_201 : f32 to vector<64x512xf32>
    %409 = arith.maximumf %407, %408 : vector<64x512xf32>
    %410 = arith.truncf %409 : vector<64x512xf32> to vector<64x512xbf16>
    %c1_202 = arith.constant 1 : index
    %c512_203 = arith.constant 512 : index
    %c0_204 = arith.constant 0 : index
    %411 = vector.load %arg10[%c1_202, %c512_203, %c0_204] : memref<2x2048x128xbf16, #tpu.memory_space<vmem>>, vector<1x512x128xbf16>
    %412 = vector.shape_cast %411 : vector<1x512x128xbf16> to vector<512x128xbf16>
    %cst_205 = arith.constant dense<0.000000e+00> : vector<64x128xf32>
    %413 = tpu.matmul %410, %412, %cst_205 {dimension_numbers = #tpu.dot_dimension_numbers<[1], [0], [0], [1], [0, 0, 1, 1], [], []>} : vector<64x512xbf16>, vector<512x128xbf16>, vector<64x128xf32> -> vector<64x128xf32>
    %414 = arith.addf %400, %413 : vector<64x128xf32>
    %c1_206 = arith.constant 1 : index
    %c0_207 = arith.constant 0 : index
    %c1024_208 = arith.constant 1024 : index
    %415 = vector.load %arg8[%c1_206, %c0_207, %c1024_208] : memref<2x128x2048xbf16, #tpu.memory_space<vmem>>, vector<1x128x512xbf16>
    %416 = vector.shape_cast %415 : vector<1x128x512xbf16> to vector<128x512xbf16>
    %cst_209 = arith.constant dense<0.000000e+00> : vector<64x512xf32>
    %417 = tpu.matmul %385, %416, %cst_209 {dimension_numbers = #tpu.dot_dimension_numbers<[1], [0], [0], [1], [0, 0, 1, 1], [], []>} : vector<64x128xbf16>, vector<128x512xbf16>, vector<64x512xf32> -> vector<64x512xf32>
    %c1_210 = arith.constant 1 : index
    %c0_211 = arith.constant 0 : index
    %c1024_212 = arith.constant 1024 : index
    %418 = vector.load %arg9[%c1_210, %c0_211, %c1024_212] : memref<2x1x2048xf32, #tpu.memory_space<vmem>>, vector<1x1x512xf32>
    %419 = vector.shape_cast %418 : vector<1x1x512xf32> to vector<1x512xf32>
    %420 = vector.broadcast %419 : vector<1x512xf32> to vector<64x512xf32>
    %421 = arith.addf %417, %420 : vector<64x512xf32>
    %cst_213 = arith.constant 0.000000e+00 : f32
    %422 = vector.broadcast %cst_213 : f32 to vector<64x512xf32>
    %423 = arith.maximumf %421, %422 : vector<64x512xf32>
    %424 = arith.truncf %423 : vector<64x512xf32> to vector<64x512xbf16>
    %c1_214 = arith.constant 1 : index
    %c1024_215 = arith.constant 1024 : index
    %c0_216 = arith.constant 0 : index
    %425 = vector.load %arg10[%c1_214, %c1024_215, %c0_216] : memref<2x2048x128xbf16, #tpu.memory_space<vmem>>, vector<1x512x128xbf16>
    %426 = vector.shape_cast %425 : vector<1x512x128xbf16> to vector<512x128xbf16>
    %cst_217 = arith.constant dense<0.000000e+00> : vector<64x128xf32>
    %427 = tpu.matmul %424, %426, %cst_217 {dimension_numbers = #tpu.dot_dimension_numbers<[1], [0], [0], [1], [0, 0, 1, 1], [], []>} : vector<64x512xbf16>, vector<512x128xbf16>, vector<64x128xf32> -> vector<64x128xf32>
    %428 = arith.addf %414, %427 : vector<64x128xf32>
    %c1_218 = arith.constant 1 : index
    %c0_219 = arith.constant 0 : index
    %c1536_220 = arith.constant 1536 : index
    %429 = vector.load %arg8[%c1_218, %c0_219, %c1536_220] : memref<2x128x2048xbf16, #tpu.memory_space<vmem>>, vector<1x128x512xbf16>
    %430 = vector.shape_cast %429 : vector<1x128x512xbf16> to vector<128x512xbf16>
    %cst_221 = arith.constant dense<0.000000e+00> : vector<64x512xf32>
    %431 = tpu.matmul %385, %430, %cst_221 {dimension_numbers = #tpu.dot_dimension_numbers<[1], [0], [0], [1], [0, 0, 1, 1], [], []>} : vector<64x128xbf16>, vector<128x512xbf16>, vector<64x512xf32> -> vector<64x512xf32>
    %c1_222 = arith.constant 1 : index
    %c0_223 = arith.constant 0 : index
    %c1536_224 = arith.constant 1536 : index
    %432 = vector.load %arg9[%c1_222, %c0_223, %c1536_224] : memref<2x1x2048xf32, #tpu.memory_space<vmem>>, vector<1x1x512xf32>
    %433 = vector.shape_cast %432 : vector<1x1x512xf32> to vector<1x512xf32>
    %434 = vector.broadcast %433 : vector<1x512xf32> to vector<64x512xf32>
    %435 = arith.addf %431, %434 : vector<64x512xf32>
    %cst_225 = arith.constant 0.000000e+00 : f32
    %436 = vector.broadcast %cst_225 : f32 to vector<64x512xf32>
    %437 = arith.maximumf %435, %436 : vector<64x512xf32>
    %438 = arith.truncf %437 : vector<64x512xf32> to vector<64x512xbf16>
    %c1_226 = arith.constant 1 : index
    %c1536_227 = arith.constant 1536 : index
    %c0_228 = arith.constant 0 : index
    %439 = vector.load %arg10[%c1_226, %c1536_227, %c0_228] : memref<2x2048x128xbf16, #tpu.memory_space<vmem>>, vector<1x512x128xbf16>
    %440 = vector.shape_cast %439 : vector<1x512x128xbf16> to vector<512x128xbf16>
    %cst_229 = arith.constant dense<0.000000e+00> : vector<64x128xf32>
    %441 = tpu.matmul %438, %440, %cst_229 {dimension_numbers = #tpu.dot_dimension_numbers<[1], [0], [0], [1], [0, 0, 1, 1], [], []>} : vector<64x512xbf16>, vector<512x128xbf16>, vector<64x128xf32> -> vector<64x128xf32>
    %442 = arith.addf %428, %441 : vector<64x128xf32>
    %c1_230 = arith.constant 1 : index
    %c0_231 = arith.constant 0 : index
    %c0_232 = arith.constant 0 : index
    %443 = vector.load %arg11[%c1_230, %c0_231, %c0_232] : memref<2x1x128xf32, #tpu.memory_space<vmem>>, vector<1x1x128xf32>
    %444 = vector.shape_cast %443 : vector<1x1x128xf32> to vector<1x128xf32>
    %445 = vector.broadcast %444 : vector<1x128xf32> to vector<64x128xf32>
    %446 = arith.addf %442, %445 : vector<64x128xf32>
    %447 = arith.addf %384, %446 : vector<64x128xf32>
    %c1_233 = arith.constant 1 : index
    %c0_234 = arith.constant 0 : index
    %c0_235 = arith.constant 0 : index
    %448 = vector.load %arg12[%c1_233, %c0_234, %c0_235] : memref<2x1x128xf32, #tpu.memory_space<vmem>>, vector<1x1x128xf32>
    %449 = vector.shape_cast %448 : vector<1x1x128xf32> to vector<1x128xf32>
    %c1_236 = arith.constant 1 : index
    %c0_237 = arith.constant 0 : index
    %c0_238 = arith.constant 0 : index
    %450 = vector.load %arg13[%c1_236, %c0_237, %c0_238] : memref<2x1x128xf32, #tpu.memory_space<vmem>>, vector<1x1x128xf32>
    %451 = vector.shape_cast %450 : vector<1x1x128xf32> to vector<1x128xf32>
    %cst_239 = arith.constant dense<0.000000e+00> : vector<64xf32>
    %452 = vector.multi_reduction <add>, %447, %cst_239 [1] : vector<64x128xf32> to vector<64xf32>
    %453 = vector.shape_cast %452 : vector<64xf32> to vector<64x1xf32>
    %cst_240 = arith.constant 1.280000e+02 : f32
    %454 = vector.broadcast %cst_240 : f32 to vector<64x1xf32>
    %455 = arith.divf %453, %454 : vector<64x1xf32>
    %456 = vector.broadcast %455 : vector<64x1xf32> to vector<64x128xf32>
    %457 = arith.subf %447, %456 : vector<64x128xf32>
    %458 = arith.mulf %457, %457 : vector<64x128xf32>
    %cst_241 = arith.constant dense<0.000000e+00> : vector<64xf32>
    %459 = vector.multi_reduction <add>, %458, %cst_241 [1] : vector<64x128xf32> to vector<64xf32>
    %460 = vector.shape_cast %459 : vector<64xf32> to vector<64x1xf32>
    %cst_242 = arith.constant 1.280000e+02 : f32
    %461 = vector.broadcast %cst_242 : f32 to vector<64x1xf32>
    %462 = arith.divf %460, %461 : vector<64x1xf32>
    %463 = vector.broadcast %455 : vector<64x1xf32> to vector<64x128xf32>
    %464 = arith.subf %447, %463 : vector<64x128xf32>
    %cst_243 = arith.constant 9.99999974E-6 : f32
    %465 = vector.broadcast %cst_243 : f32 to vector<64x1xf32>
    %466 = arith.addf %462, %465 : vector<64x1xf32>
    %467 = math.rsqrt %466 : vector<64x1xf32>
    %468 = vector.broadcast %467 : vector<64x1xf32> to vector<64x128xf32>
    %469 = arith.mulf %464, %468 : vector<64x128xf32>
    %470 = vector.broadcast %449 : vector<1x128xf32> to vector<64x128xf32>
    %471 = arith.mulf %469, %470 : vector<64x128xf32>
    %472 = vector.broadcast %451 : vector<1x128xf32> to vector<64x128xf32>
    %473 = arith.addf %471, %472 : vector<64x128xf32>
    %c0_244 = arith.constant 0 : index
    %c0_245 = arith.constant 0 : index
    %c0_246 = arith.constant 0 : index
    %474 = vector.load %arg14[%c0_244, %c0_245, %c0_246] : memref<1x64x128xf32, #tpu.memory_space<vmem>>, vector<1x64x128xf32>
    %475 = vector.shape_cast %474 : vector<1x64x128xf32> to vector<64x128xf32>
    %476 = vector.shape_cast %473 : vector<64x128xf32> to vector<1x64x128xf32>
    tpu.vector_store %arg14[%c0_244, %c0_245, %c0_246], %476 {strides = array<i32>} : memref<1x64x128xf32, #tpu.memory_space<vmem>>, vector<1x64x128xf32>,
    return
  }
  func.func @transform_0(%arg0: i32) -> (i32, i32, i32) {
    %c0_i32 = arith.constant 0 : i32
    %c0_i32_0 = arith.constant 0 : i32
    %c0_i32_1 = arith.constant 0 : i32
    return %arg0, %c0_i32, %c0_i32_0 : i32, i32, i32
  }
  func.func @transform_1(%arg0: i32) -> (i32, i32, i32) {
    %c0_i32 = arith.constant 0 : i32
    %c0_i32_0 = arith.constant 0 : i32
    %c0_i32_1 = arith.constant 0 : i32
    %c0_i32_2 = arith.constant 0 : i32
    return %c0_i32, %c0_i32_0, %c0_i32_1 : i32, i32, i32
  }
  func.func @transform_2(%arg0: i32) -> (i32, i32, i32) {
    %c0_i32 = arith.constant 0 : i32
    %c0_i32_0 = arith.constant 0 : i32
    %c0_i32_1 = arith.constant 0 : i32
    %c0_i32_2 = arith.constant 0 : i32
    return %c0_i32, %c0_i32_0, %c0_i32_1 : i32, i32, i32
  }
  func.func @transform_3(%arg0: i32) -> (i32, i32, i32) {
    %c0_i32 = arith.constant 0 : i32
    %c0_i32_0 = arith.constant 0 : i32
    %c0_i32_1 = arith.constant 0 : i32
    %c0_i32_2 = arith.constant 0 : i32
    return %c0_i32, %c0_i32_0, %c0_i32_1 : i32, i32, i32
  }
  func.func @transform_4(%arg0: i32) -> (i32, i32, i32) {
    %c0_i32 = arith.constant 0 : i32
    %c0_i32_0 = arith.constant 0 : i32
    %c0_i32_1 = arith.constant 0 : i32
    %c0_i32_2 = arith.constant 0 : i32
    return %c0_i32, %c0_i32_0, %c0_i32_1 : i32, i32, i32
  }
  func.func @transform_5(%arg0: i32) -> (i32, i32, i32) {
    %c0_i32 = arith.constant 0 : i32
    %c0_i32_0 = arith.constant 0 : i32
    %c0_i32_1 = arith.constant 0 : i32
    %c0_i32_2 = arith.constant 0 : i32
    return %c0_i32, %c0_i32_0, %c0_i32_1 : i32, i32, i32
  }
  func.func @transform_6(%arg0: i32) -> (i32, i32, i32) {
    %c0_i32 = arith.constant 0 : i32
    %c0_i32_0 = arith.constant 0 : i32
    %c0_i32_1 = arith.constant 0 : i32
    %c0_i32_2 = arith.constant 0 : i32
    return %c0_i32, %c0_i32_0, %c0_i32_1 : i32, i32, i32
  }
  func.func @transform_7(%arg0: i32) -> (i32, i32, i32) {
    %c0_i32 = arith.constant 0 : i32
    %c0_i32_0 = arith.constant 0 : i32
    %c0_i32_1 = arith.constant 0 : i32
    %c0_i32_2 = arith.constant 0 : i32
    return %c0_i32, %c0_i32_0, %c0_i32_1 : i32, i32, i32
  }
  func.func @transform_8(%arg0: i32) -> (i32, i32, i32) {
    %c0_i32 = arith.constant 0 : i32
    %c0_i32_0 = arith.constant 0 : i32
    %c0_i32_1 = arith.constant 0 : i32
    %c0_i32_2 = arith.constant 0 : i32
    return %c0_i32, %c0_i32_0, %c0_i32_1 : i32, i32, i32
  }
  func.func @transform_9(%arg0: i32) -> (i32, i32, i32) {
    %c0_i32 = arith.constant 0 : i32
    %c0_i32_0 = arith.constant 0 : i32
    %c0_i32_1 = arith.constant 0 : i32
    %c0_i32_2 = arith.constant 0 : i32
    return %c0_i32, %c0_i32_0, %c0_i32_1 : i32, i32, i32
  }
  func.func @transform_10(%arg0: i32) -> (i32, i32, i32) {
    %c0_i32 = arith.constant 0 : i32
    %c0_i32_0 = arith.constant 0 : i32
    %c0_i32_1 = arith.constant 0 : i32
    %c0_i32_2 = arith.constant 0 : i32
    return %c0_i32, %c0_i32_0, %c0_i32_1 : i32, i32, i32
  }
  func.func @transform_11(%arg0: i32) -> (i32, i32, i32) {
    %c0_i32 = arith.constant 0 : i32
    %c0_i32_0 = arith.constant 0 : i32
    %c0_i32_1 = arith.constant 0 : i32
    %c0_i32_2 = arith.constant 0 : i32
    return %c0_i32, %c0_i32_0, %c0_i32_1 : i32, i32, i32
  }
  func.func @transform_12(%arg0: i32) -> (i32, i32, i32) {
    %c0_i32 = arith.constant 0 : i32
    %c0_i32_0 = arith.constant 0 : i32
    %c0_i32_1 = arith.constant 0 : i32
    %c0_i32_2 = arith.constant 0 : i32
    return %c0_i32, %c0_i32_0, %c0_i32_1 : i32, i32, i32
  }
  func.func @transform_13(%arg0: i32) -> (i32, i32, i32) {
    %c0_i32 = arith.constant 0 : i32
    %c0_i32_0 = arith.constant 0 : i32
    %c0_i32_1 = arith.constant 0 : i32
    return %arg0, %c0_i32, %c0_i32_0 : i32, i32, i32
  }
  func.func @transform_14(%arg0: i32) -> (i32, i32, i32, i32) {
    %c0_i32 = arith.constant 0 : i32
    %c0_i32_0 = arith.constant 0 : i32
    %c0_i32_1 = arith.constant 0 : i32
    %c0_i32_2 = arith.constant 0 : i32
    return %arg0, %c0_i32, %c0_i32_0, %c0_i32_1 : i32, i32, i32, i32
  }
}

</mosaic_0001>

<bundles_post_ra>
// kernel: tpu_custom_call.1
= control target key start
LH: loop header
LB: loop body
LE: loop exit
PB: predicated region body
PF: predicated region fallthrough
CT: control target
= control target key end

     0   :  { %s18141_s0 = inlined_call_operand.hbm [shape: f32[2,64,128], index: 0, kind: input, shape index: {}]   ;;  %s18142_s1 = inlined_call_operand.hbm [shape: bf16[2,128,384], index: 1, kind: input, shape index: {}]   ;;  %s18143_s2 = inlined_call_operand.vmem [shape: f32[2,1,384], index: 2, kind: input, shape index: {}]   ;;  %s18144_s3 = inlined_call_operand.hbm [shape: bf16[2,128,128], index: 3, kind: input, shape index: {}]   ;;  %s18145_s4 = inlined_call_operand.vmem [shape: f32[2,1,128], index: 4, kind: input, shape index: {}]   ;;  %s18146_s5 = inlined_call_operand.vmem [shape: f32[2,1,128], index: 5, kind: input, shape index: {}]   ;;  %s18147_s6 = inlined_call_operand.vmem [shape: f32[2,1,128], index: 6, kind: input, shape index: {}]   ;;  %s18148_s7 = inlined_call_operand.hbm [shape: bf16[2,128,2048], index: 7, kind: input, shape index: {}]   ;;  %s18149_s8 = inlined_call_operand.hbm [shape: f32[2,1,2048], index: 8, kind: input, shape index: {}]   ;;  %s18150_s9 = inlined_call_operand.hbm [shape: bf16[2,2048,128], index: 9, kind: input, shape index: {}]   ;;  %s18151_s10 = inlined_call_operand.vmem [shape: f32[2,1,128], index: 10, kind: input, shape index: {}]   ;;  %s18152_s11 = inlined_call_operand.vmem [shape: f32[2,1,128], index: 11, kind: input, shape index: {}]   ;;  %s18153_s12 = inlined_call_operand.vmem [shape: f32[2,1,128], index: 12, kind: input, shape index: {}]   ;;  %s18154_s13 = inlined_call_operand.hbm [shape: f32[2,64,128], index: 13, kind: output, shape index: {0}]   ;;  %s18155_s14 = inlined_call_operand.hbm [shape: f32[2,2,64,256], index: 14, kind: output, shape index: {1}]  }
   0x1   :  { %18227 = sst [smem:[#allocation78_spill]] %s18141_s0 }
   0x2   :  { %18228 = sst [smem:[#allocation79_spill]] %s18142_s1 }
   0x3   :  { %18229 = sst [smem:[#allocation80_spill]] %s18143_s2 }
   0x4   :  { %18230 = sst [smem:[#allocation81_spill]] %s18144_s3 }
   0x5   :  { %18231 = sst [smem:[#allocation82_spill]] %s18145_s4 }
   0x6   :  { %18232 = sst [smem:[#allocation83_spill]] %s18147_s6 }
   0x7   :  { %18233 = sst [smem:[#allocation84_spill]] %s18151_s10 }
   0x8   :  { %18234 = sst [smem:[#allocation85_spill]] %s18152_s11 }
   0x9   :  { %18235 = sst [smem:[#allocation86_spill]] %s18153_s12 }
   0xa   :  { %18236 = sst [smem:[#allocation87_spill]] %s18154_s13 }
   0xb   :  { %18237 = sst [smem:[#allocation88_spill]] %s18155_s14 }
   0xc   :  { %20 = vsyncpa [#allocation3], 0 }
   0xd   :  { %22 = vsyncpa [#allocation3 + $0x1], 0 }
   0xe   :  { %23 = vsyncpa [#allocation6], 0 }
   0xf   :  { %24 = vsyncpa [#allocation9], 0 }
  0x10   :  { %25 = vsyncpa [#allocation12], 0 }
  0x11   :  { %26 = vsyncpa [#allocation4], 0 }
  0x12   :  { %28 = vsyncpa [#allocation4 + $0x1], 0 }
  0x13   :  { %29 = vsyncpa [#allocation15], 0 }
  0x14   :  { %31 = vsyncpa [#allocation15 + $0x1], 0  ;;  %s14952_s29 = smov 0   ;;  %s14954_s30 = smov 0  }
  0x15   :  { %s14956_s15 = smov 0   ;;  %s14958_s16 = smov 0  }
  0x16 LB: > { %s14852_s17 = smov [#allocation5]   ;;  %s14973_s19 = sadd.s32 4294967295, %s14850_s16   ;;  %s14850_s16 = sphi %s14958_s16, %s18398_s16   ;;  %s14846_s15 = sphi %s14956_s15, %s18397_s15   ;;  %s14842_s30 = sphi %s14954_s30, %s18396_s30   ;;  %s14838_s29 = sphi %s14952_s29, %s18395_s29  }
  0x17   : > { %s384_s18 = sshll.u32 %s14852_s17, 4  ;;  %p11730_p0 = scmp.ge.s32.totalorder %s14850_s16, 1  ;;  %s14978_s18 = int_to_ptr.vmem [resolvable:$true] %s384_s18 }
  0x18   : > { %p18162_p1 = scmp.eq.s32.totalorder %s14973_s19, 0  ;;  %p372_p2 = scmp.lt.s32.totalorder %s14850_s16, 3 }
  0x19   : > { %s14853_s22 = smov [#allocation8]   ;;  %s14854_s24 = smov [#allocation7]  }
  0x1a   : > { %p14980_p3 = pnand %p11730_p0, %p372_p2  ;;  %s422_s23 = sshll.u32 %s14853_s22, 4  ;;  %s14993_s23 = int_to_ptr.vmem [resolvable:$true] %s422_s23 }
  0x1b   : > { %s14995_s25 = sshll.u32 %s14854_s24, 4  ;;  %s18240_s1 = sld [smem:[#allocation79_spill]]  ;;  %s401_s25 = int_to_ptr.vmem [resolvable:$true] %s14995_s25 }
  0x1c   : > { %s18238_s20 = scalar_select %p14980_p3, 1, 0 }
  0x1d   : > { %p13813_p5 = pneg %p14980_p3 }
  0x1f   : > { %p14989_p6 = pnand %p13813_p5, %p18162_p1 }
  0x21   : > { %s14570_s28 = scalar_lea.hbm %s18240_s1, 6144  ;;  %p15005_p8 = pneg %p14989_p6 }
  0x22   : > { %p14571_p7 = scmp.ne.s32.totalorder %s18240_s1, %s14570_s28  ;;  %p14577_p11 = scmp.lt.u32.totalorder %s14570_s28, %s18240_s1 }
  0x24   : > { %p14573_p9 = pnand %p15005_p8, %p14571_p7 }
  0x26   : > { %p14574_p10 = pneg %p14573_p9 }
  0x28   : > { %p14579_p12 = pnand %p14577_p11, %p14574_p10 }
  0x2a   : > { %14582 = shalt.err (!%p14579_p12)
}
  0x2b   : > { %s14583_s13 = scalar_lea.vmem %s14978_s18, 6144  ;;  %p14591_p5 = scmp.lt.s32.totalorder %s14978_s18, %s14978_s18 }
  0x2c   : > { %p14584_p13 = scmp.ne.s32.totalorder %s14978_s18, %s14583_s13  ;;  %p14592_p4 = scmp.lt.s32.totalorder %s14583_s13, %s14583_s13 }
  0x2e   : > { %p14586_p0 = pnand %p14584_p13, %p15005_p8  ;;  %p14593_p7 = por %p14592_p4, %p14591_p5 }
  0x30   : > { %p14587_p2 = pneg %p14586_p0 }
  0x32   : > { %p14594_p9 = pnand %p14593_p7, %p14587_p2 }
  0x34   : > { %14597 = shalt.err (!%p14594_p9)
}
  0x35   : > { %s14855_s26 = smov 192   ;;  %s14856_s27 = smov 12  }
  0x36   : > { %13816 = dma.hbm_to_vmem [thread:$0]  (!%p14989_p6), %s18240_s1, 6144, %s14978_s18, [#allocation6], %s14855_s26, %s14855_s26, %s14856_s27  }
  0x37   : > { %s14598_s12 = scalar_lea.hbm %s18148_s7, 32768 }
  0x38   : > { %p14599_p4 = scmp.ne.s32.totalorder %s18148_s7, %s14598_s12  ;;  %p14605_p12 = scmp.lt.u32.totalorder %s14598_s12, %s18148_s7 }
  0x3a   : > { %p14601_p10 = pnand %p14599_p4, %p15005_p8 }
  0x3c   : > { %p14602_p11 = pneg %p14601_p10 }
  0x3e   : > { %p14607_p13 = pnand %p14605_p12, %p14602_p11 }
  0x40   : > { %14610 = shalt.err (!%p14607_p13)
}
  0x41   : > { %s14611_s18 = scalar_lea.vmem %s14993_s23, 32768  ;;  %p14619_p7 = scmp.lt.s32.totalorder %s14993_s23, %s14993_s23 }
  0x42   : > { %p14612_p0 = scmp.ne.s32.totalorder %s14993_s23, %s14611_s18  ;;  %p14620_p9 = scmp.lt.s32.totalorder %s14611_s18, %s14611_s18 }
  0x44   : > { %p14614_p2 = pnand %p14612_p0, %p15005_p8  ;;  %p14621_p4 = por %p14620_p9, %p14619_p7 }
  0x46   : > { %p14615_p5 = pneg %p14614_p2 }
  0x48   : > { %p14622_p10 = pnand %p14621_p4, %p14615_p5 }
  0x4a   : > { %14625 = shalt.err (!%p14622_p10)
}
  0x4b   : > { %s14857_s10 = smov 1024   ;;  %s18164_s6 = smov 64  }
  0x4c   : > { %13822 = dma.hbm_to_vmem [thread:$0]  (!%p14989_p6), %s18148_s7, 32768, %s14993_s23, [#allocation9], %s14857_s10, %s14857_s10, %s18164_s6  }
  0x4d   : > { %s18242_s3 = sld [smem:[#allocation81_spill]] }
  0x53   : > { %s14626_s28 = scalar_lea.hbm %s18242_s3, 2048 }
  0x54   : > { %p14627_p11 = scmp.ne.s32.totalorder %s18242_s3, %s14626_s28  ;;  %p14633_p0 = scmp.lt.u32.totalorder %s14626_s28, %s18242_s3 }
  0x56   : > { %p14629_p12 = pnand %p14627_p11, %p15005_p8 }
  0x58   : > { %p14630_p13 = pneg %p14629_p12 }
  0x5a   : > { %p14635_p2 = pnand %p14633_p0, %p14630_p13 }
  0x5c   : > { %14638 = shalt.err (!%p14635_p2)
}
  0x5d   : > { %s14639_s18 = scalar_lea.vmem %s401_s25, 2048  ;;  %p14647_p4 = scmp.lt.s32.totalorder %s401_s25, %s401_s25 }
  0x5e   : > { %p14640_p5 = scmp.ne.s32.totalorder %s401_s25, %s14639_s18  ;;  %p14648_p10 = scmp.lt.s32.totalorder %s14639_s18, %s14639_s18 }
  0x60   : > { %p14642_p7 = pnand %p14640_p5, %p15005_p8  ;;  %p14649_p1 = por %p14648_p10, %p14647_p4 }
  0x62   : > { %p14643_p9 = pneg %p14642_p7 }
  0x64   : > { %p14650_p3 = pnand %p14649_p1, %p14643_p9 }
  0x66   : > { %14653 = shalt.err (!%p14650_p3)
}
  0x67   : > { %s18165_s23 = smov 4   ;;  %s14860_s12 = smov [#allocation10]  }
  0x68   : > { %13819 = dma.hbm_to_vmem [thread:$0]  (!%p14989_p6), %s18242_s3, 2048, %s401_s25, [#allocation6], %s18164_s6, %s18164_s6, %s18165_s23  }
  0x69   : > { %s435_s26 = sshll.u32 %s14860_s12, 4  ;;  %s14654_s17 = scalar_lea.hbm %s18149_s8, 512  ;;  %s436_s26 = int_to_ptr.vmem [resolvable:$true] %s435_s26 }
  0x6a   : > { %p14655_p1 = scmp.ne.s32.totalorder %s18149_s8, %s14654_s17  ;;  %p14661_p12 = scmp.lt.u32.totalorder %s14654_s17, %s18149_s8 }
  0x6c   : > { %p14657_p3 = pnand %p14655_p1, %p15005_p8 }
  0x6e   : > { %p14658_p11 = pneg %p14657_p3 }
  0x70   : > { %p14663_p13 = pnand %p14661_p12, %p14658_p11 }
  0x72   : > { %14666 = shalt.err (!%p14663_p13)
}
  0x73   : > { %s14667_s25 = scalar_lea.vmem %s436_s26, 512  ;;  %p14675_p7 = scmp.lt.s32.totalorder %s436_s26, %s436_s26 }
  0x74   : > { %p14668_p0 = scmp.ne.s32.totalorder %s436_s26, %s14667_s25  ;;  %p14676_p9 = scmp.lt.s32.totalorder %s14667_s25, %s14667_s25 }
  0x76   : > { %p14670_p2 = pnand %p14668_p0, %p15005_p8  ;;  %p14677_p4 = por %p14676_p9, %p14675_p7 }
  0x78   : > { %p14671_p5 = pneg %p14670_p2 }
  0x7a   : > { %p14678_p10 = pnand %p14677_p4, %p14671_p5 }
  0x7c   : > { %14681 = shalt.err (!%p14678_p10)
}
  0x7d   : > { %s14861_s10 = smov 256   ;;  %s14862_s11 = smov 16  }
  0x7e   : > { %13825 = dma.hbm_to_vmem [thread:$0]  (!%p14989_p6), %s18149_s8, 512, %s436_s26, [#allocation9], %s14861_s10, %s14861_s10, %s14862_s11  }
  0x7f   : > { %s14863_s28 = smov [#allocation11]   ;;  %s14682_s13 = scalar_lea.hbm %s18150_s9, 32768 }
  0x80   : > { %s448_s17 = sshll.u32 %s14863_s28, 4  ;;  %p14683_p1 = scmp.ne.s32.totalorder %s18150_s9, %s14682_s13  ;;  %s449_s17 = int_to_ptr.vmem [resolvable:$true] %s448_s17 }
  0x81   : > { %p14689_p12 = scmp.lt.u32.totalorder %s14682_s13, %s18150_s9 }
  0x82   : > { %p14685_p3 = pnand %p14683_p1, %p15005_p8 }
  0x84   : > { %p14686_p11 = pneg %p14685_p3 }
  0x86   : > { %p14691_p13 = pnand %p14689_p12, %p14686_p11 }
  0x88   : > { %14694 = shalt.err (!%p14691_p13)
}
  0x89   : > { %s14695_s26 = scalar_lea.vmem %s449_s17, 32768  ;;  %p14703_p7 = scmp.lt.s32.totalorder %s449_s17, %s449_s17 }
  0x8a   : > { %p14696_p0 = scmp.ne.s32.totalorder %s449_s17, %s14695_s26  ;;  %p14704_p9 = scmp.lt.s32.totalorder %s14695_s26, %s14695_s26 }
  0x8c   : > { %p14698_p2 = pnand %p14696_p0, %p15005_p8  ;;  %p14705_p4 = por %p14704_p9, %p14703_p7 }
  0x8e   : > { %p14699_p5 = pneg %p14698_p2 }
  0x90   : > { %p14706_p10 = pnand %p14705_p4, %p14699_p5 }
  0x92   : > { %14709 = shalt.err (!%p14706_p10)
}
  0x93   : > { %s18243_s10 = smov 4   ;;  %s18244_s11 = smov 64  }
  0x94   : > { %13828 = dma.hbm_to_vmem [thread:$0]  (!%p14989_p6), %s18150_s9, 32768, %s449_s17, [#allocation12], %s18244_s11, %s18244_s11, %s18243_s10  }
  0x95   : > { %s11729_s14 = sadd.s32 4294967294, %s14850_s16   ;;  %s15113_s21 = sadd.s32 1, %s14850_s16  }
  0x96   : > { %s41_s12 = ssub.s32 %s14850_s16, %s15113_s21  ;;  %s44_s27 = sadd.s32 1, %s14846_s15 }
  0x97   : > { %p42_p8 = scmp.eq.s32.totalorder %s41_s12, 0  ;;  %p51_p1 = scmp.ne.s32.totalorder %s14846_s15, %s14842_s30 }
  0x98   : > { %p52_p3 = scmp.eq.s32.totalorder %s14850_s16, 0  ;;  %p57_p11 = scmp.ne.s32.totalorder %s14842_s30, %s14838_s29 }
  0x99   : > { %s15124_s28 = scalar_select %p42_p8, %s14846_s15, %s44_s27  }
  0x9a   : > { %p15126_p12 = por %p52_p3, %p51_p1  ;;  %p18246_p13 = scmp.eq.s32.totalorder %s14973_s19, 0 }
  0x9b   : > { %p333_p0 = scmp.eq.s32.totalorder %s14973_s19, 1  ;;  %p339_p2 = scmp.eq.s32.totalorder %s11729_s14, 1 }
  0x9c   : > { %p15132_p6 = por %p18246_p13, %p57_p11  ;;  %p13845_p5 = scmp.lt.s32.totalorder %s14850_s16, 2 }
  0x9d   : > { %s471_s24 = sand.u32 1, %s14846_s15   ;;  %p15139_p7 = por %p333_p0, %p51_p1 }
  0x9e   : > { %p15143_p9 = por %p339_p2, %p57_p11  ;;  %s11737_s25 = sshll.u32 %s471_s24, 6 }
  0x9f   : > { %s18248_s13 = scalar_select %p15139_p7, 1, 0 }
  0xa0   : > { %s18249_s18 = scalar_select %p15143_p9, 1, 0 }
  0xa1   : > { %s12464_s26 = sshll.u32 %s14850_s16, 10  ;;  %s18250_s0 = sld [smem:[#allocation78_spill]] }
  0xa2   : > { %s475_s23 = scalar_lea.vmem [#allocation2], %s11737_s25  ;;  %p15157_p4 = pnand %p13845_p5, %p15126_p12 }
  0xa3   : > { %s482_s14 = sshll.u32 %s475_s23, 4  ;;  %s15161_s27 = scalar_lea.sflag [#allocation3], %s471_s24  ;;  %s15153_s14 = int_to_ptr.vmem [resolvable:$true] %s482_s14 }
  0xa4   : > { %p14712_p8 = pneg %p15157_p4 }
  0xa7   : > { %s15151_s6 = scalar_lea.hbm %s18250_s0, %s12464_s26  ;;  %s14715_s22 = scalar_lea.hbm %s18250_s0, 2048 }
  0xa8   : > { %s14710_s10 = scalar_lea.hbm %s15151_s6, 1024  ;;  %p14716_p11 = scmp.lt.u32.totalorder %s15151_s6, %s18250_s0 }
  0xa9   : > { %p14711_p10 = scmp.ne.s32.totalorder %s15151_s6, %s14710_s10  ;;  %p14717_p12 = scmp.lt.u32.totalorder %s14715_s22, %s14710_s10 }
  0xaa   : > { %p14719_p0 = scmp.lt.u32.totalorder %s14710_s10, %s15151_s6 }
  0xab   : > { %p14713_p1 = pnand %p14712_p8, %p14711_p10  ;;  %p14718_p13 = por %p14717_p12, %p14716_p11 }
  0xad   : > { %p14714_p3 = pneg %p14713_p1  ;;  %p14720_p2 = por %p14719_p0, %p14718_p13 }
  0xaf   : > { %p14721_p5 = pnand %p14720_p2, %p14714_p3 }
  0xb1   : > { %14724 = shalt.err (!%p14721_p5)
}
  0xb2   : > { %s14725_s24 = scalar_lea.vmem %s15153_s14, 1024  ;;  %s14864_s25 = smov [#allocation2]  }
  0xb3   : > { %p14726_p10 = scmp.ne.s32.totalorder %s15153_s14, %s14725_s24  ;;  %s14730_s26 = sshll.u32 %s14864_s25, 4  ;;  %s14731_s26 = int_to_ptr.vmem [resolvable:$false] %s14730_s26 }
  0xb4   : > { %s14732_s11 = scalar_lea.vmem %s14731_s26, 2048  ;;  %p14733_p7 = scmp.lt.s32.totalorder %s15153_s14, %s14731_s26 }
  0xb5   : > { %p14728_p1 = pnand %p14726_p10, %p14712_p8  ;;  %p14734_p11 = scmp.lt.s32.totalorder %s14732_s11, %s14725_s24 }
  0xb7   : > { %p14729_p9 = pneg %p14728_p1  ;;  %p14735_p12 = por %p14734_p11, %p14733_p7 }
  0xb9   : > { %p14736_p13 = pnand %p14735_p12, %p14729_p9 }
  0xbb   : > { %14739 = shalt.err (!%p14736_p13)
}
  0xbc   : > { %s14865_s10 = smov 128   ;;  %s14866_s22 = smov 8  }
  0xbd   : > { %13832 = dma.hbm_to_vmem [thread:$0]  (!%p15157_p4), %s15151_s6, 1024, %s15153_s14, %s15161_s27, %s14865_s10, %s14865_s10, %s14866_s22  }
  0xbe   : > { %p18252_p8 = scmp.ne.s32.totalorder %s18238_s20, 0 }
  0xc0   : > { %494 = sbr.rel (%p18252_p8) target bundleno = 8356 (0x20a4), region = 72 }
  0xc7   : > { %s15192_s23 = sand.u32 1, %s14842_s30  }
  0xc8   : > { %s11741_s24 = sshll.u32 %s15192_s23, 6  ;;  %s497_s25 = scalar_lea.sflag [#allocation3], %s15192_s23 }
  0xc9   : > { %s15198_s26 = scalar_lea.vmem [#allocation2], %s11741_s24 }
  0xca   : > { %14813 = dma.done.wait (%p15132_p6), %s497_s25, 1024  }
  0xcb   : > { %14815 = vsyncadd (%p15132_p6), %s497_s25, 4294966272  ;;  %p18253_p7 = scmp.eq.s32.totalorder %s14973_s19, 0 }
  0xcd   : > { %14817 = dma.done.wait (%p18253_p7), [#allocation6], 8192   ;;  %p18254_p9 = pmov %p18253_p7 }
  0xce   : > { %p18255_p4 = pmov %p18253_p7 }
  0xcf   : > { %14819 = vsyncadd (%p18254_p9), [#allocation6], 4294959104 }
  0xd0   : > { %14821 = dma.done.wait (%p18255_p4), [#allocation9], 33280   ;;  %p18256_p3 = pmov %p18255_p4 }
  0xd2   : > { %14823 = vsyncadd (%p18256_p3), [#allocation9], 4294934016  ;;  %p18257_p0 = pmov %p18256_p3 }
  0xd4   : > { %14825 = dma.done.wait (%p18257_p0), [#allocation12], 32768   ;;  %p18258_p2 = pmov %p18257_p0 }
  0xd5   : > { %v18167_v0 = vmov 0   ;;  %v13906_v1 = vld [vmem:[#allocation5 + $0x4] ss:$12 sps:$4 sm:$0xff]   ;;  %v13908_v2 = vld [vmem:[#allocation5] ss:$12 sps:$4 sm:$0xff]   ;;  %v574_v21 = vld [vmem:[%s15198_s26 + $0x18] sm:$0xff]  ;;  %v617_v29 = vlaneseq }
  0xd6   : > { %14827 = vsyncadd (%p18258_p2), [#allocation12], 4294934528  ;;  %792 = vmatprep.mubr.bf16.mxu0 %v18167_v0  ;;  %760 = vmatprep.subr.bf16.mxu0 %v13906_v1  ;;  %v13909_v3 = vld [vmem:[#allocation5 + $0x1c] ss:$12 sps:$4 sm:$0xff]   ;;  %v13911_v4 = vld [vmem:[#allocation5 + $0x18] ss:$12 sps:$4 sm:$0xff]  }
  0xd7   : > { %761 = vmatpush1.bf16.msra.mxu0 %v13908_v2  ;;  %v13912_v5 = vld [vmem:[#allocation5 + $0x34] ss:$12 sps:$4 sm:$0xff]   ;;  %v13914_v6 = vld [vmem:[#allocation5 + $0x30] ss:$12 sps:$4 sm:$0xff]   ;;  %v13915_v7 = vld [vmem:[#allocation5 + $0x4c] ss:$12 sps:$4 sm:$0xff]  }
  0xd8   : > { %762 = vmatprep.subr.bf16.mxu0 %v13909_v3  ;;  %v571_v8 = vld [vmem:[%s15198_s26] sm:$0xff]  ;;  %v13917_v9 = vld [vmem:[#allocation5 + $0x48] ss:$12 sps:$4 sm:$0xff]   ;;  %v13926_v17 = vld [vmem:[#allocation5 + $0x90] ss:$12 sps:$4 sm:$0xff]   ;;  %v15237_v30 = vshrl.u32 %v617_v29, 7 }
  0xd9   : > { %v572_v10 = vld [vmem:[%s15198_s26 + $0x8] sm:$0xff]  ;;  %v13918_v11 = vld [vmem:[#allocation5 + $0x64] ss:$12 sps:$4 sm:$0xff]   ;;  %v13924_v16 = vld [vmem:[#allocation5 + $0x94] ss:$12 sps:$4 sm:$0xff]   ;;  %s18259_s2 = sld [smem:[#allocation80_spill]] }
  0xda   : > { %v579_v12 = vpack.c.bf16 %v572_v10, %v571_v8  ;;  %v13920_v13 = vld [vmem:[#allocation5 + $0x60] ss:$12 sps:$4 sm:$0xff]   ;;  %v13921_v14 = vld [vmem:[#allocation5 + $0x7c] ss:$12 sps:$4 sm:$0xff]   ;;  %v13923_v15 = vld [vmem:[#allocation5 + $0x78] ss:$12 sps:$4 sm:$0xff]  }
  0xdb   : > { %763 = vmatpush1.bf16.msra.mxu0 %v13911_v4  ;;  %v13927_v18 = vld [vmem:[#allocation5 + $0xac] ss:$12 sps:$4 sm:$0xff]   ;;  %v13929_v19 = vld [vmem:[#allocation5 + $0xa8] ss:$12 sps:$4 sm:$0xff]   ;;  %v575_v23 = vld [vmem:[%s15198_s26 + $0x20] sm:$0xff]  ;;  %v15240_v31 = vsub.s32 0, %v15237_v30 }
  0xdc   : > { %764 = vmatprep.subr.bf16.mxu0 %v13912_v5  ;;  %13323 = vmatprep.mubr.bf16.mxu1 %v579_v12  ;;  %v573_v20 = vld [vmem:[%s15198_s26 + $0x10] sm:$0xff]  ;;  %v576_v24 = vld [vmem:[%s15198_s26 + $0x28] sm:$0xff]  ;;  %v578_v27 = vld [vmem:[%s15198_s26 + $0x38] sm:$0xff]  ;;  %v15248_v33 = vsub.s32 1, %v15237_v30  ;;  %vm910_vm0 = vcmask 261120   ;;  %vm1008_vm1 = vcmask 523264  }
  0xdd   : > { %v15222_v22 = vpack.c.bf16 %v574_v21, %v573_v20  ;;  %v15228_v25 = vpack.c.bf16 %v576_v24, %v575_v23  ;;  %v577_v26 = vld [vmem:[%s15198_s26 + $0x30] sm:$0xff]  ;;  %v13935_v23 = vld [vmem:[#allocation5 + $0x80] ss:$12 sps:$4 sm:$0xff]   ;;  %v13936_v24 = vld [vmem:[#allocation5 + $0x98] ss:$12 sps:$4 sm:$0xff]   ;;  %s14868_s6 = smov 96  }
  0xde   : > { %v15234_v28 = vpack.c.bf16 %v578_v27, %v577_v26  ;;  %v13933_v20 = vld [vmem:[#allocation5 + $0x50] ss:$12 sps:$4 sm:$0xff]   ;;  %v13934_v21 = vld [vmem:[#allocation5 + $0x68] ss:$12 sps:$4 sm:$0xff]   ;;  %s14869_s14 = smov 64   ;;  %s14870_s12 = smov 32  }
  0xdf   : > { %765 = vmatpush1.bf16.msra.mxu0 %v13914_v6  ;;  %v15245_v32 = vld [vmem:[%s18259_s2] sm:$0x7]  ;;  %v13937_v26 = vld [vmem:[#allocation5 + $0xb0] ss:$12 sps:$4 sm:$0xff]   ;;  %s18292_s4 = sld [smem:[#allocation82_spill]]  ;;  %s18293_s20 = sld [smem:[#allocation83_spill]] }
  0xe0   : > { %766 = vmatprep.subr.bf16.mxu0 %v13915_v7  ;;  %v620_v34 = vrot.slane %v15245_v32, %v15240_v31  ;;  %v624_v36 = vrot.slane %v15245_v32, %v15248_v33  ;;  %s18298_s11 = sld [smem:[#allocation84_spill]]  ;;  %s18300_s25 = sld [smem:[#allocation85_spill]] }
  0xe1   : > { %s18301_s27 = sld [smem:[#allocation86_spill]]  ;;  %s11748_s10 = sshll.u32 %s15192_s23, 8 }
  0xe2   : > { %p18390_p5 = scmp.ne.s32.totalorder %s18248_s13, 0 }
  0xe3   : > { %767 = vmatpush1.bf16.msra.mxu0 %v13917_v9 }
  0xe4   : > { %768 = vmatprep.subr.bf16.mxu0 %v13918_v11 }
  0xe7   : > { %769 = vmatpush1.bf16.msra.mxu0 %v13920_v13 }
  0xe8   : > { %770 = vmatprep.subr.bf16.mxu0 %v13921_v14 }
  0xeb   : > { %771 = vmatpush1.bf16.msra.mxu0 %v13923_v15 }
  0xec   : > { %772 = vmatprep.subr.bf16.mxu0 %v13924_v16 }
  0xef   : > { %773 = vmatpush1.bf16.msra.mxu0 %v13926_v17  ;;  %v13930_v17 = vld [vmem:[#allocation5 + $0x8] ss:$12 sps:$4 sm:$0xff]  }
  0xf0   : > { %774 = vmatprep.subr.bf16.mxu0 %v13927_v18  ;;  %v13931_v18 = vld [vmem:[#allocation5 + $0x20] ss:$12 sps:$4 sm:$0xff]   ;;  %13307 = vmatprep.subr.bf16.mxu1 %v13930_v17 }
  0xf1   : > { %13308 = vmatpush3.bf16.msra.mxu1 %v13930_v17 }
  0xf2   : > { %13309 = vmatprep.subr.bf16.mxu1 %v13931_v18 }
  0xf3   : > { %775 = vmatpush1.bf16.msra.mxu0 %v13929_v19  ;;  %v13932_v19 = vld [vmem:[#allocation5 + $0x38] ss:$12 sps:$4 sm:$0xff]  }
  0xf5   : > { %13310 = vmatpush3.bf16.msra.mxu1 %v13931_v18 }
  0xf6   : > { %793 = vmatmul.mubr.bf16.vlgmr.msra.gmra.mrb[0].mxu0 %v579_v12  ;;  %13311 = vmatprep.subr.bf16.mxu1 %v13932_v19 }
  0xf7   : > { %802 = vmatprep.mubr.bf16.mxu0 %v18167_v0 }
  0xf9   : > { %13312 = vmatpush3.bf16.msra.mxu1 %v13932_v19 }
  0xfa   : > { %13313 = vmatprep.subr.bf16.mxu1 %v13933_v20 }
  0xfd   : > { %13314 = vmatpush3.bf16.msra.mxu1 %v13933_v20 }
  0xfe   : > { %803 = vmatmul.mubr.bf16.gmra.mrb[4].mxu0 %v15222_v22  ;;  %13315 = vmatprep.subr.bf16.mxu1 %v13934_v21 }
  0xff   : > { %812 = vmatprep.mubr.bf16.mxu0 %v18167_v0 }
 0x101   : > { %13316 = vmatpush3.bf16.msra.mxu1 %v13934_v21 }
 0x102   : > { %13317 = vmatprep.subr.bf16.mxu1 %v13935_v23 }
 0x105   : > { %13318 = vmatpush3.bf16.msra.mxu1 %v13935_v23 }
 0x106   : > { %813 = vmatmul.mubr.bf16.gmra.mrb[8].mxu0 %v15228_v25  ;;  %13319 = vmatprep.subr.bf16.mxu1 %v13936_v24 }
 0x107   : > { %822 = vmatprep.mubr.bf16.mxu0 %v18167_v0 }
 0x109   : > { %13320 = vmatpush3.bf16.msra.mxu1 %v13936_v24 }
 0x10a   : > { %13321 = vmatprep.subr.bf16.mxu1 %v13937_v26 }
 0x10d   : > { %13322 = vmatpush3.bf16.msra.mxu1 %v13937_v26 }
 0x10e   : > { %823 = vmatmul.mubr.bf16.gmra.mrb[12].mxu0 %v15234_v28 }
 0x110   : > { %13324 = vmatmul.mubr.bf16.vlgmr.msra.gmra.mrb[0].mxu1 %v15222_v22 }
 0x111   : > { %13327 = vmatprep.mubr.bf16.mxu1 %v15228_v25 }
 0x118   : > { %13328 = vmatmul.mubr.bf16.gmra.mrb[4].mxu1 %v15234_v28 }
 0x1c9   : > { %v794_v35 = vpop.f32.mrb[0].mxu0 }
 0x1ca   : > { %v796_v37 = vpop.f32.mrb[1].mxu0  ;;  %v795_v39 = vadd.f32 %v794_v35, %v620_v34 }
 0x1cb   : > { %v798_v38 = vpop.f32.mrb[2].mxu0  ;;  %v797_v42 = vadd.f32 %v796_v37, %v624_v36 }
 0x1cc   : > { %v799_v40 = vadd.f32 %v798_v38, %v620_v34  ;;  %v800_v41 = vpop.f32.mrb[3].mxu0 }
 0x1cd   : > { %v801_v43 = vadd.f32 %v800_v41, %v624_v36 }
 0x1ce   : > { %v15254_v44 = vpack.c.bf16 %v799_v40, %v795_v39 }
 0x1cf   : > { %v15256_v45 = vpack.c.bf16 %v801_v43, %v797_v42 }
 0x1d0   : > { %13339 = vmatprep.mubr.msk.bf16.mxu0 %vm910_vm0, %v15254_v44 }
 0x1d1   : > { %v804_v46 = vpop.f32.mrb[4].mxu0  ;;  %13755 = vmatprep.subr.msk.bf16.mxu0 %vm910_vm0, %v15256_v45  ;;  %v924_v47 = vsel %vm910_vm0, %v15256_v45, 0 }
 0x1d2   : > { %v806_v48 = vpop.f32.mrb[5].mxu0  ;;  %13332 = vmatpush3.bf16.xpose.msra.mxu0 %v924_v47  ;;  %v805_v50 = vadd.f32 %v804_v46, %v620_v34 }
 0x1d3   : > { %v808_v49 = vpop.f32.mrb[6].mxu0  ;;  %v807_v53 = vadd.f32 %v806_v48, %v624_v36 }
 0x1d4   : > { %v809_v51 = vadd.f32 %v808_v49, %v620_v34  ;;  %v810_v52 = vpop.f32.mrb[7].mxu0 }
 0x1d5   : > { %v811_v54 = vadd.f32 %v810_v52, %v624_v36 }
 0x1d6   : > { %v15264_v55 = vpack.c.bf16 %v809_v51, %v805_v50 }
 0x1d7   : > { %v15266_v56 = vpack.c.bf16 %v811_v54, %v807_v53 }
 0x1d9   : > { %v814_v57 = vpop.f32.mrb[8].mxu0  ;;  %13756 = vmatprep.subr.msk.bf16.mxu0 %vm910_vm0, %v15266_v56  ;;  %v927_v58 = vsel %vm910_vm0, %v15266_v56, 0 }
 0x1da   : > { %v816_v59 = vpop.f32.mrb[9].mxu0  ;;  %13334 = vmatpush3.bf16.xpose.msra.mxu0 %v927_v58  ;;  %v815_v61 = vadd.f32 %v814_v57, %v620_v34  ;;  %v15312_v57 = vsub.s32 2, %v15237_v30 }
 0x1db   : > { %v818_v60 = vpop.f32.mrb[10].mxu0  ;;  %v817_v1 = vadd.f32 %v816_v59, %v624_v36 }
 0x1dc   : > { %v819_v62 = vadd.f32 %v818_v60, %v620_v34  ;;  %v820_v63 = vpop.f32.mrb[11].mxu0  ;;  %v15316_v58 = vrot.slane %v15245_v32, %v15312_v57 }
 0x1dd   : > { %v821_v2 = vadd.f32 %v820_v63, %v624_v36 }
 0x1de   : > { %v15272_v3 = vpack.c.bf16 %v819_v62, %v815_v61 }
 0x1df   : > { %v15274_v4 = vpack.c.bf16 %v821_v2, %v817_v1 }
 0x1e1   : > { %v824_v5 = vpop.f32.mrb[12].mxu0  ;;  %13757 = vmatprep.subr.msk.bf16.mxu0 %vm910_vm0, %v15274_v4  ;;  %v930_v6 = vsel %vm910_vm0, %v15274_v4, 0 }
 0x1e2   : > { %v826_v7 = vpop.f32.mrb[13].mxu0  ;;  %13336 = vmatpush3.bf16.xpose.msra.mxu0 %v930_v6  ;;  %v825_v9 = vadd.f32 %v824_v5, %v620_v34 }
 0x1e3   : > { %v828_v8 = vpop.f32.mrb[14].mxu0  ;;  %v827_v12 = vadd.f32 %v826_v7, %v624_v36  ;;  %v13325_v59 = vpop.f32.mrb[0].mxu1 }
 0x1e4   : > { %v829_v10 = vadd.f32 %v828_v8, %v620_v34  ;;  %v830_v11 = vpop.f32.mrb[15].mxu0  ;;  %v876_v60 = vadd.f32 %v13325_v59, %v15316_v58  ;;  %v867_v61 = vpop.f32.mrb[1].mxu1 }
 0x1e5   : > { %v831_v13 = vadd.f32 %v830_v11, %v624_v36  ;;  %v868_v62 = vadd.f32 %v867_v61, %v15316_v58  ;;  %v13326_v63 = vpop.f32.mrb[2].mxu1 }
 0x1e6   : > { %v15280_v14 = vpack.c.bf16 %v829_v10, %v825_v9  ;;  %v879_v1 = vadd.f32 %v13326_v63, %v15316_v58  ;;  %v870_v2 = vpop.f32.mrb[3].mxu1 }
 0x1e7   : > { %v15282_v15 = vpack.c.bf16 %v831_v13, %v827_v12  ;;  %v871_v5 = vadd.f32 %v870_v2, %v15316_v58 }
 0x1e8   : > { %v15322_v6 = vpack.c.bf16 %v879_v1, %v876_v60 }
 0x1e9   : > { %13758 = vmatprep.subr.msk.bf16.mxu0 %vm910_vm0, %v15282_v15  ;;  %v933_v16 = vsel %vm910_vm0, %v15282_v15, 0  ;;  %v15324_v7 = vpack.c.bf16 %v871_v5, %v868_v62 }
 0x1ea   : > { %13338 = vmatpush3.bf16.xpose.msra.mxu0 %v933_v16 }
 0x1eb   : > { %13347 = vmatprep.subr.bf16.mxu1 %v15324_v7 }
 0x1ec   : > { %13348 = vmatpush3.bf16.msra.mxu1 %v15324_v7 }
 0x1ed   : > { %13349 = vmatprep.subr.bf16.mxu1 %v15322_v6 }
 0x1f0   : > { %13350 = vmatpush3.bf16.msra.mxu1 %v15322_v6 }
 0x1f1   : > { %13340 = vmatmul.mubr.msk.bf16.vlgmr.msra.gmra.mrb[16].mxu0 %vm910_vm0, %v15264_v55 }
 0x1f2   : > { %13343 = vmatprep.mubr.msk.bf16.mxu0 %vm910_vm0, %v15272_v3 }
 0x1f9   : > { %13344 = vmatmul.mubr.msk.bf16.gmra.mrb[20].mxu0 %vm910_vm0, %v15280_v14 }
 0x2c4   : > { %v13341_v27 = vpop.f32.mrb[16].mxu0 }
 0x2c5   : > { %v969_v29 = vpop.f32.mrb[17].mxu0  ;;  %v1002_v34 = vmul.f32 0.17677669, %v13341_v27 }
 0x2c6   : > { %v13342_v35 = vpop.f32.mrb[18].mxu0  ;;  %v1000_v36 = vmul.f32 0.17677669, %v969_v29 }
 0x2c7   : > { %v972_v37 = vpop.f32.mrb[19].mxu0  ;;  %v1015_v38 = vsel %vm1008_vm1, %v1002_v34, -inf  ;;  %v1003_v39 = vmul.f32 0.17677669, %v13342_v35 }
 0x2c8   : > { %1016 = vmax.xlane.f32.xlu1 %v1015_v38  ;;  %v1009_v40 = vsel %vm1008_vm1, %v1000_v36, -inf  ;;  %v1001_v41 = vmul.f32 0.17677669, %v972_v37 }
 0x2c9   : > { %1010 = vmax.xlane.f32.xlu0 %v1009_v40  ;;  %v1018_v22 = vsel %vm1008_vm1, %v1003_v39, -inf }
 0x2ca   : > { %v1012_v28 = vsel %vm1008_vm1, %v1001_v41, -inf }
 0x2cc   : > { %1019 = vmax.xlane.f32.xlu1 %v1018_v22  ;;  %v13345_v25 = vpop.f32.mrb[20].mxu0 }
 0x2cd   : > { %1013 = vmax.xlane.f32.xlu0 %v1012_v28  ;;  %v985_v42 = vpop.f32.mrb[21].mxu0  ;;  %v1006_v50 = vmul.f32 0.17677669, %v13345_v25 }
 0x2ce   : > { %v13346_v43 = vpop.f32.mrb[22].mxu0  ;;  %v1004_v46 = vmul.f32 0.17677669, %v985_v42 }
 0x2cf   : > { %v988_v47 = vpop.f32.mrb[23].mxu0  ;;  %v15306_v52 = vmul.f32 0.17677669, %v13346_v43  ;;  %v1027_v53 = vsel %vm1008_vm1, %v1006_v50, -inf  ;;  %v13329_v43 = vpop.f32.mrb[4].mxu1 }
 0x2d0   : > { %v1021_v48 = vsel %vm1008_vm1, %v1004_v46, -inf  ;;  %v15302_v49 = vmul.f32 0.17677669, %v988_v47 }
 0x2d1   : > { %1022 = vmax.xlane.f32.xlu0 %v1021_v48  ;;  %v1030_v54 = vsel %vm1008_vm1, %v15306_v52, -inf }
 0x2d2   : > { %v1024_v51 = vsel %vm1008_vm1, %v15302_v49, -inf }
 0x2d3   : > { %1025 = vmax.xlane.f32.xlu1 %v1024_v51 }
 0x2d5   : > { %1028 = vmax.xlane.f32.xlu0 %v1027_v53 }
 0x2d7   : > { %1031 = vmax.xlane.f32.xlu1 %v1030_v54  ;;  %v892_v54 = vadd.f32 %v13329_v43, %v15316_v58 }
 0x355   : > { %v1017_v32 = vpop.xlane.xlu1 %1016 }
 0x356   : > { %v1035_v8 = vsub.f32 %v1002_v34, %v1017_v32  ;;  %v1011_v9 = vpop.xlane.xlu0 %1010 }
 0x357   : > { %v1033_v10 = vsub.f32 %v1000_v36, %v1011_v9 }
 0x358   : > { %v1045_v11 = vmul.f32 1.442695, %v1035_v8 }
 0x359   : > { %v1041_v12 = vmul.f32 1.442695, %v1033_v10  ;;  %v1020_v13 = vpop.xlane.xlu1 %1019 }
 0x35a   : > { %14242 = vpow2.f32 %v1045_v11  ;;  %v1036_v16 = vsub.f32 %v1003_v39, %v1020_v13  ;;  %v1014_v17 = vpop.xlane.xlu0 %1013 }
 0x35b   : > { %v1034_v18 = vsub.f32 %v1001_v41, %v1014_v17  ;;  %14244 = vpow2.f32 %v1041_v12 }
 0x35c   : > { %v1047_v19 = vmul.f32 1.442695, %v1036_v16 }
 0x35d   : > { %v1043_v20 = vmul.f32 1.442695, %v1034_v18 }
 0x35e   : > { %14246 = vpow2.f32 %v1047_v19  ;;  %v1023_v21 = vpop.xlane.xlu0 %1022 }
 0x35f   : > { %14248 = vpow2.f32 %v1043_v20  ;;  %v1037_v23 = vsub.f32 %v1004_v46, %v1023_v21  ;;  %v883_v46 = vpop.f32.mrb[5].mxu1 }
 0x360   : > { %v13330_v47 = vpop.f32.mrb[6].mxu1  ;;  %v884_v48 = vadd.f32 %v883_v46, %v15316_v58  ;;  %v1026_v61 = vpop.xlane.xlu1 %1025 }
 0x361   : > { %v1049_v29 = vmul.f32 1.442695, %v1037_v23  ;;  %v895_v59 = vadd.f32 %v13330_v47, %v15316_v58  ;;  %v1038_v63 = vsub.f32 %v15302_v49, %v1026_v61 }
 0x362   : > { %v1029_v24 = vpop.xlane.xlu0 %1028 }
 0x363   : > { %v1039_v26 = vsub.f32 %v1006_v50, %v1029_v24  ;;  %v886_v50 = vpop.f32.mrb[7].mxu1  ;;  %v15364_v60 = vpack.c.bf16 %v895_v59, %v892_v54  ;;  %v1051_v2 = vmul.f32 1.442695, %v1038_v63 }
 0x364   : > { %v15330_v27 = vpop.eup %14242  ;;  %v887_v51 = vadd.f32 %v886_v50, %v15316_v58  ;;  %v1032_v62 = vpop.xlane.xlu1 %1031 }
 0x365   : > { %v1053_v34 = vmul.f32 1.442695, %v1039_v26  ;;  %v1063_v35 = vsel %vm1008_vm1, %v15330_v27, 0.0  ;;  %v15334_v36 = vpop.eup %14244  ;;  %v1040_v58 = vsub.f32 %v15306_v52, %v1032_v62 }
 0x366   : > { %1064 = vadd.xlane.f32.xlu0 %v1063_v35  ;;  %v1057_v38 = vsel %vm1008_vm1, %v15334_v36, 0.0  ;;  %v15356_v53 = vpack.c.bf16 %v887_v51, %v884_v48 }
 0x367   : > { %14250 = vpow2.f32 %v1053_v34  ;;  %v1055_v1 = vmul.f32 1.442695, %v1040_v58 }
 0x368   : > { %v15336_v37 = vpop.eup %14246  ;;  %14252 = vpow2.f32 %v1049_v29  ;;  %13351 = vmatprep.subr.bf16.mxu1 %v15356_v53 }
 0x369   : > { %v1066_v39 = vsel %vm1008_vm1, %v15336_v37, 0.0  ;;  %v15342_v40 = vpop.eup %14248  ;;  %13352 = vmatpush3.bf16.msra.mxu1 %v15356_v53  ;;  %14254 = vpow2.f32 %v1055_v1 }
 0x36a   : > { %1058 = vadd.xlane.f32.xlu0 %v1057_v38  ;;  %1067 = vadd.xlane.f32.xlu1 %v1066_v39  ;;  %v1060_v41 = vsel %vm1008_vm1, %v15342_v40, 0.0  ;;  %14256 = vpow2.f32 %v1051_v2 }
 0x36b   : > { %13353 = vmatprep.subr.bf16.mxu1 %v15364_v60 }
 0x36d   : > { %13354 = vmatpush3.bf16.msra.mxu1 %v15364_v60 }
 0x36e   : > { %1061 = vadd.xlane.f32.xlu1 %v1060_v41 }
 0x371   : > { %v15346_v22 = vpop.eup %14250 }
 0x372   : > { %v1075_v25 = vsel %vm1008_vm1, %v15346_v22, 0.0  ;;  %v15350_v28 = vpop.eup %14252 }
 0x373   : > { %1076 = vadd.xlane.f32.xlu0 %v1075_v25  ;;  %v1069_v42 = vsel %vm1008_vm1, %v15350_v28, 0.0  ;;  %v14255_v5 = vpop.eup %14254 }
 0x374   : > { %v1078_v32 = vsel %vm1008_vm1, %v14255_v5, 0.0  ;;  %v14257_v8 = vpop.eup %14256 }
 0x375   : > { %v1072_v9 = vsel %vm1008_vm1, %v14257_v8, 0.0 }
 0x377   : > { %1070 = vadd.xlane.f32.xlu0 %v1069_v42 }
 0x37f   : > { %1204 = vrot.lane.b32.xlu1 %v15266_v56, %s14868_s6 }
 0x383   : > { %1206 = vrot.lane.b32.xlu1 %v15274_v4, %s14868_s6 }
 0x38d   : > { %1202 = vrot.lane.b32.xlu0 %v15256_v45, %s14868_s6 }
 0x391   : > { %1190 = vrot.lane.b32.xlu0 %v15254_v44, %s14868_s6 }
 0x395   : > { %1194 = vrot.lane.b32.xlu0 %v15272_v3, %s14868_s6 }
 0x3a7   : > { %1079 = vadd.xlane.f32.xlu1 %v1078_v32 }
 0x3ab   : > { %1073 = vadd.xlane.f32.xlu1 %v1072_v9 }
 0x3bc   : > { %1208 = vrot.lane.b32.xlu1 %v15282_v15, %s14868_s6 }
 0x3c0   : > { %1192 = vrot.lane.b32.xlu1 %v15264_v55, %s14868_s6 }
 0x3c4   : > { %1196 = vrot.lane.b32.xlu1 %v15280_v14, %s14868_s6 }
 0x3f3   : > { %v1065_v49 = vpop.xlane.xlu0 %1064 }
 0x3f7   : > { %v1059_v52 = vpop.xlane.xlu0 %1058  ;;  %v1068_v10 = vpop.xlane.xlu1 %1067 }
 0x3f8   : > { %14258 = vrcp.f32 %v1068_v10 }
 0x3f9   : > { %14260 = vrcp.f32 %v1059_v52 }
 0x3fa   : > { %14262 = vrcp.f32 %v1065_v49 }
 0x3fb   : > { %v1062_v11 = vpop.xlane.xlu1 %1061 }
 0x3fc   : > { %14264 = vrcp.f32 %v1062_v11 }
 0x400   : > { %v1077_v12 = vpop.xlane.xlu0 %1076 }
 0x402   : > { %v14259_v13 = vpop.eup %14258 }
 0x403   : > { %v14261_v16 = vpop.eup %14260  ;;  %v15387_v20 = vmul.f32 %v14259_v13, %v15336_v37 }
 0x404   : > { %v1071_v17 = vpop.xlane.xlu0 %1070  ;;  %v14263_v18 = vpop.eup %14262  ;;  %v15390_v21 = vmul.f32 %v14261_v16, %v15334_v36 }
 0x405   : > { %18260 = vst [vmem:[#allocation22_spill] sm:$0xff] %v15387_v20  ;;  %v15396_v24 = vmul.f32 %v14263_v18, %v15330_v27  ;;  %v1205_v36 = vpop.permute.xlu1 %1204 }
 0x406   : > { %v14265_v19 = vpop.eup %14264  ;;  %18261 = vst [vmem:[#allocation23_spill] sm:$0xff] %v15390_v21  ;;  %v1226_v27 = vsel %vm910_vm0, %v1205_v36, 0 }
 0x407   : > { %v15393_v23 = vmul.f32 %v14265_v19, %v15342_v40  ;;  %18263 = vst [vmem:[#allocation25_spill] sm:$0xff] %v15396_v24  ;;  %v1098_v34 = vpack.c.bf16 %v15387_v20, %v15396_v24 }
 0x408   : > { %v1203_v26 = vpop.permute.xlu0 %1202 }
 0x409   : > { %18262 = vst [vmem:[#allocation24_spill] sm:$0xff] %v15393_v23  ;;  %13759 = vmatprep.subr.msk.bf16.mxu1 %vm910_vm0, %v1203_v26  ;;  %v1097_v29 = vpack.c.bf16 %v15393_v23, %v15390_v21  ;;  %v1223_v35 = vsel %vm910_vm0, %v1203_v26, 0  ;;  %v1207_v37 = vpop.permute.xlu1 %1206 }
 0x40a   : > { %v1229_v38 = vsel %vm910_vm0, %v1207_v37, 0 }
 0x40b   : > { %13355 = vmatprep.mubr.msk.bf16.mxu1 %vm1008_vm1, %v1097_v29 }
 0x40c   : > { %13356 = vmatmul.mubr.msk.bf16.vlgmr.msra.gmra.mrb[8].mxu1 %vm1008_vm1, %v1098_v34  ;;  %v1191_v62 = vpop.permute.xlu0 %1190 }
 0x40d   : > { %13364 = vmatpush3.bf16.xpose.msra.mxu1 %v1223_v35 }
 0x40e   : > { %13760 = vmatprep.subr.msk.bf16.mxu1 %vm910_vm0, %v1205_v36 }
 0x410   : > { %v1195_v58 = vpop.permute.xlu0 %1194 }
 0x415   : > { %13366 = vmatpush3.bf16.xpose.msra.mxu1 %v1226_v27 }
 0x416   : > { %13761 = vmatprep.subr.msk.bf16.mxu1 %vm910_vm0, %v1207_v37 }
 0x41d   : > { %13368 = vmatpush3.bf16.xpose.msra.mxu1 %v1229_v38 }
 0x434   : > { %v1080_v39 = vpop.xlane.xlu1 %1079 }
 0x435   : > { %14266 = vrcp.f32 %v1080_v39 }
 0x436   : > { %14268 = vrcp.f32 %v1071_v17 }
 0x437   : > { %14270 = vrcp.f32 %v1077_v12 }
 0x438   : > { %v1074_v40 = vpop.xlane.xlu1 %1073 }
 0x439   : > { %14272 = vrcp.f32 %v1074_v40 }
 0x43c   : > { %v1209_v41 = vpop.permute.xlu1 %1208 }
 0x43d   : > { %13762 = vmatprep.subr.msk.bf16.mxu1 %vm910_vm0, %v1209_v41  ;;  %v1232_v25 = vsel %vm910_vm0, %v1209_v41, 0 }
 0x43e   : > { %13370 = vmatpush3.bf16.xpose.msra.mxu1 %v1232_v25 }
 0x43f   : > { %v14267_v42 = vpop.eup %14266 }
 0x440   : > { %v14269_v43 = vpop.eup %14268  ;;  %v15412_v48 = vmul.f32 %v14267_v42, %v14255_v5 }
 0x441   : > { %v14271_v46 = vpop.eup %14270  ;;  %v15415_v50 = vmul.f32 %v14269_v43, %v15350_v28  ;;  %v1193_v28 = vpop.permute.xlu1 %1192 }
 0x442   : > { %18264 = vst [vmem:[#allocation26_spill] sm:$0xff] %v15412_v48  ;;  %v15420_v54 = vmul.f32 %v14271_v46, %v15346_v22 }
 0x443   : > { %v14273_v47 = vpop.eup %14272  ;;  %18265 = vst [vmem:[#allocation27_spill] sm:$0xff] %v15415_v50 }
 0x444   : > { %v15417_v51 = vmul.f32 %v14273_v47, %v14257_v8  ;;  %18267 = vst [vmem:[#allocation29_spill] sm:$0xff] %v15420_v54  ;;  %v1100_v61 = vpack.c.bf16 %v15412_v48, %v15420_v54 }
 0x445   : > { %v1197_v22 = vpop.permute.xlu1 %1196 }
 0x446   : > { %18266 = vst [vmem:[#allocation28_spill] sm:$0xff] %v15417_v51  ;;  %v1099_v59 = vpack.c.bf16 %v15417_v51, %v15415_v50  ;;  %v3204_v51 = vld [vmem:[#allocation8 + $0x1d0] sm:$0xff] }
 0x448   : > { %13359 = vmatprep.mubr.msk.bf16.mxu1 %vm1008_vm1, %v1099_v59 }
 0x449   : > { %13360 = vmatmul.mubr.msk.bf16.gmra.mrb[12].mxu1 %vm1008_vm1, %v1100_v61 }
 0x44a   : > { %13371 = vmatprep.mubr.msk.bf16.mxu1 %vm910_vm0, %v1191_v62 }
 0x451   : > { %13372 = vmatmul.mubr.msk.bf16.vlgmr.msra.gmra.mrb[16].mxu1 %vm910_vm0, %v1193_v28 }
 0x452   : > { %13375 = vmatprep.mubr.msk.bf16.mxu1 %vm910_vm0, %v1195_v58 }
 0x459   : > { %13376 = vmatmul.mubr.msk.bf16.gmra.mrb[20].mxu1 %vm910_vm0, %v1197_v22 }
 0x4df   : > { %v15432_v63 = vpop.f32.mrb[8].mxu1 }
 0x4e0   : > { %v15434_v1 = vpop.f32.mrb[9].mxu1 }
 0x4e1   : > { %v15436_v2 = vpop.f32.mrb[10].mxu1 }
 0x4e2   : > { %v1179_v5 = vpack.c.bf16 %v15436_v2, %v15432_v63  ;;  %v15440_v32 = vpop.f32.mrb[11].mxu1 }
 0x4e3   : > { %v1178_v8 = vpack.c.bf16 %v15440_v32, %v15434_v1 }
 0x51c   : > { %v15444_v9 = vpop.f32.mrb[12].mxu1 }
 0x51d   : > { %v15446_v49 = vpop.f32.mrb[13].mxu1 }
 0x51e   : > { %v15448_v52 = vpop.f32.mrb[14].mxu1 }
 0x51f   : > { %v1181_v10 = vpack.c.bf16 %v15448_v52, %v15444_v9  ;;  %v15452_v11 = vpop.f32.mrb[15].mxu1 }
 0x520   : > { %v1180_v12 = vpack.c.bf16 %v15452_v11, %v15446_v49 }
 0x524   : > { %v13373_v13 = vpop.f32.mrb[16].mxu1 }
 0x525   : > { %v1268_v16 = vpop.f32.mrb[17].mxu1  ;;  %v1301_v17 = vmul.f32 0.17677669, %v13373_v13 }
 0x526   : > { %v13374_v18 = vpop.f32.mrb[18].mxu1  ;;  %v1299_v29 = vmul.f32 0.17677669, %v1268_v16 }
 0x527   : > { %v1271_v19 = vpop.f32.mrb[19].mxu1  ;;  %v1313_v26 = vsel %vm1008_vm1, %v1301_v17, -inf  ;;  %v1302_v27 = vmul.f32 0.17677669, %v13374_v18 }
 0x528   : > { %1314 = vmax.xlane.f32.xlu0 %v1313_v26  ;;  %v1300_v34 = vmul.f32 0.17677669, %v1271_v19  ;;  %v1307_v36 = vsel %vm1008_vm1, %v1299_v29, -inf }
 0x529   : > { %v1316_v41 = vsel %vm1008_vm1, %v1302_v27, -inf }
 0x52a   : > { %v1310_v35 = vsel %vm1008_vm1, %v1300_v34, -inf }
 0x52b   : > { %1311 = vmax.xlane.f32.xlu1 %v1310_v35 }
 0x52c   : > { %1308 = vmax.xlane.f32.xlu0 %v1307_v36  ;;  %v13377_v37 = vpop.f32.mrb[20].mxu1 }
 0x52d   : > { %v1284_v38 = vpop.f32.mrb[21].mxu1  ;;  %v1305_v25 = vmul.f32 0.17677669, %v13377_v37 }
 0x52e   : > { %v13378_v39 = vpop.f32.mrb[22].mxu1  ;;  %v1303_v43 = vmul.f32 0.17677669, %v1284_v38 }
 0x52f   : > { %v1287_v40 = vpop.f32.mrb[23].mxu1  ;;  %v1325_v42 = vsel %vm1008_vm1, %v1305_v25, -inf  ;;  %v15468_v47 = vmul.f32 0.17677669, %v13378_v39 }
 0x530   : > { %1317 = vmax.xlane.f32.xlu0 %v1316_v41  ;;  %v1319_v46 = vsel %vm1008_vm1, %v1303_v43, -inf  ;;  %v15472_v61 = vmul.f32 0.17677669, %v1287_v40 }
 0x531   : > { %v1328_v59 = vsel %vm1008_vm1, %v15468_v47, -inf }
 0x532   : > { %v1322_v62 = vsel %vm1008_vm1, %v15472_v61, -inf }
 0x534   : > { %1326 = vmax.xlane.f32.xlu0 %v1325_v42 }
 0x538   : > { %1320 = vmax.xlane.f32.xlu0 %v1319_v46 }
 0x53c   : > { %1405 = vrot.lane.b32.xlu1 %v15322_v6, %s14868_s6 }
 0x540   : > { %1407 = vrot.lane.b32.xlu1 %v15356_v53, %s14868_s6 }
 0x54e   : > { %1403 = vrot.lane.b32.xlu0 %v15324_v7, %s14868_s6 }
 0x564   : > { %1329 = vmax.xlane.f32.xlu1 %v1328_v59 }
 0x568   : > { %1323 = vmax.xlane.f32.xlu1 %v1322_v62 }
 0x579   : > { %1409 = vrot.lane.b32.xlu1 %v15364_v60, %s14868_s6 }
 0x5b5   : > { %v1315_v28 = vpop.xlane.xlu0 %1314 }
 0x5b6   : > { %v1333_v58 = vsub.f32 %v1301_v17, %v1315_v28 }
 0x5b8   : > { %v1343_v22 = vmul.f32 1.442695, %v1333_v58  ;;  %v1312_v13 = vpop.xlane.xlu1 %1311 }
 0x5b9   : > { %v1309_v16 = vpop.xlane.xlu0 %1308  ;;  %v1332_v19 = vsub.f32 %v1300_v34, %v1312_v13 }
 0x5ba   : > { %14274 = vpow2.f32 %v1343_v22  ;;  %v1331_v18 = vsub.f32 %v1299_v29, %v1309_v16 }
 0x5bb   : > { %v1341_v37 = vmul.f32 1.442695, %v1332_v19 }
 0x5bc   : > { %v1339_v26 = vmul.f32 1.442695, %v1331_v18 }
 0x5bd   : > { %v1318_v35 = vpop.xlane.xlu0 %1317 }
 0x5be   : > { %14276 = vpow2.f32 %v1339_v26  ;;  %v1334_v36 = vsub.f32 %v1302_v27, %v1318_v35  ;;  %v1406_v27 = vpop.permute.xlu1 %1405 }
 0x5c0   : > { %v1345_v38 = vmul.f32 1.442695, %v1334_v36 }
 0x5c1   : > { %v1327_v39 = vpop.xlane.xlu0 %1326 }
 0x5c2   : > { %14278 = vpow2.f32 %v1345_v38  ;;  %v1337_v40 = vsub.f32 %v1305_v25, %v1327_v39  ;;  %v1408_v22 = vpop.permute.xlu1 %1407 }
 0x5c3   : > { %14280 = vpow2.f32 %v1341_v37 }
 0x5c4   : > { %v15478_v41 = vpop.eup %14274  ;;  %v1351_v42 = vmul.f32 1.442695, %v1337_v40 }
 0x5c5   : > { %v1321_v17 = vpop.xlane.xlu0 %1320  ;;  %v1361_v46 = vsel %vm1008_vm1, %v15478_v41, 0.0 }
 0x5c6   : > { %14282 = vpow2.f32 %v1351_v42  ;;  %v1335_v29 = vsub.f32 %v1303_v43, %v1321_v17  ;;  %1362 = vadd.xlane.f32.xlu0 %v1361_v46 }
 0x5c8   : > { %v15482_v34 = vpop.eup %14276  ;;  %v1347_v59 = vmul.f32 1.442695, %v1335_v29 }
 0x5c9   : > { %v1404_v62 = vpop.permute.xlu0 %1403  ;;  %v1355_v28 = vsel %vm1008_vm1, %v15482_v34, 0.0 }
 0x5ca   : > { %14284 = vpow2.f32 %v1347_v59  ;;  %1356 = vadd.xlane.f32.xlu0 %v1355_v28  ;;  %13379 = vmatprep.subr.bf16.mxu1 %v1404_v62  ;;  %v13938_v59 = vld [vmem:[#allocation7 + $0x10] sm:$0xff]  }
 0x5cb   : > { %13380 = vmatpush3.bf16.msra.mxu1 %v1404_v62  ;;  %13395 = vmatprep.subr.bf16.mxu0 %v13938_v59 }
 0x5cc   : > { %v15486_v25 = vpop.eup %14278  ;;  %13381 = vmatprep.subr.bf16.mxu1 %v1406_v27  ;;  %13396 = vmatpush3.bf16.msra.mxu0 %v13938_v59 }
 0x5cd   : > { %v1364_v58 = vsel %vm1008_vm1, %v15486_v25, 0.0  ;;  %v15490_v43 = vpop.eup %14280 }
 0x5ce   : > { %1365 = vadd.xlane.f32.xlu1 %v1364_v58  ;;  %v1358_v18 = vsel %vm1008_vm1, %v15490_v43, 0.0 }
 0x5cf   : > { %13382 = vmatpush3.bf16.msra.mxu1 %v1406_v27 }
 0x5d0   : > { %v15492_v13 = vpop.eup %14282  ;;  %13383 = vmatprep.subr.bf16.mxu1 %v1408_v22 }
 0x5d1   : > { %v1373_v16 = vsel %vm1008_vm1, %v15492_v13, 0.0 }
 0x5d2   : > { %1374 = vadd.xlane.f32.xlu0 %v1373_v16  ;;  %1359 = vadd.xlane.f32.xlu1 %v1358_v18 }
 0x5d3   : > { %13384 = vmatpush3.bf16.msra.mxu1 %v1408_v22 }
 0x5d4   : > { %v15498_v19 = vpop.eup %14284 }
 0x5d5   : > { %v1367_v26 = vsel %vm1008_vm1, %v15498_v19, 0.0 }
 0x5d6   : > { %1368 = vadd.xlane.f32.xlu0 %v1367_v26 }
 0x5e3   : > { %1688 = vrot.lane.b32.xlu1 %v15266_v56, %s14869_s14 }
 0x5e7   : > { %1690 = vrot.lane.b32.xlu1 %v15274_v4, %s14869_s14 }
 0x5f1   : > { %v1330_v35 = vpop.xlane.xlu1 %1329 }
 0x5f2   : > { %v1338_v36 = vsub.f32 %v15468_v47, %v1330_v35 }
 0x5f4   : > { %v1353_v37 = vmul.f32 1.442695, %v1338_v36 }
 0x5f5   : > { %v1324_v38 = vpop.xlane.xlu1 %1323 }
 0x5f6   : > { %14286 = vpow2.f32 %v1353_v37  ;;  %v1336_v39 = vsub.f32 %v15472_v61, %v1324_v38 }
 0x5f8   : > { %v1349_v40 = vmul.f32 1.442695, %v1336_v39 }
 0x5f9   : > { %v1410_v42 = vpop.permute.xlu1 %1409 }
 0x5fa   : > { %13385 = vmatprep.subr.bf16.mxu1 %v1410_v42  ;;  %14288 = vpow2.f32 %v1349_v40 }
 0x5fb   : > { %13386 = vmatpush3.bf16.msra.mxu1 %v1410_v42 }
 0x600   : > { %v15508_v17 = vpop.eup %14286 }
 0x601   : > { %v1376_v46 = vsel %vm1008_vm1, %v15508_v17, 0.0 }
 0x602   : > { %1377 = vadd.xlane.f32.xlu0 %v1376_v46 }
 0x604   : > { %v15512_v29 = vpop.eup %14288 }
 0x605   : > { %v1370_v47 = vsel %vm1008_vm1, %v15512_v29, 0.0 }
 0x60b   : > { %1371 = vadd.xlane.f32.xlu1 %v1370_v47 }
 0x618   : > { %1686 = vrot.lane.b32.xlu0 %v15256_v45, %s14869_s14 }
 0x61c   : > { %1678 = vrot.lane.b32.xlu0 %v15254_v44, %s14869_s14  ;;  %1692 = vrot.lane.b32.xlu1 %v15282_v15, %s14869_s14 }
 0x620   : > { %1682 = vrot.lane.b32.xlu0 %v15272_v3, %s14869_s14  ;;  %1680 = vrot.lane.b32.xlu1 %v15264_v55, %s14869_s14 }
 0x624   : > { %2085 = vrot.lane.b32.xlu0 %v15256_v45, %s14870_s12  ;;  %1684 = vrot.lane.b32.xlu1 %v15280_v14, %s14869_s14 }
 0x628   : > { %2089 = vrot.lane.b32.xlu0 %v15274_v4, %s14870_s12  ;;  %2087 = vrot.lane.b32.xlu1 %v15266_v56, %s14870_s12 }
 0x62c   : > { %2077 = vrot.lane.b32.xlu0 %v15254_v44, %s14870_s12  ;;  %2091 = vrot.lane.b32.xlu1 %v15282_v15, %s14870_s12 }
 0x630   : > { %2081 = vrot.lane.b32.xlu0 %v15272_v3, %s14870_s12  ;;  %2079 = vrot.lane.b32.xlu1 %v15264_v55, %s14870_s12 }
 0x634   : > { %2083 = vrot.lane.b32.xlu1 %v15280_v14, %s14870_s12 }
 0x653   : > { %v1363_v45 = vpop.xlane.xlu0 %1362 }
 0x657   : > { %v1357_v61 = vpop.xlane.xlu0 %1356 }
 0x65b   : > { %v1366_v4 = vpop.xlane.xlu1 %1365 }
 0x65c   : > { %14290 = vrcp.f32 %v1366_v4 }
 0x65d   : > { %14292 = vrcp.f32 %v1357_v61 }
 0x65e   : > { %14294 = vrcp.f32 %v1363_v45 }
 0x65f   : > { %v1360_v44 = vpop.xlane.xlu1 %1359 }
 0x660   : > { %14296 = vrcp.f32 %v1360_v44 }
 0x666   : > { %v14291_v56 = vpop.eup %14290 }
 0x667   : > { %v14293_v15 = vpop.eup %14292  ;;  %v15545_v55 = vmul.f32 %v14291_v56, %v15486_v25  ;;  %v1375_v25 = vpop.xlane.xlu0 %1374 }
 0x668   : > { %v14295_v3 = vpop.eup %14294  ;;  %v15548_v14 = vmul.f32 %v14293_v15, %v15482_v34  ;;  %v1689_v34 = vpop.permute.xlu1 %1688 }
 0x669   : > { %18268 = vst [vmem:[#allocation30_spill] sm:$0xff] %v15545_v55  ;;  %v15554_v28 = vmul.f32 %v14295_v3, %v15478_v41  ;;  %v1710_v36 = vsel %vm910_vm0, %v1689_v34, 0 }
 0x66a   : > { %v14297_v27 = vpop.eup %14296  ;;  %18269 = vst [vmem:[#allocation31_spill] sm:$0xff] %v15548_v14 }
 0x66b   : > { %v15551_v62 = vmul.f32 %v14297_v27, %v15490_v43  ;;  %18271 = vst [vmem:[#allocation33_spill] sm:$0xff] %v15554_v28  ;;  %v1396_v22 = vpack.c.bf16 %v15545_v55, %v15554_v28  ;;  %v1369_v16 = vpop.xlane.xlu0 %1368  ;;  %v13981_v28 = vld [vmem:[#allocation11 + $0x80] sm:$0xff]  }
 0x66c   : > { %v1691_v43 = vpop.permute.xlu1 %1690 }
 0x66d   : > { %18270 = vst [vmem:[#allocation32_spill] sm:$0xff] %v15551_v62  ;;  %v1395_v58 = vpack.c.bf16 %v15551_v62, %v15548_v14  ;;  %v1713_v45 = vsel %vm910_vm0, %v1691_v43, 0  ;;  %v13980_v14 = vld [vmem:[#allocation11] sm:$0xff]  }
 0x66f   : > { %13387 = vmatprep.mubr.msk.bf16.mxu1 %vm1008_vm1, %v1395_v58 }
 0x670   : > { %13388 = vmatmul.mubr.msk.bf16.vlgmr.msra.gmra.mrb[24].mxu1 %vm1008_vm1, %v1396_v22 }
 0x68f   : > { %v1378_v18 = vpop.xlane.xlu0 %1377 }
 0x690   : > { %14298 = vrcp.f32 %v1378_v18  ;;  %v13939_v18 = vld [vmem:[#allocation7 + $0x18] sm:$0xff]  }
 0x691   : > { %14300 = vrcp.f32 %v1369_v16  ;;  %13397 = vmatprep.subr.bf16.mxu0 %v13939_v18 }
 0x692   : > { %14302 = vrcp.f32 %v1375_v25  ;;  %13398 = vmatpush3.bf16.msra.mxu0 %v13939_v18 }
 0x693   : > { %v1687_v26 = vpop.permute.xlu0 %1686 }
 0x694   : > { %13763 = vmatprep.subr.msk.bf16.mxu1 %vm910_vm0, %v1687_v26  ;;  %v1707_v41 = vsel %vm910_vm0, %v1687_v26, 0 }
 0x695   : > { %13420 = vmatpush3.bf16.xpose.msra.mxu1 %v1707_v41 }
 0x696   : > { %13764 = vmatprep.subr.msk.bf16.mxu1 %vm910_vm0, %v1689_v34 }
 0x697   : > { %v1679_v39 = vpop.permute.xlu0 %1678 }
 0x698   : > { %v1372_v35 = vpop.xlane.xlu1 %1371 }
 0x699   : > { %14304 = vrcp.f32 %v1372_v35 }
 0x69a   : > { %v14299_v37 = vpop.eup %14298 }
 0x69b   : > { %v14301_v38 = vpop.eup %14300  ;;  %v15568_v47 = vmul.f32 %v14299_v37, %v15508_v17  ;;  %v1683_v56 = vpop.permute.xlu0 %1682 }
 0x69c   : > { %v14303_v40 = vpop.eup %14302  ;;  %v1693_v46 = vpop.permute.xlu1 %1692  ;;  %v15572_v4 = vmul.f32 %v14301_v38, %v15498_v19 }
 0x69d   : > { %13422 = vmatpush3.bf16.xpose.msra.mxu1 %v1710_v36  ;;  %18272 = vst [vmem:[#allocation34_spill] sm:$0xff] %v15568_v47  ;;  %v15578_v59 = vmul.f32 %v14303_v40, %v15492_v13  ;;  %v13940_v36 = vld [vmem:[#allocation7] sm:$0xff]  }
 0x69e   : > { %13765 = vmatprep.subr.msk.bf16.mxu1 %vm910_vm0, %v1691_v43  ;;  %18273 = vst [vmem:[#allocation35_spill] sm:$0xff] %v15572_v4  ;;  %13407 = vmatprep.subr.bf16.mxu0 %v13940_v36 }
 0x69f   : > { %18275 = vst [vmem:[#allocation37_spill] sm:$0xff] %v15578_v59  ;;  %v1398_v17 = vpack.c.bf16 %v15568_v47, %v15578_v59  ;;  %v2086_v13 = vpop.permute.xlu0 %2085 }
 0x6a0   : > { %v1681_v19 = vpop.permute.xlu1 %1680  ;;  %v2106_v3 = vsel %vm910_vm0, %v2086_v13, 0 }
 0x6a3   : > { %v14305_v42 = vpop.eup %14304  ;;  %v2090_v58 = vpop.permute.xlu0 %2089 }
 0x6a4   : > { %v15575_v61 = vmul.f32 %v14305_v42, %v15512_v29  ;;  %v1716_v29 = vsel %vm910_vm0, %v1693_v46, 0  ;;  %v1685_v15 = vpop.permute.xlu1 %1684  ;;  %v2112_v16 = vsel %vm910_vm0, %v2090_v58, 0 }
 0x6a5   : > { %13424 = vmatpush3.bf16.xpose.msra.mxu1 %v1713_v45  ;;  %v13941_v45 = vld [vmem:[#allocation7 + $0x8] sm:$0xff]  }
 0x6a6   : > { %18274 = vst [vmem:[#allocation36_spill] sm:$0xff] %v15575_v61  ;;  %13766 = vmatprep.subr.msk.bf16.mxu1 %vm910_vm0, %v1693_v46  ;;  %v1397_v44 = vpack.c.bf16 %v15575_v61, %v15572_v4 }
 0x6a7   : > { %v2078_v22 = vpop.permute.xlu0 %2077 }
 0x6a8   : > { %13391 = vmatprep.mubr.msk.bf16.mxu1 %vm1008_vm1, %v1397_v44  ;;  %v2088_v27 = vpop.permute.xlu1 %2087 }
 0x6a9   : > { %13392 = vmatmul.mubr.msk.bf16.gmra.mrb[28].mxu1 %vm1008_vm1, %v1398_v17  ;;  %v2109_v25 = vsel %vm910_vm0, %v2088_v27, 0 }
 0x6aa   : > { %13427 = vmatprep.mubr.msk.bf16.mxu1 %vm910_vm0, %v1679_v39 }
 0x6ab   : > { %v2082_v41 = vpop.permute.xlu0 %2081 }
 0x6ac   : > { %v2092_v34 = vpop.permute.xlu1 %2091 }
 0x6ad   : > { %13426 = vmatpush3.bf16.xpose.msra.mxu1 %v1716_v29  ;;  %v2115_v26 = vsel %vm910_vm0, %v2092_v34, 0 }
 0x6ae   : > { %13767 = vmatprep.subr.msk.bf16.mxu1 %vm910_vm0, %v2086_v13 }
 0x6b0   : > { %v2080_v43 = vpop.permute.xlu1 %2079 }
 0x6b4   : > { %13428 = vmatmul.mubr.msk.bf16.vlgmr.msra.gmra.mrb[32].mxu1 %vm910_vm0, %v1681_v19  ;;  %v2084_v35 = vpop.permute.xlu1 %2083 }
 0x6b5   : > { %13431 = vmatprep.mubr.msk.bf16.mxu1 %vm910_vm0, %v1683_v56  ;;  %13464 = vmatpush3.bf16.xpose.msra.mxu1 %v2106_v3 }
 0x6b6   : > { %13768 = vmatprep.subr.msk.bf16.mxu1 %vm910_vm0, %v2088_v27 }
 0x6bc   : > { %13432 = vmatmul.mubr.msk.bf16.gmra.mrb[36].mxu1 %vm910_vm0, %v1685_v15 }
 0x6bd   : > { %13466 = vmatpush3.bf16.xpose.msra.mxu1 %v2109_v25  ;;  %13471 = vmatprep.mubr.msk.bf16.mxu1 %vm910_vm0, %v2078_v22 }
 0x6be   : > { %13769 = vmatprep.subr.msk.bf16.mxu1 %vm910_vm0, %v2090_v58 }
 0x6c5   : > { %13468 = vmatpush3.bf16.xpose.msra.mxu1 %v2112_v16 }
 0x6c6   : > { %13770 = vmatprep.subr.msk.bf16.mxu1 %vm910_vm0, %v2092_v34 }
 0x6cd   : > { %13470 = vmatpush3.bf16.xpose.msra.mxu1 %v2115_v26 }
 0x6d4   : > { %13472 = vmatmul.mubr.msk.bf16.vlgmr.msra.gmra.mrb[40].mxu1 %vm910_vm0, %v2080_v43 }
 0x6d5   : > { %13475 = vmatprep.mubr.msk.bf16.mxu1 %vm910_vm0, %v2082_v41 }
 0x6dc   : > { %13476 = vmatmul.mubr.msk.bf16.gmra.mrb[44].mxu1 %vm910_vm0, %v2084_v35 }
 0x6dd   : > { %2964 = vmatprep.mubr.bf16.mxu1 %v18167_v0 }
 0x743   : > { %v13389_v37 = vpop.f32.mrb[24].mxu1 }
 0x744   : > { %v1461_v38 = vpop.f32.mrb[25].mxu1 }
 0x745   : > { %v13390_v39 = vpop.f32.mrb[26].mxu1 }
 0x746   : > { %v1493_v40 = vpack.c.bf16 %v13390_v39, %v13389_v37  ;;  %v1464_v42 = vpop.f32.mrb[27].mxu1 }
 0x747   : > { %v1492_v46 = vpack.c.bf16 %v1464_v42, %v1461_v38 }
 0x749   : > { %13399 = vmatprep.mubr.msk.bf16.mxu0 %vm910_vm0, %v1492_v46 }
 0x74a   : > { %13400 = vmatmul.mubr.msk.bf16.vlgmr.msra.gmra.mrb[24].mxu0 %vm910_vm0, %v1493_v40 }
 0x74b   : > { %13408 = vmatpush3.bf16.msra.mxu0 %v13940_v36 }
 0x74c   : > { %13409 = vmatprep.subr.bf16.mxu0 %v13941_v45 }
 0x74f   : > { %13410 = vmatpush3.bf16.msra.mxu0 %v13941_v45 }
 0x77c   : > { %v13393_v44 = vpop.f32.mrb[28].mxu1 }
 0x77d   : > { %v1477_v56 = vpop.f32.mrb[29].mxu1 }
 0x77e   : > { %v13394_v17 = vpop.f32.mrb[30].mxu1 }
 0x77f   : > { %v1495_v19 = vpack.c.bf16 %v13394_v17, %v13393_v44  ;;  %v1480_v29 = vpop.f32.mrb[31].mxu1 }
 0x780   : > { %v1494_v13 = vpack.c.bf16 %v1480_v29, %v1477_v56 }
 0x782   : > { %13403 = vmatprep.mubr.msk.bf16.mxu0 %vm910_vm0, %v1494_v13 }
 0x783   : > { %13404 = vmatmul.mubr.msk.bf16.gmra.mrb[28].mxu0 %vm910_vm0, %v1495_v19 }
 0x784   : > { %13411 = vmatprep.mubr.msk.bf16.mxu0 %vm910_vm0, %v1178_v8 }
 0x787   : > { %v13429_v15 = vpop.f32.mrb[32].mxu1 }
 0x788   : > { %v1752_v3 = vpop.f32.mrb[33].mxu1  ;;  %v1785_v34 = vmul.f32 0.17677669, %v13429_v15 }
 0x789   : > { %v13430_v27 = vpop.f32.mrb[34].mxu1  ;;  %v1783_v58 = vmul.f32 0.17677669, %v1752_v3 }
 0x78a   : > { %v1755_v22 = vpop.f32.mrb[35].mxu1  ;;  %v1797_v8 = vsel %vm1008_vm1, %v1785_v34, -inf  ;;  %v1786_v18 = vmul.f32 0.17677669, %v13430_v27 }
 0x78b   : > { %13412 = vmatmul.mubr.msk.bf16.vlgmr.msra.gmra.mrb[24].mxu0 %vm910_vm0, %v1179_v5  ;;  %v1791_v25 = vsel %vm1008_vm1, %v1783_v58, -inf  ;;  %v1784_v16 = vmul.f32 0.17677669, %v1755_v22 }
 0x78c   : > { %13415 = vmatprep.mubr.msk.bf16.mxu0 %vm910_vm0, %v1180_v12  ;;  %1792 = vmax.xlane.f32.xlu0 %v1791_v25  ;;  %v1800_v49 = vsel %vm1008_vm1, %v1786_v18, -inf }
 0x78d   : > { %v1794_v1 = vsel %vm1008_vm1, %v1784_v16, -inf }
 0x78e   : > { %1795 = vmax.xlane.f32.xlu1 %v1794_v1 }
 0x78f   : > { %v13433_v32 = vpop.f32.mrb[36].mxu1 }
 0x790   : > { %1798 = vmax.xlane.f32.xlu0 %v1797_v8  ;;  %v1768_v63 = vpop.f32.mrb[37].mxu1  ;;  %v1789_v35 = vmul.f32 0.17677669, %v13433_v32 }
 0x791   : > { %v13434_v2 = vpop.f32.mrb[38].mxu1  ;;  %v1787_v12 = vmul.f32 0.17677669, %v1768_v63 }
 0x792   : > { %v1771_v5 = vpop.f32.mrb[39].mxu1  ;;  %v15633_v43 = vmul.f32 0.17677669, %v13434_v2  ;;  %v1809_v52 = vsel %vm1008_vm1, %v1789_v35, -inf }
 0x793   : > { %13416 = vmatmul.mubr.msk.bf16.gmra.mrb[28].mxu0 %vm910_vm0, %v1181_v10  ;;  %v15629_v11 = vmul.f32 0.17677669, %v1771_v5  ;;  %v1803_v41 = vsel %vm1008_vm1, %v1787_v12, -inf }
 0x794   : > { %1801 = vmax.xlane.f32.xlu0 %v1800_v49  ;;  %v1812_v9 = vsel %vm1008_vm1, %v15633_v43, -inf }
 0x795   : > { %v1806_v26 = vsel %vm1008_vm1, %v15629_v11, -inf }
 0x796   : > { %1807 = vmax.xlane.f32.xlu1 %v1806_v26 }
 0x798   : > { %1804 = vmax.xlane.f32.xlu0 %v1803_v41 }
 0x79a   : > { %1813 = vmax.xlane.f32.xlu1 %v1812_v9 }
 0x79c   : > { %1810 = vmax.xlane.f32.xlu0 %v1809_v52 }
 0x7a7   : > { %v15639_v10 = vpop.f32.mrb[40].mxu1 }
 0x7a8   : > { %v2151_v36 = vpop.f32.mrb[41].mxu1 }
 0x7a9   : > { %v15641_v37 = vpop.f32.mrb[42].mxu1 }
 0x7aa   : > { %v15643_v38 = vpop.f32.mrb[43].mxu1 }
 0x7af   : > { %v15645_v39 = vpop.f32.mrb[44].mxu1 }
 0x7b0   : > { %v15647_v40 = vpop.f32.mrb[45].mxu1 }
 0x7b1   : > { %v15649_v42 = vpop.f32.mrb[46].mxu1 }
 0x7b2   : > { %v15651_v46 = vpop.f32.mrb[47].mxu1 }
 0x819   : > { %v1793_v45 = vpop.xlane.xlu0 %1792 }
 0x81a   : > { %v1815_v44 = vsub.f32 %v1783_v58, %v1793_v45 }
 0x81b   : > { %v1796_v56 = vpop.xlane.xlu1 %1795 }
 0x81c   : > { %v1823_v29 = vmul.f32 1.442695, %v1815_v44  ;;  %v1816_v13 = vsub.f32 %v1784_v16, %v1796_v56 }
 0x81d   : > { %v1799_v17 = vpop.xlane.xlu0 %1798 }
 0x81e   : > { %v1817_v19 = vsub.f32 %v1785_v34, %v1799_v17  ;;  %v1825_v22 = vmul.f32 1.442695, %v1816_v13 }
 0x820   : > { %v1827_v15 = vmul.f32 1.442695, %v1817_v19 }
 0x821   : > { %v1802_v3 = vpop.xlane.xlu0 %1801 }
 0x822   : > { %14306 = vpow2.f32 %v1827_v15  ;;  %v1818_v27 = vsub.f32 %v1786_v18, %v1802_v3 }
 0x823   : > { %14308 = vpow2.f32 %v1823_v29  ;;  %v1808_v44 = vpop.xlane.xlu1 %1807 }
 0x824   : > { %v1829_v25 = vmul.f32 1.442695, %v1818_v27  ;;  %v1820_v19 = vsub.f32 %v15629_v11, %v1808_v44  ;;  %v15689_v27 = vmul.f32 0.17677669, %v2151_v36  ;;  %v15703_v36 = vmul.f32 0.17677669, %v15641_v37 }
 0x825   : > { %v1805_v1 = vpop.xlane.xlu0 %1804  ;;  %v15722_v37 = vmul.f32 0.17677669, %v15643_v38 }
 0x826   : > { %14310 = vpow2.f32 %v1829_v25  ;;  %v1819_v32 = vsub.f32 %v1787_v12, %v1805_v1  ;;  %v1833_v13 = vmul.f32 1.442695, %v1820_v19  ;;  %v2190_v25 = vsel %vm1008_vm1, %v15689_v27, -inf }
 0x827   : > { %14312 = vpow2.f32 %v1825_v22  ;;  %v1814_v56 = vpop.xlane.xlu1 %1813 }
 0x828   : > { %v1831_v58 = vmul.f32 1.442695, %v1819_v32  ;;  %v1822_v17 = vsub.f32 %v15633_v43, %v1814_v56  ;;  %v15698_v43 = vmul.f32 0.17677669, %v15639_v10  ;;  %v2199_v32 = vsel %vm1008_vm1, %v15703_v36, -inf }
 0x829   : > { %v1811_v8 = vpop.xlane.xlu0 %1810 }
 0x82a   : > { %v1821_v63 = vsub.f32 %v1789_v35, %v1811_v8  ;;  %v1837_v29 = vmul.f32 1.442695, %v1822_v17  ;;  %v2196_v1 = vsel %vm1008_vm1, %v15698_v43, -inf  ;;  %v15708_v8 = vmul.f32 0.17677669, %v15647_v40 }
 0x82b   : > { %v2193_v40 = vsel %vm1008_vm1, %v15722_v37, -inf }
 0x82c   : > { %v15653_v2 = vpop.eup %14306  ;;  %v1835_v5 = vmul.f32 1.442695, %v1821_v63  ;;  %v2202_v10 = vsel %vm1008_vm1, %v15708_v8, -inf  ;;  %v15713_v63 = vmul.f32 0.17677669, %v15645_v39 }
 0x82d   : > { %v1845_v16 = vsel %vm1008_vm1, %v15653_v2, 0.0  ;;  %v15657_v34 = vpop.eup %14308  ;;  %v15727_v39 = vmul.f32 0.17677669, %v15651_v46 }
 0x82e   : > { %14314 = vpow2.f32 %v1835_v5  ;;  %1846 = vadd.xlane.f32.xlu0 %v1845_v16  ;;  %v1839_v49 = vsel %vm1008_vm1, %v15657_v34, 0.0  ;;  %v15732_v16 = vmul.f32 0.17677669, %v15649_v42 }
 0x82f   : > { %14316 = vpow2.f32 %v1831_v58  ;;  %v2208_v58 = vsel %vm1008_vm1, %v15713_v63, -inf  ;;  %v2205_v5 = vsel %vm1008_vm1, %v15727_v39, -inf }
 0x830   : > { %v15659_v18 = vpop.eup %14310  ;;  %14318 = vpow2.f32 %v1837_v29 }
 0x831   : > { %v1848_v12 = vsel %vm1008_vm1, %v15659_v18, 0.0  ;;  %v15665_v26 = vpop.eup %14312  ;;  %14320 = vpow2.f32 %v1833_v13 }
 0x832   : > { %1840 = vadd.xlane.f32.xlu0 %v1839_v49  ;;  %1849 = vadd.xlane.f32.xlu1 %v1848_v12  ;;  %v1842_v41 = vsel %vm1008_vm1, %v15665_v26, 0.0 }
 0x836   : > { %1843 = vadd.xlane.f32.xlu1 %v1842_v41 }
 0x838   : > { %v15669_v35 = vpop.eup %14314 }
 0x839   : > { %v1857_v9 = vsel %vm1008_vm1, %v15669_v35, 0.0  ;;  %v15673_v52 = vpop.eup %14316 }
 0x83a   : > { %1858 = vadd.xlane.f32.xlu0 %v1857_v9  ;;  %v1851_v45 = vsel %vm1008_vm1, %v15673_v52, 0.0  ;;  %v15685_v15 = vpop.eup %14318 }
 0x83b   : > { %v1860_v3 = vsel %vm1008_vm1, %v15685_v15, 0.0  ;;  %v15691_v22 = vpop.eup %14320 }
 0x83c   : > { %v1854_v11 = vsel %vm1008_vm1, %v15691_v22, 0.0 }
 0x83e   : > { %1852 = vadd.xlane.f32.xlu0 %v1851_v45 }
 0x847   : > { %1885 = vrot.lane.b32.xlu1 %v15322_v6, %s14869_s14 }
 0x84b   : > { %1887 = vrot.lane.b32.xlu1 %v15356_v53, %s14869_s14 }
 0x854   : > { %1883 = vrot.lane.b32.xlu0 %v15324_v7, %s14869_s14 }
 0x86f   : > { %1861 = vadd.xlane.f32.xlu1 %v1860_v3 }
 0x873   : > { %2191 = vmax.xlane.f32.xlu0 %v2190_v25  ;;  %1855 = vadd.xlane.f32.xlu1 %v1854_v11 }
 0x877   : > { %2197 = vmax.xlane.f32.xlu0 %v2196_v1 }
 0x87b   : > { %2200 = vmax.xlane.f32.xlu0 %v2199_v32 }
 0x87f   : > { %2203 = vmax.xlane.f32.xlu0 %v2202_v10  ;;  %v13942_v10 = vld [vmem:[#allocation7 + $0x20] sm:$0xff]  }
 0x883   : > { %2209 = vmax.xlane.f32.xlu0 %v2208_v58 }
 0x884   : > { %1889 = vrot.lane.b32.xlu1 %v15364_v60, %s14869_s14 }
 0x899   : > { %2282 = vrot.lane.b32.xlu0 %v15324_v7, %s14870_s12  ;;  %v2211_v7 = vsel %vm1008_vm1, %v15732_v16, -inf }
 0x8a8   : > { %2194 = vmax.xlane.f32.xlu1 %v2193_v40 }
 0x8ac   : > { %2206 = vmax.xlane.f32.xlu1 %v2205_v5 }
 0x8b0   : > { %2212 = vmax.xlane.f32.xlu1 %v2211_v7 }
 0x8bb   : > { %v1847_v38 = vpop.xlane.xlu0 %1846 }
 0x8bf   : > { %v1841_v49 = vpop.xlane.xlu0 %1840  ;;  %v1850_v12 = vpop.xlane.xlu1 %1849 }
 0x8c0   : > { %14322 = vrcp.f32 %v1841_v49 }
 0x8c3   : > { %v1844_v41 = vpop.xlane.xlu1 %1843 }
 0x8c4   : > { %14324 = vrcp.f32 %v1844_v41 }
 0x8c5   : > { %14326 = vrcp.f32 %v1850_v12 }
 0x8c6   : > { %14328 = vrcp.f32 %v1847_v38 }
 0x8c7   : > { %v1859_v46 = vpop.xlane.xlu0 %1858  ;;  %v1886_v56 = vpop.permute.xlu1 %1885 }
 0x8ca   : > { %v14323_v45 = vpop.eup %14322 }
 0x8cb   : > { %v1853_v9 = vpop.xlane.xlu0 %1852  ;;  %v15737_v42 = vmul.f32 %v14323_v45, %v15657_v34  ;;  %v1888_v13 = vpop.permute.xlu1 %1887 }
 0x8cd   : > { %18276 = vst [vmem:[#allocation38_spill] sm:$0xff] %v15737_v42 }
 0x8ce   : > { %v14325_v44 = vpop.eup %14324 }
 0x8cf   : > { %v1884_v17 = vpop.permute.xlu0 %1883  ;;  %v15740_v19 = vmul.f32 %v14325_v44, %v15665_v26  ;;  %v14327_v34 = vpop.eup %14326 }
 0x8d0   : > { %13435 = vmatprep.subr.bf16.mxu0 %v1884_v17  ;;  %v14329_v11 = vpop.eup %14328  ;;  %v15746_v1 = vmul.f32 %v14327_v34, %v15659_v18  ;;  %v13943_v18 = vld [vmem:[#allocation7 + $0x28] sm:$0xff]  }
 0x8d1   : > { %18277 = vst [vmem:[#allocation39_spill] sm:$0xff] %v15740_v19  ;;  %13436 = vmatpush3.bf16.msra.mxu0 %v1884_v17  ;;  %v1879_v29 = vpack.c.bf16 %v15740_v19, %v15737_v42  ;;  %v15750_v5 = vmul.f32 %v14329_v11, %v15653_v2 }
 0x8d2   : > { %13437 = vmatprep.subr.bf16.mxu0 %v1886_v56  ;;  %18278 = vst [vmem:[#allocation40_spill] sm:$0xff] %v15746_v1 }
 0x8d3   : > { %13443 = vmatprep.mubr.msk.bf16.mxu0 %vm1008_vm1, %v1879_v29  ;;  %18279 = vst [vmem:[#allocation41_spill] sm:$0xff] %v15750_v5  ;;  %v1880_v38 = vpack.c.bf16 %v15746_v1, %v15750_v5  ;;  %v3200_v1 = vld [vmem:[#allocation8 + $0x150] sm:$0xff] }
 0x8d4   : > { %v3202_v5 = vld [vmem:[#allocation8 + $0x190] sm:$0xff] }
 0x8d5   : > { %13438 = vmatpush3.bf16.msra.mxu0 %v1886_v56 }
 0x8d6   : > { %13439 = vmatprep.subr.bf16.mxu0 %v1888_v13 }
 0x8d9   : > { %13440 = vmatpush3.bf16.msra.mxu0 %v1888_v13 }
 0x8fc   : > { %v1862_v3 = vpop.xlane.xlu1 %1861 }
 0x8fd   : > { %14330 = vrcp.f32 %v1862_v3 }
 0x8fe   : > { %14332 = vrcp.f32 %v1853_v9 }
 0x8ff   : > { %14334 = vrcp.f32 %v1859_v46 }
 0x900   : > { %v2192_v26 = vpop.xlane.xlu0 %2191  ;;  %v1856_v25 = vpop.xlane.xlu1 %1855 }
 0x901   : > { %14336 = vrcp.f32 %v1856_v25  ;;  %v2214_v32 = vsub.f32 %v15689_v27, %v2192_v26 }
 0x903   : > { %v2222_v49 = vmul.f32 1.442695, %v2214_v32 }
 0x904   : > { %v2198_v58 = vpop.xlane.xlu0 %2197  ;;  %v1890_v40 = vpop.permute.xlu1 %1889 }
 0x905   : > { %v2216_v7 = vsub.f32 %v15698_v43, %v2198_v58  ;;  %13441 = vmatprep.subr.bf16.mxu0 %v1890_v40 }
 0x906   : > { %13442 = vmatpush3.bf16.msra.mxu0 %v1890_v40 }
 0x907   : > { %v2226_v12 = vmul.f32 1.442695, %v2216_v7  ;;  %13451 = vmatprep.subr.bf16.mxu0 %v13942_v10  ;;  %v14331_v41 = vpop.eup %14330 }
 0x908   : > { %v2201_v46 = vpop.xlane.xlu0 %2200  ;;  %v14333_v27 = vpop.eup %14332  ;;  %v15758_v44 = vmul.f32 %v14331_v41, %v15685_v15 }
 0x909   : > { %14338 = vpow2.f32 %v2226_v12  ;;  %v2217_v9 = vsub.f32 %v15703_v36, %v2201_v46  ;;  %13444 = vmatmul.mubr.msk.bf16.vlgmr.msra.gmra.mrb[32].mxu0 %vm1008_vm1, %v1880_v38  ;;  %v14335_v2 = vpop.eup %14334  ;;  %v15761_v17 = vmul.f32 %v14333_v27, %v15673_v52 }
 0x90a   : > { %13452 = vmatpush3.bf16.msra.mxu0 %v13942_v10  ;;  %14340 = vpow2.f32 %v2222_v49  ;;  %18280 = vst [vmem:[#allocation42_spill] sm:$0xff] %v15758_v44  ;;  %v15767_v36 = vmul.f32 %v14335_v2, %v15669_v35 }
 0x90b   : > { %v14337_v43 = vpop.eup %14336  ;;  %v2228_v45 = vmul.f32 1.442695, %v2217_v9  ;;  %13453 = vmatprep.subr.bf16.mxu0 %v13943_v18  ;;  %18281 = vst [vmem:[#allocation43_spill] sm:$0xff] %v15761_v17 }
 0x90c   : > { %v2204_v56 = vpop.xlane.xlu0 %2203  ;;  %v15764_v29 = vmul.f32 %v14337_v43, %v15691_v22  ;;  %18283 = vst [vmem:[#allocation45_spill] sm:$0xff] %v15767_v36  ;;  %v1882_v15 = vpack.c.bf16 %v15758_v44, %v15767_v36  ;;  %v3201_v36 = vld [vmem:[#allocation8 + $0x158] sm:$0xff] }
 0x90d   : > { %14342 = vpow2.f32 %v2228_v45  ;;  %v2218_v40 = vsub.f32 %v15708_v8, %v2204_v56 }
 0x90e   : > { %18282 = vst [vmem:[#allocation44_spill] sm:$0xff] %v15764_v29  ;;  %v1881_v13 = vpack.c.bf16 %v15764_v29, %v15761_v17  ;;  %13454 = vmatpush3.bf16.msra.mxu0 %v13943_v18  ;;  %v3198_v29 = vld [vmem:[#allocation8 + $0x110] sm:$0xff] }
 0x90f   : > { %v2230_v12 = vmul.f32 1.442695, %v2218_v40 }
 0x910   : > { %v2210_v3 = vpop.xlane.xlu0 %2209  ;;  %13447 = vmatprep.mubr.msk.bf16.mxu0 %vm1008_vm1, %v1881_v13 }
 0x911   : > { %13448 = vmatmul.mubr.msk.bf16.gmra.mrb[36].mxu0 %vm1008_vm1, %v1882_v15  ;;  %v2220_v32 = vsub.f32 %v15713_v63, %v2210_v3 }
 0x913   : > { %v15775_v52 = vpop.eup %14338  ;;  %v2234_v7 = vmul.f32 1.442695, %v2220_v32 }
 0x914   : > { %v15777_v22 = vpop.permute.xlu0 %2282  ;;  %v2244_v35 = vsel %vm1008_vm1, %v15775_v52, 0.0  ;;  %v15781_v34 = vpop.eup %14340 }
 0x915   : > { %2245 = vadd.xlane.f32.xlu0 %v2244_v35  ;;  %13479 = vmatprep.subr.bf16.mxu0 %v15777_v22  ;;  %v2238_v25 = vsel %vm1008_vm1, %v15781_v34, 0.0 }
 0x917   : > { %v15784_v26 = vpop.eup %14342 }
 0x918   : > { %v2247_v11 = vsel %vm1008_vm1, %v15784_v26, 0.0 }
 0x919   : > { %2239 = vadd.xlane.f32.xlu0 %v2238_v25  ;;  %2248 = vadd.xlane.f32.xlu1 %v2247_v11 }
 0x92f   : > { %2286 = vrot.lane.b32.xlu0 %v15356_v53, %s14870_s12 }
 0x933   : > { %2288 = vrot.lane.b32.xlu0 %v15364_v60, %s14870_s12 }
 0x935   : > { %v2195_v10 = vpop.xlane.xlu1 %2194 }
 0x936   : > { %v2215_v58 = vsub.f32 %v15722_v37, %v2195_v10 }
 0x938   : > { %v2224_v38 = vmul.f32 1.442695, %v2215_v58 }
 0x939   : > { %v2207_v49 = vpop.xlane.xlu1 %2206 }
 0x93a   : > { %14344 = vpow2.f32 %v2224_v38  ;;  %v2219_v53 = vsub.f32 %v15727_v39, %v2207_v49 }
 0x93b   : > { %14346 = vpow2.f32 %v2234_v7 }
 0x93c   : > { %14348 = vpow2.f32 %v2230_v12  ;;  %v2232_v63 = vmul.f32 1.442695, %v2219_v53 }
 0x93d   : > { %v2213_v18 = vpop.xlane.xlu1 %2212 }
 0x93e   : > { %v2221_v41 = vsub.f32 %v15732_v16, %v2213_v18 }
 0x940   : > { %v2236_v60 = vmul.f32 1.442695, %v2221_v41 }
 0x942   : > { %14350 = vpow2.f32 %v2236_v60 }
 0x943   : > { %14352 = vpow2.f32 %v2232_v63 }
 0x944   : > { %v14345_v46 = vpop.eup %14344 }
 0x945   : > { %v2241_v37 = vsel %vm1008_vm1, %v14345_v46, 0.0  ;;  %v15800_v27 = vpop.eup %14346 }
 0x946   : > { %2242 = vadd.xlane.f32.xlu1 %v2241_v37  ;;  %v2256_v8 = vsel %vm1008_vm1, %v15800_v27, 0.0  ;;  %v15804_v9 = vpop.eup %14348 }
 0x947   : > { %v2250_v16 = vsel %vm1008_vm1, %v15804_v9, 0.0 }
 0x94a   : > { %2257 = vadd.xlane.f32.xlu1 %v2256_v8 }
 0x94c   : > { %v15808_v39 = vpop.eup %14350 }
 0x94d   : > { %v2259_v2 = vsel %vm1008_vm1, %v15808_v39, 0.0  ;;  %v14353_v43 = vpop.eup %14352 }
 0x94e   : > { %2251 = vadd.xlane.f32.xlu1 %v2250_v16  ;;  %v2253_v45 = vsel %vm1008_vm1, %v14353_v43, 0.0 }
 0x952   : > { %2260 = vadd.xlane.f32.xlu1 %v2259_v2 }
 0x956   : > { %2254 = vadd.xlane.f32.xlu1 %v2253_v45 }
 0x967   : > { %2284 = vrot.lane.b32.xlu1 %v15322_v6, %s14870_s12 }
 0x9a2   : > { %v2246_v13 = vpop.xlane.xlu0 %2245 }
 0x9a6   : > { %v2249_v56 = vpop.xlane.xlu1 %2248  ;;  %v2240_v35 = vpop.xlane.xlu0 %2239 }
 0x9aa   : > { %v2287_v53 = vpop.permute.xlu0 %2286 }
 0x9d3   : > { %v2243_v15 = vpop.xlane.xlu1 %2242 }
 0x9d4   : > { %14354 = vrcp.f32 %v2243_v15  ;;  %v2289_v15 = vpop.permute.xlu0 %2288 }
 0x9d5   : > { %14356 = vrcp.f32 %v2240_v35 }
 0x9d6   : > { %14358 = vrcp.f32 %v2249_v56 }
 0x9d7   : > { %v2258_v3 = vpop.xlane.xlu1 %2257  ;;  %14360 = vrcp.f32 %v2246_v13 }
 0x9db   : > { %v2252_v25 = vpop.xlane.xlu1 %2251 }
 0x9dc   : > { %v13445_v11 = vpop.f32.mrb[32].mxu0  ;;  %14362 = vrcp.f32 %v2252_v25  ;;  %v13944_v25 = vld [vmem:[#allocation7 + $0x30] sm:$0xff]  }
 0x9dd   : > { %v1941_v32 = vpop.f32.mrb[33].mxu0 }
 0x9de   : > { %v13446_v10 = vpop.f32.mrb[34].mxu0  ;;  %v14355_v6 = vpop.eup %14354 }
 0x9df   : > { %v1973_v58 = vpack.c.bf16 %v13446_v10, %v13445_v11  ;;  %v1944_v40 = vpop.f32.mrb[35].mxu0  ;;  %v2261_v7 = vpop.xlane.xlu1 %2260  ;;  %v15818_v63 = vmul.f32 %v14355_v6, %v14345_v46 }
 0x9e0   : > { %v1972_v38 = vpack.c.bf16 %v1944_v40, %v1941_v32  ;;  %v14357_v18 = vpop.eup %14356 }
 0x9e1   : > { %18284 = vst [vmem:[#allocation46_spill] sm:$0xff] %v15818_v63  ;;  %v15821_v45 = vmul.f32 %v14357_v18, %v15781_v34  ;;  %v14359_v56 = vpop.eup %14358 }
 0x9e2   : > { %13455 = vmatprep.mubr.msk.bf16.mxu0 %vm910_vm0, %v1972_v38  ;;  %v14361_v46 = vpop.eup %14360  ;;  %v15829_v35 = vmul.f32 %v14359_v56, %v15784_v26 }
 0x9e3   : > { %13456 = vmatmul.mubr.msk.bf16.vlgmr.msra.gmra.mrb[24].mxu0 %vm910_vm0, %v1973_v58  ;;  %v2255_v49 = vpop.xlane.xlu1 %2254  ;;  %18285 = vst [vmem:[#allocation47_spill] sm:$0xff] %v15821_v45  ;;  %v15834_v32 = vmul.f32 %v14361_v46, %v15775_v52  ;;  %v13945_v58 = vld [vmem:[#allocation7 + $0x38] sm:$0xff]  }
 0x9e4   : > { %13480 = vmatpush3.bf16.msra.mxu0 %v15777_v22  ;;  %14364 = vrcp.f32 %v2255_v49  ;;  %v13449_v12 = vpop.f32.mrb[36].mxu0  ;;  %v2278_v22 = vpack.c.bf16 %v15818_v63, %v15821_v45  ;;  %18286 = vst [vmem:[#allocation48_spill] sm:$0xff] %v15829_v35 }
 0x9e5   : > { %v1957_v41 = vpop.f32.mrb[37].mxu0  ;;  %14366 = vrcp.f32 %v2261_v7  ;;  %18288 = vst [vmem:[#allocation50_spill] sm:$0xff] %v15834_v32  ;;  %v2279_v10 = vpack.c.bf16 %v15829_v35, %v15834_v32 }
 0x9e6   : > { %v13450_v60 = vpop.f32.mrb[38].mxu0  ;;  %14368 = vrcp.f32 %v2258_v3  ;;  %v14363_v13 = vpop.eup %14362 }
 0x9e7   : > { %v1975_v37 = vpack.c.bf16 %v13450_v60, %v13449_v12  ;;  %v1960_v8 = vpop.f32.mrb[39].mxu0  ;;  %v2285_v16 = vpop.permute.xlu1 %2284  ;;  %v15837_v3 = vmul.f32 %v14363_v13, %v15804_v9 }
 0x9e8   : > { %v1974_v2 = vpack.c.bf16 %v1960_v8, %v1957_v41  ;;  %13481 = vmatprep.subr.bf16.mxu0 %v2285_v16 }
 0x9e9   : > { %13482 = vmatpush3.bf16.msra.mxu0 %v2285_v16  ;;  %18289 = vst [vmem:[#allocation51_spill] sm:$0xff] %v15837_v3  ;;  %v11829_v16 = vld [vmem:[%s18292_s4] ss:$0 sm:$0xff] }
 0x9ea   : > { %13459 = vmatprep.mubr.msk.bf16.mxu0 %vm910_vm0, %v1974_v2  ;;  %13483 = vmatprep.subr.bf16.mxu0 %v2287_v53 }
 0x9eb   : > { %13460 = vmatmul.mubr.msk.bf16.gmra.mrb[28].mxu0 %vm910_vm0, %v1975_v37 }
 0x9ec   : > { %13487 = vmatprep.mubr.msk.bf16.mxu0 %vm1008_vm1, %v2278_v22 }
 0x9ed   : > { %13484 = vmatpush3.bf16.msra.mxu0 %v2287_v53 }
 0x9ee   : > { %v14365_v34 = vpop.eup %14364  ;;  %13485 = vmatprep.subr.bf16.mxu0 %v2289_v15 }
 0x9ef   : > { %v15831_v11 = vmul.f32 %v14365_v34, %v14353_v43  ;;  %v14367_v40 = vpop.eup %14366 }
 0x9f0   : > { %v14369_v43 = vpop.eup %14368  ;;  %v15846_v52 = vmul.f32 %v14367_v40, %v15808_v39 }
 0x9f1   : > { %18287 = vst [vmem:[#allocation49_spill] sm:$0xff] %v15831_v11  ;;  %13486 = vmatpush3.bf16.msra.mxu0 %v2289_v15  ;;  %v2280_v26 = vpack.c.bf16 %v15831_v11, %v15837_v3  ;;  %v15849_v9 = vmul.f32 %v14369_v43, %v15800_v27  ;;  %v3222_v3 = vld [vmem:[#allocation10 + $0x4] sm:$0xf] }
 0x9f2   : > { %13495 = vmatprep.subr.bf16.mxu0 %v13944_v25  ;;  %18290 = vst [vmem:[#allocation52_spill] sm:$0xff] %v15846_v52 }
 0x9f3   : > { %18291 = vst [vmem:[#allocation53_spill] sm:$0xff] %v15849_v9  ;;  %v2281_v7 = vpack.c.bf16 %v15846_v52, %v15849_v9 }
 0x9f4   : > { %13488 = vmatmul.mubr.msk.bf16.vlgmr.msra.gmra.mrb[40].mxu0 %vm1008_vm1, %v2279_v10 }
 0x9f5   : > { %13491 = vmatprep.mubr.msk.bf16.mxu0 %vm1008_vm1, %v2280_v26  ;;  %13496 = vmatpush3.bf16.msra.mxu0 %v13944_v25  ;;  %v14562_v25 = vld [vmem:[%s15198_s26] sm:$0xff] }
 0x9f6   : > { %13497 = vmatprep.subr.bf16.mxu0 %v13945_v58 }
 0x9f9   : > { %13498 = vmatpush3.bf16.msra.mxu0 %v13945_v58  ;;  %v14563_v58 = vld [vmem:[%s15198_s26 + $0x8] sm:$0xff] }
 0x9fc   : > { %13492 = vmatmul.mubr.msk.bf16.gmra.mrb[44].mxu0 %vm1008_vm1, %v2281_v7  ;;  %v14564_v7 = vld [vmem:[%s15198_s26 + $0x10] sm:$0xff] }
 0xac7   : > { %v13489_v38 = vpop.f32.mrb[40].mxu0 }
 0xac8   : > { %v2340_v6 = vpop.f32.mrb[41].mxu0 }
 0xac9   : > { %v13490_v49 = vpop.f32.mrb[42].mxu0 }
 0xaca   : > { %v2372_v12 = vpack.c.bf16 %v13490_v49, %v13489_v38  ;;  %v2343_v18 = vpop.f32.mrb[43].mxu0 }
 0xacb   : > { %v2371_v41 = vpack.c.bf16 %v2343_v18, %v2340_v6 }
 0xacd   : > { %13499 = vmatprep.mubr.msk.bf16.mxu0 %vm910_vm0, %v2371_v41 }
 0xace   : > { %13500 = vmatmul.mubr.msk.bf16.vlgmr.msra.gmra.mrb[24].mxu0 %vm910_vm0, %v2372_v12 }
 0xacf   : > { %v13493_v39 = vpop.f32.mrb[44].mxu0 }
 0xad0   : > { %v2356_v53 = vpop.f32.mrb[45].mxu0 }
 0xad1   : > { %v13494_v27 = vpop.f32.mrb[46].mxu0 }
 0xad2   : > { %v2374_v60 = vpack.c.bf16 %v13494_v27, %v13493_v39  ;;  %v2359_v37 = vpop.f32.mrb[47].mxu0  ;;  %v14565_v39 = vld [vmem:[%s15198_s26 + $0x18] sm:$0xff] }
 0xad3   : > { %v2373_v8 = vpack.c.bf16 %v2359_v37, %v2356_v53 }
 0xad5   : > { %13503 = vmatprep.mubr.msk.bf16.mxu0 %vm910_vm0, %v2373_v8 }
 0xad6   : > { %13504 = vmatmul.mubr.msk.bf16.gmra.mrb[28].mxu0 %vm910_vm0, %v2374_v60  ;;  %v14566_v60 = vld [vmem:[%s15198_s26 + $0x28] sm:$0xff] }
 0xad7   : > { %3037 = vmatprep.mubr.bf16.mxu0 %v18167_v0 }
 0xba1   : > { %v13501_v2 = vpop.f32.mrb[24].mxu0 }
 0xba2   : > { %v2437_v22 = vpop.f32.mrb[25].mxu0  ;;  %v2581_v15 = vadd.f32 %v13501_v2, %v11829_v16  ;;  %v14567_v2 = vld [vmem:[%s15198_s26 + $0x20] sm:$0xff] }
 0xba3   : > { %v2579_v56 = vadd.f32 %v11829_v16, %v2437_v22  ;;  %v13502_v46 = vpop.f32.mrb[26].mxu0 }
 0xba4   : > { %v2440_v13 = vpop.f32.mrb[27].mxu0  ;;  %v2582_v26 = vadd.f32 %v13502_v46, %v11829_v16  ;;  %v2589_v38 = vadd.f32 %v14564_v7, %v2581_v15 }
 0xba5   : > { %v2580_v34 = vadd.f32 %v11829_v16, %v2440_v13  ;;  %v2587_v10 = vadd.f32 %v14562_v25, %v2579_v56  ;;  %v14568_v56 = vld [vmem:[%s15198_s26 + $0x38] sm:$0xff]  ;;  %v14569_v13 = vld [vmem:[%s15198_s26 + $0x30] sm:$0xff]  ;;  %v2720_v25 = vld [vmem:[#allocation8 + $0x40] sm:$0xff]  ;;  %s18016_s26 = scalar_lea.vmem [#allocation13], %s11741_s24  ;;  %s12466_s24 = sshll.u32 %s14973_s19, 12 }
 0xba6   : > { %v2590_v53 = vadd.f32 %v14565_v39, %v2582_v26  ;;  %v2723_v39 = vld [vmem:[#allocation8 + $0x88] sm:$0xff] }
 0xba7   : > { %2597 = vadd.xlane.f32.xlu0 %v2587_v10  ;;  %v2588_v40 = vadd.f32 %v14563_v58, %v2580_v34  ;;  %v2718_v34 = vld [vmem:[#allocation8] sm:$0xff]  ;;  %v2719_v58 = vld [vmem:[#allocation8 + $0x8] sm:$0xff] }
 0xba8   : > { %v11832_v7 = vcombine.low %v2718_v34, %v2720_v25  ;;  %v11833_v26 = vcombine.high %v2718_v34, %v2720_v25 }
 0xba9   : > { %2599 = vadd.xlane.f32.xlu1 %v2588_v40  ;;  %v13505_v43 = vpop.f32.mrb[28].mxu0 }
 0xbaa   : > { %v2453_v6 = vpop.f32.mrb[29].mxu0  ;;  %v2585_v8 = vadd.f32 %v13505_v43, %v11829_v16  ;;  %2932 = vmatprep.subr.bf16.mxu1 %v11833_v26 }
 0xbab   : > { %2601 = vadd.xlane.f32.xlu0 %v2589_v38  ;;  %v13506_v49 = vpop.f32.mrb[30].mxu0  ;;  %v2583_v18 = vadd.f32 %v11829_v16, %v2453_v6  ;;  %v2721_v6 = vld [vmem:[#allocation8 + $0x48] sm:$0xff]  ;;  %2933 = vmatpush1.bf16.msra.mxu1 %v11832_v7 }
 0xbac   : > { %v2456_v12 = vpop.f32.mrb[31].mxu0  ;;  %v2586_v27 = vadd.f32 %v13506_v49, %v11829_v16  ;;  %v2593_v15 = vadd.f32 %v14569_v13, %v2585_v8  ;;  %v2722_v49 = vld [vmem:[#allocation8 + $0x80] sm:$0xff] }
 0xbad   : > { %v2584_v41 = vadd.f32 %v11829_v16, %v2456_v12  ;;  %v2591_v22 = vadd.f32 %v14567_v2, %v2583_v18  ;;  %v2724_v12 = vld [vmem:[#allocation8 + $0xc0] sm:$0xff]  ;;  %v11835_v16 = vcombine.high %v2719_v58, %v2721_v6  ;;  %v2725_v18 = vld [vmem:[#allocation8 + $0xc8] sm:$0xff] }
 0xbae   : > { %v2594_v46 = vadd.f32 %v14568_v56, %v2586_v27  ;;  %v11837_v43 = vcombine.high %v2722_v49, %v2724_v12  ;;  %v11836_v27 = vcombine.low %v2722_v49, %v2724_v12  ;;  %v11838_v8 = vcombine.low %v2723_v39, %v2725_v18 }
 0xbaf   : > { %2603 = vadd.xlane.f32.xlu0 %v2590_v53  ;;  %v2592_v37 = vadd.f32 %v14566_v60, %v2584_v41  ;;  %v11834_v41 = vcombine.low %v2719_v58, %v2721_v6  ;;  %v11839_v60 = vcombine.high %v2723_v39, %v2725_v18  ;;  %3005 = vmatprep.subr.bf16.mxu0 %v11835_v16 }
 0xbb0   : > { %2934 = vmatprep.subr.bf16.mxu1 %v11837_v43 }
 0xbb1   : > { %2607 = vadd.xlane.f32.xlu1 %v2592_v37  ;;  %3006 = vmatpush1.bf16.msra.mxu0 %v11834_v41 }
 0xbb2   : > { %3007 = vmatprep.subr.bf16.mxu0 %v11839_v60  ;;  %2935 = vmatpush1.bf16.msra.mxu1 %v11836_v27 }
 0xbb3   : > { %2605 = vadd.xlane.f32.xlu0 %v2591_v22 }
 0xbb5   : > { %2611 = vadd.xlane.f32.xlu1 %v2594_v46  ;;  %3008 = vmatpush1.bf16.msra.mxu0 %v11838_v8 }
 0xbb7   : > { %2609 = vadd.xlane.f32.xlu0 %v2593_v15 }
 0xc34   : > { %v2598_v2 = vpop.xlane.xlu0 %2597 }
 0xc35   : > { %v2614_v56 = vmul.f32 0.0078125, %v2598_v2 }
 0xc36   : > { %v2600_v13 = vpop.xlane.xlu1 %2599 }
 0xc37   : > { %v15870_v34 = vsub.f32 %v2587_v10, %v2614_v56  ;;  %v2615_v25 = vmul.f32 0.0078125, %v2600_v13 }
 0xc38   : > { %v2602_v58 = vpop.xlane.xlu0 %2601 }
 0xc39   : > { %v15872_v6 = vsub.f32 %v2588_v40, %v2615_v25  ;;  %v2616_v26 = vmul.f32 0.0078125, %v2602_v58  ;;  %v2630_v7 = vmul.f32 %v15870_v34, %v15870_v34 }
 0xc3b   : > { %v15876_v49 = vsub.f32 %v2589_v38, %v2616_v26  ;;  %2638 = vadd.xlane.f32.xlu0 %v2630_v7  ;;  %v2631_v12 = vmul.f32 %v15872_v6, %v15872_v6  ;;  %v2726_v7 = vld [vmem:[#allocation8 + $0x100] sm:$0xff] }
 0xc3c   : > { %v2604_v41 = vpop.xlane.xlu0 %2603 }
 0xc3d   : > { %v2617_v16 = vmul.f32 0.0078125, %v2604_v41  ;;  %2640 = vadd.xlane.f32.xlu1 %v2631_v12  ;;  %v2632_v10 = vmul.f32 %v15876_v49, %v15876_v49  ;;  %v2728_v12 = vld [vmem:[#allocation8 + $0x140] sm:$0xff] }
 0xc3e   : > { %v2608_v43 = vpop.xlane.xlu1 %2607 }
 0xc3f   : > { %v15882_v39 = vsub.f32 %v2590_v53, %v2617_v16  ;;  %v2619_v40 = vmul.f32 0.0078125, %v2608_v43  ;;  %2642 = vadd.xlane.f32.xlu0 %v2632_v10  ;;  %v11841_v16 = vcombine.high %v2726_v7, %v2728_v12  ;;  %v2729_v10 = vld [vmem:[#allocation8 + $0x148] sm:$0xff]  ;;  %v11840_v43 = vcombine.low %v2726_v7, %v2728_v12  ;;  %v2736_v7 = vld [vmem:[#allocation8 + $0x240] sm:$0xff] }
 0xc40   : > { %v2606_v18 = vpop.xlane.xlu0 %2605  ;;  %v2735_v12 = vld [vmem:[#allocation8 + $0x208] sm:$0xff] }
 0xc41   : > { %v15884_v60 = vsub.f32 %v2592_v37, %v2619_v40  ;;  %v2618_v38 = vmul.f32 0.0078125, %v2606_v18  ;;  %v2633_v27 = vmul.f32 %v15882_v39, %v15882_v39  ;;  %2936 = vmatprep.subr.bf16.mxu1 %v11841_v16 }
 0xc42   : > { %v2612_v8 = vpop.xlane.xlu1 %2611  ;;  %2937 = vmatpush1.bf16.msra.mxu1 %v11840_v43  ;;  %v2738_v43 = vld [vmem:[#allocation8 + $0x280] sm:$0xff] }
 0xc43   : > { %v15888_v2 = vsub.f32 %v2591_v22, %v2618_v38  ;;  %v2621_v56 = vmul.f32 0.0078125, %v2612_v8  ;;  %2644 = vadd.xlane.f32.xlu1 %v2633_v27  ;;  %v2635_v37 = vmul.f32 %v15884_v60, %v15884_v60  ;;  %v2727_v22 = vld [vmem:[#allocation8 + $0x108] sm:$0xff]  ;;  %v2732_v38 = vld [vmem:[#allocation8 + $0x1c0] sm:$0xff] }
 0xc44   : > { %v2610_v13 = vpop.xlane.xlu0 %2609  ;;  %v11842_v40 = vcombine.low %v2727_v22, %v2729_v10  ;;  %v11843_v18 = vcombine.high %v2727_v22, %v2729_v10  ;;  %v2731_v27 = vld [vmem:[#allocation8 + $0x188] sm:$0xff] }
 0xc45   : > { %v15890_v25 = vsub.f32 %v2594_v46, %v2621_v56  ;;  %v2620_v58 = vmul.f32 0.0078125, %v2610_v13  ;;  %v2634_v53 = vmul.f32 %v15888_v2, %v15888_v2  ;;  %v2733_v56 = vld [vmem:[#allocation8 + $0x1c8] sm:$0xff] }
 0xc46   : > { %3009 = vmatprep.subr.bf16.mxu0 %v11843_v18  ;;  %v2739_v18 = vld [vmem:[#allocation8 + $0x288] sm:$0xff] }
 0xc47   : > { %v15896_v26 = vsub.f32 %v2593_v15, %v2620_v58  ;;  %2646 = vadd.xlane.f32.xlu0 %v2634_v53  ;;  %2648 = vadd.xlane.f32.xlu1 %v2635_v37  ;;  %v2637_v46 = vmul.f32 %v15890_v25, %v15890_v25  ;;  %v2730_v15 = vld [vmem:[#allocation8 + $0x180] sm:$0xff]  ;;  %v11846_v58 = vcombine.low %v2731_v27, %v2733_v56 }
 0xc48   : > { %3010 = vmatpush1.bf16.msra.mxu0 %v11842_v40  ;;  %v11845_v8 = vcombine.high %v2730_v15, %v2732_v38  ;;  %v11844_v13 = vcombine.low %v2730_v15, %v2732_v38  ;;  %v11847_v53 = vcombine.high %v2731_v27, %v2733_v56  ;;  %v2734_v37 = vld [vmem:[#allocation8 + $0x200] sm:$0xff]  ;;  %v2741_v38 = vld [vmem:[#allocation8 + $0x2c8] sm:$0xff] }
 0xc49   : > { %v2636_v41 = vmul.f32 %v15896_v26, %v15896_v26  ;;  %v11849_v22 = vcombine.high %v2734_v37, %v2736_v7  ;;  %v2740_v40 = vld [vmem:[#allocation8 + $0x2c0] sm:$0xff]  ;;  %v11855_v56 = vcombine.high %v2739_v18, %v2741_v38 }
 0xc4a   : > { %2938 = vmatprep.subr.bf16.mxu1 %v11845_v8  ;;  %3011 = vmatprep.subr.bf16.mxu0 %v11847_v53  ;;  %v11853_v15 = vcombine.high %v2738_v43, %v2740_v40  ;;  %v11852_v27 = vcombine.low %v2738_v43, %v2740_v40  ;;  %v11854_v8 = vcombine.low %v2739_v18, %v2741_v38  ;;  %v2743_v53 = vld [vmem:[#allocation8 + $0x308] sm:$0xff] }
 0xc4b   : > { %2650 = vadd.xlane.f32.xlu0 %v2636_v41  ;;  %2652 = vadd.xlane.f32.xlu1 %v2637_v46  ;;  %v2737_v41 = vld [vmem:[#allocation8 + $0x248] sm:$0xff]  ;;  %v11848_v46 = vcombine.low %v2734_v37, %v2736_v7 }
 0xc4c   : > { %2939 = vmatpush1.bf16.msra.mxu1 %v11844_v13  ;;  %3012 = vmatpush1.bf16.msra.mxu0 %v11846_v58  ;;  %v11850_v16 = vcombine.low %v2735_v12, %v2737_v41  ;;  %v11851_v10 = vcombine.high %v2735_v12, %v2737_v41  ;;  %v2742_v13 = vld [vmem:[#allocation8 + $0x300] sm:$0xff]  ;;  %v2745_v7 = vld [vmem:[#allocation8 + $0x348] sm:$0xff] }
 0xc4d   : > { %2940 = vmatprep.subr.bf16.mxu1 %v11849_v22  ;;  %v2744_v58 = vld [vmem:[#allocation8 + $0x340] sm:$0xff]  ;;  %v11858_v22 = vcombine.low %v2743_v53, %v2745_v7  ;;  %v11859_v41 = vcombine.high %v2743_v53, %v2745_v7  ;;  %v2749_v40 = vld [vmem:[#allocation8 + $0x3c8] sm:$0xff] }
 0xc4e   : > { %3013 = vmatprep.subr.bf16.mxu0 %v11851_v10  ;;  %v11857_v37 = vcombine.high %v2742_v13, %v2744_v58  ;;  %v11856_v12 = vcombine.low %v2742_v13, %v2744_v58  ;;  %v2747_v10 = vld [vmem:[#allocation8 + $0x388] sm:$0xff]  ;;  %v15910_v58 = vld [vmem:[#allocation8 + $0x58] sm:$0xff] }
 0xc4f   : > { %v11863_v38 = vcombine.high %v2747_v10, %v2749_v40 }
 0xc50   : > { %2941 = vmatpush1.bf16.msra.mxu1 %v11848_v46  ;;  %3014 = vmatpush1.bf16.msra.mxu0 %v11850_v16  ;;  %v2746_v46 = vld [vmem:[#allocation8 + $0x380] sm:$0xff] }
 0xc51   : > { %2942 = vmatprep.subr.bf16.mxu1 %v11853_v15  ;;  %3015 = vmatprep.subr.bf16.mxu0 %v11855_v56  ;;  %v2748_v16 = vld [vmem:[#allocation8 + $0x3c0] sm:$0xff]  ;;  %v11862_v15 = vcombine.low %v2747_v10, %v2749_v40  ;;  %v15906_v56 = vld [vmem:[#allocation8 + $0x18] sm:$0xff] }
 0xc52   : > { %v11861_v43 = vcombine.high %v2746_v46, %v2748_v16  ;;  %v11860_v18 = vcombine.low %v2746_v46, %v2748_v16  ;;  %v11867_v7 = vcombine.high %v15906_v56, %v15910_v58 }
 0xc54   : > { %2943 = vmatpush1.bf16.msra.mxu1 %v11852_v27  ;;  %3016 = vmatpush1.bf16.msra.mxu0 %v11854_v8  ;;  %v15902_v27 = vld [vmem:[#allocation8 + $0x10] sm:$0xff] }
 0xc55   : > { %2944 = vmatprep.subr.bf16.mxu1 %v11857_v37  ;;  %3017 = vmatprep.subr.bf16.mxu0 %v11859_v41  ;;  %v15904_v8 = vld [vmem:[#allocation8 + $0x50] sm:$0xff] }
 0xc56   : > { %v11865_v13 = vcombine.high %v15902_v27, %v15904_v8 }
 0xc58   : > { %2945 = vmatpush1.bf16.msra.mxu1 %v11856_v12  ;;  %3018 = vmatpush1.bf16.msra.mxu0 %v11858_v22 }
 0xc59   : > { %2946 = vmatprep.subr.bf16.mxu1 %v11861_v43  ;;  %3019 = vmatprep.subr.bf16.mxu0 %v11863_v38 }
 0xc5c   : > { %2947 = vmatpush1.bf16.msra.mxu1 %v11860_v18  ;;  %3020 = vmatpush1.bf16.msra.mxu0 %v11862_v15 }
 0xc5d   : > { %3404 = vmatprep.subr.bf16.mxu1 %v11865_v13  ;;  %3477 = vmatprep.subr.bf16.mxu0 %v11867_v7 }
 0xcc8   : > { %v2639_v12 = vpop.xlane.xlu0 %2638 }
 0xcc9   : > { %v2654_v22 = vmul.f32 0.0078125, %v2639_v12  ;;  %v15921_v12 = vld [vmem:[%s18146_s5] ss:$0 sm:$0xff] }
 0xcca   : > { %v2641_v41 = vpop.xlane.xlu1 %2640 }
 0xccb   : > { %v2662_v46 = vadd.f32 1e-05, %v2654_v22  ;;  %v2655_v16 = vmul.f32 0.0078125, %v2641_v41 }
 0xccc   : > { %v2643_v10 = vpop.xlane.xlu0 %2642 }
 0xccd   : > { %14370 = vrsqrt.f32 %v2662_v46  ;;  %v2663_v43 = vadd.f32 1e-05, %v2655_v16  ;;  %v2656_v40 = vmul.f32 0.0078125, %v2643_v10 }
 0xccf   : > { %14372 = vrsqrt.f32 %v2663_v43  ;;  %v2664_v18 = vadd.f32 1e-05, %v2656_v40 }
 0xcd0   : > { %v2645_v15 = vpop.xlane.xlu1 %2644 }
 0xcd1   : > { %14374 = vrsqrt.f32 %v2664_v18  ;;  %v2657_v38 = vmul.f32 0.0078125, %v2645_v15  ;;  %v15929_v15 = vld [vmem:[%s18293_s20] ss:$0 sm:$0xff] }
 0xcd3   : > { %v2665_v0 = vadd.f32 1e-05, %v2657_v38 }
 0xcd4   : > { %v2647_v37 = vpop.xlane.xlu0 %2646  ;;  %v2649_v53 = vpop.xlane.xlu1 %2648 }
 0xcd5   : > { %14376 = vrsqrt.f32 %v2665_v0  ;;  %v2658_v13 = vmul.f32 0.0078125, %v2647_v37  ;;  %v2659_v7 = vmul.f32 0.0078125, %v2649_v53 }
 0xcd7   : > { %v14371_v44 = vpop.eup %14370  ;;  %v2666_v22 = vadd.f32 1e-05, %v2658_v13  ;;  %v2667_v41 = vadd.f32 1e-05, %v2659_v7  ;;  %v3196_v7 = vld [vmem:[#allocation8 + $0xd0] sm:$0xff] }
 0xcd8   : > { %v2678_v46 = vmul.f32 %v14371_v44, %v15870_v34  ;;  %v2651_v16 = vpop.xlane.xlu0 %2650  ;;  %v2653_v10 = vpop.xlane.xlu1 %2652  ;;  %v3194_v34 = vld [vmem:[#allocation8 + $0x90] sm:$0xff] }
 0xcd9   : > { %v14373_v43 = vpop.eup %14372  ;;  %14378 = vrsqrt.f32 %v2666_v22  ;;  %v2660_v40 = vmul.f32 0.0078125, %v2651_v16  ;;  %v2661_v18 = vmul.f32 0.0078125, %v2653_v10  ;;  %v3195_v22 = vld [vmem:[#allocation8 + $0x98] sm:$0xff] }
 0xcda   : > { %v2692_v0 = vmul.f32 %v15921_v12, %v2678_v46  ;;  %v2679_v53 = vmul.f32 %v14373_v43, %v15872_v6  ;;  %14380 = vrsqrt.f32 %v2667_v41  ;;  %v3197_v16 = vld [vmem:[#allocation8 + $0xd8] sm:$0xff] }
 0xcdb   : > { %v14375_v37 = vpop.eup %14374  ;;  %v2668_v38 = vadd.f32 1e-05, %v2660_v40  ;;  %v2669_v13 = vadd.f32 1e-05, %v2661_v18  ;;  %v11869_v18 = vcombine.high %v3194_v34, %v3196_v7 }
 0xcdc   : > { %v2693_v44 = vmul.f32 %v15921_v12, %v2679_v53  ;;  %v15933_v10 = vadd.f32 %v15929_v15, %v2692_v0  ;;  %v2680_v41 = vmul.f32 %v14375_v37, %v15876_v49  ;;  %v11871_v53 = vcombine.high %v3195_v22, %v3197_v16  ;;  %v3199_v0 = vld [vmem:[#allocation8 + $0x118] sm:$0xff] }
 0xcdd   : > { %14382 = vrsqrt.f32 %v2668_v38  ;;  %v18294_v37 = vcombine.low %v15902_v27, %v15904_v8  ;;  %v11868_v38 = vcombine.low %v3194_v34, %v3196_v7  ;;  %v11875_v48 = vcombine.high %v3199_v0, %v3201_v36 }
 0xcde   : > { %v15936_v6 = vadd.f32 %v15929_v15, %v2693_v44  ;;  %14384 = vrsqrt.f32 %v2669_v13  ;;  %v2694_v44 = vmul.f32 %v15921_v12, %v2680_v41  ;;  %v11870_v13 = vcombine.low %v3195_v22, %v3197_v16  ;;  %v3206_v16 = vld [vmem:[#allocation8 + $0x210] sm:$0xff] }
 0xcdf   : > { %v14377_v46 = vpop.eup %14376  ;;  %v18296_v8 = vmov 0   ;;  %v11877_v22 = vcombine.high %v3202_v5, %v3204_v51 }
 0xce0   : > { %v15941_v43 = vpack.c.bf16 %v15936_v6, %v15933_v10  ;;  %v2681_v40 = vmul.f32 %v14377_v46, %v15882_v39  ;;  %v18295_v39 = vcombine.low %v15906_v56, %v15910_v58  ;;  %v11873_v46 = vcombine.high %v3198_v29, %v3200_v1  ;;  %v3203_v56 = vld [vmem:[#allocation8 + $0x198] sm:$0xff] }
 0xce1   : > { %v3205_v58 = vld [vmem:[#allocation8 + $0x1d8] sm:$0xff]  ;;  %v15962_v34 = vadd.f32 %v15929_v15, %v2694_v44  ;;  %v3208_v44 = vld [vmem:[#allocation8 + $0x250] sm:$0xff] }
 0xce2   : > { %v2695_v19 = vmul.f32 %v15921_v12, %v2681_v40  ;;  %2965 = vmatmul.mubr.bf16.vlgmr.msra.gmra.mrb[48].mxu1 %v15941_v43  ;;  %3038 = vmatmul.mubr.bf16.vlgmr.msra.gmra.mrb[48].mxu0 %v15941_v43 }
 0xce3   : > { %v14379_v49 = vpop.eup %14378  ;;  %3405 = vmatpush1.bf16.msra.mxu1 %v18294_v37  ;;  %3478 = vmatpush1.bf16.msra.mxu0 %v18295_v39  ;;  %v11881_v39 = vcombine.high %v3206_v16, %v3208_v44 }
 0xce4   : > { %v14381_v17 = vpop.eup %14380  ;;  %v15955_v41 = vadd.f32 %v15929_v15, %v2695_v19  ;;  %v2682_v40 = vmul.f32 %v14379_v49, %v15888_v2  ;;  %3406 = vmatprep.subr.bf16.mxu1 %v11869_v18  ;;  %3479 = vmatprep.subr.bf16.mxu0 %v11871_v53  ;;  %v11872_v19 = vcombine.low %v3198_v29, %v3200_v1  ;;  %v3207_v49 = vld [vmem:[#allocation8 + $0x218] sm:$0xff] }
 0xce5   : > { %v2683_v27 = vmul.f32 %v14381_v17, %v15884_v60  ;;  %2974 = vmatprep.mubr.bf16.mxu1 %v18296_v8  ;;  %3047 = vmatprep.mubr.bf16.mxu0 %v18296_v8  ;;  %v11874_v2 = vcombine.low %v3199_v0, %v3201_v36  ;;  %v11879_v53 = vcombine.high %v3203_v56, %v3205_v58  ;;  %v3209_v1 = vld [vmem:[#allocation8 + $0x258] sm:$0xff] }
 0xce6   : > { %v2696_v7 = vmul.f32 %v15921_v12, %v2682_v40  ;;  %v15967_v17 = vpack.c.bf16 %v15955_v41, %v15962_v34  ;;  %v11876_v36 = vcombine.low %v3202_v5, %v3204_v51  ;;  %v11878_v0 = vcombine.low %v3203_v56, %v3205_v58  ;;  %v3211_v51 = vld [vmem:[#allocation8 + $0x298] sm:$0xff] }
 0xce7   : > { %3407 = vmatpush1.bf16.msra.mxu1 %v11868_v38  ;;  %3480 = vmatpush1.bf16.msra.mxu0 %v11870_v13  ;;  %v14383_v18 = vpop.eup %14382  ;;  %v2697_v60 = vmul.f32 %v15921_v12, %v2683_v27  ;;  %v11883_v38 = vcombine.high %v3207_v49, %v3209_v1  ;;  %v3210_v13 = vld [vmem:[#allocation8 + $0x290] sm:$0xff]  ;;  %v3213_v5 = vld [vmem:[#allocation8 + $0x2d8] sm:$0xff]  ;;  %v11880_v56 = vcombine.low %v3206_v16, %v3208_v44 }
 0xce8   : > { %3408 = vmatprep.subr.bf16.mxu1 %v11873_v46  ;;  %3481 = vmatprep.subr.bf16.mxu0 %v11875_v48  ;;  %v14385_v29 = vpop.eup %14384  ;;  %v15973_v37 = vadd.f32 %v15929_v15, %v2696_v7  ;;  %v2684_v46 = vmul.f32 %v14383_v18, %v15896_v26  ;;  %v3212_v27 = vld [vmem:[#allocation8 + $0x2d0] sm:$0xff]  ;;  %v11882_v58 = vcombine.low %v3207_v49, %v3209_v1 }
 0xce9   : > { %v15976_v48 = vadd.f32 %v15929_v15, %v2697_v60  ;;  %v2685_v40 = vmul.f32 %v14385_v29, %v15890_v25  ;;  %v11887_v7 = vcombine.high %v3211_v51, %v3213_v5  ;;  %v3216_v18 = vld [vmem:[#allocation8 + $0x350] sm:$0xff]  ;;  %v3215_v60 = vld [vmem:[#allocation8 + $0x318] sm:$0xff]  ;;  %v11884_v16 = vcombine.low %v3210_v13, %v3212_v27 }
 0xcea   : > { %2975 = vmatmul.mubr.bf16.gmra.mrb[52].mxu1 %v15967_v17  ;;  %3048 = vmatmul.mubr.bf16.gmra.mrb[52].mxu0 %v15967_v17  ;;  %v2698_v25 = vmul.f32 %v15921_v12, %v2684_v46  ;;  %v11886_v44 = vcombine.low %v3211_v51, %v3213_v5 }
 0xceb   : > { %3409 = vmatpush1.bf16.msra.mxu1 %v11872_v19  ;;  %3482 = vmatpush1.bf16.msra.mxu0 %v11874_v2  ;;  %v11885_v19 = vcombine.high %v3210_v13, %v3212_v27  ;;  %v15984_v26 = vpack.c.bf16 %v15976_v48, %v15973_v37  ;;  %v2699_v2 = vmul.f32 %v15921_v12, %v2685_v40 }
 0xcec   : > { %3410 = vmatprep.subr.bf16.mxu1 %v11877_v22  ;;  %3483 = vmatprep.subr.bf16.mxu0 %v11879_v53  ;;  %v3214_v22 = vld [vmem:[#allocation8 + $0x310] sm:$0xff]  ;;  %v3217_v53 = vld [vmem:[#allocation8 + $0x358] sm:$0xff]  ;;  %v15991_v1 = vadd.f32 %v15929_v15, %v2698_v25  ;;  %v13950_v25 = vld [vmem:[#allocation11 + $0x148] sm:$0xff]  }
 0xced   : > { %2984 = vmatprep.mubr.bf16.mxu1 %v18296_v8  ;;  %3057 = vmatprep.mubr.bf16.mxu0 %v18296_v8  ;;  %v11889_v49 = vcombine.high %v3214_v22, %v3216_v18  ;;  %v15994_v12 = vadd.f32 %v15929_v15, %v2699_v2  ;;  %v11891_v29 = vcombine.high %v3215_v60, %v3217_v53  ;;  %v13951_v2 = vld [vmem:[#allocation11 + $0x1c8] sm:$0xff]  }
 0xcee   : > { %v11888_v13 = vcombine.low %v3214_v22, %v3216_v18  ;;  %v11890_v46 = vcombine.low %v3215_v60, %v3217_v53  ;;  %v13952_v22 = vld [vmem:[#allocation11 + $0x108] sm:$0xff]   ;;  %v13954_v60 = vld [vmem:[#allocation11 + $0x150] sm:$0xff]  }
 0xcef   : > { %3411 = vmatpush1.bf16.msra.mxu1 %v11876_v36  ;;  %3484 = vmatpush1.bf16.msra.mxu0 %v11878_v0  ;;  %18297 = vst [vmem:[#allocation54_spill] sm:$0xff] %v15994_v12  ;;  %v3218_v36 = vld [vmem:[#allocation8 + $0x390] sm:$0xff]  ;;  %v16000_v40 = vpack.c.bf16 %v15994_v12, %v15991_v1  ;;  %v13953_v18 = vld [vmem:[#allocation11 + $0x188] sm:$0xff]  }
 0xcf0   : > { %3412 = vmatprep.subr.bf16.mxu1 %v11881_v39  ;;  %3485 = vmatprep.subr.bf16.mxu0 %v11883_v38  ;;  %v3220_v0 = vld [vmem:[#allocation8 + $0x3d0] sm:$0xff]  ;;  %v3219_v39 = vld [vmem:[#allocation8 + $0x398] sm:$0xff] }
 0xcf1   : > { %v3221_v38 = vld [vmem:[#allocation8 + $0x3d8] sm:$0xff]  ;;  %v11893_v15 = vcombine.high %v3218_v36, %v3220_v0  ;;  %v11892_v51 = vcombine.low %v3218_v36, %v3220_v0  ;;  %v13955_v53 = vld [vmem:[#allocation11 + $0x1d0] sm:$0xff]  }
 0xcf2   : > { %2985 = vmatmul.mubr.bf16.gmra.mrb[56].mxu1 %v15984_v26  ;;  %3058 = vmatmul.mubr.bf16.gmra.mrb[56].mxu0 %v15984_v26  ;;  %v11895_v27 = vcombine.high %v3219_v39, %v3221_v38  ;;  %v11894_v5 = vcombine.low %v3219_v39, %v3221_v38  ;;  %v13960_v36 = vld [vmem:[#allocation11 + $0x118] sm:$0xff]   ;;  %v13962_v39 = vld [vmem:[#allocation11 + $0x160] sm:$0xff]  }
 0xcf3   : > { %3413 = vmatpush1.bf16.msra.mxu1 %v11880_v56  ;;  %3486 = vmatpush1.bf16.msra.mxu0 %v11882_v58  ;;  %v13946_v56 = vld [vmem:[#allocation11 + $0x140] sm:$0xff]   ;;  %v13961_v0 = vld [vmem:[#allocation11 + $0x198] sm:$0xff]  }
 0xcf4   : > { %3414 = vmatprep.subr.bf16.mxu1 %v11885_v19  ;;  %3487 = vmatprep.subr.bf16.mxu0 %v11887_v7  ;;  %v13947_v58 = vld [vmem:[#allocation11 + $0x1c0] sm:$0xff]  }
 0xcf5   : > { %2994 = vmatprep.mubr.bf16.mxu1 %v18296_v8  ;;  %3067 = vmatprep.mubr.bf16.mxu0 %v18296_v8  ;;  %v13948_v19 = vld [vmem:[#allocation11 + $0x100] sm:$0xff]  }
 0xcf6   : > { %v13949_v7 = vld [vmem:[#allocation11 + $0x180] sm:$0xff]  }
 0xcf7   : > { %3415 = vmatpush1.bf16.msra.mxu1 %v11884_v16  ;;  %3488 = vmatpush1.bf16.msra.mxu0 %v11886_v44  ;;  %v13956_v16 = vld [vmem:[#allocation11 + $0x110] sm:$0xff]   ;;  %v13963_v38 = vld [vmem:[#allocation11 + $0x1e0] sm:$0xff]  }
 0xcf8   : > { %3416 = vmatprep.subr.bf16.mxu1 %v11889_v49  ;;  %3489 = vmatprep.subr.bf16.mxu0 %v11891_v29  ;;  %v13957_v44 = vld [vmem:[#allocation11 + $0x190] sm:$0xff]   ;;  %v13958_v49 = vld [vmem:[#allocation11 + $0x158] sm:$0xff]  }
 0xcf9   : > { %v13959_v29 = vld [vmem:[#allocation11 + $0x1d8] sm:$0xff]  }
 0xcfa   : > { %2995 = vmatmul.mubr.bf16.gmra.mrb[60].mxu1 %v16000_v40  ;;  %3068 = vmatmul.mubr.bf16.gmra.mrb[60].mxu0 %v16000_v40 }
 0xcfb   : > { %3417 = vmatpush1.bf16.msra.mxu1 %v11888_v13  ;;  %3490 = vmatpush1.bf16.msra.mxu0 %v11890_v46  ;;  %v13964_v13 = vld [vmem:[#allocation11 + $0x120] sm:$0xff]  }
 0xcfc   : > { %3418 = vmatprep.subr.bf16.mxu1 %v11893_v15  ;;  %3491 = vmatprep.subr.bf16.mxu0 %v11895_v27  ;;  %v13965_v46 = vld [vmem:[#allocation11 + $0x1a0] sm:$0xff]   ;;  %v13966_v15 = vld [vmem:[#allocation11 + $0x168] sm:$0xff]  }
 0xcfd   : > { %3436 = vmatprep.mubr.bf16.mxu1 %v18296_v8  ;;  %3509 = vmatprep.mubr.bf16.mxu0 %v18296_v8  ;;  %v13967_v27 = vld [vmem:[#allocation11 + $0x1e8] sm:$0xff]  }
 0xcff   : > { %3419 = vmatpush1.bf16.msra.mxu1 %v11892_v51  ;;  %3492 = vmatpush1.bf16.msra.mxu0 %v11894_v5  ;;  %v13968_v51 = vld [vmem:[#allocation11 + $0x128] sm:$0xff]  }
 0xd00   : > { %12567 = vmatprep.subr.bf16.mxu1 %v13946_v56  ;;  %12607 = vmatprep.subr.bf16.mxu0 %v13947_v58  ;;  %v13969_v5 = vld [vmem:[#allocation11 + $0x1a8] sm:$0xff]   ;;  %v13970_v56 = vld [vmem:[#allocation11 + $0x170] sm:$0xff]  }
 0xd01   : > { %v13971_v58 = vld [vmem:[#allocation11 + $0x1f0] sm:$0xff]  }
 0xd02   : > { %3437 = vmatmul.mubr.bf16.vlgmr.msra.gmra.mrb[64].mxu1 %v15941_v43  ;;  %3510 = vmatmul.mubr.bf16.vlgmr.msra.gmra.mrb[64].mxu0 %v15941_v43 }
 0xd03   : > { %3446 = vmatprep.mubr.bf16.mxu1 %v18296_v8  ;;  %3519 = vmatprep.mubr.bf16.mxu0 %v18296_v8 }
 0xd04   : > { %12568 = vmatpush3.bf16.msra.mxu1 %v13948_v19  ;;  %12608 = vmatpush3.bf16.msra.mxu0 %v13949_v7  ;;  %v13972_v19 = vld [vmem:[#allocation11 + $0x130] sm:$0xff]  }
 0xd05   : > { %12569 = vmatprep.subr.bf16.mxu1 %v13950_v25  ;;  %12609 = vmatprep.subr.bf16.mxu0 %v13951_v2  ;;  %v13973_v7 = vld [vmem:[#allocation11 + $0x1b0] sm:$0xff]   ;;  %v13974_v25 = vld [vmem:[#allocation11 + $0x178] sm:$0xff]  }
 0xd06   : > { %v13975_v2 = vld [vmem:[#allocation11 + $0x1f8] sm:$0xff]  }
 0xd08   : > { %12570 = vmatpush3.bf16.msra.mxu1 %v13952_v22  ;;  %12610 = vmatpush3.bf16.msra.mxu0 %v13953_v18  ;;  %v13976_v22 = vld [vmem:[#allocation11 + $0x138] sm:$0xff]  }
 0xd09   : > { %12571 = vmatprep.subr.bf16.mxu1 %v13954_v60  ;;  %12611 = vmatprep.subr.bf16.mxu0 %v13955_v53  ;;  %v13977_v18 = vld [vmem:[#allocation11 + $0x1b8] sm:$0xff]   ;;  %v13978_v60 = vld [vmem:[#allocation11 + $0x40] sm:$0xff]  }
 0xd0a   : > { %3447 = vmatmul.mubr.bf16.gmra.mrb[68].mxu1 %v15967_v17  ;;  %3520 = vmatmul.mubr.bf16.gmra.mrb[68].mxu0 %v15967_v17  ;;  %v13979_v53 = vld [vmem:[#allocation11 + $0xc0] sm:$0xff]  }
 0xd0b   : > { %3456 = vmatprep.mubr.bf16.mxu1 %v18296_v8  ;;  %3529 = vmatprep.mubr.bf16.mxu0 %v18296_v8 }
 0xd0c   : > { %12572 = vmatpush3.bf16.msra.mxu1 %v13956_v16  ;;  %12612 = vmatpush3.bf16.msra.mxu0 %v13957_v44  ;;  %v2750_v16 = vld [vmem:[#allocation10] sm:$0xf]  ;;  %v16021_v44 = vsub.s32 3, %v15237_v30 }
 0xd0d   : > { %12573 = vmatprep.subr.bf16.mxu1 %v13958_v49  ;;  %12613 = vmatprep.subr.bf16.mxu0 %v13959_v29  ;;  %v16024_v49 = vrot.slane %v2750_v16, %v15240_v31  ;;  %v16027_v29 = vrot.slane %v2750_v16, %v15312_v57 }
 0xd10   : > { %12574 = vmatpush3.bf16.msra.mxu1 %v13960_v36  ;;  %12614 = vmatpush3.bf16.msra.mxu0 %v13961_v0  ;;  %v16030_v36 = vrot.slane %v2750_v16, %v15248_v33  ;;  %v16033_v0 = vrot.slane %v2750_v16, %v16021_v44 }
 0xd11   : > { %12575 = vmatprep.subr.bf16.mxu1 %v13962_v39  ;;  %12615 = vmatprep.subr.bf16.mxu0 %v13963_v38 }
 0xd12   : > { %3457 = vmatmul.mubr.bf16.gmra.mrb[72].mxu1 %v15984_v26  ;;  %3530 = vmatmul.mubr.bf16.gmra.mrb[72].mxu0 %v15984_v26 }
 0xd13   : > { %3466 = vmatprep.mubr.bf16.mxu1 %v18296_v8  ;;  %3539 = vmatprep.mubr.bf16.mxu0 %v18296_v8 }
 0xd14   : > { %12576 = vmatpush3.bf16.msra.mxu1 %v13964_v13  ;;  %12616 = vmatpush3.bf16.msra.mxu0 %v13965_v46 }
 0xd15   : > { %12577 = vmatprep.subr.bf16.mxu1 %v13966_v15  ;;  %12617 = vmatprep.subr.bf16.mxu0 %v13967_v27 }
 0xd18   : > { %12578 = vmatpush3.bf16.msra.mxu1 %v13968_v51  ;;  %12618 = vmatpush3.bf16.msra.mxu0 %v13969_v5 }
 0xd19   : > { %12579 = vmatprep.subr.bf16.mxu1 %v13970_v56  ;;  %12619 = vmatprep.subr.bf16.mxu0 %v13971_v58 }
 0xd1a   : > { %3467 = vmatmul.mubr.bf16.gmra.mrb[76].mxu1 %v16000_v40  ;;  %3540 = vmatmul.mubr.bf16.gmra.mrb[76].mxu0 %v16000_v40 }
 0xd1c   : > { %12580 = vmatpush3.bf16.msra.mxu1 %v13972_v19  ;;  %12620 = vmatpush3.bf16.msra.mxu0 %v13973_v7 }
 0xd1d   : > { %12581 = vmatprep.subr.bf16.mxu1 %v13974_v25  ;;  %12621 = vmatprep.subr.bf16.mxu0 %v13975_v2 }
 0xd20   : > { %12582 = vmatpush3.bf16.msra.mxu1 %v13976_v22  ;;  %12622 = vmatpush3.bf16.msra.mxu0 %v13977_v18 }
 0xd21   : > { %12647 = vmatprep.subr.bf16.mxu1 %v13978_v60  ;;  %12687 = vmatprep.subr.bf16.mxu0 %v13979_v53 }
 0xdb5   : > { %v2966_v39 = vpop.f32.mrb[48].mxu1  ;;  %v3039_v38 = vpop.f32.mrb[48].mxu0 }
 0xdb6   : > { %v2967_v13 = vadd.f32 %v2966_v39, %v16024_v49  ;;  %v3040_v46 = vadd.f32 %v3039_v38, %v16027_v29  ;;  %v2968_v30 = vpop.f32.mrb[49].mxu1  ;;  %v3041_v15 = vpop.f32.mrb[49].mxu0 }
 0xdb7   : > { %v2969_v27 = vadd.f32 %v2968_v30, %v16030_v36  ;;  %v3042_v51 = vadd.f32 %v3041_v15, %v16033_v0  ;;  %v2970_v5 = vpop.f32.mrb[50].mxu1  ;;  %v3043_v56 = vpop.f32.mrb[50].mxu0 }
 0xdb8   : > { %v2971_v58 = vadd.f32 %v2970_v5, %v16024_v49  ;;  %v3044_v19 = vadd.f32 %v3043_v56, %v16027_v29  ;;  %v2972_v7 = vpop.f32.mrb[51].mxu1  ;;  %v3045_v25 = vpop.f32.mrb[51].mxu0  ;;  %v3078_v18 = vmax.f32 %v2967_v13, 0.0  ;;  %v3080_v60 = vmax.f32 %v3040_v46, 0.0 }
 0xdb9   : > { %v2973_v2 = vadd.f32 %v2972_v7, %v16030_v36  ;;  %v3046_v22 = vadd.f32 %v3045_v25, %v16033_v0  ;;  %v3079_v39 = vmax.f32 %v2969_v27, 0.0  ;;  %v3081_v38 = vmax.f32 %v3042_v51, 0.0 }
 0xdba   : > { %v3082_v53 = vmax.f32 %v2971_v58, 0.0  ;;  %v3084_v16 = vmax.f32 %v3044_v19, 0.0 }
 0xdbb   : > { %v3083_v30 = vmax.f32 %v2973_v2, 0.0  ;;  %v3085_v15 = vmax.f32 %v3046_v22, 0.0 }
 0xdbc   : > { %v16043_v42 = vpack.c.bf16 %v3082_v53, %v3078_v18  ;;  %v16045_v20 = vpack.c.bf16 %v3084_v16, %v3080_v60 }
 0xdbd   : > { %v2976_v5 = vpop.f32.mrb[52].mxu1  ;;  %v3049_v56 = vpop.f32.mrb[52].mxu0  ;;  %v16047_v54 = vpack.c.bf16 %v3083_v30, %v3079_v39  ;;  %v16049_v24 = vpack.c.bf16 %v3085_v15, %v3081_v38 }
 0xdbe   : > { %v2977_v7 = vadd.f32 %v2976_v5, %v16024_v49  ;;  %v3050_v13 = vadd.f32 %v3049_v56, %v16027_v29  ;;  %v2978_v46 = vpop.f32.mrb[53].mxu1  ;;  %v3051_v58 = vpop.f32.mrb[53].mxu0 }
 0xdbf   : > { %v2979_v27 = vadd.f32 %v2978_v46, %v16030_v36  ;;  %v3052_v51 = vadd.f32 %v3051_v58, %v16033_v0  ;;  %v2980_v19 = vpop.f32.mrb[54].mxu1  ;;  %v3053_v25 = vpop.f32.mrb[54].mxu0 }
 0xdc0   : > { %v2981_v2 = vadd.f32 %v2980_v19, %v16024_v49  ;;  %v3054_v22 = vadd.f32 %v3053_v25, %v16027_v29  ;;  %v2982_v18 = vpop.f32.mrb[55].mxu1  ;;  %v3055_v60 = vpop.f32.mrb[55].mxu0  ;;  %v3086_v39 = vmax.f32 %v2977_v7, 0.0  ;;  %v3088_v38 = vmax.f32 %v3050_v13, 0.0 }
 0xdc1   : > { %v2983_v53 = vadd.f32 %v2982_v18, %v16030_v36  ;;  %v3056_v16 = vadd.f32 %v3055_v60, %v16033_v0  ;;  %v3087_v5 = vmax.f32 %v2979_v27, 0.0  ;;  %v3089_v56 = vmax.f32 %v3052_v51, 0.0 }
 0xdc2   : > { %v3090_v30 = vmax.f32 %v2981_v2, 0.0  ;;  %v3092_v15 = vmax.f32 %v3054_v22, 0.0 }
 0xdc3   : > { %v3091_v46 = vmax.f32 %v2983_v53, 0.0  ;;  %v3093_v58 = vmax.f32 %v3056_v16, 0.0 }
 0xdc4   : > { %v16059_v50 = vpack.c.bf16 %v3090_v30, %v3086_v39  ;;  %v16061_v23 = vpack.c.bf16 %v3092_v15, %v3088_v38 }
 0xdc5   : > { %v2986_v19 = vpop.f32.mrb[56].mxu1  ;;  %v3059_v25 = vpop.f32.mrb[56].mxu0  ;;  %v16063_v21 = vpack.c.bf16 %v3091_v46, %v3087_v5  ;;  %v16065_v52 = vpack.c.bf16 %v3093_v58, %v3089_v56 }
 0xdc6   : > { %v2987_v18 = vadd.f32 %v2986_v19, %v16024_v49  ;;  %v3060_v7 = vadd.f32 %v3059_v25, %v16027_v29  ;;  %v2988_v13 = vpop.f32.mrb[57].mxu1  ;;  %v3061_v2 = vpop.f32.mrb[57].mxu0 }
 0xdc7   : > { %v2989_v27 = vadd.f32 %v2988_v13, %v16030_v36  ;;  %v3062_v51 = vadd.f32 %v3061_v2, %v16033_v0  ;;  %v2990_v22 = vpop.f32.mrb[58].mxu1  ;;  %v3063_v60 = vpop.f32.mrb[58].mxu0 }
 0xdc8   : > { %v2991_v53 = vadd.f32 %v2990_v22, %v16024_v49  ;;  %v3064_v16 = vadd.f32 %v3063_v60, %v16027_v29  ;;  %v2992_v39 = vpop.f32.mrb[59].mxu1  ;;  %v3065_v38 = vpop.f32.mrb[59].mxu0  ;;  %v3094_v5 = vmax.f32 %v2987_v18, 0.0  ;;  %v3096_v56 = vmax.f32 %v3060_v7, 0.0 }
 0xdc9   : > { %v2993_v30 = vadd.f32 %v2992_v39, %v16030_v36  ;;  %v3066_v15 = vadd.f32 %v3065_v38, %v16033_v0  ;;  %v3095_v19 = vmax.f32 %v2989_v27, 0.0  ;;  %v3097_v25 = vmax.f32 %v3062_v51, 0.0 }
 0xdca   : > { %v3098_v46 = vmax.f32 %v2991_v53, 0.0  ;;  %v3100_v58 = vmax.f32 %v3064_v16, 0.0 }
 0xdcb   : > { %v3099_v13 = vmax.f32 %v2993_v30, 0.0  ;;  %v3101_v2 = vmax.f32 %v3066_v15, 0.0 }
 0xdcc   : > { %v16075_v9 = vpack.c.bf16 %v3098_v46, %v3094_v5  ;;  %v16077_v11 = vpack.c.bf16 %v3100_v58, %v3096_v56  ;;  %v16090_v58 = vrot.slane %v3222_v3, %v15240_v31 }
 0xdcd   : > { %v2996_v22 = vpop.f32.mrb[60].mxu1  ;;  %v3069_v60 = vpop.f32.mrb[60].mxu0  ;;  %v16079_v35 = vpack.c.bf16 %v3099_v13, %v3095_v19  ;;  %v16081_v39 = vpack.c.bf16 %v3101_v2, %v3097_v25  ;;  %v16093_v19 = vrot.slane %v3222_v3, %v15312_v57  ;;  %v16098_v2 = vrot.slane %v3222_v3, %v15248_v33 }
 0xdce   : > { %v2997_v18 = vadd.f32 %v2996_v22, %v16024_v49  ;;  %v3070_v7 = vadd.f32 %v3069_v60, %v16027_v29  ;;  %v2998_v53 = vpop.f32.mrb[61].mxu1  ;;  %v3071_v27 = vpop.f32.mrb[61].mxu0  ;;  %v16101_v22 = vrot.slane %v3222_v3, %v16021_v44 }
 0xdcf   : > { %v2999_v51 = vadd.f32 %v2998_v53, %v16030_v36  ;;  %v3072_v16 = vadd.f32 %v3071_v27, %v16033_v0  ;;  %v3000_v38 = vpop.f32.mrb[62].mxu1  ;;  %v3073_v30 = vpop.f32.mrb[62].mxu0 }
 0xdd0   : > { %v3001_v15 = vadd.f32 %v3000_v38, %v16024_v49  ;;  %v3074_v5 = vadd.f32 %v3073_v30, %v16027_v29  ;;  %v3002_v56 = vpop.f32.mrb[63].mxu1  ;;  %v3075_v46 = vpop.f32.mrb[63].mxu0  ;;  %v3102_v49 = vmax.f32 %v2997_v18, 0.0  ;;  %v3104_v29 = vmax.f32 %v3070_v7, 0.0 }
 0xdd1   : > { %v3003_v25 = vadd.f32 %v3002_v56, %v16030_v36  ;;  %v3076_v13 = vadd.f32 %v3075_v46, %v16033_v0  ;;  %v3103_v27 = vmax.f32 %v2999_v51, 0.0  ;;  %v3105_v38 = vmax.f32 %v3072_v16, 0.0 }
 0xdd2   : > { %v3106_v60 = vmax.f32 %v3001_v15, 0.0  ;;  %v3108_v53 = vmax.f32 %v3074_v5, 0.0 }
 0xdd3   : > { %v3107_v30 = vmax.f32 %v3003_v25, 0.0  ;;  %v3109_v32 = vmax.f32 %v3076_v13, 0.0 }
 0xdd4   : > { %v16103_v63 = vpack.c.bf16 %v3106_v60, %v3102_v49  ;;  %v16105_v45 = vpack.c.bf16 %v3108_v53, %v3104_v29 }
 0xdd5   : > { %v3438_v36 = vpop.f32.mrb[64].mxu1  ;;  %v3511_v0 = vpop.f32.mrb[64].mxu0  ;;  %v16107_v56 = vpack.c.bf16 %v3107_v30, %v3103_v27  ;;  %v16109_v46 = vpack.c.bf16 %v3109_v32, %v3105_v38 }
 0xdd6   : > { %v3439_v3 = vadd.f32 %v3438_v36, %v16090_v58  ;;  %v3512_v18 = vadd.f32 %v3511_v0, %v16093_v19  ;;  %v3440_v7 = vpop.f32.mrb[65].mxu1  ;;  %v3513_v15 = vpop.f32.mrb[65].mxu0 }
 0xdd7   : > { %v3441_v51 = vadd.f32 %v3440_v7, %v16098_v2  ;;  %v3514_v16 = vadd.f32 %v3513_v15, %v16101_v22  ;;  %v3442_v5 = vpop.f32.mrb[66].mxu1  ;;  %v3515_v25 = vpop.f32.mrb[66].mxu0 }
 0xdd8   : > { %v3443_v13 = vadd.f32 %v3442_v5, %v16090_v58  ;;  %v3516_v49 = vadd.f32 %v3515_v25, %v16093_v19  ;;  %v3444_v29 = vpop.f32.mrb[67].mxu1  ;;  %v3517_v60 = vpop.f32.mrb[67].mxu0  ;;  %v3550_v27 = vmax.f32 %v3439_v3, 0.0  ;;  %v3552_v38 = vmax.f32 %v3512_v18, 0.0 }
 0xdd9   : > { %v3445_v32 = vadd.f32 %v3444_v29, %v16098_v2  ;;  %v3518_v53 = vadd.f32 %v3517_v60, %v16101_v22  ;;  %v3551_v0 = vmax.f32 %v3441_v51, 0.0  ;;  %v3553_v7 = vmax.f32 %v3514_v16, 0.0 }
 0xdda   : > { %v3554_v30 = vmax.f32 %v3443_v13, 0.0  ;;  %v3556_v36 = vmax.f32 %v3516_v49, 0.0  ;;  %v13982_v13 = vld [vmem:[#allocation11 + $0x48] sm:$0xff]  }
 0xddb   : > { %v3555_v47 = vmax.f32 %v3445_v32, 0.0  ;;  %v3557_v15 = vmax.f32 %v3518_v53, 0.0  ;;  %v13983_v49 = vld [vmem:[#allocation11 + $0xc8] sm:$0xff]  }
 0xddc   : > { %v3582_v59 = vpack.c.bf16 %v3554_v30, %v3550_v27  ;;  %v3584_v61 = vpack.c.bf16 %v3556_v36, %v3552_v38 }
 0xddd   : > { %v3448_v4 = vpop.f32.mrb[68].mxu1  ;;  %v3521_v5 = vpop.f32.mrb[68].mxu0  ;;  %v3583_v55 = vpack.c.bf16 %v3555_v47, %v3551_v0  ;;  %v3585_v25 = vpack.c.bf16 %v3557_v15, %v3553_v7  ;;  %v13984_v0 = vld [vmem:[#allocation11 + $0x8] sm:$0xff]  }
 0xdde   : > { %v3449_v29 = vadd.f32 %v3448_v4, %v16090_v58  ;;  %v3522_v60 = vadd.f32 %v3521_v5, %v16093_v19  ;;  %v3450_v3 = vpop.f32.mrb[69].mxu1  ;;  %v3523_v18 = vpop.f32.mrb[69].mxu0  ;;  %v13985_v7 = vld [vmem:[#allocation11 + $0x88] sm:$0xff]  }
 0xddf   : > { %v3451_v51 = vadd.f32 %v3450_v3, %v16098_v2  ;;  %v3524_v16 = vadd.f32 %v3523_v18, %v16101_v22  ;;  %v3452_v32 = vpop.f32.mrb[70].mxu1  ;;  %v3525_v53 = vpop.f32.mrb[70].mxu0  ;;  %3886 = vmatprep.mubr.bf16.mxu1 %v3583_v55  ;;  %3951 = vmatprep.mubr.bf16.mxu0 %v3585_v25  ;;  %v13986_v3 = vld [vmem:[#allocation11 + $0x50] sm:$0xff]  }
 0xde0   : > { %v3453_v47 = vadd.f32 %v3452_v32, %v16090_v58  ;;  %v3526_v27 = vadd.f32 %v3525_v53, %v16093_v19  ;;  %v3454_v38 = vpop.f32.mrb[71].mxu1  ;;  %v3527_v4 = vpop.f32.mrb[71].mxu0  ;;  %3887 = vmatmul.mubr.bf16.vlgmr.msra.gmra.mrb[80].mxu1 %v3582_v59  ;;  %3952 = vmatmul.mubr.bf16.vlgmr.msra.gmra.mrb[80].mxu0 %v3584_v61  ;;  %v3558_v15 = vmax.f32 %v3449_v29, 0.0  ;;  %v3560_v5 = vmax.f32 %v3522_v60, 0.0  ;;  %v13987_v18 = vld [vmem:[#allocation11 + $0xd0] sm:$0xff]  }
 0xde1   : > { %v3455_v30 = vadd.f32 %v3454_v38, %v16098_v2  ;;  %v3528_v36 = vadd.f32 %v3527_v4, %v16101_v22  ;;  %12648 = vmatpush3.bf16.msra.mxu1 %v13980_v14  ;;  %12688 = vmatpush3.bf16.msra.mxu0 %v13981_v28  ;;  %v3559_v32 = vmax.f32 %v3451_v51, 0.0  ;;  %v3561_v53 = vmax.f32 %v3524_v16, 0.0  ;;  %v13988_v29 = vld [vmem:[#allocation11 + $0x10] sm:$0xff]   ;;  %v13990_v51 = vld [vmem:[#allocation11 + $0x58] sm:$0xff]  }
 0xde2   : > { %v3562_v55 = vmax.f32 %v3453_v47, 0.0  ;;  %v3564_v25 = vmax.f32 %v3526_v27, 0.0  ;;  %12649 = vmatprep.subr.bf16.mxu1 %v13982_v13  ;;  %12689 = vmatprep.subr.bf16.mxu0 %v13983_v49  ;;  %v13989_v60 = vld [vmem:[#allocation11 + $0x90] sm:$0xff]   ;;  %v13991_v16 = vld [vmem:[#allocation11 + $0xd8] sm:$0xff]  }
 0xde3   : > { %v3563_v59 = vmax.f32 %v3455_v30, 0.0  ;;  %v3565_v61 = vmax.f32 %v3528_v36, 0.0 }
 0xde4   : > { %v3586_v62 = vpack.c.bf16 %v3562_v55, %v3558_v15  ;;  %v3588_v38 = vpack.c.bf16 %v3564_v25, %v3560_v5 }
 0xde5   : > { %v3458_v12 = vpop.f32.mrb[72].mxu1  ;;  %v3531_v4 = vpop.f32.mrb[72].mxu0  ;;  %12650 = vmatpush3.bf16.msra.mxu1 %v13984_v0  ;;  %12690 = vmatpush3.bf16.msra.mxu0 %v13985_v7  ;;  %v3587_v14 = vpack.c.bf16 %v3563_v59, %v3559_v32  ;;  %v3589_v28 = vpack.c.bf16 %v3565_v61, %v3561_v53  ;;  %v13993_v32 = vld [vmem:[#allocation11 + $0x98] sm:$0xff]  }
 0xde6   : > { %v3459_v47 = vadd.f32 %v3458_v12, %v16090_v58  ;;  %v3532_v13 = vadd.f32 %v3531_v4, %v16093_v19  ;;  %v3460_v49 = vpop.f32.mrb[73].mxu1  ;;  %v3533_v27 = vpop.f32.mrb[73].mxu0  ;;  %12651 = vmatprep.subr.bf16.mxu1 %v13986_v3  ;;  %12691 = vmatprep.subr.bf16.mxu0 %v13987_v18  ;;  %v13992_v18 = vld [vmem:[#allocation11 + $0x18] sm:$0xff]  }
 0xde7   : > { %v3461_v30 = vadd.f32 %v3460_v49, %v16098_v2  ;;  %v3534_v36 = vadd.f32 %v3533_v27, %v16101_v22  ;;  %v3462_v0 = vpop.f32.mrb[74].mxu1  ;;  %v3535_v7 = vpop.f32.mrb[74].mxu0  ;;  %3894 = vmatprep.mubr.bf16.mxu1 %v3587_v14  ;;  %3959 = vmatprep.mubr.bf16.mxu0 %v3589_v28  ;;  %v13994_v14 = vld [vmem:[#allocation11 + $0x60] sm:$0xff]  }
 0xde8   : > { %v3463_v15 = vadd.f32 %v3462_v0, %v16090_v58  ;;  %v3536_v12 = vadd.f32 %v3535_v7, %v16093_v19  ;;  %v3464_v5 = vpop.f32.mrb[75].mxu1  ;;  %v3537_v55 = vpop.f32.mrb[75].mxu0  ;;  %3895 = vmatmul.mubr.bf16.gmra.mrb[84].mxu1 %v3586_v62  ;;  %3960 = vmatmul.mubr.bf16.gmra.mrb[84].mxu0 %v3588_v38  ;;  %v3566_v53 = vmax.f32 %v3459_v47, 0.0  ;;  %v3568_v59 = vmax.f32 %v3532_v13, 0.0  ;;  %v13995_v28 = vld [vmem:[#allocation11 + $0xe0] sm:$0xff]  }
 0xde9   : > { %v3465_v25 = vadd.f32 %v3464_v5, %v16098_v2  ;;  %v3538_v3 = vadd.f32 %v3537_v55, %v16101_v22  ;;  %12652 = vmatpush3.bf16.msra.mxu1 %v13988_v29  ;;  %12692 = vmatpush3.bf16.msra.mxu0 %v13989_v60  ;;  %v3567_v49 = vmax.f32 %v3461_v30, 0.0  ;;  %v3569_v27 = vmax.f32 %v3534_v36, 0.0  ;;  %v13996_v47 = vld [vmem:[#allocation11 + $0x20] sm:$0xff]   ;;  %v13998_v30 = vld [vmem:[#allocation11 + $0x68] sm:$0xff]  }
 0xdea   : > { %v3570_v61 = vmax.f32 %v3463_v15, 0.0  ;;  %v3572_v4 = vmax.f32 %v3536_v12, 0.0  ;;  %12653 = vmatprep.subr.bf16.mxu1 %v13990_v51  ;;  %12693 = vmatprep.subr.bf16.mxu0 %v13991_v16  ;;  %v13997_v13 = vld [vmem:[#allocation11 + $0xa0] sm:$0xff]   ;;  %v13999_v36 = vld [vmem:[#allocation11 + $0xe8] sm:$0xff]  }
 0xdeb   : > { %v3571_v62 = vmax.f32 %v3465_v25, 0.0  ;;  %v3573_v38 = vmax.f32 %v3538_v3, 0.0 }
 0xdec   : > { %v3590_v0 = vpack.c.bf16 %v3570_v61, %v3566_v53  ;;  %v3592_v7 = vpack.c.bf16 %v3572_v4, %v3568_v59 }
 0xded   : > { %v3468_v5 = vpop.f32.mrb[76].mxu1  ;;  %v3541_v55 = vpop.f32.mrb[76].mxu0  ;;  %12654 = vmatpush3.bf16.msra.mxu1 %v13992_v18  ;;  %12694 = vmatpush3.bf16.msra.mxu0 %v13993_v32  ;;  %v3591_v29 = vpack.c.bf16 %v3571_v62, %v3567_v49  ;;  %v3593_v60 = vpack.c.bf16 %v3573_v38, %v3569_v27  ;;  %v14000_v49 = vld [vmem:[#allocation11 + $0x28] sm:$0xff]  }
 0xdee   : > { %v3469_v15 = vadd.f32 %v3468_v5, %v16090_v58  ;;  %v3542_v51 = vadd.f32 %v3541_v55, %v16093_v19  ;;  %v3470_v16 = vpop.f32.mrb[77].mxu1  ;;  %v3543_v12 = vpop.f32.mrb[77].mxu0  ;;  %12655 = vmatprep.subr.bf16.mxu1 %v13994_v14  ;;  %12695 = vmatprep.subr.bf16.mxu0 %v13995_v28  ;;  %v14001_v27 = vld [vmem:[#allocation11 + $0xa8] sm:$0xff]  }
 0xdef   : > { %v3471_v25 = vadd.f32 %v3470_v16, %v16098_v2  ;;  %v3544_v3 = vadd.f32 %v3543_v12, %v16101_v22  ;;  %v3472_v18 = vpop.f32.mrb[78].mxu1  ;;  %v3545_v32 = vpop.f32.mrb[78].mxu0  ;;  %3902 = vmatprep.mubr.bf16.mxu1 %v3591_v29  ;;  %3967 = vmatprep.mubr.bf16.mxu0 %v3593_v60  ;;  %v14007_v12 = vld [vmem:[#allocation11 + $0xf8] sm:$0xff]  }
 0xdf0   : > { %v3473_v53 = vadd.f32 %v3472_v18, %v16090_v58  ;;  %v3546_v59 = vadd.f32 %v3545_v32, %v16093_v19  ;;  %v3474_v61 = vpop.f32.mrb[79].mxu1  ;;  %v3547_v4 = vpop.f32.mrb[79].mxu0  ;;  %3903 = vmatmul.mubr.bf16.gmra.mrb[88].mxu1 %v3590_v0  ;;  %3968 = vmatmul.mubr.bf16.gmra.mrb[88].mxu0 %v3592_v7  ;;  %v3574_v62 = vmax.f32 %v3469_v15, 0.0  ;;  %v3576_v38 = vmax.f32 %v3542_v51, 0.0  ;;  %v14002_v58 = vld [vmem:[#allocation11 + $0x70] sm:$0xff]   ;;  %v14006_v51 = vld [vmem:[#allocation11 + $0x78] sm:$0xff]  }
 0xdf1   : > { %v3475_v14 = vadd.f32 %v3474_v61, %v16098_v2  ;;  %v3548_v28 = vadd.f32 %v3547_v4, %v16101_v22  ;;  %12656 = vmatpush3.bf16.msra.mxu1 %v13996_v47  ;;  %12696 = vmatpush3.bf16.msra.mxu0 %v13997_v13  ;;  %v14003_v19 = vld [vmem:[#allocation11 + $0xf0] sm:$0xff]   ;;  %v3575_v29 = vmax.f32 %v3471_v25, 0.0  ;;  %v3577_v60 = vmax.f32 %v3544_v3, 0.0  ;;  %v4307_v25 = vld [vmem:[#allocation8 + $0x28] sm:$0xff]  ;;  %v14008_v18 = vld [vmem:[#allocation11 + $0x38] sm:$0xff]  }
 0xdf2   : > { %v3578_v5 = vmax.f32 %v3473_v53, 0.0  ;;  %v3580_v55 = vmax.f32 %v3546_v59, 0.0  ;;  %12657 = vmatprep.subr.bf16.mxu1 %v13998_v30  ;;  %12697 = vmatprep.subr.bf16.mxu0 %v13999_v36  ;;  %v14004_v13 = vld [vmem:[#allocation11 + $0x30] sm:$0xff]   ;;  %v4306_v30 = vld [vmem:[#allocation8 + $0x20] sm:$0xff]  ;;  %v4309_v3 = vld [vmem:[#allocation8 + $0x68] sm:$0xff] }
 0xdf3   : > { %v3579_v0 = vmax.f32 %v3475_v14, 0.0  ;;  %v3581_v7 = vmax.f32 %v3548_v28, 0.0  ;;  %v14005_v15 = vld [vmem:[#allocation11 + $0xb0] sm:$0xff]   ;;  %v4308_v36 = vld [vmem:[#allocation8 + $0x60] sm:$0xff]  ;;  %v14009_v32 = vld [vmem:[#allocation11 + $0xb8] sm:$0xff]   ;;  %v11963_v59 = vcombine.high %v4307_v25, %v4309_v3 }
 0xdf4   : > { %v3594_v16 = vpack.c.bf16 %v3578_v5, %v3574_v62  ;;  %v3596_v2 = vpack.c.bf16 %v3580_v55, %v3576_v38  ;;  %v11961_v53 = vcombine.high %v4306_v30, %v4308_v36  ;;  %v4310_v61 = vld [vmem:[#allocation8 + $0xa0] sm:$0xff]  ;;  %v4311_v14 = vld [vmem:[#allocation8 + $0xa8] sm:$0xff] }
 0xdf5   : > { %12658 = vmatpush3.bf16.msra.mxu1 %v14000_v49  ;;  %12698 = vmatpush3.bf16.msra.mxu0 %v14001_v27  ;;  %v3595_v22 = vpack.c.bf16 %v3579_v0, %v3575_v29  ;;  %v3597_v47 = vpack.c.bf16 %v3581_v7, %v3577_v60  ;;  %v4312_v4 = vld [vmem:[#allocation8 + $0xe0] sm:$0xff]  ;;  %v4313_v28 = vld [vmem:[#allocation8 + $0xe8] sm:$0xff]  ;;  %v11960_v49 = vcombine.low %v4306_v30, %v4308_v36 }
 0xdf6   : > { %12659 = vmatprep.subr.bf16.mxu1 %v14002_v58  ;;  %12699 = vmatprep.subr.bf16.mxu0 %v14003_v19  ;;  %v11962_v27 = vcombine.low %v4307_v25, %v4309_v3  ;;  %v11967_v62 = vcombine.high %v4311_v14, %v4313_v28  ;;  %v4316_v38 = vld [vmem:[#allocation8 + $0x160] sm:$0xff]  ;;  %v4315_v5 = vld [vmem:[#allocation8 + $0x128] sm:$0xff]  ;;  %v11964_v58 = vcombine.low %v4310_v61, %v4312_v4 }
 0xdf7   : > { %3910 = vmatprep.mubr.bf16.mxu1 %v3595_v22  ;;  %3975 = vmatprep.mubr.bf16.mxu0 %v3597_v47  ;;  %v4317_v55 = vld [vmem:[#allocation8 + $0x168] sm:$0xff]  ;;  %v11966_v19 = vcombine.low %v4311_v14, %v4313_v28  ;;  %v4320_v0 = vld [vmem:[#allocation8 + $0x1e0] sm:$0xff] }
 0xdf8   : > { %3911 = vmatmul.mubr.bf16.gmra.mrb[92].mxu1 %v3594_v16  ;;  %3976 = vmatmul.mubr.bf16.gmra.mrb[92].mxu0 %v3596_v2  ;;  %v11971_v60 = vcombine.high %v4315_v5, %v4317_v55  ;;  %v4319_v7 = vld [vmem:[#allocation8 + $0x1a8] sm:$0xff]  ;;  %v4322_v22 = vld [vmem:[#allocation8 + $0x220] sm:$0xff] }
 0xdf9   : > { %12660 = vmatpush3.bf16.msra.mxu1 %v14004_v13  ;;  %4208 = vmatprep.mubr.bf16.mxu1 %v16047_v54  ;;  %v11965_v54 = vcombine.high %v4310_v61, %v4312_v4  ;;  %v4321_v16 = vld [vmem:[#allocation8 + $0x1e8] sm:$0xff]  ;;  %v4324_v47 = vld [vmem:[#allocation8 + $0x260] sm:$0xff] }
 0xdfa   : > { %12700 = vmatpush3.bf16.msra.mxu0 %v14005_v15  ;;  %4273 = vmatprep.mubr.bf16.mxu0 %v16049_v24  ;;  %v4314_v24 = vld [vmem:[#allocation8 + $0x120] sm:$0xff]  ;;  %v4323_v13 = vld [vmem:[#allocation8 + $0x228] sm:$0xff]  ;;  %v11977_v30 = vcombine.high %v4322_v22, %v4324_v47 }
 0xdfb   : > { %12661 = vmatprep.subr.bf16.mxu1 %v14006_v51  ;;  %12701 = vmatprep.subr.bf16.mxu0 %v14007_v12  ;;  %v11969_v29 = vcombine.high %v4314_v24, %v4316_v38  ;;  %v4325_v15 = vld [vmem:[#allocation8 + $0x268] sm:$0xff]  ;;  %v11974_v12 = vcombine.low %v4319_v7, %v4321_v16  ;;  %v4326_v36 = vld [vmem:[#allocation8 + $0x2a0] sm:$0xff] }
 0xdfc   : > { %v4328_v25 = vld [vmem:[#allocation8 + $0x2e0] sm:$0xff]  ;;  %v4327_v3 = vld [vmem:[#allocation8 + $0x2a8] sm:$0xff] }
 0xdfd   : > { %12662 = vmatpush3.bf16.msra.mxu1 %v14008_v18  ;;  %v4329_v18 = vld [vmem:[#allocation8 + $0x2e8] sm:$0xff]  ;;  %v11980_v14 = vcombine.low %v4326_v36, %v4328_v25 }
 0xdfe   : > { %12702 = vmatpush3.bf16.msra.mxu0 %v14009_v32  ;;  %4520 = vmatprep.subr.bf16.mxu1 %v11961_v53  ;;  %v11981_v32 = vcombine.high %v4326_v36, %v4328_v25  ;;  %v4330_v53 = vld [vmem:[#allocation8 + $0x320] sm:$0xff]  ;;  %v4331_v61 = vld [vmem:[#allocation8 + $0x328] sm:$0xff]  ;;  %v11982_v28 = vcombine.low %v4327_v3, %v4329_v18 }
 0xdff   : > { %4593 = vmatprep.subr.bf16.mxu0 %v11963_v59  ;;  %v4332_v59 = vld [vmem:[#allocation8 + $0x360] sm:$0xff]  ;;  %v4333_v4 = vld [vmem:[#allocation8 + $0x368] sm:$0xff] }
 0xe00   : > { %4209 = vmatmul.mubr.bf16.vlgmr.msra.gmra.mrb[96].mxu1 %v16043_v42  ;;  %v4318_v42 = vld [vmem:[#allocation8 + $0x1a0] sm:$0xff]  ;;  %v14032_v36 = vld [vmem:[#allocation11 + $0x228] sm:$0xff]  }
 0xe01   : > { %4274 = vmatmul.mubr.bf16.vlgmr.msra.gmra.mrb[96].mxu0 %v16045_v20  ;;  %4216 = vmatprep.mubr.bf16.mxu1 %v16063_v21  ;;  %v11968_v20 = vcombine.low %v4314_v24, %v4316_v38  ;;  %v11970_v21 = vcombine.low %v4315_v5, %v4317_v55  ;;  %v11973_v2 = vcombine.high %v4318_v42, %v4320_v0  ;;  %v4337_v24 = vld [vmem:[#allocation8 + $0x3e8] sm:$0xff] }
 0xe02   : > { %4281 = vmatprep.mubr.bf16.mxu0 %v16065_v52  ;;  %4521 = vmatpush1.bf16.msra.mxu1 %v11960_v49  ;;  %v11975_v52 = vcombine.high %v4319_v7, %v4321_v16  ;;  %v11972_v51 = vcombine.low %v4318_v42, %v4320_v0  ;;  %v11985_v49 = vcombine.high %v4330_v53, %v4332_v59  ;;  %v14016_v42 = vld [vmem:[#allocation11 + $0x208] sm:$0xff]   ;;  %v14018_v7 = vld [vmem:[#allocation11 + $0x250] sm:$0xff]  }
 0xe03   : > { %4594 = vmatpush1.bf16.msra.mxu0 %v11962_v27  ;;  %4522 = vmatprep.subr.bf16.mxu1 %v11965_v54  ;;  %v4334_v27 = vld [vmem:[#allocation8 + $0x3a0] sm:$0xff]  ;;  %v14017_v0 = vld [vmem:[#allocation11 + $0x288] sm:$0xff]   ;;  %v14019_v16 = vld [vmem:[#allocation11 + $0x2d0] sm:$0xff]  }
 0xe04   : > { %4595 = vmatprep.subr.bf16.mxu0 %v11967_v62  ;;  %v4336_v54 = vld [vmem:[#allocation8 + $0x3e0] sm:$0xff]  ;;  %v4335_v62 = vld [vmem:[#allocation8 + $0x3a8] sm:$0xff] }
 0xe05   : > { %v11989_v38 = vcombine.high %v4334_v27, %v4336_v54  ;;  %v11988_v5 = vcombine.low %v4334_v27, %v4336_v54  ;;  %v11990_v55 = vcombine.low %v4335_v62, %v4337_v24  ;;  %v14033_v25 = vld [vmem:[#allocation11 + $0x2a8] sm:$0xff]  }
 0xe06   : > { %4523 = vmatpush1.bf16.msra.mxu1 %v11964_v58  ;;  %v14012_v58 = vld [vmem:[#allocation11 + $0x200] sm:$0xff]  }
 0xe07   : > { %4596 = vmatpush1.bf16.msra.mxu0 %v11966_v19  ;;  %4524 = vmatprep.subr.bf16.mxu1 %v11969_v29  ;;  %v14013_v19 = vld [vmem:[#allocation11 + $0x280] sm:$0xff]   ;;  %v14014_v29 = vld [vmem:[#allocation11 + $0x248] sm:$0xff]  }
 0xe08   : > { %4217 = vmatmul.mubr.bf16.gmra.mrb[100].mxu1 %v16059_v50  ;;  %4597 = vmatprep.subr.bf16.mxu0 %v11971_v60  ;;  %v11979_v50 = vcombine.high %v4323_v13, %v4325_v15  ;;  %v14015_v60 = vld [vmem:[#allocation11 + $0x2c8] sm:$0xff]  }
 0xe09   : > { %4282 = vmatmul.mubr.bf16.gmra.mrb[100].mxu0 %v16061_v23  ;;  %4224 = vmatprep.mubr.bf16.mxu1 %v16079_v35  ;;  %v11976_v23 = vcombine.low %v4322_v22, %v4324_v47  ;;  %v11978_v35 = vcombine.low %v4323_v13, %v4325_v15  ;;  %v14024_v22 = vld [vmem:[#allocation11 + $0x218] sm:$0xff]   ;;  %v14026_v13 = vld [vmem:[#allocation11 + $0x260] sm:$0xff]  }
 0xe0a   : > { %4289 = vmatprep.mubr.bf16.mxu0 %v16081_v39  ;;  %4525 = vmatpush1.bf16.msra.mxu1 %v11968_v20  ;;  %v11983_v39 = vcombine.high %v4327_v3, %v4329_v18  ;;  %v14020_v20 = vld [vmem:[#allocation11 + $0x210] sm:$0xff]   ;;  %v14025_v47 = vld [vmem:[#allocation11 + $0x298] sm:$0xff]   ;;  %v14027_v15 = vld [vmem:[#allocation11 + $0x2e0] sm:$0xff]  }
 0xe0b   : > { %4598 = vmatpush1.bf16.msra.mxu0 %v11970_v21  ;;  %4526 = vmatprep.subr.bf16.mxu1 %v11973_v2  ;;  %v14021_v21 = vld [vmem:[#allocation11 + $0x290] sm:$0xff]   ;;  %v14022_v2 = vld [vmem:[#allocation11 + $0x258] sm:$0xff]  }
 0xe0c   : > { %4599 = vmatprep.subr.bf16.mxu0 %v11975_v52  ;;  %v14023_v52 = vld [vmem:[#allocation11 + $0x2d8] sm:$0xff]   ;;  %v14034_v3 = vld [vmem:[#allocation11 + $0x270] sm:$0xff]  }
 0xe0d   : > { %v14035_v18 = vld [vmem:[#allocation11 + $0x2f0] sm:$0xff]  }
 0xe0e   : > { %4527 = vmatpush1.bf16.msra.mxu1 %v11972_v51  ;;  %v14028_v51 = vld [vmem:[#allocation11 + $0x220] sm:$0xff]  }
 0xe0f   : > { %4600 = vmatpush1.bf16.msra.mxu0 %v11974_v12  ;;  %4528 = vmatprep.subr.bf16.mxu1 %v11977_v30  ;;  %v14029_v12 = vld [vmem:[#allocation11 + $0x2a0] sm:$0xff]   ;;  %v14030_v30 = vld [vmem:[#allocation11 + $0x268] sm:$0xff]  }
 0xe10   : > { %4225 = vmatmul.mubr.bf16.gmra.mrb[104].mxu1 %v16075_v9  ;;  %4601 = vmatprep.subr.bf16.mxu0 %v11979_v50  ;;  %v11987_v9 = vcombine.high %v4331_v61, %v4333_v4  ;;  %v14031_v50 = vld [vmem:[#allocation11 + $0x2e8] sm:$0xff]  }
 0xe11   : > { %4290 = vmatmul.mubr.bf16.gmra.mrb[104].mxu0 %v16077_v11  ;;  %4232 = vmatprep.mubr.bf16.mxu1 %v16107_v56  ;;  %v11984_v11 = vcombine.low %v4330_v53, %v4332_v59  ;;  %v11986_v56 = vcombine.low %v4331_v61, %v4333_v4  ;;  %v14040_v53 = vld [vmem:[#allocation11 + $0x238] sm:$0xff]   ;;  %v16175_v61 = vld [vmem:[#allocation8 + $0x30] sm:$0xff] }
 0xe12   : > { %4297 = vmatprep.mubr.bf16.mxu0 %v16109_v46  ;;  %4529 = vmatpush1.bf16.msra.mxu1 %v11976_v23  ;;  %v11991_v46 = vcombine.high %v4335_v62, %v4337_v24  ;;  %v14036_v23 = vld [vmem:[#allocation11 + $0x230] sm:$0xff]   ;;  %v14041_v59 = vld [vmem:[#allocation11 + $0x2b8] sm:$0xff]  }
 0xe13   : > { %4602 = vmatpush1.bf16.msra.mxu0 %v11978_v35  ;;  %4530 = vmatprep.subr.bf16.mxu1 %v11981_v32  ;;  %v14037_v35 = vld [vmem:[#allocation11 + $0x2b0] sm:$0xff]   ;;  %v14038_v32 = vld [vmem:[#allocation11 + $0x278] sm:$0xff]  }
 0xe14   : > { %4603 = vmatprep.subr.bf16.mxu0 %v11983_v39  ;;  %v14039_v39 = vld [vmem:[#allocation11 + $0x2f8] sm:$0xff]   ;;  %v16177_v4 = vld [vmem:[#allocation8 + $0x70] sm:$0xff] }
 0xe16   : > { %4531 = vmatpush1.bf16.msra.mxu1 %v11980_v14  ;;  %v16179_v14 = vld [vmem:[#allocation8 + $0x38] sm:$0xff] }
 0xe17   : > { %4604 = vmatpush1.bf16.msra.mxu0 %v11982_v28  ;;  %4532 = vmatprep.subr.bf16.mxu1 %v11985_v49  ;;  %v12025_v28 = vcombine.high %v16175_v61, %v16177_v4  ;;  %v16183_v49 = vld [vmem:[#allocation8 + $0x78] sm:$0xff] }
 0xe18   : > { %4233 = vmatmul.mubr.bf16.gmra.mrb[108].mxu1 %v16103_v63  ;;  %4605 = vmatprep.subr.bf16.mxu0 %v11987_v9  ;;  %v14010_v63 = vld [vmem:[#allocation11 + $0x240] sm:$0xff]   ;;  %v12024_v9 = vcombine.low %v16175_v61, %v16177_v4  ;;  %v12026_v27 = vcombine.low %v16179_v14, %v16183_v49  ;;  %v12027_v54 = vcombine.high %v16179_v14, %v16183_v49  ;;  %v16262_v49 = vld [vmem:[#allocation8 + $0x1b8] sm:$0xff] }
 0xe19   : > { %4298 = vmatmul.mubr.bf16.gmra.mrb[108].mxu0 %v16105_v45  ;;  %4552 = vmatprep.mubr.bf16.mxu1 %v18296_v8  ;;  %v14011_v45 = vld [vmem:[#allocation11 + $0x2c0] sm:$0xff]  }
 0xe1a   : > { %4533 = vmatpush1.bf16.msra.mxu1 %v11984_v11  ;;  %4625 = vmatprep.mubr.bf16.mxu0 %v18296_v8 }
 0xe1b   : > { %4606 = vmatpush1.bf16.msra.mxu0 %v11986_v56  ;;  %4534 = vmatprep.subr.bf16.mxu1 %v11989_v38 }
 0xe1c   : > { %4607 = vmatprep.subr.bf16.mxu0 %v11991_v46 }
 0xe1e   : > { %4535 = vmatpush1.bf16.msra.mxu1 %v11988_v5 }
 0xe1f   : > { %4608 = vmatpush1.bf16.msra.mxu0 %v11990_v55  ;;  %12727 = vmatprep.subr.bf16.mxu1 %v14010_v63 }
 0xe20   : > { %12767 = vmatprep.subr.bf16.mxu0 %v14011_v45 }
 0xe21   : > { %4553 = vmatmul.mubr.bf16.vlgmr.msra.gmra.mrb[112].mxu1 %v15941_v43 }
 0xe22   : > { %4626 = vmatmul.mubr.bf16.vlgmr.msra.gmra.mrb[112].mxu0 %v15941_v43  ;;  %4562 = vmatprep.mubr.bf16.mxu1 %v18296_v8 }
 0xe23   : > { %4635 = vmatprep.mubr.bf16.mxu0 %v18296_v8  ;;  %12728 = vmatpush3.bf16.msra.mxu1 %v14012_v58 }
 0xe24   : > { %12768 = vmatpush3.bf16.msra.mxu0 %v14013_v19  ;;  %12729 = vmatprep.subr.bf16.mxu1 %v14014_v29 }
 0xe25   : > { %12769 = vmatprep.subr.bf16.mxu0 %v14015_v60 }
 0xe27   : > { %12730 = vmatpush3.bf16.msra.mxu1 %v14016_v42 }
 0xe28   : > { %12770 = vmatpush3.bf16.msra.mxu0 %v14017_v0  ;;  %12731 = vmatprep.subr.bf16.mxu1 %v14018_v7 }
 0xe29   : > { %4563 = vmatmul.mubr.bf16.gmra.mrb[116].mxu1 %v15967_v17  ;;  %12771 = vmatprep.subr.bf16.mxu0 %v14019_v16 }
 0xe2a   : > { %4636 = vmatmul.mubr.bf16.gmra.mrb[116].mxu0 %v15967_v17  ;;  %4572 = vmatprep.mubr.bf16.mxu1 %v18296_v8 }
 0xe2b   : > { %4645 = vmatprep.mubr.bf16.mxu0 %v18296_v8  ;;  %12732 = vmatpush3.bf16.msra.mxu1 %v14020_v20 }
 0xe2c   : > { %12772 = vmatpush3.bf16.msra.mxu0 %v14021_v21  ;;  %12733 = vmatprep.subr.bf16.mxu1 %v14022_v2 }
 0xe2d   : > { %12773 = vmatprep.subr.bf16.mxu0 %v14023_v52 }
 0xe2f   : > { %12734 = vmatpush3.bf16.msra.mxu1 %v14024_v22 }
 0xe30   : > { %12774 = vmatpush3.bf16.msra.mxu0 %v14025_v47  ;;  %12735 = vmatprep.subr.bf16.mxu1 %v14026_v13 }
 0xe31   : > { %4573 = vmatmul.mubr.bf16.gmra.mrb[120].mxu1 %v15984_v26  ;;  %12775 = vmatprep.subr.bf16.mxu0 %v14027_v15 }
 0xe32   : > { %4646 = vmatmul.mubr.bf16.gmra.mrb[120].mxu0 %v15984_v26  ;;  %4582 = vmatprep.mubr.bf16.mxu1 %v18296_v8 }
 0xe33   : > { %4655 = vmatprep.mubr.bf16.mxu0 %v18296_v8  ;;  %12736 = vmatpush3.bf16.msra.mxu1 %v14028_v51 }
 0xe34   : > { %12776 = vmatpush3.bf16.msra.mxu0 %v14029_v12  ;;  %12737 = vmatprep.subr.bf16.mxu1 %v14030_v30 }
 0xe35   : > { %12777 = vmatprep.subr.bf16.mxu0 %v14031_v50 }
 0xe37   : > { %12738 = vmatpush3.bf16.msra.mxu1 %v14032_v36 }
 0xe38   : > { %12778 = vmatpush3.bf16.msra.mxu0 %v14033_v25  ;;  %12739 = vmatprep.subr.bf16.mxu1 %v14034_v3 }
 0xe39   : > { %4583 = vmatmul.mubr.bf16.gmra.mrb[124].mxu1 %v16000_v40  ;;  %12779 = vmatprep.subr.bf16.mxu0 %v14035_v18 }
 0xe3a   : > { %4656 = vmatmul.mubr.bf16.gmra.mrb[124].mxu0 %v16000_v40 }
 0xe3b   : > { %12740 = vmatpush3.bf16.msra.mxu1 %v14036_v23 }
 0xe3c   : > { %12780 = vmatpush3.bf16.msra.mxu0 %v14037_v35  ;;  %12741 = vmatprep.subr.bf16.mxu1 %v14038_v32 }
 0xe3d   : > { %12781 = vmatprep.subr.bf16.mxu0 %v14039_v39 }
 0xe3f   : > { %12742 = vmatpush3.bf16.msra.mxu1 %v14040_v53 }
 0xe40   : > { %12782 = vmatpush3.bf16.msra.mxu0 %v14041_v59  ;;  %5322 = vmatprep.subr.bf16.mxu1 %v12025_v28 }
 0xe41   : > { %5395 = vmatprep.subr.bf16.mxu0 %v12027_v54 }
 0xeb3   : > { %v12583_v62 = vpop.f32.mrb[80].mxu1  ;;  %v12623_v24 = vpop.f32.mrb[80].mxu0 }
 0xeb4   : > { %v12584_v11 = vpop.f32.mrb[81].mxu1  ;;  %v12624_v56 = vpop.f32.mrb[81].mxu0 }
 0xeb5   : > { %v12585_v38 = vadd.f32 %v12584_v11, %v12583_v62  ;;  %v12625_v46 = vadd.f32 %v12624_v56, %v12623_v24  ;;  %v12586_v5 = vpop.f32.mrb[82].mxu1  ;;  %v12626_v55 = vpop.f32.mrb[82].mxu0 }
 0xeb6   : > { %v12587_v63 = vpop.f32.mrb[83].mxu1  ;;  %v12627_v45 = vpop.f32.mrb[83].mxu0 }
 0xeb7   : > { %v12588_v58 = vadd.f32 %v12587_v63, %v12586_v5  ;;  %v12628_v19 = vadd.f32 %v12627_v45, %v12626_v55  ;;  %v3954_v29 = vadd.f32 %v12625_v46, %v12585_v38 }
 0xeb9   : > { %v3957_v60 = vadd.f32 %v12628_v19, %v12588_v58 }
 0xebb   : > { %v12589_v42 = vpop.f32.mrb[84].mxu1  ;;  %v12629_v0 = vpop.f32.mrb[84].mxu0 }
 0xebc   : > { %v12590_v7 = vpop.f32.mrb[85].mxu1  ;;  %v12630_v16 = vpop.f32.mrb[85].mxu0 }
 0xebd   : > { %v12591_v20 = vadd.f32 %v12590_v7, %v12589_v42  ;;  %v12631_v21 = vadd.f32 %v12630_v16, %v12629_v0  ;;  %v12592_v2 = vpop.f32.mrb[86].mxu1  ;;  %v12632_v52 = vpop.f32.mrb[86].mxu0 }
 0xebe   : > { %v12593_v22 = vpop.f32.mrb[87].mxu1  ;;  %v12633_v47 = vpop.f32.mrb[87].mxu0 }
 0xebf   : > { %v12594_v13 = vadd.f32 %v12593_v22, %v12592_v2  ;;  %v12634_v15 = vadd.f32 %v12633_v47, %v12632_v52  ;;  %v3962_v51 = vadd.f32 %v12631_v21, %v12591_v20 }
 0xec1   : > { %v3965_v12 = vadd.f32 %v12634_v15, %v12594_v13 }
 0xec3   : > { %v12595_v30 = vpop.f32.mrb[88].mxu1  ;;  %v12635_v50 = vpop.f32.mrb[88].mxu0 }
 0xec4   : > { %v12596_v36 = vpop.f32.mrb[89].mxu1  ;;  %v12636_v25 = vpop.f32.mrb[89].mxu0 }
 0xec5   : > { %v12597_v3 = vadd.f32 %v12596_v36, %v12595_v30  ;;  %v12637_v18 = vadd.f32 %v12636_v25, %v12635_v50  ;;  %v12598_v23 = vpop.f32.mrb[90].mxu1  ;;  %v12638_v35 = vpop.f32.mrb[90].mxu0 }
 0xec6   : > { %v12599_v32 = vpop.f32.mrb[91].mxu1  ;;  %v12639_v39 = vpop.f32.mrb[91].mxu0 }
 0xec7   : > { %v12600_v53 = vadd.f32 %v12599_v32, %v12598_v23  ;;  %v12640_v59 = vadd.f32 %v12639_v39, %v12638_v35  ;;  %v3970_v28 = vadd.f32 %v12637_v18, %v12597_v3 }
 0xec9   : > { %v3973_v54 = vadd.f32 %v12640_v59, %v12600_v53 }
 0xecb   : > { %v12601_v62 = vpop.f32.mrb[92].mxu1  ;;  %v12641_v24 = vpop.f32.mrb[92].mxu0 }
 0xecc   : > { %v12602_v11 = vpop.f32.mrb[93].mxu1  ;;  %v12642_v56 = vpop.f32.mrb[93].mxu0 }
 0xecd   : > { %v12603_v38 = vadd.f32 %v12602_v11, %v12601_v62  ;;  %v12643_v46 = vadd.f32 %v12642_v56, %v12641_v24  ;;  %v12604_v5 = vpop.f32.mrb[94].mxu1  ;;  %v12644_v55 = vpop.f32.mrb[94].mxu0 }
 0xece   : > { %v12605_v63 = vpop.f32.mrb[95].mxu1  ;;  %v12645_v45 = vpop.f32.mrb[95].mxu0 }
 0xecf   : > { %v12606_v58 = vadd.f32 %v12605_v63, %v12604_v5  ;;  %v12646_v19 = vadd.f32 %v12645_v45, %v12644_v55  ;;  %v3978_v42 = vadd.f32 %v12643_v46, %v12603_v38 }
 0xed1   : > { %v16191_v0 = vadd.f32 %v12646_v19, %v12606_v58 }
 0xed3   : > { %v12663_v7 = vpop.f32.mrb[96].mxu1 }
 0xed4   : > { %v12703_v16 = vpop.f32.mrb[96].mxu0  ;;  %v12664_v20 = vpop.f32.mrb[97].mxu1 }
 0xed5   : > { %v12665_v21 = vadd.f32 %v12664_v20, %v12663_v7  ;;  %v12704_v2 = vpop.f32.mrb[97].mxu0  ;;  %v12666_v52 = vpop.f32.mrb[98].mxu1 }
 0xed6   : > { %v12705_v22 = vadd.f32 %v12704_v2, %v12703_v16  ;;  %v12706_v47 = vpop.f32.mrb[98].mxu0  ;;  %v12667_v13 = vpop.f32.mrb[99].mxu1 }
 0xed7   : > { %v4211_v15 = vadd.f32 %v12665_v21, %v3954_v29  ;;  %v12668_v30 = vadd.f32 %v12667_v13, %v12666_v52  ;;  %v12707_v50 = vpop.f32.mrb[99].mxu0 }
 0xed8   : > { %v12708_v36 = vadd.f32 %v12707_v50, %v12706_v47 }
 0xed9   : > { %v16193_v25 = vadd.f32 %v12705_v22, %v4211_v15  ;;  %v4214_v3 = vadd.f32 %v12668_v30, %v3957_v60 }
 0xedb   : > { %v16195_v18 = vadd.f32 %v12708_v36, %v4214_v3  ;;  %v12669_v23 = vpop.f32.mrb[100].mxu1 }
 0xedc   : > { %v12709_v35 = vpop.f32.mrb[100].mxu0  ;;  %v12670_v32 = vpop.f32.mrb[101].mxu1 }
 0xedd   : > { %v12671_v39 = vadd.f32 %v12670_v32, %v12669_v23  ;;  %v12710_v53 = vpop.f32.mrb[101].mxu0  ;;  %v12672_v59 = vpop.f32.mrb[102].mxu1 }
 0xede   : > { %v12711_v62 = vadd.f32 %v12710_v53, %v12709_v35  ;;  %v12712_v24 = vpop.f32.mrb[102].mxu0  ;;  %v12673_v11 = vpop.f32.mrb[103].mxu1 }
 0xedf   : > { %v4219_v56 = vadd.f32 %v12671_v39, %v3962_v51  ;;  %v12674_v38 = vadd.f32 %v12673_v11, %v12672_v59  ;;  %v12713_v29 = vpop.f32.mrb[103].mxu0  ;;  %v4338_v59 = vld [vmem:[#allocation10 + $0x8] sm:$0xf] }
 0xee0   : > { %v12714_v46 = vadd.f32 %v12713_v29, %v12712_v24  ;;  %v16212_v29 = vrot.slane %v4338_v59, %v15312_v57 }
 0xee1   : > { %v16197_v5 = vadd.f32 %v12711_v62, %v4219_v56  ;;  %v4222_v55 = vadd.f32 %v12674_v38, %v3965_v12  ;;  %v16209_v38 = vrot.slane %v4338_v59, %v15240_v31 }
 0xee3   : > { %v16199_v63 = vadd.f32 %v12714_v46, %v4222_v55  ;;  %v12675_v60 = vpop.f32.mrb[104].mxu1  ;;  %v16215_v46 = vrot.slane %v4338_v59, %v15248_v33 }
 0xee4   : > { %v12715_v45 = vpop.f32.mrb[104].mxu0  ;;  %v12676_v58 = vpop.f32.mrb[105].mxu1 }
 0xee5   : > { %v12677_v19 = vadd.f32 %v12676_v58, %v12675_v60  ;;  %v12716_v7 = vpop.f32.mrb[105].mxu0  ;;  %v12678_v16 = vpop.f32.mrb[106].mxu1 }
 0xee6   : > { %v12717_v20 = vadd.f32 %v12716_v7, %v12715_v45  ;;  %v12718_v21 = vpop.f32.mrb[106].mxu0  ;;  %v12679_v2 = vpop.f32.mrb[107].mxu1 }
 0xee7   : > { %v4227_v52 = vadd.f32 %v12677_v19, %v3970_v28  ;;  %v12680_v22 = vadd.f32 %v12679_v2, %v12678_v16  ;;  %v12719_v51 = vpop.f32.mrb[107].mxu0 }
 0xee8   : > { %v12720_v47 = vadd.f32 %v12719_v51, %v12718_v21 }
 0xee9   : > { %v16201_v13 = vadd.f32 %v12717_v20, %v4227_v52  ;;  %v4230_v15 = vadd.f32 %v12680_v22, %v3973_v54 }
 0xeeb   : > { %v16203_v30 = vadd.f32 %v12720_v47, %v4230_v15  ;;  %v12681_v12 = vpop.f32.mrb[108].mxu1 }
 0xeec   : > { %v12721_v50 = vpop.f32.mrb[108].mxu0  ;;  %v12682_v36 = vpop.f32.mrb[109].mxu1 }
 0xeed   : > { %v12683_v3 = vadd.f32 %v12682_v36, %v12681_v12  ;;  %v12722_v23 = vpop.f32.mrb[109].mxu0  ;;  %v12684_v35 = vpop.f32.mrb[110].mxu1 }
 0xeee   : > { %v12723_v32 = vadd.f32 %v12722_v23, %v12721_v50  ;;  %v12724_v39 = vpop.f32.mrb[110].mxu0  ;;  %v12685_v53 = vpop.f32.mrb[111].mxu1 }
 0xeef   : > { %v4235_v62 = vadd.f32 %v12683_v3, %v3978_v42  ;;  %v12686_v28 = vadd.f32 %v12685_v53, %v12684_v35  ;;  %v12725_v24 = vpop.f32.mrb[111].mxu0  ;;  %v16220_v42 = vrot.slane %v4338_v59, %v16021_v44  ;;  %v5114_v53 = vld [vmem:[#allocation8 + $0xf0] sm:$0xff] }
 0xef0   : > { %v12726_v11 = vadd.f32 %v12725_v24, %v12724_v39  ;;  %v5112_v39 = vld [vmem:[#allocation8 + $0xb0] sm:$0xff]  ;;  %v5113_v24 = vld [vmem:[#allocation8 + $0xb8] sm:$0xff] }
 0xef1   : > { %v16205_v56 = vadd.f32 %v12723_v32, %v4235_v62  ;;  %v4238_v54 = vadd.f32 %v12686_v28, %v16191_v0 }
 0xef3   : > { %v16217_v55 = vadd.f32 %v12726_v11, %v4238_v54  ;;  %v5115_v11 = vld [vmem:[#allocation8 + $0xf8] sm:$0xff] }
 0xef4   : > { %v4554_v60 = vpop.f32.mrb[112].mxu1 }
 0xef5   : > { %v4555_v45 = vadd.f32 %v4554_v60, %v16209_v38  ;;  %v4627_v58 = vpop.f32.mrb[112].mxu0  ;;  %v4556_v19 = vpop.f32.mrb[113].mxu1 }
 0xef6   : > { %v4628_v0 = vadd.f32 %v4627_v58, %v16212_v29  ;;  %v4557_v7 = vadd.f32 %v4556_v19, %v16215_v46  ;;  %v4629_v16 = vpop.f32.mrb[113].mxu0  ;;  %v4558_v20 = vpop.f32.mrb[114].mxu1 }
 0xef7   : > { %v4630_v21 = vadd.f32 %v4629_v16, %v16220_v42  ;;  %v4559_v2 = vadd.f32 %v4558_v20, %v16209_v38  ;;  %v4631_v52 = vpop.f32.mrb[114].mxu0  ;;  %v4560_v22 = vpop.f32.mrb[115].mxu1  ;;  %v4666_v12 = vmax.f32 %v4555_v45, 0.0 }
 0xef8   : > { %v4632_v51 = vadd.f32 %v4631_v52, %v16212_v29  ;;  %v4561_v47 = vadd.f32 %v4560_v22, %v16215_v46  ;;  %v4633_v15 = vpop.f32.mrb[115].mxu0  ;;  %v4668_v3 = vmax.f32 %v4628_v0, 0.0  ;;  %v4667_v23 = vmax.f32 %v4557_v7, 0.0  ;;  %v16231_v0 = vld [vmem:[#allocation8 + $0x130] sm:$0xff] }
 0xef9   : > { %v4670_v50 = vmax.f32 %v4559_v2, 0.0  ;;  %v4634_v36 = vadd.f32 %v4633_v15, %v16220_v42  ;;  %v4669_v59 = vmax.f32 %v4630_v21, 0.0  ;;  %v12029_v2 = vcombine.high %v5112_v39, %v5114_v53  ;;  %v16233_v7 = vld [vmem:[#allocation8 + $0x170] sm:$0xff] }
 0xefa   : > { %v4672_v35 = vmax.f32 %v4632_v51, 0.0  ;;  %v4671_v32 = vmax.f32 %v4561_v47, 0.0  ;;  %v12028_v47 = vcombine.low %v5112_v39, %v5114_v53  ;;  %v12031_v15 = vcombine.high %v5113_v24, %v5115_v11 }
 0xefb   : > { %v4698_v62 = vpack.c.bf16 %v4670_v50, %v4666_v12  ;;  %v4673_v28 = vmax.f32 %v4634_v36, 0.0  ;;  %v16237_v12 = vld [vmem:[#allocation8 + $0x138] sm:$0xff]  ;;  %v12033_v39 = vcombine.high %v16231_v0, %v16233_v7  ;;  %v12032_v14 = vcombine.low %v16231_v0, %v16233_v7 }
 0xefc   : > { %v4700_v54 = vpack.c.bf16 %v4672_v35, %v4668_v3  ;;  %v4699_v60 = vpack.c.bf16 %v4671_v32, %v4667_v23  ;;  %v4564_v58 = vpop.f32.mrb[116].mxu1  ;;  %v16239_v50 = vld [vmem:[#allocation8 + $0x178] sm:$0xff]  ;;  %v12030_v32 = vcombine.low %v5113_v24, %v5115_v11  ;;  %v16256_v24 = vld [vmem:[#allocation8 + $0x1b0] sm:$0xff] }
 0xefd   : > { %v4701_v19 = vpack.c.bf16 %v4673_v28, %v4669_v59  ;;  %v4565_v45 = vadd.f32 %v4564_v58, %v16209_v38  ;;  %v4637_v16 = vpop.f32.mrb[116].mxu0  ;;  %v4566_v20 = vpop.f32.mrb[117].mxu1  ;;  %v16258_v11 = vld [vmem:[#allocation8 + $0x1f0] sm:$0xff] }
 0xefe   : > { %v4638_v52 = vadd.f32 %v4637_v16, %v16212_v29  ;;  %v4567_v21 = vadd.f32 %v4566_v20, %v16215_v46  ;;  %v4639_v22 = vpop.f32.mrb[117].mxu0  ;;  %v4568_v51 = vpop.f32.mrb[118].mxu1  ;;  %5002 = vmatprep.mubr.bf16.mxu1 %v4699_v60  ;;  %v12036_v7 = vcombine.low %v16256_v24, %v16258_v11 }
 0xeff   : > { %v4640_v36 = vadd.f32 %v4639_v22, %v16220_v42  ;;  %v4569_v3 = vadd.f32 %v4568_v51, %v16209_v38  ;;  %v4641_v23 = vpop.f32.mrb[118].mxu0  ;;  %5067 = vmatprep.mubr.bf16.mxu0 %v4701_v19  ;;  %v4570_v35 = vpop.f32.mrb[119].mxu1  ;;  %5003 = vmatmul.mubr.bf16.vlgmr.msra.gmra.mrb[128].mxu1 %v4698_v62  ;;  %v4674_v53 = vmax.f32 %v4565_v45, 0.0  ;;  %v12035_v62 = vcombine.high %v16237_v12, %v16239_v50 }
 0xf00   : > { %v4642_v59 = vadd.f32 %v4641_v23, %v16212_v29  ;;  %v4571_v28 = vadd.f32 %v4570_v35, %v16215_v46  ;;  %v4643_v60 = vpop.f32.mrb[119].mxu0  ;;  %5068 = vmatmul.mubr.bf16.vlgmr.msra.gmra.mrb[128].mxu0 %v4700_v54  ;;  %5323 = vmatpush1.bf16.msra.mxu1 %v12024_v9  ;;  %v4676_v61 = vmax.f32 %v4638_v52, 0.0  ;;  %v4675_v4 = vmax.f32 %v4567_v21, 0.0  ;;  %v16273_v23 = vld [vmem:[#allocation8 + $0x230] sm:$0xff] }
 0xf01   : > { %v4678_v58 = vmax.f32 %v4569_v3, 0.0  ;;  %v4644_v19 = vadd.f32 %v4643_v60, %v16220_v42  ;;  %5396 = vmatpush1.bf16.msra.mxu0 %v12026_v27  ;;  %5324 = vmatprep.subr.bf16.mxu1 %v12029_v2  ;;  %v4677_v45 = vmax.f32 %v4640_v36, 0.0  ;;  %v16264_v27 = vld [vmem:[#allocation8 + $0x1f8] sm:$0xff]  ;;  %v12034_v52 = vcombine.low %v16237_v12, %v16239_v50  ;;  %v16275_v35 = vld [vmem:[#allocation8 + $0x270] sm:$0xff] }
 0xf02   : > { %v4680_v9 = vmax.f32 %v4642_v59, 0.0  ;;  %v4679_v54 = vmax.f32 %v4571_v28, 0.0  ;;  %5397 = vmatprep.subr.bf16.mxu0 %v12031_v15  ;;  %v12037_v21 = vcombine.high %v16256_v24, %v16258_v11  ;;  %v16281_v28 = vld [vmem:[#allocation8 + $0x238] sm:$0xff]  ;;  %v12038_v24 = vcombine.low %v16262_v49, %v16264_v27 }
 0xf03   : > { %v4702_v16 = vpack.c.bf16 %v4678_v58, %v4674_v53  ;;  %v4681_v20 = vmax.f32 %v4644_v19, 0.0  ;;  %v16283_v60 = vld [vmem:[#allocation8 + $0x278] sm:$0xff] }
 0xf04   : > { %v4704_v2 = vpack.c.bf16 %v4680_v9, %v4676_v61  ;;  %v4703_v22 = vpack.c.bf16 %v4679_v54, %v4675_v4  ;;  %v4574_v51 = vpop.f32.mrb[120].mxu1  ;;  %5325 = vmatpush1.bf16.msra.mxu1 %v12028_v47  ;;  %v12041_v4 = vcombine.high %v16273_v23, %v16275_v35 }
 0xf05   : > { %v4705_v15 = vpack.c.bf16 %v4681_v20, %v4677_v45  ;;  %v4575_v36 = vadd.f32 %v4574_v51, %v16209_v38  ;;  %v4647_v3 = vpop.f32.mrb[120].mxu0  ;;  %5398 = vmatpush1.bf16.msra.mxu0 %v12030_v32  ;;  %v4576_v0 = vpop.f32.mrb[121].mxu1  ;;  %5326 = vmatprep.subr.bf16.mxu1 %v12033_v39  ;;  %v12039_v32 = vcombine.high %v16262_v49, %v16264_v27  ;;  %v16296_v20 = vld [vmem:[#allocation8 + $0x2b0] sm:$0xff] }
 0xf06   : > { %v4648_v47 = vadd.f32 %v4647_v3, %v16212_v29  ;;  %v4577_v12 = vadd.f32 %v4576_v0, %v16215_v46  ;;  %v4649_v50 = vpop.f32.mrb[121].mxu0  ;;  %v4578_v59 = vpop.f32.mrb[122].mxu1  ;;  %5010 = vmatprep.mubr.bf16.mxu1 %v4703_v22  ;;  %5399 = vmatprep.subr.bf16.mxu0 %v12035_v62  ;;  %v16298_v49 = vld [vmem:[#allocation8 + $0x2f0] sm:$0xff]  ;;  %v12040_v3 = vcombine.low %v16273_v23, %v16275_v35 }
 0xf07   : > { %v4650_v39 = vadd.f32 %v4649_v50, %v16220_v42  ;;  %v4579_v53 = vadd.f32 %v4578_v59, %v16209_v38  ;;  %v4651_v58 = vpop.f32.mrb[122].mxu0  ;;  %5075 = vmatprep.mubr.bf16.mxu0 %v4705_v15  ;;  %v4580_v19 = vpop.f32.mrb[123].mxu1  ;;  %5011 = vmatmul.mubr.bf16.gmra.mrb[132].mxu1 %v4702_v16  ;;  %v4682_v9 = vmax.f32 %v4575_v36, 0.0  ;;  %v12043_v16 = vcombine.high %v16281_v28, %v16283_v60  ;;  %v5132_v35 = vld [vmem:[#allocation8 + $0x330] sm:$0xff] }
 0xf08   : > { %v4652_v62 = vadd.f32 %v4651_v58, %v16212_v29  ;;  %v4581_v11 = vadd.f32 %v4580_v19, %v16215_v46  ;;  %v4653_v61 = vpop.f32.mrb[123].mxu0  ;;  %5076 = vmatmul.mubr.bf16.gmra.mrb[132].mxu0 %v4704_v2  ;;  %5327 = vmatpush1.bf16.msra.mxu1 %v12032_v14  ;;  %v4684_v27 = vmax.f32 %v4648_v47, 0.0  ;;  %v4683_v22 = vmax.f32 %v4577_v12, 0.0  ;;  %v5134_v19 = vld [vmem:[#allocation8 + $0x370] sm:$0xff] }
 0xf09   : > { %v4686_v54 = vmax.f32 %v4579_v53, 0.0  ;;  %v4654_v45 = vadd.f32 %v4653_v61, %v16220_v42  ;;  %5400 = vmatpush1.bf16.msra.mxu0 %v12034_v52  ;;  %5328 = vmatprep.subr.bf16.mxu1 %v12037_v21  ;;  %v4685_v51 = vmax.f32 %v4650_v39, 0.0  ;;  %v5129_v52 = vld [vmem:[#allocation8 + $0x2b8] sm:$0xff]  ;;  %v12042_v53 = vcombine.low %v16281_v28, %v16283_v60 }
 0xf0a   : > { %v4688_v2 = vmax.f32 %v4652_v62, 0.0  ;;  %v4687_v14 = vmax.f32 %v4581_v11, 0.0  ;;  %5401 = vmatprep.subr.bf16.mxu0 %v12039_v32  ;;  %v5131_v21 = vld [vmem:[#allocation8 + $0x2f8] sm:$0xff]  ;;  %v12045_v47 = vcombine.high %v16296_v20, %v16298_v49  ;;  %v12044_v23 = vcombine.low %v16296_v20, %v16298_v49 }
 0xf0b   : > { %v4706_v15 = vpack.c.bf16 %v4686_v54, %v4682_v9  ;;  %v4689_v36 = vmax.f32 %v4654_v45, 0.0  ;;  %v12047_v11 = vcombine.high %v5129_v52, %v5131_v21  ;;  %v5133_v61 = vld [vmem:[#allocation8 + $0x338] sm:$0xff]  ;;  %v12046_v20 = vcombine.low %v5129_v52, %v5131_v21  ;;  %v5136_v52 = vld [vmem:[#allocation8 + $0x3b0] sm:$0xff] }
 0xf0c   : > { %v4708_v0 = vpack.c.bf16 %v4688_v2, %v4684_v27  ;;  %v4707_v50 = vpack.c.bf16 %v4687_v14, %v4683_v22  ;;  %v4584_v59 = vpop.f32.mrb[124].mxu1  ;;  %5329 = vmatpush1.bf16.msra.mxu1 %v12036_v7  ;;  %v5135_v9 = vld [vmem:[#allocation8 + $0x378] sm:$0xff] }
 0xf0d   : > { %v4709_v12 = vpack.c.bf16 %v4689_v36, %v4685_v51  ;;  %v4585_v32 = vadd.f32 %v4584_v59, %v16209_v38  ;;  %v4657_v39 = vpop.f32.mrb[124].mxu0  ;;  %5402 = vmatpush1.bf16.msra.mxu0 %v12038_v24  ;;  %v4586_v58 = vpop.f32.mrb[125].mxu1  ;;  %5330 = vmatprep.subr.bf16.mxu1 %v12041_v4 }
 0xf0e   : > { %v4658_v7 = vadd.f32 %v4657_v39, %v16212_v29  ;;  %v4587_v62 = vadd.f32 %v4586_v58, %v16215_v46  ;;  %v4659_v28 = vpop.f32.mrb[125].mxu0  ;;  %v4588_v60 = vpop.f32.mrb[126].mxu1  ;;  %5018 = vmatprep.mubr.bf16.mxu1 %v4707_v50  ;;  %5403 = vmatprep.subr.bf16.mxu0 %v12043_v16  ;;  %v12049_v16 = vcombine.high %v5132_v35, %v5134_v19 }
 0xf0f   : > { %v4660_v24 = vadd.f32 %v4659_v28, %v16220_v42  ;;  %v4589_v4 = vadd.f32 %v4588_v60, %v16209_v38  ;;  %v4661_v54 = vpop.f32.mrb[126].mxu0  ;;  %5083 = vmatprep.mubr.bf16.mxu0 %v4709_v12  ;;  %v4590_v45 = vpop.f32.mrb[127].mxu1  ;;  %5019 = vmatmul.mubr.bf16.gmra.mrb[136].mxu1 %v4706_v15  ;;  %v4690_v2 = vmax.f32 %v4585_v32, 0.0  ;;  %v12051_v38 = vcombine.high %v5133_v61, %v5135_v9  ;;  %v14047_v60 = vld [vmem:[#allocation11 + $0x3c8] sm:$0xff]  }
 0xf10   : > { %v4662_v49 = vadd.f32 %v4661_v54, %v16212_v29  ;;  %v4591_v27 = vadd.f32 %v4590_v45, %v16215_v46  ;;  %v4663_v22 = vpop.f32.mrb[127].mxu0  ;;  %5084 = vmatmul.mubr.bf16.gmra.mrb[136].mxu0 %v4708_v0  ;;  %5331 = vmatpush1.bf16.msra.mxu1 %v12040_v3  ;;  %v4692_v36 = vmax.f32 %v4658_v7, 0.0  ;;  %v4691_v50 = vmax.f32 %v4587_v62, 0.0  ;;  %v5138_v29 = vld [vmem:[#allocation8 + $0x3f0] sm:$0xff]  ;;  %v5137_v0 = vld [vmem:[#allocation8 + $0x3b8] sm:$0xff] }
 0xf11   : > { %v4694_v14 = vmax.f32 %v4589_v4, 0.0  ;;  %v4664_v51 = vadd.f32 %v4663_v22, %v16220_v42  ;;  %5404 = vmatpush1.bf16.msra.mxu0 %v12042_v53  ;;  %5332 = vmatprep.subr.bf16.mxu1 %v12045_v47  ;;  %v4693_v21 = vmax.f32 %v4660_v24, 0.0  ;;  %v5139_v3 = vld [vmem:[#allocation8 + $0x3f8] sm:$0xff]  ;;  %v12048_v58 = vcombine.low %v5132_v35, %v5134_v19  ;;  %v14044_v35 = vld [vmem:[#allocation11 + $0x300] sm:$0xff]   ;;  %v14046_v19 = vld [vmem:[#allocation11 + $0x348] sm:$0xff]  }
 0xf12   : > { %v4696_v59 = vmax.f32 %v4662_v49, 0.0  ;;  %v4695_v15 = vmax.f32 %v4591_v27, 0.0  ;;  %5405 = vmatprep.subr.bf16.mxu0 %v12047_v11  ;;  %v12050_v53 = vcombine.low %v5133_v61, %v5135_v9  ;;  %v12053_v47 = vcombine.high %v5136_v52, %v5138_v29  ;;  %v14048_v11 = vld [vmem:[#allocation11 + $0x308] sm:$0xff]   ;;  %v14050_v61 = vld [vmem:[#allocation11 + $0x350] sm:$0xff]   ;;  %v14054_v4 = vld [vmem:[#allocation11 + $0x358] sm:$0xff]  }
 0xf13   : > { %v4710_v46 = vpack.c.bf16 %v4694_v14, %v4690_v2  ;;  %v4697_v12 = vmax.f32 %v4664_v51, 0.0  ;;  %v12055_v7 = vcombine.high %v5137_v0, %v5139_v3  ;;  %v12052_v62 = vcombine.low %v5136_v52, %v5138_v29  ;;  %v14051_v9 = vld [vmem:[#allocation11 + $0x3d0] sm:$0xff]   ;;  %v14055_v54 = vld [vmem:[#allocation11 + $0x3d8] sm:$0xff]   ;;  %v14058_v49 = vld [vmem:[#allocation11 + $0x360] sm:$0xff]  }
 0xf14   : > { %v4712_v39 = vpack.c.bf16 %v4696_v59, %v4692_v36  ;;  %v4711_v32 = vpack.c.bf16 %v4695_v15, %v4691_v50  ;;  %5333 = vmatpush1.bf16.msra.mxu1 %v12044_v23  ;;  %v12054_v28 = vcombine.low %v5137_v0, %v5139_v3  ;;  %v14043_v23 = vld [vmem:[#allocation11 + $0x3c0] sm:$0xff]   ;;  %v14052_v24 = vld [vmem:[#allocation11 + $0x310] sm:$0xff]   ;;  %v14056_v45 = vld [vmem:[#allocation11 + $0x318] sm:$0xff]  }
 0xf15   : > { %v4713_v42 = vpack.c.bf16 %v4697_v12, %v4693_v21  ;;  %5406 = vmatpush1.bf16.msra.mxu0 %v12046_v20  ;;  %5334 = vmatprep.subr.bf16.mxu1 %v12049_v16  ;;  %v14057_v20 = vld [vmem:[#allocation11 + $0x398] sm:$0xff]   ;;  %v14059_v27 = vld [vmem:[#allocation11 + $0x3e0] sm:$0xff]   ;;  %v14062_v2 = vld [vmem:[#allocation11 + $0x368] sm:$0xff]  }
 0xf16   : > { %5026 = vmatprep.mubr.bf16.mxu1 %v4711_v32  ;;  %5407 = vmatprep.subr.bf16.mxu0 %v12051_v38  ;;  %v14060_v22 = vld [vmem:[#allocation11 + $0x320] sm:$0xff]   ;;  %v14063_v14 = vld [vmem:[#allocation11 + $0x3e8] sm:$0xff]   ;;  %v14066_v36 = vld [vmem:[#allocation11 + $0x370] sm:$0xff]  }
 0xf17   : > { %5091 = vmatprep.mubr.bf16.mxu0 %v4713_v42  ;;  %5027 = vmatmul.mubr.bf16.gmra.mrb[140].mxu1 %v4710_v46  ;;  %v14061_v16 = vld [vmem:[#allocation11 + $0x3a0] sm:$0xff]   ;;  %v14064_v51 = vld [vmem:[#allocation11 + $0x328] sm:$0xff]   ;;  %v14067_v50 = vld [vmem:[#allocation11 + $0x3f0] sm:$0xff]  }
 0xf18   : > { %5092 = vmatmul.mubr.bf16.gmra.mrb[140].mxu0 %v4712_v39  ;;  %5335 = vmatpush1.bf16.msra.mxu1 %v12048_v58  ;;  %v14065_v38 = vld [vmem:[#allocation11 + $0x3a8] sm:$0xff]   ;;  %v14068_v59 = vld [vmem:[#allocation11 + $0x330] sm:$0xff]   ;;  %v14070_v52 = vld [vmem:[#allocation11 + $0x378] sm:$0xff]  }
 0xf19   : > { %5408 = vmatpush1.bf16.msra.mxu0 %v12050_v53  ;;  %5336 = vmatprep.subr.bf16.mxu1 %v12053_v47  ;;  %v14069_v15 = vld [vmem:[#allocation11 + $0x3b0] sm:$0xff]   ;;  %v14071_v29 = vld [vmem:[#allocation11 + $0x3f8] sm:$0xff]  }
 0xf1a   : > { %5409 = vmatprep.subr.bf16.mxu0 %v12055_v7  ;;  %5354 = vmatprep.mubr.bf16.mxu1 %v18296_v8  ;;  %v14072_v21 = vld [vmem:[#allocation11 + $0x338] sm:$0xff]  }
 0xf1b   : > { %5427 = vmatprep.mubr.bf16.mxu0 %v18296_v8  ;;  %v14073_v46 = vld [vmem:[#allocation11 + $0x3b8] sm:$0xff]  }
 0xf1c   : > { %5337 = vmatpush1.bf16.msra.mxu1 %v12052_v62 }
 0xf1d   : > { %5410 = vmatpush1.bf16.msra.mxu0 %v12054_v28 }
 0xf1e   : > { %12847 = vmatprep.subr.bf16.mxu0 %v14043_v23 }
 0xf1f   : > { %5355 = vmatmul.mubr.bf16.vlgmr.msra.gmra.mrb[144].mxu1 %v15941_v43 }
 0xf20   : > { %5428 = vmatmul.mubr.bf16.vlgmr.msra.gmra.mrb[144].mxu0 %v15941_v43  ;;  %5364 = vmatprep.mubr.bf16.mxu1 %v18296_v8  ;;  %v14042_v43 = vld [vmem:[#allocation11 + $0x340] sm:$0xff]  }
 0xf21   : > { %5437 = vmatprep.mubr.bf16.mxu0 %v18296_v8  ;;  %12807 = vmatprep.subr.bf16.mxu1 %v14042_v43 }
 0xf22   : > { %12808 = vmatpush3.bf16.msra.mxu1 %v14044_v35 }
 0xf23   : > { %12809 = vmatprep.subr.bf16.mxu1 %v14046_v19 }
 0xf26   : > { %12810 = vmatpush3.bf16.msra.mxu1 %v14048_v11 }
 0xf27   : > { %5365 = vmatmul.mubr.bf16.gmra.mrb[148].mxu1 %v15967_v17  ;;  %12811 = vmatprep.subr.bf16.mxu1 %v14050_v61 }
 0xf28   : > { %5438 = vmatmul.mubr.bf16.gmra.mrb[148].mxu0 %v15967_v17  ;;  %5374 = vmatprep.mubr.bf16.mxu1 %v18296_v8  ;;  %v14045_v17 = vld [vmem:[#allocation11 + $0x380] sm:$0xff]  }
 0xf29   : > { %5447 = vmatprep.mubr.bf16.mxu0 %v18296_v8  ;;  %12848 = vmatpush3.bf16.msra.mxu0 %v14045_v17 }
 0xf2a   : > { %12849 = vmatprep.subr.bf16.mxu0 %v14047_v60  ;;  %12812 = vmatpush3.bf16.msra.mxu1 %v14052_v24 }
 0xf2b   : > { %12813 = vmatprep.subr.bf16.mxu1 %v14054_v4 }
 0xf2e   : > { %12814 = vmatpush3.bf16.msra.mxu1 %v14056_v45 }
 0xf2f   : > { %5375 = vmatmul.mubr.bf16.gmra.mrb[152].mxu1 %v15984_v26  ;;  %12815 = vmatprep.subr.bf16.mxu1 %v14058_v49 }
 0xf30   : > { %5448 = vmatmul.mubr.bf16.gmra.mrb[152].mxu0 %v15984_v26  ;;  %5384 = vmatprep.mubr.bf16.mxu1 %v18296_v8  ;;  %v14049_v26 = vld [vmem:[#allocation11 + $0x388] sm:$0xff]  }
 0xf31   : > { %5457 = vmatprep.mubr.bf16.mxu0 %v18296_v8  ;;  %12850 = vmatpush3.bf16.msra.mxu0 %v14049_v26 }
 0xf32   : > { %12851 = vmatprep.subr.bf16.mxu0 %v14051_v9  ;;  %12816 = vmatpush3.bf16.msra.mxu1 %v14060_v22 }
 0xf33   : > { %12817 = vmatprep.subr.bf16.mxu1 %v14062_v2 }
 0xf36   : > { %12818 = vmatpush3.bf16.msra.mxu1 %v14064_v51 }
 0xf37   : > { %5385 = vmatmul.mubr.bf16.gmra.mrb[156].mxu1 %v16000_v40  ;;  %12819 = vmatprep.subr.bf16.mxu1 %v14066_v36 }
 0xf38   : > { %5458 = vmatmul.mubr.bf16.gmra.mrb[156].mxu0 %v16000_v40  ;;  %v14053_v40 = vld [vmem:[#allocation11 + $0x390] sm:$0xff]  }
 0xf39   : > { %12852 = vmatpush3.bf16.msra.mxu0 %v14053_v40 }
 0xf3a   : > { %12853 = vmatprep.subr.bf16.mxu0 %v14055_v54  ;;  %12820 = vmatpush3.bf16.msra.mxu1 %v14068_v59 }
 0xf3b   : > { %12821 = vmatprep.subr.bf16.mxu1 %v14070_v52 }
 0xf3d   : > { %12854 = vmatpush3.bf16.msra.mxu0 %v14057_v20 }
 0xf3e   : > { %12855 = vmatprep.subr.bf16.mxu0 %v14059_v27  ;;  %12822 = vmatpush3.bf16.msra.mxu1 %v14072_v21 }
 0xf41   : > { %12856 = vmatpush3.bf16.msra.mxu0 %v14061_v16 }
 0xf42   : > { %12857 = vmatprep.subr.bf16.mxu0 %v14063_v14 }
 0xf45   : > { %12858 = vmatpush3.bf16.msra.mxu0 %v14065_v38 }
 0xf46   : > { %12859 = vmatprep.subr.bf16.mxu0 %v14067_v50 }
 0xf49   : > { %12860 = vmatpush3.bf16.msra.mxu0 %v14069_v15 }
 0xf4a   : > { %12861 = vmatprep.subr.bf16.mxu0 %v14071_v29 }
 0xf4d   : > { %12862 = vmatpush3.bf16.msra.mxu0 %v14073_v46 }
 0xfd2   : > { %v12743_v12 = vpop.f32.mrb[128].mxu1 }
 0xfd3   : > { %v12783_v0 = vpop.f32.mrb[128].mxu0  ;;  %v12744_v3 = vpop.f32.mrb[129].mxu1 }
 0xfd4   : > { %v12745_v39 = vadd.f32 %v12744_v3, %v12743_v12  ;;  %v12784_v32 = vpop.f32.mrb[129].mxu0  ;;  %v12746_v58 = vpop.f32.mrb[130].mxu1 }
 0xfd5   : > { %v12785_v42 = vadd.f32 %v12784_v32, %v12783_v0  ;;  %v12786_v53 = vpop.f32.mrb[130].mxu0  ;;  %v12747_v47 = vpop.f32.mrb[131].mxu1 }
 0xfd6   : > { %v12748_v7 = vadd.f32 %v12747_v47, %v12746_v58  ;;  %v12787_v62 = vpop.f32.mrb[131].mxu0 }
 0xfd7   : > { %v5070_v28 = vadd.f32 %v12785_v42, %v12745_v39  ;;  %v12788_v43 = vadd.f32 %v12787_v62, %v12786_v53  ;;  %v5140_v42 = vld [vmem:[#allocation10 + $0xc] sm:$0xf] }
 0xfd9   : > { %v16333_v23 = vadd.f32 %v5070_v28, %v16193_v25  ;;  %v5073_v35 = vadd.f32 %v12788_v43, %v12748_v7 }
 0xfda   : > { %v12749_v17 = vpop.f32.mrb[132].mxu1 }
 0xfdb   : > { %v16336_v19 = vadd.f32 %v5073_v35, %v16195_v18  ;;  %v12789_v60 = vpop.f32.mrb[132].mxu0  ;;  %v12750_v11 = vpop.f32.mrb[133].mxu1 }
 0xfdc   : > { %v12751_v26 = vadd.f32 %v12750_v11, %v12749_v17  ;;  %v12790_v61 = vpop.f32.mrb[133].mxu0  ;;  %v12752_v9 = vpop.f32.mrb[134].mxu1  ;;  %v16354_v17 = vrot.slane %v5140_v42, %v15312_v57 }
 0xfdd   : > { %v12791_v24 = vadd.f32 %v12790_v61, %v12789_v60  ;;  %v12792_v40 = vpop.f32.mrb[134].mxu0  ;;  %v12753_v4 = vpop.f32.mrb[135].mxu1 }
 0xfde   : > { %v12754_v54 = vadd.f32 %v12753_v4, %v12752_v9  ;;  %v12793_v45 = vpop.f32.mrb[135].mxu0 }
 0xfdf   : > { %v5078_v20 = vadd.f32 %v12791_v24, %v12751_v26  ;;  %v12794_v49 = vadd.f32 %v12793_v45, %v12792_v40  ;;  %v16363_v26 = vrot.slane %v5140_v42, %v16021_v44 }
 0xfe1   : > { %v16339_v25 = vadd.f32 %v5078_v20, %v16197_v5  ;;  %v5081_v27 = vadd.f32 %v12794_v49, %v12754_v54 }
 0xfe2   : > { %v12755_v22 = vpop.f32.mrb[136].mxu1 }
 0xfe3   : > { %v16342_v18 = vadd.f32 %v5081_v27, %v16199_v63  ;;  %v12795_v16 = vpop.f32.mrb[136].mxu0  ;;  %v12756_v2 = vpop.f32.mrb[137].mxu1 }
 0xfe4   : > { %v12757_v14 = vadd.f32 %v12756_v2, %v12755_v22  ;;  %v12796_v51 = vpop.f32.mrb[137].mxu0  ;;  %v12758_v38 = vpop.f32.mrb[138].mxu1 }
 0xfe5   : > { %v12797_v36 = vadd.f32 %v12796_v51, %v12795_v16  ;;  %v12798_v50 = vpop.f32.mrb[138].mxu0  ;;  %v12759_v59 = vpop.f32.mrb[139].mxu1 }
 0xfe6   : > { %v12760_v15 = vadd.f32 %v12759_v59, %v12758_v38  ;;  %v12799_v52 = vpop.f32.mrb[139].mxu0 }
 0xfe7   : > { %v5086_v29 = vadd.f32 %v12797_v36, %v12757_v14  ;;  %v12800_v21 = vadd.f32 %v12799_v52, %v12798_v50 }
 0xfe9   : > { %v16345_v5 = vadd.f32 %v5086_v29, %v16201_v13  ;;  %v5089_v46 = vadd.f32 %v12800_v21, %v12760_v15  ;;  %v16351_v13 = vrot.slane %v5140_v42, %v15240_v31 }
 0xfea   : > { %v12761_v12 = vpop.f32.mrb[140].mxu1 }
 0xfeb   : > { %v16348_v63 = vadd.f32 %v5089_v46, %v16203_v30  ;;  %v12801_v0 = vpop.f32.mrb[140].mxu0  ;;  %v12762_v3 = vpop.f32.mrb[141].mxu1  ;;  %v16357_v30 = vrot.slane %v5140_v42, %v15248_v33 }
 0xfec   : > { %v12763_v39 = vadd.f32 %v12762_v3, %v12761_v12  ;;  %v12802_v32 = vpop.f32.mrb[141].mxu0  ;;  %v12764_v58 = vpop.f32.mrb[142].mxu1 }
 0xfed   : > { %v12803_v53 = vadd.f32 %v12802_v32, %v12801_v0  ;;  %v12804_v47 = vpop.f32.mrb[142].mxu0  ;;  %v12765_v7 = vpop.f32.mrb[143].mxu1 }
 0xfee   : > { %v12766_v62 = vadd.f32 %v12765_v7, %v12764_v58  ;;  %v12805_v28 = vpop.f32.mrb[143].mxu0 }
 0xfef   : > { %v5094_v43 = vadd.f32 %v12803_v53, %v12763_v39  ;;  %v12806_v35 = vadd.f32 %v12805_v28, %v12804_v47 }
 0xff1   : > { %v16360_v60 = vadd.f32 %v5094_v43, %v16205_v56  ;;  %v5097_v11 = vadd.f32 %v12806_v35, %v12766_v62 }
 0xff2   : > { %v5356_v61 = vpop.f32.mrb[144].mxu1 }
 0xff3   : > { %v16366_v9 = vadd.f32 %v5097_v11, %v16217_v55  ;;  %v5357_v24 = vadd.f32 %v5356_v61, %v16351_v13  ;;  %v5429_v40 = vpop.f32.mrb[144].mxu0  ;;  %v5358_v4 = vpop.f32.mrb[145].mxu1 }
 0xff4   : > { %v5430_v54 = vadd.f32 %v5429_v40, %v16354_v17  ;;  %v5359_v45 = vadd.f32 %v5358_v4, %v16357_v30  ;;  %v5431_v20 = vpop.f32.mrb[145].mxu0  ;;  %v5360_v49 = vpop.f32.mrb[146].mxu1 }
 0xff5   : > { %v5432_v56 = vadd.f32 %v5431_v20, %v16363_v26  ;;  %v5361_v27 = vadd.f32 %v5360_v49, %v16351_v13  ;;  %v5433_v22 = vpop.f32.mrb[146].mxu0  ;;  %v5362_v16 = vpop.f32.mrb[147].mxu1  ;;  %v5468_v51 = vmax.f32 %v5357_v24, 0.0 }
 0xff6   : > { %v5434_v2 = vadd.f32 %v5433_v22, %v16354_v17  ;;  %v5363_v55 = vadd.f32 %v5362_v16, %v16357_v30  ;;  %v5435_v14 = vpop.f32.mrb[147].mxu0  ;;  %v5470_v50 = vmax.f32 %v5430_v54, 0.0  ;;  %v5469_v59 = vmax.f32 %v5359_v45, 0.0 }
 0xff7   : > { %v5472_v38 = vmax.f32 %v5361_v27, 0.0  ;;  %v5436_v36 = vadd.f32 %v5435_v14, %v16363_v26  ;;  %v5471_v29 = vmax.f32 %v5432_v56, 0.0 }
 0xff8   : > { %v5474_v15 = vmax.f32 %v5434_v2, 0.0  ;;  %v5473_v52 = vmax.f32 %v5363_v55, 0.0 }
 0xff9   : > { %v5500_v21 = vpack.c.bf16 %v5472_v38, %v5468_v51  ;;  %v5475_v46 = vmax.f32 %v5436_v36, 0.0 }
 0xffa   : > { %v5502_v12 = vpack.c.bf16 %v5474_v15, %v5470_v50  ;;  %v5501_v0 = vpack.c.bf16 %v5473_v52, %v5469_v59  ;;  %v5366_v3 = vpop.f32.mrb[148].mxu1 }
 0xffb   : > { %v5503_v39 = vpack.c.bf16 %v5475_v46, %v5471_v29  ;;  %v5367_v32 = vadd.f32 %v5366_v3, %v16351_v13  ;;  %v5439_v58 = vpop.f32.mrb[148].mxu0  ;;  %v5368_v42 = vpop.f32.mrb[149].mxu1 }
 0xffc   : > { %v5440_v53 = vadd.f32 %v5439_v58, %v16354_v17  ;;  %v5369_v47 = vadd.f32 %v5368_v42, %v16357_v30  ;;  %v5441_v7 = vpop.f32.mrb[149].mxu0  ;;  %v5370_v62 = vpop.f32.mrb[150].mxu1  ;;  %5804 = vmatprep.mubr.bf16.mxu1 %v5501_v0 }
 0xffd   : > { %v5442_v28 = vadd.f32 %v5441_v7, %v16363_v26  ;;  %v5371_v43 = vadd.f32 %v5370_v62, %v16351_v13  ;;  %v5443_v35 = vpop.f32.mrb[150].mxu0  ;;  %5869 = vmatprep.mubr.bf16.mxu0 %v5503_v39  ;;  %v5372_v11 = vpop.f32.mrb[151].mxu1  ;;  %5805 = vmatmul.mubr.bf16.vlgmr.msra.gmra.mrb[160].mxu1 %v5500_v21  ;;  %v5476_v4 = vmax.f32 %v5367_v32, 0.0 }
 0xffe   : > { %v5444_v61 = vadd.f32 %v5443_v35, %v16354_v17  ;;  %v5373_v24 = vadd.f32 %v5372_v11, %v16357_v30  ;;  %v5445_v40 = vpop.f32.mrb[151].mxu0  ;;  %5870 = vmatmul.mubr.bf16.vlgmr.msra.gmra.mrb[160].mxu0 %v5502_v12  ;;  %v5478_v20 = vmax.f32 %v5440_v53, 0.0  ;;  %v5477_v49 = vmax.f32 %v5369_v47, 0.0 }
 0xfff   : > { %v5480_v54 = vmax.f32 %v5371_v43, 0.0  ;;  %v5446_v45 = vadd.f32 %v5445_v40, %v16363_v26  ;;  %v5479_v22 = vmax.f32 %v5442_v28, 0.0 }
0x1000   : > { %v5482_v56 = vmax.f32 %v5444_v61, 0.0  ;;  %v5481_v27 = vmax.f32 %v5373_v24, 0.0 }
0x1001   : > { %v5504_v16 = vpack.c.bf16 %v5480_v54, %v5476_v4  ;;  %v5483_v2 = vmax.f32 %v5446_v45, 0.0 }
0x1002   : > { %v5506_v55 = vpack.c.bf16 %v5482_v56, %v5478_v20  ;;  %v5505_v14 = vpack.c.bf16 %v5481_v27, %v5477_v49  ;;  %v5376_v51 = vpop.f32.mrb[152].mxu1 }
0x1003   : > { %v5507_v38 = vpack.c.bf16 %v5483_v2, %v5479_v22  ;;  %v5377_v36 = vadd.f32 %v5376_v51, %v16351_v13  ;;  %v5449_v50 = vpop.f32.mrb[152].mxu0  ;;  %v5378_v59 = vpop.f32.mrb[153].mxu1 }
0x1004   : > { %v5450_v15 = vadd.f32 %v5449_v50, %v16354_v17  ;;  %v5379_v52 = vadd.f32 %v5378_v59, %v16357_v30  ;;  %v5451_v29 = vpop.f32.mrb[153].mxu0  ;;  %v5380_v21 = vpop.f32.mrb[154].mxu1  ;;  %5812 = vmatprep.mubr.bf16.mxu1 %v5505_v14 }
0x1005   : > { %v5452_v46 = vadd.f32 %v5451_v29, %v16363_v26  ;;  %v5381_v12 = vadd.f32 %v5380_v21, %v16351_v13  ;;  %v5453_v0 = vpop.f32.mrb[154].mxu0  ;;  %5877 = vmatprep.mubr.bf16.mxu0 %v5507_v38  ;;  %v5382_v3 = vpop.f32.mrb[155].mxu1  ;;  %5813 = vmatmul.mubr.bf16.gmra.mrb[164].mxu1 %v5504_v16  ;;  %v5484_v42 = vmax.f32 %v5377_v36, 0.0 }
0x1006   : > { %v5454_v39 = vadd.f32 %v5453_v0, %v16354_v17  ;;  %v5383_v32 = vadd.f32 %v5382_v3, %v16357_v30  ;;  %v5455_v58 = vpop.f32.mrb[155].mxu0  ;;  %5878 = vmatmul.mubr.bf16.gmra.mrb[164].mxu0 %v5506_v55  ;;  %v5486_v7 = vmax.f32 %v5450_v15, 0.0  ;;  %v5485_v62 = vmax.f32 %v5379_v52, 0.0 }
0x1007   : > { %v5488_v53 = vmax.f32 %v5381_v12, 0.0  ;;  %v5456_v47 = vadd.f32 %v5455_v58, %v16363_v26  ;;  %v5487_v35 = vmax.f32 %v5452_v46, 0.0 }
0x1008   : > { %v5490_v28 = vmax.f32 %v5454_v39, 0.0  ;;  %v5489_v43 = vmax.f32 %v5383_v32, 0.0 }
0x1009   : > { %v5508_v11 = vpack.c.bf16 %v5488_v53, %v5484_v42  ;;  %v5491_v61 = vmax.f32 %v5456_v47, 0.0 }
0x100a   : > { %v5510_v24 = vpack.c.bf16 %v5490_v28, %v5486_v7  ;;  %v5509_v40 = vpack.c.bf16 %v5489_v43, %v5485_v62  ;;  %v5386_v4 = vpop.f32.mrb[156].mxu1 }
0x100b   : > { %v5511_v54 = vpack.c.bf16 %v5491_v61, %v5487_v35  ;;  %v5387_v45 = vadd.f32 %v5386_v4, %v16351_v13  ;;  %v5459_v20 = vpop.f32.mrb[156].mxu0  ;;  %v5388_v49 = vpop.f32.mrb[157].mxu1 }
0x100c   : > { %v5460_v56 = vadd.f32 %v5459_v20, %v16354_v17  ;;  %v5389_v27 = vadd.f32 %v5388_v49, %v16357_v30  ;;  %v5461_v22 = vpop.f32.mrb[157].mxu0  ;;  %v5390_v16 = vpop.f32.mrb[158].mxu1  ;;  %5820 = vmatprep.mubr.bf16.mxu1 %v5509_v40 }
0x100d   : > { %v5462_v2 = vadd.f32 %v5461_v22, %v16363_v26  ;;  %v5391_v55 = vadd.f32 %v5390_v16, %v16351_v13  ;;  %v5463_v14 = vpop.f32.mrb[158].mxu0  ;;  %5885 = vmatprep.mubr.bf16.mxu0 %v5511_v54  ;;  %v5392_v51 = vpop.f32.mrb[159].mxu1  ;;  %5821 = vmatmul.mubr.bf16.gmra.mrb[168].mxu1 %v5508_v11  ;;  %v5492_v59 = vmax.f32 %v5387_v45, 0.0 }
0x100e   : > { %v5464_v38 = vadd.f32 %v5463_v14, %v16354_v17  ;;  %v5393_v36 = vadd.f32 %v5392_v51, %v16357_v30  ;;  %v5465_v50 = vpop.f32.mrb[159].mxu0  ;;  %5886 = vmatmul.mubr.bf16.gmra.mrb[168].mxu0 %v5510_v24  ;;  %v5494_v29 = vmax.f32 %v5460_v56, 0.0  ;;  %v5493_v21 = vmax.f32 %v5389_v27, 0.0  ;;  %v16404_v24 = vld [vmem:[%s18298_s11] ss:$0 sm:$0xff] }
0x100f   : > { %v5496_v15 = vmax.f32 %v5391_v55, 0.0  ;;  %v5466_v52 = vadd.f32 %v5465_v50, %v16363_v26  ;;  %v5495_v0 = vmax.f32 %v5462_v2, 0.0 }
0x1010   : > { %v5498_v46 = vmax.f32 %v5464_v38, 0.0  ;;  %v5497_v12 = vmax.f32 %v5393_v36, 0.0 }
0x1011   : > { %v5512_v13 = vpack.c.bf16 %v5496_v15, %v5492_v59  ;;  %v5499_v3 = vmax.f32 %v5466_v52, 0.0 }
0x1012   : > { %v5514_v39 = vpack.c.bf16 %v5498_v46, %v5494_v29  ;;  %v5513_v32 = vpack.c.bf16 %v5497_v12, %v5493_v21 }
0x1013   : > { %v5515_v58 = vpack.c.bf16 %v5499_v3, %v5495_v0 }
0x1014   : > { %5828 = vmatprep.mubr.bf16.mxu1 %v5513_v32 }
0x1015   : > { %5893 = vmatprep.mubr.bf16.mxu0 %v5515_v58  ;;  %5829 = vmatmul.mubr.bf16.gmra.mrb[172].mxu1 %v5512_v13 }
0x1016   : > { %5894 = vmatmul.mubr.bf16.gmra.mrb[172].mxu0 %v5514_v39  ;;  %6266 = vmatprep.mubr.bf16.mxu1 %v18296_v8 }
0x10d0   : > { %v12823_v17 = vpop.f32.mrb[160].mxu1 }
0x10d1   : > { %v12863_v30 = vpop.f32.mrb[160].mxu0  ;;  %v12824_v42 = vpop.f32.mrb[161].mxu1 }
0x10d2   : > { %v12825_v26 = vadd.f32 %v12824_v42, %v12823_v17  ;;  %v12864_v53 = vpop.f32.mrb[161].mxu0  ;;  %v12826_v47 = vpop.f32.mrb[162].mxu1 }
0x10d3   : > { %v12865_v7 = vadd.f32 %v12864_v53, %v12863_v30  ;;  %v12866_v62 = vpop.f32.mrb[162].mxu0  ;;  %v12827_v28 = vpop.f32.mrb[163].mxu1 }
0x10d4   : > { %v12828_v43 = vadd.f32 %v12827_v28, %v12826_v47  ;;  %v12867_v35 = vpop.f32.mrb[163].mxu0 }
0x10d5   : > { %v5872_v11 = vadd.f32 %v12865_v7, %v12825_v26  ;;  %v12868_v61 = vadd.f32 %v12867_v35, %v12866_v62 }
0x10d7   : > { %v5902_v40 = vadd.f32 %v5872_v11, %v16333_v23  ;;  %v5875_v4 = vadd.f32 %v12868_v61, %v12828_v43 }
0x10d8   : > { %v12829_v54 = vpop.f32.mrb[164].mxu1 }
0x10d9   : > { %v5903_v45 = vadd.f32 %v5875_v4, %v16336_v19  ;;  %v12869_v20 = vpop.f32.mrb[164].mxu0  ;;  %v12830_v49 = vpop.f32.mrb[165].mxu1  ;;  %v5917_v56 = vadd.f32 %v16404_v24, %v5902_v40 }
0x10da   : > { %v12831_v27 = vadd.f32 %v12830_v49, %v12829_v54  ;;  %v12870_v22 = vpop.f32.mrb[165].mxu0  ;;  %v12832_v16 = vpop.f32.mrb[166].mxu1 }
0x10db   : > { %v12871_v2 = vadd.f32 %v12870_v22, %v12869_v20  ;;  %v12872_v55 = vpop.f32.mrb[166].mxu0  ;;  %v12833_v14 = vpop.f32.mrb[167].mxu1  ;;  %v16410_v51 = vadd.f32 %v5917_v56, %v15933_v10  ;;  %v5918_v38 = vadd.f32 %v16404_v24, %v5903_v45 }
0x10dc   : > { %v12834_v23 = vadd.f32 %v12833_v14, %v12832_v16  ;;  %v12873_v36 = vpop.f32.mrb[167].mxu0  ;;  %v18299_v14 = vld [vmem:[#allocation54_spill] sm:$0xff] }
0x10dd   : > { %v5880_v50 = vadd.f32 %v12871_v2, %v12831_v27  ;;  %v12874_v59 = vadd.f32 %v12873_v36, %v12872_v55  ;;  %5935 = vadd.xlane.f32.xlu0 %v16410_v51  ;;  %v16415_v19 = vadd.f32 %v5918_v38, %v15936_v6  ;;  %v14076_v36 = vld [vmem:[#allocation5 + $0xc4] ss:$12 sps:$4 sm:$0xff]  }
0x10de   : > { %6234 = vmatprep.subr.bf16.mxu1 %v14076_v36 }
0x10df   : > { %v5904_v15 = vadd.f32 %v5880_v50, %v16339_v25  ;;  %v5883_v52 = vadd.f32 %v12874_v59, %v12834_v23  ;;  %5937 = vadd.xlane.f32.xlu1 %v16415_v19  ;;  %v14074_v23 = vld [vmem:[#allocation5 + $0xc0] ss:$12 sps:$4 sm:$0xff]   ;;  %v14079_v50 = vld [vmem:[#allocation5 + $0xdc] ss:$12 sps:$4 sm:$0xff]  }
0x10e0   : > { %v12835_v29 = vpop.f32.mrb[168].mxu1  ;;  %6235 = vmatpush1.bf16.msra.mxu1 %v14074_v23 }
0x10e1   : > { %v5905_v10 = vadd.f32 %v5883_v52, %v16342_v18  ;;  %v12875_v21 = vpop.f32.mrb[168].mxu0  ;;  %v12836_v46 = vpop.f32.mrb[169].mxu1  ;;  %v5919_v12 = vadd.f32 %v16404_v24, %v5904_v15  ;;  %6236 = vmatprep.subr.bf16.mxu1 %v14079_v50 }
0x10e2   : > { %v12837_v0 = vadd.f32 %v12836_v46, %v12835_v29  ;;  %v12876_v13 = vpop.f32.mrb[169].mxu0  ;;  %v12838_v3 = vpop.f32.mrb[170].mxu1 }
0x10e3   : > { %v12877_v39 = vadd.f32 %v12876_v13, %v12875_v21  ;;  %v12878_v32 = vpop.f32.mrb[170].mxu0  ;;  %v12839_v58 = vpop.f32.mrb[171].mxu1  ;;  %v5927_v6 = vadd.f32 %v5919_v12, %v15962_v34  ;;  %v5920_v25 = vadd.f32 %v16404_v24, %v5905_v10 }
0x10e4   : > { %v12840_v17 = vadd.f32 %v12839_v58, %v12838_v3  ;;  %v12879_v30 = vpop.f32.mrb[171].mxu0 }
0x10e5   : > { %v5888_v42 = vadd.f32 %v12877_v39, %v12837_v0  ;;  %v12880_v26 = vadd.f32 %v12879_v30, %v12878_v32  ;;  %5939 = vadd.xlane.f32.xlu0 %v5927_v6  ;;  %v5928_v18 = vadd.f32 %v5920_v25, %v15955_v41 }
0x10e7   : > { %v5906_v53 = vadd.f32 %v5888_v42, %v16345_v5  ;;  %v5891_v47 = vadd.f32 %v12880_v26, %v12840_v17  ;;  %5941 = vadd.xlane.f32.xlu1 %v5928_v18  ;;  %v14082_v17 = vld [vmem:[#allocation5 + $0xf4] ss:$12 sps:$4 sm:$0xff]   ;;  %v14080_v26 = vld [vmem:[#allocation5 + $0xf0] ss:$12 sps:$4 sm:$0xff]  }
0x10e8   : > { %v12841_v7 = vpop.f32.mrb[172].mxu1 }
0x10e9   : > { %v5907_v62 = vadd.f32 %v5891_v47, %v16348_v63  ;;  %v12881_v28 = vpop.f32.mrb[172].mxu0  ;;  %v12842_v43 = vpop.f32.mrb[173].mxu1  ;;  %v5921_v34 = vadd.f32 %v16404_v24, %v5906_v53  ;;  %v14086_v47 = vld [vmem:[#allocation5 + $0x10c] ss:$12 sps:$4 sm:$0xff]  }
0x10ea   : > { %v12843_v35 = vadd.f32 %v12842_v43, %v12841_v7  ;;  %v12882_v11 = vpop.f32.mrb[173].mxu0  ;;  %v12844_v61 = vpop.f32.mrb[174].mxu1  ;;  %v14087_v7 = vld [vmem:[#allocation5 + $0xe0] ss:$12 sps:$4 sm:$0xff]  }
0x10eb   : > { %v12883_v40 = vadd.f32 %v12882_v11, %v12881_v28  ;;  %v12884_v4 = vpop.f32.mrb[174].mxu0  ;;  %v12845_v54 = vpop.f32.mrb[175].mxu1  ;;  %v5929_v45 = vadd.f32 %v5921_v34, %v15973_v37  ;;  %v5922_v41 = vadd.f32 %v16404_v24, %v5907_v62  ;;  %v14084_v28 = vld [vmem:[#allocation5 + $0x108] ss:$12 sps:$4 sm:$0xff]   ;;  %v14090_v11 = vld [vmem:[#allocation5 + $0x124] ss:$12 sps:$4 sm:$0xff]  }
0x10ec   : > { %v12846_v5 = vadd.f32 %v12845_v54, %v12844_v61  ;;  %v12885_v20 = vpop.f32.mrb[175].mxu0  ;;  %v14091_v61 = vld [vmem:[#allocation5 + $0xf8] ss:$12 sps:$4 sm:$0xff]   ;;  %v14088_v54 = vld [vmem:[#allocation5 + $0x120] ss:$12 sps:$4 sm:$0xff]  }
0x10ed   : > { %v5896_v49 = vadd.f32 %v12883_v40, %v12843_v35  ;;  %v12886_v56 = vadd.f32 %v12885_v20, %v12884_v4  ;;  %5943 = vadd.xlane.f32.xlu0 %v5929_v45  ;;  %v5930_v63 = vadd.f32 %v5922_v41, %v15976_v48  ;;  %v14077_v48 = vld [vmem:[#allocation5 + $0xd8] ss:$12 sps:$4 sm:$0xff]   ;;  %v14094_v41 = vld [vmem:[#allocation5 + $0x13c] ss:$12 sps:$4 sm:$0xff]  }
0x10ee   : > { %6237 = vmatpush1.bf16.msra.mxu1 %v14077_v48  ;;  %v14092_v20 = vld [vmem:[#allocation5 + $0x138] ss:$12 sps:$4 sm:$0xff]  }
0x10ef   : > { %v5908_v27 = vadd.f32 %v5896_v49, %v16360_v60  ;;  %v5899_v22 = vadd.f32 %v12886_v56, %v12846_v5  ;;  %5945 = vadd.xlane.f32.xlu1 %v5930_v63  ;;  %6238 = vmatprep.subr.bf16.mxu1 %v14082_v17  ;;  %v14095_v5 = vld [vmem:[#allocation5 + $0x110] ss:$12 sps:$4 sm:$0xff]   ;;  %v14098_v49 = vld [vmem:[#allocation5 + $0x154] ss:$12 sps:$4 sm:$0xff]  }
0x10f0   : > { %v14099_v56 = vld [vmem:[#allocation5 + $0x128] ss:$12 sps:$4 sm:$0xff]   ;;  %v12090_v17 = vld [vmem:[%s18301_s27] ss:$0 sm:$0xff] }
0x10f1   : > { %v5909_v16 = vadd.f32 %v5899_v22, %v16366_v9  ;;  %v5923_v2 = vadd.f32 %v16404_v24, %v5908_v27  ;;  %v14102_v27 = vld [vmem:[#allocation5 + $0x16c] ss:$12 sps:$4 sm:$0xff]  }
0x10f2   : > { %6239 = vmatpush1.bf16.msra.mxu1 %v14080_v26  ;;  %v14103_v22 = vld [vmem:[#allocation5 + $0x140] ss:$12 sps:$4 sm:$0xff]  }
0x10f3   : > { %v5931_v55 = vadd.f32 %v5923_v2, %v15991_v1  ;;  %v5924_v37 = vadd.f32 %v16404_v24, %v5909_v16  ;;  %6240 = vmatprep.subr.bf16.mxu1 %v14086_v47  ;;  %v14100_v16 = vld [vmem:[#allocation5 + $0x168] ss:$12 sps:$4 sm:$0xff]   ;;  %v14104_v2 = vld [vmem:[#allocation5 + $0x158] ss:$12 sps:$4 sm:$0xff]  }
0x10f5   : > { %5947 = vadd.xlane.f32.xlu0 %v5931_v55  ;;  %v5932_v38 = vadd.f32 %v5924_v37, %v18299_v14 }
0x10f6   : > { %6241 = vmatpush1.bf16.msra.mxu1 %v14084_v28 }
0x10f7   : > { %5949 = vadd.xlane.f32.xlu1 %v5932_v38  ;;  %6242 = vmatprep.subr.bf16.mxu1 %v14090_v11 }
0x10fa   : > { %6243 = vmatpush1.bf16.msra.mxu1 %v14088_v54 }
0x10fb   : > { %6244 = vmatprep.subr.bf16.mxu1 %v14094_v41 }
0x10fe   : > { %6245 = vmatpush1.bf16.msra.mxu1 %v14092_v20 }
0x10ff   : > { %6246 = vmatprep.subr.bf16.mxu1 %v14098_v49 }
0x116a   : > { %v5936_v60 = vpop.xlane.xlu0 %5935 }
0x116b   : > { %v5951_v9 = vmul.f32 0.0078125, %v5936_v60 }
0x116c   : > { %v5938_v59 = vpop.xlane.xlu1 %5937 }
0x116d   : > { %v16437_v15 = vsub.f32 %v16410_v51, %v5951_v9  ;;  %v5952_v1 = vmul.f32 0.0078125, %v5938_v59 }
0x116f   : > { %v16440_v24 = vsub.f32 %v16415_v19, %v5952_v1  ;;  %v5967_v52 = vmul.f32 %v16437_v15, %v16437_v15 }
0x1171   : > { %5975 = vadd.xlane.f32.xlu0 %v5967_v52  ;;  %v5968_v29 = vmul.f32 %v16440_v24, %v16440_v24 }
0x1172   : > { %v5940_v10 = vpop.xlane.xlu0 %5939 }
0x1173   : > { %v5953_v21 = vmul.f32 0.0078125, %v5940_v10  ;;  %5977 = vadd.xlane.f32.xlu1 %v5968_v29  ;;  %v12089_v10 = vld [vmem:[%s18300_s25] ss:$0 sm:$0xff] }
0x1174   : > { %v5942_v46 = vpop.xlane.xlu1 %5941 }
0x1175   : > { %v16446_v12 = vsub.f32 %v5927_v6, %v5953_v21  ;;  %v5954_v0 = vmul.f32 0.0078125, %v5942_v46  ;;  %v14083_v6 = vld [vmem:[#allocation5 + $0xc8] ss:$12 sps:$4 sm:$0xff]  }
0x1176   : > { %13507 = vmatprep.subr.bf16.mxu0 %v14083_v6 }
0x1177   : > { %v16448_v51 = vsub.f32 %v5928_v18, %v5954_v0  ;;  %v5969_v19 = vmul.f32 %v16446_v12, %v16446_v12  ;;  %13508 = vmatpush3.bf16.msra.mxu0 %v14083_v6 }
0x1178   : > { %13509 = vmatprep.subr.bf16.mxu0 %v14087_v7 }
0x1179   : > { %5979 = vadd.xlane.f32.xlu0 %v5969_v19  ;;  %v5970_v13 = vmul.f32 %v16448_v51, %v16448_v51 }
0x117a   : > { %v5944_v3 = vpop.xlane.xlu0 %5943 }
0x117b   : > { %v5955_v39 = vmul.f32 0.0078125, %v5944_v3  ;;  %5981 = vadd.xlane.f32.xlu1 %v5970_v13  ;;  %13510 = vmatpush3.bf16.msra.mxu0 %v14087_v7 }
0x117c   : > { %v5946_v32 = vpop.xlane.xlu1 %5945  ;;  %13511 = vmatprep.subr.bf16.mxu0 %v14091_v61 }
0x117d   : > { %v16454_v58 = vsub.f32 %v5929_v45, %v5955_v39  ;;  %v5956_v25 = vmul.f32 0.0078125, %v5946_v32 }
0x117f   : > { %v16456_v30 = vsub.f32 %v5930_v63, %v5956_v25  ;;  %v5971_v42 = vmul.f32 %v16454_v58, %v16454_v58  ;;  %13512 = vmatpush3.bf16.msra.mxu0 %v14091_v61  ;;  %v14096_v63 = vld [vmem:[#allocation5 + $0x150] ss:$12 sps:$4 sm:$0xff]  }
0x1180   : > { %13513 = vmatprep.subr.bf16.mxu0 %v14095_v5  ;;  %6247 = vmatpush1.bf16.msra.mxu1 %v14096_v63 }
0x1181   : > { %5983 = vadd.xlane.f32.xlu0 %v5971_v42  ;;  %v5972_v18 = vmul.f32 %v16456_v30, %v16456_v30  ;;  %6248 = vmatprep.subr.bf16.mxu1 %v14102_v27 }
0x1182   : > { %v5948_v53 = vpop.xlane.xlu0 %5947 }
0x1183   : > { %v5957_v62 = vmul.f32 0.0078125, %v5948_v53  ;;  %5985 = vadd.xlane.f32.xlu1 %v5972_v18  ;;  %13514 = vmatpush3.bf16.msra.mxu0 %v14095_v5 }
0x1184   : > { %v5950_v43 = vpop.xlane.xlu1 %5949  ;;  %13515 = vmatprep.subr.bf16.mxu0 %v14099_v56  ;;  %6249 = vmatpush1.bf16.msra.mxu1 %v14100_v16 }
0x1185   : > { %v16462_v34 = vsub.f32 %v5931_v55, %v5957_v62  ;;  %v5958_v35 = vmul.f32 0.0078125, %v5950_v43  ;;  %v14105_v55 = vld [vmem:[#allocation5 + $0x170] ss:$12 sps:$4 sm:$0xff]  }
0x1187   : > { %v16464_v40 = vsub.f32 %v5932_v38, %v5958_v35  ;;  %v5973_v4 = vmul.f32 %v16462_v34, %v16462_v34  ;;  %13516 = vmatpush3.bf16.msra.mxu0 %v14099_v56 }
0x1188   : > { %13517 = vmatprep.subr.bf16.mxu0 %v14103_v22 }
0x1189   : > { %5987 = vadd.xlane.f32.xlu0 %v5973_v4  ;;  %v5974_v45 = vmul.f32 %v16464_v40, %v16464_v40 }
0x118b   : > { %5989 = vadd.xlane.f32.xlu1 %v5974_v45  ;;  %13518 = vmatpush3.bf16.msra.mxu0 %v14103_v22 }
0x118c   : > { %13519 = vmatprep.subr.bf16.mxu0 %v14104_v2 }
0x118f   : > { %13520 = vmatpush3.bf16.msra.mxu0 %v14104_v2 }
0x1190   : > { %13521 = vmatprep.subr.bf16.mxu0 %v14105_v55 }
0x1193   : > { %13522 = vmatpush3.bf16.msra.mxu0 %v14105_v55 }
0x11fe   : > { %v5976_v37 = vpop.xlane.xlu0 %5975 }
0x11ff   : > { %v5991_v14 = vmul.f32 0.0078125, %v5976_v37 }
0x1200   : > { %v5978_v38 = vpop.xlane.xlu1 %5977 }
0x1201   : > { %v5999_v23 = vadd.f32 1e-05, %v5991_v14  ;;  %v5992_v36 = vmul.f32 0.0078125, %v5978_v38 }
0x1203   : > { %14386 = vrsqrt.f32 %v5999_v23  ;;  %v6000_v50 = vadd.f32 1e-05, %v5992_v36 }
0x1205   : > { %14388 = vrsqrt.f32 %v6000_v50 }
0x1206   : > { %v5980_v48 = vpop.xlane.xlu0 %5979 }
0x1207   : > { %v5993_v60 = vmul.f32 0.0078125, %v5980_v48 }
0x1208   : > { %v5982_v9 = vpop.xlane.xlu1 %5981 }
0x1209   : > { %v6001_v59 = vadd.f32 1e-05, %v5993_v60  ;;  %v5994_v1 = vmul.f32 0.0078125, %v5982_v9 }
0x120b   : > { %14390 = vrsqrt.f32 %v6001_v59  ;;  %v6002_v52 = vadd.f32 1e-05, %v5994_v1 }
0x120d   : > { %v14387_v29 = vpop.eup %14386  ;;  %14392 = vrsqrt.f32 %v6002_v52 }
0x120e   : > { %v6015_v21 = vmul.f32 %v14387_v29, %v16437_v15  ;;  %v5984_v46 = vpop.xlane.xlu0 %5983 }
0x120f   : > { %v14389_v0 = vpop.eup %14388  ;;  %v5995_v19 = vmul.f32 0.0078125, %v5984_v46 }
0x1210   : > { %v6029_v13 = vmul.f32 %v12089_v10, %v6015_v21  ;;  %v6016_v3 = vmul.f32 %v14389_v0, %v16440_v24  ;;  %v5986_v39 = vpop.xlane.xlu1 %5985 }
0x1211   : > { %v6003_v32 = vadd.f32 1e-05, %v5995_v19  ;;  %v5996_v25 = vmul.f32 0.0078125, %v5986_v39 }
0x1212   : > { %v6030_v6 = vmul.f32 %v12089_v10, %v6016_v3  ;;  %v16478_v26 = vadd.f32 %v12090_v17, %v6029_v13 }
0x1213   : > { %14394 = vrsqrt.f32 %v6003_v32  ;;  %v6004_v42 = vadd.f32 1e-05, %v5996_v25 }
0x1214   : > { %v16480_v18 = vadd.f32 %v12090_v17, %v6030_v6 }
0x1215   : > { %v14391_v15 = vpop.eup %14390  ;;  %14396 = vrsqrt.f32 %v6004_v42 }
0x1216   : > { %v5988_v53 = vpop.xlane.xlu0 %5987  ;;  %v6051_v24 = vpack.c.bf16 %v16480_v18, %v16478_v26  ;;  %v6017_v47 = vmul.f32 %v14391_v15, %v16446_v12 }
0x1217   : > { %v14393_v7 = vpop.eup %14392  ;;  %v5997_v62 = vmul.f32 0.0078125, %v5988_v53 }
0x1218   : > { %v5990_v28 = vpop.xlane.xlu1 %5989  ;;  %6267 = vmatmul.mubr.bf16.vlgmr.msra.gmra.mrb[176].mxu1 %v6051_v24  ;;  %13523 = vmatprep.mubr.bf16.mxu0 %v6051_v24  ;;  %v6018_v43 = vmul.f32 %v14393_v7, %v16448_v51  ;;  %v6031_v35 = vmul.f32 %v12089_v10, %v6017_v47 }
0x1219   : > { %v6005_v11 = vadd.f32 1e-05, %v5997_v62  ;;  %v5998_v61 = vmul.f32 0.0078125, %v5990_v28  ;;  %6276 = vmatprep.mubr.bf16.mxu1 %v18296_v8 }
0x121a   : > { %v6032_v4 = vmul.f32 %v12089_v10, %v6018_v43  ;;  %v16487_v45 = vadd.f32 %v12090_v17, %v6031_v35 }
0x121b   : > { %14398 = vrsqrt.f32 %v6005_v11  ;;  %v6006_v54 = vadd.f32 1e-05, %v5998_v61 }
0x121c   : > { %v16489_v41 = vadd.f32 %v12090_v17, %v6032_v4 }
0x121d   : > { %v14395_v12 = vpop.eup %14394  ;;  %14400 = vrsqrt.f32 %v6006_v54 }
0x121e   : > { %v6052_v5 = vpack.c.bf16 %v16489_v41, %v16487_v45  ;;  %v6019_v20 = vmul.f32 %v14395_v12, %v16454_v58 }
0x121f   : > { %v14397_v51 = vpop.eup %14396 }
0x1220   : > { %6277 = vmatmul.mubr.bf16.gmra.mrb[180].mxu1 %v6052_v5  ;;  %13524 = vmatmul.mubr.bf16.vlgmr.msra.gmra.mrb[176].mxu0 %v6052_v5  ;;  %v6020_v49 = vmul.f32 %v14397_v51, %v16456_v30  ;;  %v6033_v56 = vmul.f32 %v12089_v10, %v6019_v20 }
0x1221   : > { %6286 = vmatprep.mubr.bf16.mxu1 %v18296_v8 }
0x1222   : > { %v6034_v63 = vmul.f32 %v12089_v10, %v6020_v49  ;;  %v16496_v27 = vadd.f32 %v12090_v17, %v6033_v56 }
0x1224   : > { %v16498_v22 = vadd.f32 %v12090_v17, %v6034_v63 }
0x1225   : > { %v14399_v16 = vpop.eup %14398 }
0x1226   : > { %v6053_v2 = vpack.c.bf16 %v16498_v22, %v16496_v27  ;;  %v6021_v55 = vmul.f32 %v14399_v16, %v16462_v34  ;;  %v12091_v34 = vld [vmem:[%s18259_s2 + $0x3] sm:$0x7] }
0x1227   : > { %v14401_v58 = vpop.eup %14400  ;;  %v16515_v50 = vrot.slane %v12091_v34, %v15240_v31  ;;  %v16518_v48 = vrot.slane %v12091_v34, %v15248_v33  ;;  %v16531_v0 = vrot.slane %v12091_v34, %v15312_v57 }
0x1228   : > { %6287 = vmatmul.mubr.bf16.gmra.mrb[184].mxu1 %v6053_v2  ;;  %13527 = vmatprep.mubr.bf16.mxu0 %v6053_v2  ;;  %v6022_v37 = vmul.f32 %v14401_v58, %v16464_v40  ;;  %v6035_v30 = vmul.f32 %v12089_v10, %v6021_v55 }
0x1229   : > { %6296 = vmatprep.mubr.bf16.mxu1 %v18296_v8 }
0x122a   : > { %v6036_v14 = vmul.f32 %v12089_v10, %v6022_v37  ;;  %v16505_v38 = vadd.f32 %v12090_v17, %v6035_v30 }
0x122c   : > { %v16507_v23 = vadd.f32 %v12090_v17, %v6036_v14 }
0x122e   : > { %v6054_v36 = vpack.c.bf16 %v16507_v23, %v16505_v38 }
0x1230   : > { %6297 = vmatmul.mubr.bf16.gmra.mrb[188].mxu1 %v6054_v36  ;;  %13528 = vmatmul.mubr.bf16.gmra.mrb[180].mxu0 %v6054_v36 }
0x12eb   : > { %v6268_v40 = vpop.f32.mrb[176].mxu1 }
0x12ec   : > { %v6270_v60 = vpop.f32.mrb[177].mxu1  ;;  %v6269_v59 = vadd.f32 %v6268_v40, %v16515_v50 }
0x12ed   : > { %v6272_v9 = vpop.f32.mrb[178].mxu1  ;;  %v6271_v29 = vadd.f32 %v6270_v60, %v16518_v48 }
0x12ee   : > { %v6273_v1 = vadd.f32 %v6272_v9, %v16515_v50  ;;  %v6274_v52 = vpop.f32.mrb[179].mxu1 }
0x12ef   : > { %v6275_v10 = vadd.f32 %v6274_v52, %v16518_v48 }
0x12f0   : > { %v16524_v21 = vpack.c.bf16 %v6273_v1, %v6269_v59 }
0x12f1   : > { %v16526_v46 = vpack.c.bf16 %v6275_v10, %v6271_v29 }
0x12f2   : > { %13539 = vmatprep.mubr.msk.bf16.mxu1 %vm910_vm0, %v16524_v21 }
0x12f3   : > { %6675 = vrot.lane.b32.xlu0 %v16526_v46, %s14868_s6  ;;  %v6278_v19 = vpop.f32.mrb[180].mxu1  ;;  %v13525_v13 = vpop.f32.mrb[176].mxu0  ;;  %13771 = vmatprep.subr.msk.bf16.mxu1 %vm910_vm0, %v16526_v46  ;;  %v6397_v3 = vsel %vm910_vm0, %v16526_v46, 0 }
0x12f4   : > { %v6280_v39 = vpop.f32.mrb[181].mxu1  ;;  %v6341_v32 = vpop.f32.mrb[177].mxu0  ;;  %13532 = vmatpush3.bf16.xpose.msra.mxu1 %v6397_v3  ;;  %v6279_v6 = vadd.f32 %v6278_v19, %v16515_v50  ;;  %v6350_v42 = vadd.f32 %v13525_v13, %v16531_v0 }
0x12f5   : > { %v6282_v25 = vpop.f32.mrb[182].mxu1  ;;  %v13526_v17 = vpop.f32.mrb[178].mxu0  ;;  %v6281_v7 = vadd.f32 %v6280_v39, %v16518_v48  ;;  %v6342_v62 = vadd.f32 %v6341_v32, %v16531_v0 }
0x12f6   : > { %v6283_v15 = vadd.f32 %v6282_v25, %v16515_v50  ;;  %v6353_v53 = vadd.f32 %v13526_v17, %v16531_v0  ;;  %v6284_v24 = vpop.f32.mrb[183].mxu1  ;;  %v6344_v47 = vpop.f32.mrb[179].mxu0 }
0x12f7   : > { %v6285_v28 = vadd.f32 %v6284_v24, %v16518_v48  ;;  %v6345_v43 = vadd.f32 %v6344_v47, %v16531_v0  ;;  %6663 = vrot.lane.b32.xlu0 %v16524_v21, %s14868_s6 }
0x12f8   : > { %v16549_v35 = vpack.c.bf16 %v6283_v15, %v6279_v6  ;;  %v16551_v11 = vpack.c.bf16 %v6353_v53, %v6350_v42 }
0x12f9   : > { %v16553_v61 = vpack.c.bf16 %v6285_v28, %v6281_v7  ;;  %v16555_v4 = vpack.c.bf16 %v6345_v43, %v6342_v62 }
0x12fb   : > { %13547 = vmatprep.subr.bf16.mxu0 %v16555_v4  ;;  %6677 = vrot.lane.b32.xlu1 %v16553_v61, %s14868_s6  ;;  %v6288_v54 = vpop.f32.mrb[184].mxu1  ;;  %v6400_v12 = vsel %vm910_vm0, %v16553_v61, 0 }
0x12fc   : > { %13772 = vmatprep.subr.msk.bf16.mxu1 %vm910_vm0, %v16553_v61  ;;  %v6290_v5 = vpop.f32.mrb[185].mxu1  ;;  %13548 = vmatpush3.bf16.msra.mxu0 %v16555_v4  ;;  %v6289_v51 = vadd.f32 %v6288_v54, %v16515_v50 }
0x12fd   : > { %13534 = vmatpush3.bf16.xpose.msra.mxu1 %v6400_v12  ;;  %v6292_v20 = vpop.f32.mrb[186].mxu1  ;;  %13549 = vmatprep.subr.bf16.mxu0 %v16551_v11  ;;  %v6291_v63 = vadd.f32 %v6290_v5, %v16518_v48 }
0x12fe   : > { %v6293_v49 = vadd.f32 %v6292_v20, %v16515_v50  ;;  %v6294_v56 = vpop.f32.mrb[187].mxu1 }
0x12ff   : > { %v6295_v16 = vadd.f32 %v6294_v56, %v16518_v48 }
0x1300   : > { %v16570_v2 = vpack.c.bf16 %v6293_v49, %v6289_v51  ;;  %13550 = vmatpush3.bf16.msra.mxu0 %v16551_v11 }
0x1301   : > { %v16573_v55 = vpack.c.bf16 %v6295_v16, %v6291_v63 }
0x1302   : > { %6667 = vrot.lane.b32.xlu0 %v16570_v2, %s14868_s6 }
0x1303   : > { %6679 = vrot.lane.b32.xlu1 %v16573_v55, %s14868_s6  ;;  %v6298_v58 = vpop.f32.mrb[188].mxu1  ;;  %v13529_v37 = vpop.f32.mrb[180].mxu0  ;;  %13773 = vmatprep.subr.msk.bf16.mxu1 %vm910_vm0, %v16573_v55  ;;  %v6403_v30 = vsel %vm910_vm0, %v16573_v55, 0 }
0x1304   : > { %v6300_v14 = vpop.f32.mrb[189].mxu1  ;;  %v6357_v36 = vpop.f32.mrb[181].mxu0  ;;  %v6299_v60 = vadd.f32 %v6298_v58, %v16515_v50  ;;  %v6366_v9 = vadd.f32 %v13529_v37, %v16531_v0 }
0x1305   : > { %13536 = vmatpush3.bf16.xpose.msra.mxu1 %v6403_v30  ;;  %v6302_v34 = vpop.f32.mrb[190].mxu1  ;;  %v13530_v40 = vpop.f32.mrb[182].mxu0  ;;  %v6301_v10 = vadd.f32 %v6300_v14, %v16518_v48  ;;  %v6358_v19 = vadd.f32 %v6357_v36, %v16531_v0 }
0x1306   : > { %v6303_v59 = vadd.f32 %v6302_v34, %v16515_v50  ;;  %v6369_v1 = vadd.f32 %v13530_v40, %v16531_v0  ;;  %7159 = vrot.lane.b32.xlu0 %v16526_v46, %s14869_s14  ;;  %v6304_v52 = vpop.f32.mrb[191].mxu1  ;;  %v6360_v29 = vpop.f32.mrb[183].mxu0 }
0x1307   : > { %v6305_v13 = vadd.f32 %v6304_v52, %v16518_v48  ;;  %v6361_v3 = vadd.f32 %v6360_v29, %v16531_v0 }
0x1308   : > { %v16593_v39 = vpack.c.bf16 %v6303_v59, %v6299_v60  ;;  %v16595_v32 = vpack.c.bf16 %v6369_v1, %v6366_v9 }
0x1309   : > { %v16597_v50 = vpack.c.bf16 %v6305_v13, %v6301_v10  ;;  %v16599_v25 = vpack.c.bf16 %v6361_v3, %v6358_v19 }
0x130a   : > { %7163 = vrot.lane.b32.xlu0 %v16573_v55, %s14869_s14 }
0x130b   : > { %13551 = vmatprep.subr.bf16.mxu0 %v16599_v25  ;;  %6681 = vrot.lane.b32.xlu1 %v16597_v50, %s14868_s6  ;;  %v6406_v48 = vsel %vm910_vm0, %v16597_v50, 0 }
0x130c   : > { %13774 = vmatprep.subr.msk.bf16.mxu1 %vm910_vm0, %v16597_v50  ;;  %13552 = vmatpush3.bf16.msra.mxu0 %v16599_v25 }
0x130d   : > { %13538 = vmatpush3.bf16.xpose.msra.mxu1 %v6406_v48  ;;  %13553 = vmatprep.subr.bf16.mxu0 %v16595_v32 }
0x130e   : > { %7151 = vrot.lane.b32.xlu0 %v16524_v21, %s14869_s14 }
0x130f   : > { %6665 = vrot.lane.b32.xlu1 %v16549_v35, %s14868_s6 }
0x1310   : > { %13554 = vmatpush3.bf16.msra.mxu0 %v16595_v32 }
0x1312   : > { %7155 = vrot.lane.b32.xlu0 %v16570_v2, %s14869_s14 }
0x1313   : > { %6669 = vrot.lane.b32.xlu1 %v16593_v39, %s14868_s6 }
0x1314   : > { %13540 = vmatmul.mubr.msk.bf16.vlgmr.msra.gmra.mrb[192].mxu1 %vm910_vm0, %v16549_v35 }
0x1315   : > { %13543 = vmatprep.mubr.msk.bf16.mxu1 %vm910_vm0, %v16570_v2 }
0x1317   : > { %7161 = vrot.lane.b32.xlu1 %v16553_v61, %s14869_s14 }
0x131b   : > { %7153 = vrot.lane.b32.xlu1 %v16549_v35, %s14869_s14 }
0x131c   : > { %13544 = vmatmul.mubr.msk.bf16.gmra.mrb[196].mxu1 %vm910_vm0, %v16593_v39 }
0x131f   : > { %7157 = vrot.lane.b32.xlu1 %v16593_v39, %s14869_s14 }
0x1323   : > { %7165 = vrot.lane.b32.xlu1 %v16597_v50, %s14869_s14 }
0x1365   : > { %v6676_v0 = vpop.permute.xlu0 %6675 }
0x1366   : > { %13775 = vmatprep.subr.msk.bf16.mxu1 %vm910_vm0, %v6676_v0  ;;  %v6696_v17 = vsel %vm910_vm0, %v6676_v0, 0 }
0x1367   : > { %13564 = vmatpush3.bf16.xpose.msra.mxu1 %v6696_v17 }
0x1369   : > { %v6664_v6 = vpop.permute.xlu0 %6663 }
0x136a   : > { %13571 = vmatprep.mubr.msk.bf16.mxu1 %vm910_vm0, %v6664_v6 }
0x136d   : > { %v6678_v42 = vpop.permute.xlu1 %6677 }
0x136e   : > { %13776 = vmatprep.subr.msk.bf16.mxu1 %vm910_vm0, %v6678_v42  ;;  %v6699_v15 = vsel %vm910_vm0, %v6678_v42, 0 }
0x136f   : > { %13566 = vmatpush3.bf16.xpose.msra.mxu1 %v6699_v15 }
0x1374   : > { %v6668_v47 = vpop.permute.xlu0 %6667 }
0x1375   : > { %v6680_v53 = vpop.permute.xlu1 %6679 }
0x1376   : > { %13777 = vmatprep.subr.msk.bf16.mxu1 %vm910_vm0, %v6680_v53  ;;  %v6702_v24 = vsel %vm910_vm0, %v6680_v53, 0 }
0x1377   : > { %13568 = vmatpush3.bf16.xpose.msra.mxu1 %v6702_v24 }
0x1378   : > { %v7160_v28 = vpop.permute.xlu0 %7159 }
0x1379   : > { %v7180_v12 = vsel %vm910_vm0, %v7160_v28, 0 }
0x137c   : > { %v7164_v5 = vpop.permute.xlu0 %7163 }
0x137d   : > { %v6682_v7 = vpop.permute.xlu1 %6681  ;;  %v7186_v16 = vsel %vm910_vm0, %v7164_v5, 0 }
0x137e   : > { %13778 = vmatprep.subr.msk.bf16.mxu1 %vm910_vm0, %v6682_v7  ;;  %v6705_v62 = vsel %vm910_vm0, %v6682_v7, 0 }
0x137f   : > { %13570 = vmatpush3.bf16.xpose.msra.mxu1 %v6705_v62 }
0x1380   : > { %13779 = vmatprep.subr.msk.bf16.mxu1 %vm910_vm0, %v7160_v28  ;;  %v7152_v49 = vpop.permute.xlu0 %7151 }
0x1381   : > { %v6666_v43 = vpop.permute.xlu1 %6665 }
0x1384   : > { %v7156_v30 = vpop.permute.xlu0 %7155 }
0x1385   : > { %v6670_v54 = vpop.permute.xlu1 %6669 }
0x1386   : > { %13572 = vmatmul.mubr.msk.bf16.vlgmr.msra.gmra.mrb[200].mxu1 %vm910_vm0, %v6666_v43 }
0x1387   : > { %13575 = vmatprep.mubr.msk.bf16.mxu1 %vm910_vm0, %v6668_v47  ;;  %13620 = vmatpush3.bf16.xpose.msra.mxu1 %v7180_v12 }
0x1389   : > { %v7162_v20 = vpop.permute.xlu1 %7161 }
0x138a   : > { %13780 = vmatprep.subr.msk.bf16.mxu1 %vm910_vm0, %v7162_v20  ;;  %v7183_v56 = vsel %vm910_vm0, %v7162_v20, 0 }
0x138d   : > { %v7154_v51 = vpop.permute.xlu1 %7153 }
0x138e   : > { %13576 = vmatmul.mubr.msk.bf16.gmra.mrb[204].mxu1 %vm910_vm0, %v6670_v54 }
0x138f   : > { %13622 = vmatpush3.bf16.xpose.msra.mxu1 %v7183_v56  ;;  %13627 = vmatprep.mubr.msk.bf16.mxu1 %vm910_vm0, %v7152_v49 }
0x1390   : > { %13781 = vmatprep.subr.msk.bf16.mxu1 %vm910_vm0, %v7164_v5 }
0x1391   : > { %v7158_v63 = vpop.permute.xlu1 %7157 }
0x1395   : > { %v7166_v58 = vpop.permute.xlu1 %7165 }
0x1396   : > { %v7189_v37 = vsel %vm910_vm0, %v7166_v58, 0 }
0x1397   : > { %13624 = vmatpush3.bf16.xpose.msra.mxu1 %v7186_v16 }
0x1398   : > { %13782 = vmatprep.subr.msk.bf16.mxu1 %vm910_vm0, %v7166_v58 }
0x139f   : > { %13626 = vmatpush3.bf16.xpose.msra.mxu1 %v7189_v37 }
0x13a6   : > { %13628 = vmatmul.mubr.msk.bf16.vlgmr.msra.gmra.mrb[208].mxu1 %vm910_vm0, %v7154_v51 }
0x13a7   : > { %13631 = vmatprep.mubr.msk.bf16.mxu1 %vm910_vm0, %v7156_v30 }
0x13ae   : > { %13632 = vmatmul.mubr.msk.bf16.gmra.mrb[212].mxu1 %vm910_vm0, %v7158_v63 }
0x13e7   : > { %v13541_v14 = vpop.f32.mrb[192].mxu1 }
0x13e8   : > { %v16659_v36 = vmul.f32 0.17677669, %v13541_v14  ;;  %v6442_v34 = vpop.f32.mrb[193].mxu1 }
0x13e9   : > { %v13542_v40 = vpop.f32.mrb[194].mxu1  ;;  %v16661_v60 = vmul.f32 0.17677669, %v6442_v34 }
0x13ea   : > { %v6445_v9 = vpop.f32.mrb[195].mxu1  ;;  %v6487_v59 = vsel %vm1008_vm1, %v16659_v36, -inf  ;;  %v16669_v29 = vmul.f32 0.17677669, %v13542_v40 }
0x13eb   : > { %v16665_v1 = vmul.f32 0.17677669, %v6445_v9  ;;  %6488 = vmax.xlane.f32.xlu0 %v6487_v59  ;;  %v6481_v10 = vsel %vm1008_vm1, %v16661_v60, -inf }
0x13ec   : > { %v6490_v6 = vsel %vm1008_vm1, %v16669_v29, -inf }
0x13ed   : > { %v6484_v52 = vsel %vm1008_vm1, %v16665_v1, -inf }
0x13ee   : > { %6485 = vmax.xlane.f32.xlu1 %v6484_v52 }
0x13ef   : > { %6482 = vmax.xlane.f32.xlu0 %v6481_v10  ;;  %v13545_v19 = vpop.f32.mrb[196].mxu1 }
0x13f0   : > { %v6458_v13 = vpop.f32.mrb[197].mxu1  ;;  %v16683_v53 = vmul.f32 0.17677669, %v13545_v19 }
0x13f1   : > { %v13546_v3 = vpop.f32.mrb[198].mxu1  ;;  %v16673_v48 = vmul.f32 0.17677669, %v6458_v13 }
0x13f2   : > { %v16675_v0 = vmul.f32 0.17677669, %v13546_v3  ;;  %v6461_v17 = vpop.f32.mrb[199].mxu1  ;;  %v6499_v7 = vsel %vm1008_vm1, %v16683_v53, -inf }
0x13f3   : > { %6491 = vmax.xlane.f32.xlu0 %v6490_v6  ;;  %v16679_v42 = vmul.f32 0.17677669, %v6461_v17  ;;  %v6493_v24 = vsel %vm1008_vm1, %v16673_v48, -inf }
0x13f4   : > { %v6502_v15 = vsel %vm1008_vm1, %v16675_v0, -inf }
0x13f5   : > { %6503 = vmax.xlane.f32.xlu1 %v6502_v15  ;;  %v6496_v47 = vsel %vm1008_vm1, %v16679_v42, -inf }
0x13f7   : > { %6494 = vmax.xlane.f32.xlu0 %v6493_v24 }
0x13f9   : > { %6497 = vmax.xlane.f32.xlu1 %v6496_v47 }
0x13fb   : > { %6500 = vmax.xlane.f32.xlu0 %v6499_v7 }
0x1459   : > { %v13573_v62 = vpop.f32.mrb[200].mxu1 }
0x145a   : > { %v6741_v28 = vpop.f32.mrb[201].mxu1  ;;  %v16695_v20 = vmul.f32 0.17677669, %v13573_v62 }
0x145b   : > { %v16691_v43 = vmul.f32 0.17677669, %v6741_v28  ;;  %v13574_v54 = vpop.f32.mrb[202].mxu1 }
0x145c   : > { %v16693_v12 = vmul.f32 0.17677669, %v13574_v54  ;;  %v6744_v5 = vpop.f32.mrb[203].mxu1  ;;  %v6786_v16 = vsel %vm1008_vm1, %v16695_v20, -inf }
0x145d   : > { %v6780_v51 = vsel %vm1008_vm1, %v16691_v43, -inf  ;;  %v16699_v49 = vmul.f32 0.17677669, %v6744_v5 }
0x145e   : > { %6781 = vmax.xlane.f32.xlu0 %v6780_v51  ;;  %v6789_v56 = vsel %vm1008_vm1, %v16693_v12, -inf }
0x145f   : > { %6790 = vmax.xlane.f32.xlu1 %v6789_v56  ;;  %v6783_v37 = vsel %vm1008_vm1, %v16699_v49, -inf }
0x1461   : > { %v13577_v63 = vpop.f32.mrb[204].mxu1 }
0x1462   : > { %6787 = vmax.xlane.f32.xlu0 %v6786_v16  ;;  %v6757_v58 = vpop.f32.mrb[205].mxu1  ;;  %v16711_v9 = vmul.f32 0.17677669, %v13577_v63 }
0x1463   : > { %v16707_v30 = vmul.f32 0.17677669, %v6757_v58  ;;  %6784 = vmax.xlane.f32.xlu1 %v6783_v37  ;;  %v13578_v14 = vpop.f32.mrb[206].mxu1 }
0x1464   : > { %v16709_v34 = vmul.f32 0.17677669, %v13578_v14  ;;  %v6760_v40 = vpop.f32.mrb[207].mxu1  ;;  %v6798_v19 = vsel %vm1008_vm1, %v16711_v9, -inf }
0x1465   : > { %v6792_v59 = vsel %vm1008_vm1, %v16707_v30, -inf  ;;  %v16715_v52 = vmul.f32 0.17677669, %v6760_v40 }
0x1466   : > { %6793 = vmax.xlane.f32.xlu0 %v6792_v59  ;;  %v6801_v10 = vsel %vm1008_vm1, %v16709_v34, -inf }
0x1467   : > { %6802 = vmax.xlane.f32.xlu1 %v6801_v10  ;;  %v6795_v13 = vsel %vm1008_vm1, %v16715_v52, -inf }
0x146a   : > { %6799 = vmax.xlane.f32.xlu0 %v6798_v19 }
0x146b   : > { %6796 = vmax.xlane.f32.xlu1 %v6795_v13 }
0x1478   : > { %v6489_v3 = vpop.xlane.xlu0 %6488 }
0x1479   : > { %v6507_v17 = vsub.f32 %v16659_v36, %v6489_v3  ;;  %v16724_v6 = vpop.f32.mrb[208].mxu1 }
0x147a   : > { %v16726_v15 = vpop.f32.mrb[209].mxu1 }
0x147b   : > { %v6517_v24 = vmul.f32 1.442695, %v6507_v17  ;;  %v6486_v47 = vpop.xlane.xlu1 %6485  ;;  %v16728_v7 = vpop.f32.mrb[210].mxu1 }
0x147c   : > { %v6483_v62 = vpop.xlane.xlu0 %6482  ;;  %v16730_v28 = vpop.f32.mrb[211].mxu1  ;;  %v6506_v5 = vsub.f32 %v16665_v1, %v6486_v47 }
0x147d   : > { %14402 = vpow2.f32 %v6517_v24  ;;  %v6505_v54 = vsub.f32 %v16661_v60, %v6483_v62 }
0x147e   : > { %v6515_v37 = vmul.f32 1.442695, %v6506_v5 }
0x147f   : > { %v6513_v51 = vmul.f32 1.442695, %v6505_v54 }
0x1480   : > { %v6492_v56 = vpop.xlane.xlu0 %6491 }
0x1481   : > { %14404 = vpow2.f32 %v6513_v51  ;;  %v6508_v36 = vsub.f32 %v16669_v29, %v6492_v56  ;;  %v16735_v63 = vpop.f32.mrb[212].mxu1 }
0x1482   : > { %v6504_v16 = vpop.xlane.xlu1 %6503  ;;  %v16737_v58 = vpop.f32.mrb[213].mxu1 }
0x1483   : > { %v6519_v14 = vmul.f32 1.442695, %v6508_v36  ;;  %v6512_v40 = vsub.f32 %v16675_v0, %v6504_v16  ;;  %v16740_v59 = vpop.f32.mrb[214].mxu1 }
0x1484   : > { %v6495_v10 = vpop.xlane.xlu0 %6494  ;;  %v16742_v60 = vpop.f32.mrb[215].mxu1 }
0x1485   : > { %14406 = vpow2.f32 %v6519_v14  ;;  %v6509_v1 = vsub.f32 %v16673_v48, %v6495_v10  ;;  %v6527_v29 = vmul.f32 1.442695, %v6512_v40 }
0x1486   : > { %v6498_v19 = vpop.xlane.xlu1 %6497  ;;  %14408 = vpow2.f32 %v6515_v37 }
0x1487   : > { %v16745_v13 = vpop.eup %14402  ;;  %v6510_v3 = vsub.f32 %v16679_v42, %v6498_v19  ;;  %v6521_v47 = vmul.f32 1.442695, %v6509_v1  ;;  %14410 = vpow2.f32 %v6527_v29 }
0x1488   : > { %v6501_v17 = vpop.xlane.xlu0 %6500  ;;  %v6535_v24 = vsel %vm1008_vm1, %v16745_v13, 0.0 }
0x1489   : > { %v6511_v0 = vsub.f32 %v16683_v53, %v6501_v17  ;;  %6536 = vadd.xlane.f32.xlu0 %v6535_v24  ;;  %v6523_v54 = vmul.f32 1.442695, %v6510_v3 }
0x148b   : > { %v16751_v62 = vpop.eup %14404  ;;  %v6525_v48 = vmul.f32 1.442695, %v6511_v0 }
0x148c   : > { %v6529_v5 = vsel %vm1008_vm1, %v16751_v62, 0.0 }
0x148d   : > { %14412 = vpow2.f32 %v6525_v48  ;;  %6530 = vadd.xlane.f32.xlu0 %v6529_v5 }
0x148e   : > { %14414 = vpow2.f32 %v6521_v47 }
0x148f   : > { %v16755_v42 = vpop.eup %14406  ;;  %14416 = vpow2.f32 %v6523_v54 }
0x1490   : > { %v6538_v51 = vsel %vm1008_vm1, %v16755_v42, 0.0  ;;  %v16759_v53 = vpop.eup %14408 }
0x1491   : > { %6539 = vadd.xlane.f32.xlu1 %v6538_v51  ;;  %v6532_v56 = vsel %vm1008_vm1, %v16759_v53, 0.0  ;;  %v16763_v36 = vpop.eup %14410 }
0x1492   : > { %v6550_v14 = vsel %vm1008_vm1, %v16763_v36, 0.0 }
0x1495   : > { %6533 = vadd.xlane.f32.xlu1 %v6532_v56 }
0x1497   : > { %v16765_v16 = vpop.eup %14412 }
0x1498   : > { %v16767_v37 = vpop.eup %14414  ;;  %v6547_v40 = vsel %vm1008_vm1, %v16765_v16, 0.0 }
0x1499   : > { %v16773_v10 = vpop.eup %14416  ;;  %6551 = vadd.xlane.f32.xlu1 %v6550_v14  ;;  %6548 = vadd.xlane.f32.xlu0 %v6547_v40  ;;  %v6541_v19 = vsel %vm1008_vm1, %v16767_v37, 0.0 }
0x149a   : > { %v6544_v1 = vsel %vm1008_vm1, %v16773_v10, 0.0 }
0x149d   : > { %6545 = vadd.xlane.f32.xlu1 %v6544_v1  ;;  %6542 = vadd.xlane.f32.xlu0 %v6541_v19 }
0x14eb   : > { %v6782_v29 = vpop.xlane.xlu0 %6781 }
0x14ec   : > { %v6791_v3 = vpop.xlane.xlu1 %6790  ;;  %v6804_v24 = vsub.f32 %v16691_v43, %v6782_v29 }
0x14ed   : > { %v6807_v17 = vsub.f32 %v16693_v12, %v6791_v3 }
0x14ee   : > { %v6812_v51 = vmul.f32 1.442695, %v6804_v24 }
0x14ef   : > { %v6818_v0 = vmul.f32 1.442695, %v6807_v17  ;;  %v6788_v47 = vpop.xlane.xlu0 %6787 }
0x14f0   : > { %v6806_v54 = vsub.f32 %v16695_v20, %v6788_v47  ;;  %v6785_v48 = vpop.xlane.xlu1 %6784 }
0x14f1   : > { %14418 = vpow2.f32 %v6818_v0  ;;  %v6805_v5 = vsub.f32 %v16699_v49, %v6785_v48 }
0x14f2   : > { %v6816_v56 = vmul.f32 1.442695, %v6806_v54 }
0x14f3   : > { %v6814_v14 = vmul.f32 1.442695, %v6805_v5  ;;  %v6794_v40 = vpop.xlane.xlu0 %6793 }
0x14f4   : > { %14420 = vpow2.f32 %v6816_v56  ;;  %v6808_v1 = vsub.f32 %v16707_v30, %v6794_v40 }
0x14f5   : > { %14422 = vpow2.f32 %v6814_v14 }
0x14f6   : > { %14424 = vpow2.f32 %v6812_v51  ;;  %v6820_v19 = vmul.f32 1.442695, %v6808_v1  ;;  %v6803_v51 = vpop.xlane.xlu1 %6802 }
0x14f7   : > { %v6800_v12 = vpop.xlane.xlu0 %6799 }
0x14f8   : > { %v6810_v43 = vsub.f32 %v16711_v9, %v6800_v12  ;;  %v6811_v12 = vsub.f32 %v16709_v34, %v6803_v51 }
0x14fa   : > { %v6824_v29 = vmul.f32 1.442695, %v6810_v43  ;;  %v6797_v14 = vpop.xlane.xlu1 %6796 }
0x14fb   : > { %v16785_v3 = vpop.eup %14418 }
0x14fc   : > { %14426 = vpow2.f32 %v6824_v29  ;;  %v6837_v20 = vsel %vm1008_vm1, %v16785_v3, 0.0 }
0x14fd   : > { %6838 = vadd.xlane.f32.xlu1 %v6837_v20  ;;  %14428 = vpow2.f32 %v6820_v19  ;;  %v6826_v19 = vmul.f32 1.442695, %v6811_v12 }
0x14fe   : > { %v16789_v49 = vpop.eup %14420 }
0x14ff   : > { %v16791_v17 = vpop.eup %14422  ;;  %v6834_v30 = vsel %vm1008_vm1, %v16789_v49, 0.0 }
0x1500   : > { %v16795_v24 = vpop.eup %14424  ;;  %6835 = vadd.xlane.f32.xlu0 %v6834_v30  ;;  %v6831_v9 = vsel %vm1008_vm1, %v16791_v17, 0.0  ;;  %v6809_v30 = vsub.f32 %v16715_v52, %v6797_v14 }
0x1501   : > { %6832 = vadd.xlane.f32.xlu1 %v6831_v9  ;;  %v6828_v0 = vsel %vm1008_vm1, %v16795_v24, 0.0 }
0x1502   : > { %v6822_v51 = vmul.f32 1.442695, %v6809_v30 }
0x1504   : > { %6829 = vadd.xlane.f32.xlu0 %v6828_v0 }
0x1506   : > { %v16801_v47 = vpop.eup %14426 }
0x1507   : > { %v6846_v54 = vsel %vm1008_vm1, %v16801_v47, 0.0  ;;  %v16805_v48 = vpop.eup %14428 }
0x1508   : > { %6847 = vadd.xlane.f32.xlu0 %v6846_v54  ;;  %v6840_v5 = vsel %vm1008_vm1, %v16805_v48, 0.0 }
0x150c   : > { %6841 = vadd.xlane.f32.xlu0 %v6840_v5 }
0x1512   : > { %6878 = vrot.lane.b32.xlu1 %v16551_v11, %s14868_s6 }
0x1516   : > { %6880 = vrot.lane.b32.xlu1 %v16599_v25, %s14868_s6  ;;  %v6537_v56 = vpop.xlane.xlu0 %6536 }
0x151a   : > { %v6531_v40 = vpop.xlane.xlu0 %6530 }
0x151e   : > { %v6540_v1 = vpop.xlane.xlu1 %6539 }
0x151f   : > { %14430 = vrcp.f32 %v6540_v1 }
0x1520   : > { %14432 = vrcp.f32 %v6531_v40 }
0x1521   : > { %14434 = vrcp.f32 %v6537_v56 }
0x1522   : > { %v6534_v43 = vpop.xlane.xlu1 %6533  ;;  %6876 = vrot.lane.b32.xlu0 %v16555_v4, %s14868_s6 }
0x1523   : > { %14436 = vrcp.f32 %v6534_v43 }
0x1526   : > { %v6552_v29 = vpop.xlane.xlu1 %6551  ;;  %v6549_v20 = vpop.xlane.xlu0 %6548  ;;  %7558 = vrot.lane.b32.xlu0 %v16526_v46, %s14870_s12 }
0x1527   : > { %14438 = vrcp.f32 %v6552_v29 }
0x1528   : > { %14440 = vrcp.f32 %v6549_v20 }
0x1529   : > { %v14431_v9 = vpop.eup %14430  ;;  %14442 = vpow2.f32 %v6826_v19 }
0x152a   : > { %v6546_v0 = vpop.xlane.xlu1 %6545  ;;  %v6543_v34 = vpop.xlane.xlu0 %6542  ;;  %7562 = vrot.lane.b32.xlu0 %v16573_v55, %s14870_s12  ;;  %v16822_v40 = vmul.f32 %v14431_v9, %v16755_v42 }
0x152b   : > { %v14433_v54 = vpop.eup %14432  ;;  %14444 = vrcp.f32 %v6546_v0  ;;  %v16882_v0 = vmul.f32 0.17677669, %v16728_v7 }
0x152c   : > { %v14435_v5 = vpop.eup %14434  ;;  %14446 = vrcp.f32 %v6543_v34  ;;  %v16827_v46 = vmul.f32 %v14433_v54, %v16751_v62  ;;  %v16908_v54 = vmul.f32 0.17677669, %v16742_v60 }
0x152d   : > { %v14437_v56 = vpop.eup %14436  ;;  %v16833_v55 = vmul.f32 %v14435_v5, %v16745_v13  ;;  %14448 = vpow2.f32 %v6822_v51  ;;  %v7273_v34 = vsel %vm1008_vm1, %v16882_v0, -inf }
0x152e   : > { %7550 = vrot.lane.b32.xlu0 %v16524_v21, %s14870_s12  ;;  %v16830_v52 = vmul.f32 %v14437_v56, %v16759_v53 }
0x152f   : > { %v6570_v42 = vpack.c.bf16 %v16822_v40, %v16833_v55 }
0x1530   : > { %v6569_v14 = vpack.c.bf16 %v16830_v52, %v16827_v46 }
0x1531   : > { %v14439_v1 = vpop.eup %14438 }
0x1532   : > { %13555 = vmatprep.mubr.msk.bf16.mxu0 %vm1008_vm1, %v6569_v14  ;;  %7554 = vrot.lane.b32.xlu0 %v16570_v2, %s14870_s12  ;;  %v14441_v21 = vpop.eup %14440  ;;  %v16852_v19 = vmul.f32 %v14439_v1, %v16763_v36 }
0x1533   : > { %13556 = vmatmul.mubr.msk.bf16.vlgmr.msra.gmra.mrb[184].mxu0 %vm1008_vm1, %v6570_v42  ;;  %v16843_v62 = vpop.eup %14442  ;;  %v16849_v43 = vmul.f32 %v14441_v21, %v16765_v16  ;;  %v16870_v16 = vmul.f32 0.17677669, %v16726_v15 }
0x1534   : > { %18304 = vst [vmem:[#allocation56_spill] sm:$0xff] %v16852_v19  ;;  %v6849_v20 = vsel %vm1008_vm1, %v16843_v62, 0.0 }
0x1535   : > { %v14445_v13 = vpop.eup %14444  ;;  %18303 = vst [vmem:[#allocation55_spill] sm:$0xff] %v16849_v43  ;;  %v7264_v9 = vsel %vm1008_vm1, %v16870_v16, -inf }
0x1536   : > { %v14447_v53 = vpop.eup %14446  ;;  %v16846_v12 = vmul.f32 %v14445_v13, %v16773_v10  ;;  %v6572_v10 = vpack.c.bf16 %v16852_v19, %v16849_v43 }
0x1537   : > { %v16855_v29 = vmul.f32 %v14447_v53, %v16767_v37  ;;  %v16861_v30 = vpop.eup %14448  ;;  %v16875_v37 = vmul.f32 0.17677669, %v16724_v6  ;;  %v16889_v6 = vmul.f32 0.17677669, %v16737_v58  ;;  %v16905_v58 = vmul.f32 0.17677669, %v16730_v28 }
0x1538   : > { %18302 = vst [vmem:[#allocation54_spill] sm:$0xff] %v16846_v12  ;;  %v6843_v36 = vsel %vm1008_vm1, %v16861_v30, 0.0 }
0x1539   : > { %18305 = vst [vmem:[#allocation57_spill] sm:$0xff] %v16855_v29  ;;  %v6571_v2 = vpack.c.bf16 %v16846_v12, %v16855_v29  ;;  %v7270_v15 = vsel %vm1008_vm1, %v16875_v37, -inf  ;;  %v7276_v7 = vsel %vm1008_vm1, %v16889_v6, -inf }
0x153a   : > { %6850 = vadd.xlane.f32.xlu1 %v6849_v20 }
0x153b   : > { %13559 = vmatprep.mubr.msk.bf16.mxu0 %vm1008_vm1, %v6571_v2 }
0x153c   : > { %13560 = vmatmul.mubr.msk.bf16.gmra.mrb[188].mxu0 %vm1008_vm1, %v6572_v10 }
0x153e   : > { %6844 = vadd.xlane.f32.xlu1 %v6843_v36 }
0x154f   : > { %6882 = vrot.lane.b32.xlu1 %v16595_v32, %s14868_s6 }
0x1551   : > { %7265 = vmax.xlane.f32.xlu0 %v7264_v9 }
0x1553   : > { %7560 = vrot.lane.b32.xlu1 %v16553_v61, %s14870_s12  ;;  %v16896_v61 = vmul.f32 0.17677669, %v16735_v63  ;;  %v16913_v63 = vmul.f32 0.17677669, %v16740_v59 }
0x1555   : > { %7271 = vmax.xlane.f32.xlu0 %v7270_v15  ;;  %v7285_v51 = vsel %vm1008_vm1, %v16913_v63, -inf }
0x1557   : > { %7564 = vrot.lane.b32.xlu1 %v16597_v50, %s14870_s12  ;;  %v7282_v50 = vsel %vm1008_vm1, %v16896_v61, -inf }
0x1559   : > { %7274 = vmax.xlane.f32.xlu0 %v7273_v34 }
0x155b   : > { %7552 = vrot.lane.b32.xlu1 %v16549_v35, %s14870_s12  ;;  %v7267_v35 = vsel %vm1008_vm1, %v16905_v58, -inf }
0x155d   : > { %7277 = vmax.xlane.f32.xlu0 %v7276_v7 }
0x155f   : > { %7556 = vrot.lane.b32.xlu1 %v16593_v39, %s14870_s12  ;;  %v7279_v39 = vsel %vm1008_vm1, %v16908_v54, -inf }
0x1561   : > { %7283 = vmax.xlane.f32.xlu0 %v7282_v50 }
0x1583   : > { %7268 = vmax.xlane.f32.xlu1 %v7267_v35 }
0x1587   : > { %7280 = vmax.xlane.f32.xlu1 %v7279_v39 }
0x158a   : > { %v6839_v5 = vpop.xlane.xlu1 %6838 }
0x158b   : > { %7286 = vmax.xlane.f32.xlu1 %v7285_v51 }
0x158d   : > { %v6836_v28 = vpop.xlane.xlu0 %6835 }
0x158e   : > { %v6833_v56 = vpop.xlane.xlu1 %6832 }
0x158f   : > { %14450 = vrcp.f32 %v6833_v56 }
0x1591   : > { %v6830_v60 = vpop.xlane.xlu0 %6829 }
0x1592   : > { %14452 = vrcp.f32 %v6830_v60  ;;  %v6879_v59 = vpop.permute.xlu1 %6878 }
0x1593   : > { %14454 = vrcp.f32 %v6836_v28 }
0x1594   : > { %14456 = vrcp.f32 %v6839_v5 }
0x1595   : > { %v6848_v14 = vpop.xlane.xlu0 %6847 }
0x1596   : > { %v6881_v9 = vpop.permute.xlu1 %6880 }
0x1599   : > { %v6842_v42 = vpop.xlane.xlu0 %6841  ;;  %v14451_v1 = vpop.eup %14450 }
0x159a   : > { %v16923_v2 = vmul.f32 %v14451_v1, %v16791_v17 }
0x159c   : > { %v14453_v21 = vpop.eup %14452 }
0x159d   : > { %v6877_v13 = vpop.permute.xlu0 %6876  ;;  %v16920_v53 = vmul.f32 %v14453_v21, %v16795_v24  ;;  %v14455_v34 = vpop.eup %14454 }
0x159e   : > { %13579 = vmatprep.subr.bf16.mxu0 %v6877_v13  ;;  %v14457_v50 = vpop.eup %14456  ;;  %v16932_v35 = vmul.f32 %v14455_v34, %v16789_v49 }
0x159f   : > { %13580 = vmatpush3.bf16.msra.mxu0 %v6877_v13  ;;  %v6868_v20 = vpack.c.bf16 %v16923_v2, %v16920_v53  ;;  %v16935_v51 = vmul.f32 %v14457_v50, %v16785_v3 }
0x15a0   : > { %13581 = vmatprep.subr.bf16.mxu0 %v6879_v59 }
0x15a1   : > { %13587 = vmatprep.mubr.msk.bf16.mxu0 %vm1008_vm1, %v6868_v20  ;;  %v7559_v10 = vpop.permute.xlu0 %7558  ;;  %v6869_v5 = vpack.c.bf16 %v16935_v51, %v16932_v35 }
0x15a2   : > { %13783 = vmatprep.subr.msk.bf16.mxu1 %vm910_vm0, %v7559_v10  ;;  %v7579_v36 = vsel %vm910_vm0, %v7559_v10, 0 }
0x15a3   : > { %13582 = vmatpush3.bf16.msra.mxu0 %v6879_v59  ;;  %13664 = vmatpush3.bf16.xpose.msra.mxu1 %v7579_v36 }
0x15a4   : > { %13583 = vmatprep.subr.bf16.mxu0 %v6881_v9 }
0x15a5   : > { %v7563_v24 = vpop.permute.xlu0 %7562 }
0x15a7   : > { %13584 = vmatpush3.bf16.msra.mxu0 %v6881_v9 }
0x15a9   : > { %v7551_v17 = vpop.permute.xlu0 %7550 }
0x15aa   : > { %13671 = vmatprep.mubr.msk.bf16.mxu1 %vm910_vm0, %v7551_v17 }
0x15ad   : > { %v7555_v20 = vpop.permute.xlu0 %7554 }
0x15c7   : > { %v6851_v15 = vpop.xlane.xlu1 %6850 }
0x15c8   : > { %14458 = vrcp.f32 %v6851_v15 }
0x15c9   : > { %14460 = vrcp.f32 %v6842_v42 }
0x15ca   : > { %14462 = vrcp.f32 %v6848_v14 }
0x15cb   : > { %v6845_v7 = vpop.xlane.xlu1 %6844 }
0x15cc   : > { %14464 = vrcp.f32 %v6845_v7 }
0x15cf   : > { %v6883_v39 = vpop.permute.xlu1 %6882 }
0x15d0   : > { %13585 = vmatprep.subr.bf16.mxu0 %v6883_v39 }
0x15d1   : > { %13586 = vmatpush3.bf16.msra.mxu0 %v6883_v39 }
0x15d2   : > { %v14459_v28 = vpop.eup %14458 }
0x15d3   : > { %v7561_v56 = vpop.permute.xlu1 %7560  ;;  %v14461_v60 = vpop.eup %14460  ;;  %v16944_v3 = vmul.f32 %v14459_v28, %v16843_v62 }
0x15d4   : > { %13588 = vmatmul.mubr.msk.bf16.vlgmr.msra.gmra.mrb[192].mxu0 %vm1008_vm1, %v6869_v5  ;;  %13784 = vmatprep.subr.msk.bf16.mxu1 %vm910_vm0, %v7561_v56  ;;  %v7582_v14 = vsel %vm910_vm0, %v7561_v56, 0  ;;  %v14463_v49 = vpop.eup %14462  ;;  %v16947_v1 = vmul.f32 %v14461_v60, %v16805_v48  ;;  %v7585_v48 = vsel %vm910_vm0, %v7563_v24, 0 }
0x15d5   : > { %13666 = vmatpush3.bf16.xpose.msra.mxu1 %v7582_v14  ;;  %18306 = vst [vmem:[#allocation58_spill] sm:$0xff] %v16944_v3  ;;  %v16953_v59 = vmul.f32 %v14463_v49, %v16801_v47 }
0x15d6   : > { %v14465_v42 = vpop.eup %14464  ;;  %13785 = vmatprep.subr.msk.bf16.mxu1 %vm910_vm0, %v7563_v24  ;;  %18307 = vst [vmem:[#allocation59_spill] sm:$0xff] %v16947_v1 }
0x15d7   : > { %v16950_v21 = vmul.f32 %v14465_v42, %v16861_v30  ;;  %18309 = vst [vmem:[#allocation61_spill] sm:$0xff] %v16953_v59  ;;  %v6871_v10 = vpack.c.bf16 %v16944_v3, %v16953_v59  ;;  %v7565_v62 = vpop.permute.xlu1 %7564 }
0x15d8   : > { %v7588_v17 = vsel %vm910_vm0, %v7565_v62, 0 }
0x15d9   : > { %18308 = vst [vmem:[#allocation60_spill] sm:$0xff] %v16950_v21  ;;  %v6870_v13 = vpack.c.bf16 %v16950_v21, %v16947_v1  ;;  %v14148_v1 = vld [vmem:[#allocation11 + $0x400] sm:$0xff]  }
0x15db   : > { %13591 = vmatprep.mubr.msk.bf16.mxu0 %vm1008_vm1, %v6870_v13  ;;  %v7553_v5 = vpop.permute.xlu1 %7552 }
0x15dc   : > { %13592 = vmatmul.mubr.msk.bf16.gmra.mrb[196].mxu0 %vm1008_vm1, %v6871_v10 }
0x15dd   : > { %13668 = vmatpush3.bf16.xpose.msra.mxu1 %v7585_v48 }
0x15de   : > { %13786 = vmatprep.subr.msk.bf16.mxu1 %vm910_vm0, %v7565_v62  ;;  %v7266_v30 = vpop.xlane.xlu0 %7265 }
0x15df   : > { %v7288_v47 = vsub.f32 %v16870_v16, %v7266_v30  ;;  %v7557_v42 = vpop.permute.xlu1 %7556 }
0x15e1   : > { %v7296_v15 = vmul.f32 1.442695, %v7288_v47 }
0x15e2   : > { %v7272_v36 = vpop.xlane.xlu0 %7271 }
0x15e3   : > { %v7290_v9 = vsub.f32 %v16875_v37, %v7272_v36 }
0x15e5   : > { %v7300_v34 = vmul.f32 1.442695, %v7290_v9  ;;  %13670 = vmatpush3.bf16.xpose.msra.mxu1 %v7588_v17 }
0x15e6   : > { %v7275_v7 = vpop.xlane.xlu0 %7274 }
0x15e7   : > { %14466 = vpow2.f32 %v7300_v34  ;;  %v7291_v50 = vsub.f32 %v16882_v0, %v7275_v7 }
0x15e8   : > { %14468 = vpow2.f32 %v7296_v15 }
0x15e9   : > { %v7302_v24 = vmul.f32 1.442695, %v7291_v50 }
0x15ea   : > { %v7278_v39 = vpop.xlane.xlu0 %7277 }
0x15eb   : > { %14470 = vpow2.f32 %v7302_v24  ;;  %v7292_v16 = vsub.f32 %v16889_v6, %v7278_v39 }
0x15ec   : > { %13672 = vmatmul.mubr.msk.bf16.vlgmr.msra.gmra.mrb[216].mxu1 %vm910_vm0, %v7553_v5 }
0x15ed   : > { %13675 = vmatprep.mubr.msk.bf16.mxu1 %vm910_vm0, %v7555_v20  ;;  %v7304_v60 = vmul.f32 1.442695, %v7292_v16 }
0x15ee   : > { %v7284_v37 = vpop.xlane.xlu0 %7283 }
0x15ef   : > { %v7294_v28 = vsub.f32 %v16896_v61, %v7284_v37 }
0x15f1   : > { %v16971_v56 = vpop.eup %14466  ;;  %v7308_v14 = vmul.f32 1.442695, %v7294_v28  ;;  %v14109_v28 = vld [vmem:[#allocation7 + $0x48] sm:$0xff]  }
0x15f2   : > { %v7318_v0 = vsel %vm1008_vm1, %v16971_v56, 0.0  ;;  %v16975_v49 = vpop.eup %14468 }
0x15f3   : > { %14472 = vpow2.f32 %v7308_v14  ;;  %7319 = vadd.xlane.f32.xlu0 %v7318_v0  ;;  %v7312_v61 = vsel %vm1008_vm1, %v16975_v49, 0.0  ;;  %v14107_v0 = vld [vmem:[#allocation7 + $0x58] sm:$0xff]  }
0x15f4   : > { %13676 = vmatmul.mubr.msk.bf16.gmra.mrb[220].mxu1 %vm910_vm0, %v7557_v42  ;;  %14474 = vpow2.f32 %v7304_v60  ;;  %v14106_v60 = vld [vmem:[#allocation7 + $0x50] sm:$0xff]   ;;  %v14108_v42 = vld [vmem:[#allocation7 + $0x40] sm:$0xff]  }
0x15f5   : > { %v16978_v6 = vpop.eup %14470  ;;  %8442 = vmatprep.mubr.bf16.mxu1 %v18296_v8  ;;  %13595 = vmatprep.subr.bf16.mxu0 %v14106_v60 }
0x15f6   : > { %v7321_v13 = vsel %vm1008_vm1, %v16978_v6, 0.0  ;;  %13596 = vmatpush3.bf16.msra.mxu0 %v14106_v60 }
0x15f7   : > { %7313 = vadd.xlane.f32.xlu0 %v7312_v61  ;;  %7322 = vadd.xlane.f32.xlu1 %v7321_v13 }
0x15f8   : > { %13597 = vmatprep.subr.bf16.mxu0 %v14107_v0 }
0x15fa   : > { %13598 = vmatpush3.bf16.msra.mxu0 %v14107_v0 }
0x15fb   : > { %13607 = vmatprep.subr.bf16.mxu0 %v14108_v42 }
0x15fd   : > { %v16985_v20 = vpop.eup %14472 }
0x15fe   : > { %v7330_v10 = vsel %vm1008_vm1, %v16985_v20, 0.0  ;;  %v16989_v48 = vpop.eup %14474 }
0x15ff   : > { %7331 = vadd.xlane.f32.xlu0 %v7330_v10  ;;  %v7324_v62 = vsel %vm1008_vm1, %v16989_v48, 0.0 }
0x1603   : > { %7325 = vadd.xlane.f32.xlu0 %v7324_v62 }
0x1606   : > { %v16993_v30 = vpop.f32.mrb[184].mxu0 }
0x1607   : > { %v16995_v47 = vpop.f32.mrb[185].mxu0 }
0x1608   : > { %v16997_v36 = vpop.f32.mrb[186].mxu0 }
0x1609   : > { %v17001_v17 = vpop.f32.mrb[187].mxu0 }
0x160f   : > { %v17005_v34 = vpop.f32.mrb[188].mxu0 }
0x1610   : > { %v17007_v7 = vpop.f32.mrb[189].mxu0  ;;  %v7269_v50 = vpop.xlane.xlu1 %7268 }
0x1611   : > { %v17009_v24 = vpop.f32.mrb[190].mxu0  ;;  %v7289_v39 = vsub.f32 %v16905_v58, %v7269_v50 }
0x1612   : > { %v17014_v16 = vpop.f32.mrb[191].mxu0 }
0x1613   : > { %v7298_v37 = vmul.f32 1.442695, %v7289_v39 }
0x1614   : > { %v7281_v61 = vpop.xlane.xlu1 %7280 }
0x1615   : > { %14476 = vpow2.f32 %v7298_v37  ;;  %v7293_v62 = vsub.f32 %v16908_v54, %v7281_v61 }
0x1617   : > { %v7306_v39 = vmul.f32 1.442695, %v7293_v62 }
0x1618   : > { %v7287_v13 = vpop.xlane.xlu1 %7286 }
0x1619   : > { %7356 = vrot.lane.b32.xlu0 %v16555_v4, %s14869_s14  ;;  %v7295_v10 = vsub.f32 %v16913_v63, %v7287_v13 }
0x161b   : > { %v7310_v50 = vmul.f32 1.442695, %v7295_v10 }
0x161d   : > { %14478 = vpow2.f32 %v7310_v50 }
0x161e   : > { %14480 = vpow2.f32 %v7306_v39 }
0x161f   : > { %v17020_v14 = vpop.eup %14476 }
0x1620   : > { %v7315_v58 = vsel %vm1008_vm1, %v17020_v14, 0.0 }
0x1621   : > { %7316 = vadd.xlane.f32.xlu1 %v7315_v58 }
0x1627   : > { %v17030_v37 = vpop.eup %14478 }
0x1628   : > { %v7333_v60 = vsel %vm1008_vm1, %v17030_v37, 0.0  ;;  %v17034_v58 = vpop.eup %14480 }
0x1629   : > { %v7327_v0 = vsel %vm1008_vm1, %v17034_v58, 0.0 }
0x1632   : > { %7358 = vrot.lane.b32.xlu1 %v16551_v11, %s14869_s14 }
0x1636   : > { %7360 = vrot.lane.b32.xlu1 %v16599_v25, %s14869_s14 }
0x165a   : > { %7334 = vadd.xlane.f32.xlu1 %v7333_v60 }
0x165e   : > { %7328 = vadd.xlane.f32.xlu1 %v7327_v0 }
0x166f   : > { %7362 = vrot.lane.b32.xlu1 %v16595_v32, %s14869_s14 }
0x1680   : > { %v17040_v54 = vpop.xlane.xlu0 %7319 }
0x1684   : > { %v7314_v63 = vpop.xlane.xlu0 %7313  ;;  %v17044_v60 = vpop.xlane.xlu1 %7322 }
0x168c   : > { %v17042_v61 = vpop.xlane.xlu0 %7331 }
0x1690   : > { %v17046_v9 = vpop.xlane.xlu0 %7325 }
0x16a7   : > { %v13589_v13 = vpop.f32.mrb[192].mxu0 }
0x16a8   : > { %v6934_v10 = vpop.f32.mrb[193].mxu0 }
0x16a9   : > { %v13590_v62 = vpop.f32.mrb[194].mxu0 }
0x16aa   : > { %v6966_v50 = vpack.c.bf16 %v13590_v62, %v13589_v13  ;;  %v6937_v39 = vpop.f32.mrb[195].mxu0  ;;  %v7357_v13 = vpop.permute.xlu0 %7356 }
0x16ab   : > { %v6965_v5 = vpack.c.bf16 %v6937_v39, %v6934_v10 }
0x16ad   : > { %13599 = vmatprep.mubr.msk.bf16.mxu0 %vm910_vm0, %v6965_v5  ;;  %v18310_v5 = vpack.c.bf16 %v17001_v17, %v16995_v47 }
0x16ae   : > { %13600 = vmatmul.mubr.msk.bf16.vlgmr.msra.gmra.mrb[200].mxu0 %vm910_vm0, %v6966_v50  ;;  %v7317_v43 = vpop.xlane.xlu1 %7316 }
0x16af   : > { %13608 = vmatpush3.bf16.msra.mxu0 %v14108_v42  ;;  %v13593_v0 = vpop.f32.mrb[196].mxu0  ;;  %14482 = vrcp.f32 %v7317_v43 }
0x16b0   : > { %v6950_v15 = vpop.f32.mrb[197].mxu0  ;;  %13609 = vmatprep.subr.bf16.mxu0 %v14109_v28  ;;  %14484 = vrcp.f32 %v7314_v63 }
0x16b1   : > { %v13594_v29 = vpop.f32.mrb[198].mxu0  ;;  %14486 = vrcp.f32 %v17044_v60 }
0x16b2   : > { %v6968_v19 = vpack.c.bf16 %v13594_v29, %v13593_v0  ;;  %v6953_v12 = vpop.f32.mrb[199].mxu0  ;;  %v7359_v42 = vpop.permute.xlu1 %7358  ;;  %v18311_v29 = vpack.c.bf16 %v16997_v36, %v16993_v30  ;;  %v18315_v0 = vpack.c.bf16 %v17009_v24, %v17005_v34  ;;  %14488 = vrcp.f32 %v17040_v54 }
0x16b3   : > { %v6967_v62 = vpack.c.bf16 %v6953_v12, %v6950_v15  ;;  %13610 = vmatpush3.bf16.msra.mxu0 %v14109_v28  ;;  %v18312_v12 = vpack.c.bf16 %v17014_v16, %v17007_v7 }
0x16b4   : > { %13635 = vmatprep.subr.bf16.mxu0 %v7357_v13 }
0x16b5   : > { %13603 = vmatprep.mubr.msk.bf16.mxu0 %vm910_vm0, %v6967_v62 }
0x16b6   : > { %13604 = vmatmul.mubr.msk.bf16.gmra.mrb[204].mxu0 %vm910_vm0, %v6968_v19  ;;  %v7361_v30 = vpop.permute.xlu1 %7360 }
0x16b7   : > { %13611 = vmatprep.mubr.msk.bf16.mxu0 %vm910_vm0, %v18310_v5 }
0x16b9   : > { %v14483_v10 = vpop.eup %14482 }
0x16ba   : > { %v14485_v19 = vpop.eup %14484  ;;  %v17067_v28 = vmul.f32 %v14483_v10, %v17020_v14 }
0x16bb   : > { %v17076_v16 = vmul.f32 %v14485_v19, %v16975_v49 }
0x16bc   : > { %18313 = vst [vmem:[#allocation62_spill] sm:$0xff] %v17067_v28 }
0x16bd   : > { %18314 = vst [vmem:[#allocation63_spill] sm:$0xff] %v17076_v16  ;;  %v7352_v14 = vpack.c.bf16 %v17067_v28, %v17076_v16 }
0x16be   : > { %13612 = vmatmul.mubr.msk.bf16.vlgmr.msra.gmra.mrb[200].mxu0 %vm910_vm0, %v18311_v29 }
0x16bf   : > { %13636 = vmatpush3.bf16.msra.mxu0 %v7357_v13  ;;  %13615 = vmatprep.mubr.msk.bf16.mxu0 %vm910_vm0, %v18312_v12  ;;  %v13673_v43 = vpop.f32.mrb[216].mxu1 }
0x16c0   : > { %13637 = vmatprep.subr.bf16.mxu0 %v7359_v42  ;;  %v7624_v15 = vpop.f32.mrb[217].mxu1  ;;  %v17069_v36 = vmul.f32 0.17677669, %v13673_v43 }
0x16c1   : > { %v17064_v47 = vmul.f32 0.17677669, %v7624_v15  ;;  %v13674_v17 = vpop.f32.mrb[218].mxu1 }
0x16c2   : > { %v7627_v63 = vpop.f32.mrb[219].mxu1  ;;  %v17086_v13 = vmul.f32 0.17677669, %v13674_v17  ;;  %v7669_v62 = vsel %vm1008_vm1, %v17069_v36, -inf }
0x16c3   : > { %13638 = vmatpush3.bf16.msra.mxu0 %v7359_v42  ;;  %v17071_v50 = vmul.f32 0.17677669, %v7627_v63  ;;  %v7663_v7 = vsel %vm1008_vm1, %v17064_v47, -inf }
0x16c4   : > { %13639 = vmatprep.subr.bf16.mxu0 %v7361_v30  ;;  %7664 = vmax.xlane.f32.xlu0 %v7663_v7  ;;  %v7672_v34 = vsel %vm1008_vm1, %v17086_v13, -inf  ;;  %v14487_v7 = vpop.eup %14486 }
0x16c5   : > { %v7666_v39 = vsel %vm1008_vm1, %v17071_v50, -inf }
0x16c6   : > { %13616 = vmatmul.mubr.msk.bf16.gmra.mrb[204].mxu0 %vm910_vm0, %v18315_v0  ;;  %7667 = vmax.xlane.f32.xlu1 %v7666_v39  ;;  %v17116_v0 = vmul.f32 %v14487_v7, %v16978_v6 }
0x16c7   : > { %13640 = vmatpush3.bf16.msra.mxu0 %v7361_v30  ;;  %13643 = vmatprep.mubr.msk.bf16.mxu0 %vm1008_vm1, %v7352_v14  ;;  %v13677_v49 = vpop.f32.mrb[220].mxu1  ;;  %v14489_v14 = vpop.eup %14488 }
0x16c8   : > { %v7640_v5 = vpop.f32.mrb[221].mxu1  ;;  %7670 = vmax.xlane.f32.xlu0 %v7669_v62  ;;  %v17101_v19 = vmul.f32 0.17677669, %v13677_v49  ;;  %18316 = vst [vmem:[#allocation64_spill] sm:$0xff] %v17116_v0  ;;  %v14110_v49 = vld [vmem:[#allocation7 + $0x60] sm:$0xff]   ;;  %v17119_v54 = vmul.f32 %v14489_v14, %v16971_v56 }
0x16c9   : > { %v13678_v42 = vpop.f32.mrb[222].mxu1  ;;  %v17091_v29 = vmul.f32 0.17677669, %v7640_v5 }
0x16ca   : > { %v7643_v10 = vpop.f32.mrb[223].mxu1  ;;  %v17097_v24 = vmul.f32 0.17677669, %v13678_v42  ;;  %v7681_v63 = vsel %vm1008_vm1, %v17101_v19, -inf  ;;  %18317 = vst [vmem:[#allocation65_spill] sm:$0xff] %v17119_v54 }
0x16cb   : > { %v17093_v12 = vmul.f32 0.17677669, %v7643_v10  ;;  %v7675_v15 = vsel %vm1008_vm1, %v17091_v29, -inf }
0x16cc   : > { %7673 = vmax.xlane.f32.xlu0 %v7672_v34  ;;  %v7684_v17 = vsel %vm1008_vm1, %v17097_v24, -inf }
0x16cd   : > { %v7678_v43 = vsel %vm1008_vm1, %v17093_v12, -inf }
0x16ce   : > { %7679 = vmax.xlane.f32.xlu1 %v7678_v43 }
0x16d0   : > { %7676 = vmax.xlane.f32.xlu0 %v7675_v15 }
0x16d2   : > { %7685 = vmax.xlane.f32.xlu1 %v7684_v17 }
0x16d4   : > { %7682 = vmax.xlane.f32.xlu0 %v7681_v63 }
0x16e7   : > { %v7335_v30 = vpop.xlane.xlu1 %7334 }
0x16e8   : > { %14490 = vrcp.f32 %v7335_v30 }
0x16e9   : > { %14492 = vrcp.f32 %v17046_v9  ;;  %v7353_v9 = vpack.c.bf16 %v17116_v0, %v17119_v54 }
0x16ea   : > { %7755 = vrot.lane.b32.xlu0 %v16555_v4, %s14870_s12  ;;  %14494 = vrcp.f32 %v17042_v61  ;;  %v14111_v4 = vld [vmem:[#allocation7 + $0x68] sm:$0xff]  }
0x16eb   : > { %v7329_v39 = vpop.xlane.xlu1 %7328 }
0x16ec   : > { %14496 = vrcp.f32 %v7329_v39 }
0x16ef   : > { %v7363_v60 = vpop.permute.xlu1 %7362 }
0x16f0   : > { %13641 = vmatprep.subr.bf16.mxu0 %v7363_v60 }
0x16f1   : > { %13642 = vmatpush3.bf16.msra.mxu0 %v7363_v60 }
0x16f2   : > { %13651 = vmatprep.subr.bf16.mxu0 %v14110_v49  ;;  %v14491_v62 = vpop.eup %14490 }
0x16f3   : > { %v14493_v61 = vpop.eup %14492  ;;  %v17125_v42 = vmul.f32 %v14491_v62, %v17030_v37 }
0x16f4   : > { %13644 = vmatmul.mubr.msk.bf16.vlgmr.msra.gmra.mrb[208].mxu0 %vm1008_vm1, %v7353_v9  ;;  %v14495_v5 = vpop.eup %14494  ;;  %v17128_v56 = vmul.f32 %v14493_v61, %v16989_v48 }
0x16f5   : > { %13652 = vmatpush3.bf16.msra.mxu0 %v14110_v49  ;;  %18318 = vst [vmem:[#allocation66_spill] sm:$0xff] %v17125_v42  ;;  %v17134_v34 = vmul.f32 %v14495_v5, %v16985_v20 }
0x16f6   : > { %v14497_v6 = vpop.eup %14496  ;;  %13653 = vmatprep.subr.bf16.mxu0 %v14111_v4  ;;  %18319 = vst [vmem:[#allocation67_spill] sm:$0xff] %v17128_v56 }
0x16f7   : > { %v17131_v10 = vmul.f32 %v14497_v6, %v17034_v58  ;;  %18321 = vst [vmem:[#allocation69_spill] sm:$0xff] %v17134_v34  ;;  %v7355_v15 = vpack.c.bf16 %v17125_v42, %v17134_v34 }
0x16f9   : > { %18320 = vst [vmem:[#allocation68_spill] sm:$0xff] %v17131_v10  ;;  %v7354_v43 = vpack.c.bf16 %v17131_v10, %v17128_v56  ;;  %13654 = vmatpush3.bf16.msra.mxu0 %v14111_v4 }
0x16fb   : > { %13647 = vmatprep.mubr.msk.bf16.mxu0 %vm1008_vm1, %v7354_v43 }
0x16fc   : > { %13648 = vmatmul.mubr.msk.bf16.gmra.mrb[212].mxu0 %vm1008_vm1, %v7355_v15 }
0x1751   : > { %v7665_v37 = vpop.xlane.xlu0 %7664 }
0x1752   : > { %v7687_v48 = vsub.f32 %v17064_v47, %v7665_v37 }
0x1753   : > { %v7668_v17 = vpop.xlane.xlu1 %7667 }
0x1754   : > { %v7695_v20 = vmul.f32 1.442695, %v7687_v48  ;;  %v7688_v30 = vsub.f32 %v17071_v50, %v7668_v17 }
0x1755   : > { %v7671_v58 = vpop.xlane.xlu0 %7670 }
0x1756   : > { %v7689_v63 = vsub.f32 %v17069_v36, %v7671_v58  ;;  %v7697_v60 = vmul.f32 1.442695, %v7688_v30 }
0x1758   : > { %v7699_v7 = vmul.f32 1.442695, %v7689_v63 }
0x1759   : > { %v7674_v39 = vpop.xlane.xlu0 %7673 }
0x175a   : > { %14498 = vpow2.f32 %v7699_v7  ;;  %v7690_v14 = vsub.f32 %v17086_v13, %v7674_v39 }
0x175b   : > { %v7680_v49 = vpop.xlane.xlu1 %7679  ;;  %14500 = vpow2.f32 %v7695_v20 }
0x175c   : > { %v7701_v9 = vmul.f32 1.442695, %v7690_v14 }
0x175d   : > { %v7677_v4 = vpop.xlane.xlu0 %7676 }
0x175e   : > { %14502 = vpow2.f32 %v7701_v9  ;;  %v7691_v47 = vsub.f32 %v17091_v29, %v7677_v4  ;;  %v7692_v29 = vsub.f32 %v17093_v12, %v7680_v49 }
0x175f   : > { %14504 = vpow2.f32 %v7697_v60  ;;  %v7686_v62 = vpop.xlane.xlu1 %7685 }
0x1760   : > { %v7703_v50 = vmul.f32 1.442695, %v7691_v47  ;;  %v7694_v6 = vsub.f32 %v17097_v24, %v7686_v62  ;;  %v7705_v63 = vmul.f32 1.442695, %v7692_v29 }
0x1761   : > { %v7683_v61 = vpop.xlane.xlu0 %7682 }
0x1762   : > { %v7693_v36 = vsub.f32 %v17101_v19, %v7683_v61  ;;  %v7709_v19 = vmul.f32 1.442695, %v7694_v6 }
0x1764   : > { %v17148_v5 = vpop.eup %14498  ;;  %v7707_v43 = vmul.f32 1.442695, %v7693_v36 }
0x1765   : > { %v7756_v13 = vpop.permute.xlu0 %7755  ;;  %v7717_v15 = vsel %vm1008_vm1, %v17148_v5, 0.0  ;;  %v14501_v37 = vpop.eup %14500 }
0x1766   : > { %14506 = vpow2.f32 %v7707_v43  ;;  %7718 = vadd.xlane.f32.xlu0 %v7717_v15  ;;  %13679 = vmatprep.subr.bf16.mxu0 %v7756_v13  ;;  %v7711_v17 = vsel %vm1008_vm1, %v14501_v37, 0.0 }
0x1767   : > { %14508 = vpow2.f32 %v7703_v50 }
0x1768   : > { %v17153_v48 = vpop.eup %14502  ;;  %14510 = vpow2.f32 %v7709_v19 }
0x1769   : > { %v7720_v24 = vsel %vm1008_vm1, %v17153_v48, 0.0  ;;  %v14505_v58 = vpop.eup %14504  ;;  %14512 = vpow2.f32 %v7705_v63 }
0x176a   : > { %7712 = vadd.xlane.f32.xlu0 %v7711_v17  ;;  %7721 = vadd.xlane.f32.xlu1 %v7720_v24  ;;  %v7714_v20 = vsel %vm1008_vm1, %v14505_v58, 0.0 }
0x176e   : > { %7715 = vadd.xlane.f32.xlu1 %v7714_v20 }
0x1770   : > { %v17160_v30 = vpop.eup %14506 }
0x1771   : > { %v7729_v12 = vsel %vm1008_vm1, %v17160_v30, 0.0  ;;  %v17164_v7 = vpop.eup %14508 }
0x1772   : > { %7730 = vadd.xlane.f32.xlu1 %v7729_v12  ;;  %v7723_v39 = vsel %vm1008_vm1, %v17164_v7, 0.0  ;;  %v17168_v14 = vpop.eup %14510 }
0x1773   : > { %v7732_v49 = vsel %vm1008_vm1, %v17168_v14, 0.0  ;;  %v14513_v60 = vpop.eup %14512 }
0x1774   : > { %v7726_v9 = vsel %vm1008_vm1, %v14513_v60, 0.0 }
0x1776   : > { %7724 = vadd.xlane.f32.xlu1 %v7723_v39 }
0x177a   : > { %7733 = vadd.xlane.f32.xlu1 %v7732_v49 }
0x177e   : > { %7727 = vadd.xlane.f32.xlu1 %v7726_v9 }
0x1780   : > { %7759 = vrot.lane.b32.xlu0 %v16599_v25, %s14870_s12 }
0x1784   : > { %7761 = vrot.lane.b32.xlu0 %v16595_v32, %s14870_s12 }
0x178f   : > { %7757 = vrot.lane.b32.xlu1 %v16551_v11, %s14870_s12  ;;  %s17346_s12 = scalar_lea.vmem [#allocation14], %s11748_s10  ;;  %s14871_s10 = smov [#allocation14]  }
0x1790   : > { %s11576_s17 = sshll.u32 %s17346_s12, 4  ;;  %s18057_s17 = int_to_ptr.vmem [resolvable:$true] %s11576_s17 }
0x1791   : > { %s14740_s1 = scalar_lea.vmem %s18057_s17, 4096 }
0x1792   : > { %p14741_p6 = scmp.ne.s32.totalorder %s18057_s17, %s14740_s1 }
0x1794   : > { %p14742_p10 = pnand %p14741_p6, %p18390_p5 }
0x1796   : > { %p14743_p1 = pneg %p14742_p10 }
0x17c7   : > { %v13645_v4 = vpop.f32.mrb[208].mxu0 }
0x17c8   : > { %v7414_v47 = vpop.f32.mrb[209].mxu0 }
0x17c9   : > { %v13646_v62 = vpop.f32.mrb[210].mxu0 }
0x17ca   : > { %v7446_v61 = vpack.c.bf16 %v13646_v62, %v13645_v4  ;;  %v7417_v36 = vpop.f32.mrb[211].mxu0 }
0x17cb   : > { %v7445_v50 = vpack.c.bf16 %v7417_v36, %v7414_v47 }
0x17cd   : > { %13655 = vmatprep.mubr.msk.bf16.mxu0 %vm910_vm0, %v7445_v50 }
0x17ce   : > { %13656 = vmatmul.mubr.msk.bf16.vlgmr.msra.gmra.mrb[200].mxu0 %vm910_vm0, %v7446_v61 }
0x17cf   : > { %13680 = vmatpush3.bf16.msra.mxu0 %v7756_v13  ;;  %v13649_v6 = vpop.f32.mrb[212].mxu0 }
0x17d0   : > { %v7430_v43 = vpop.f32.mrb[213].mxu0 }
0x17d1   : > { %v13650_v25 = vpop.f32.mrb[214].mxu0 }
0x17d2   : > { %v7448_v15 = vpack.c.bf16 %v13650_v25, %v13649_v6  ;;  %v7433_v29 = vpop.f32.mrb[215].mxu0  ;;  %v14112_v25 = vld [vmem:[#allocation7 + $0x70] sm:$0xff]  }
0x17d3   : > { %v7447_v32 = vpack.c.bf16 %v7433_v29, %v7430_v43 }
0x17d5   : > { %13659 = vmatprep.mubr.msk.bf16.mxu0 %vm910_vm0, %v7447_v32 }
0x17d6   : > { %13660 = vmatmul.mubr.msk.bf16.gmra.mrb[204].mxu0 %vm910_vm0, %v7448_v15 }
0x17f3   : > { %v7719_v11 = vpop.xlane.xlu0 %7718 }
0x17f7   : > { %v7722_v19 = vpop.xlane.xlu1 %7721  ;;  %v7713_v17 = vpop.xlane.xlu0 %7712 }
0x17f8   : > { %14514 = vrcp.f32 %v7713_v17 }
0x17fb   : > { %v7716_v24 = vpop.xlane.xlu1 %7715  ;;  %v7760_v62 = vpop.permute.xlu0 %7759 }
0x17fc   : > { %14516 = vrcp.f32 %v7716_v24 }
0x17fd   : > { %14518 = vrcp.f32 %v7722_v19  ;;  %v14113_v19 = vld [vmem:[#allocation7 + $0x78] sm:$0xff]  }
0x17fe   : > { %14520 = vrcp.f32 %v7719_v11 }
0x17ff   : > { %v7731_v63 = vpop.xlane.xlu1 %7730  ;;  %v7762_v50 = vpop.permute.xlu0 %7761 }
0x1802   : > { %v14515_v12 = vpop.eup %14514 }
0x1803   : > { %v7725_v20 = vpop.xlane.xlu1 %7724  ;;  %v17183_v49 = vmul.f32 %v14515_v12, %v14501_v37 }
0x1804   : > { %14522 = vrcp.f32 %v7725_v20 }
0x1805   : > { %18322 = vst [vmem:[#allocation70_spill] sm:$0xff] %v17183_v49 }
0x1806   : > { %v14517_v13 = vpop.eup %14516 }
0x1807   : > { %v7734_v39 = vpop.xlane.xlu1 %7733  ;;  %v17185_v9 = vmul.f32 %v14517_v13, %v14505_v58  ;;  %v14519_v37 = vpop.eup %14518 }
0x1808   : > { %v14521_v58 = vpop.eup %14520  ;;  %v17191_v43 = vmul.f32 %v14519_v37, %v17153_v48 }
0x1809   : > { %18323 = vst [vmem:[#allocation71_spill] sm:$0xff] %v17185_v9  ;;  %v7751_v4 = vpack.c.bf16 %v17185_v9, %v17183_v49  ;;  %v17196_v29 = vmul.f32 %v14521_v58, %v17148_v5  ;;  %v12189_v58 = vld [vmem:[%s18292_s4 + $0x1] ss:$0 sm:$0xff] }
0x180a   : > { %18324 = vst [vmem:[#allocation72_spill] sm:$0xff] %v17191_v43  ;;  %v14149_v9 = vld [vmem:[#allocation11 + $0x480] sm:$0xff]  }
0x180b   : > { %v7728_v47 = vpop.xlane.xlu1 %7727  ;;  %13687 = vmatprep.mubr.msk.bf16.mxu0 %vm1008_vm1, %v7751_v4  ;;  %18326 = vst [vmem:[#allocation74_spill] sm:$0xff] %v17196_v29  ;;  %v7752_v11 = vpack.c.bf16 %v17191_v43, %v17196_v29 }
0x180c   : > { %14524 = vrcp.f32 %v7728_v47 }
0x180d   : > { %14526 = vrcp.f32 %v7734_v39 }
0x180e   : > { %14528 = vrcp.f32 %v7731_v63  ;;  %v14523_v36 = vpop.eup %14522 }
0x180f   : > { %v7758_v61 = vpop.permute.xlu1 %7757  ;;  %v17199_v32 = vmul.f32 %v14523_v36, %v17164_v7 }
0x1810   : > { %13681 = vmatprep.subr.bf16.mxu0 %v7758_v61 }
0x1811   : > { %13682 = vmatpush3.bf16.msra.mxu0 %v7758_v61  ;;  %18327 = vst [vmem:[#allocation75_spill] sm:$0xff] %v17199_v32 }
0x1812   : > { %13683 = vmatprep.subr.bf16.mxu0 %v7760_v62 }
0x1815   : > { %13684 = vmatpush3.bf16.msra.mxu0 %v7760_v62 }
0x1816   : > { %v14525_v6 = vpop.eup %14524  ;;  %13685 = vmatprep.subr.bf16.mxu0 %v7762_v50 }
0x1817   : > { %v17193_v15 = vmul.f32 %v14525_v6, %v14513_v60  ;;  %v14527_v17 = vpop.eup %14526 }
0x1818   : > { %v14529_v60 = vpop.eup %14528  ;;  %v17208_v5 = vmul.f32 %v14527_v17, %v17168_v14 }
0x1819   : > { %18325 = vst [vmem:[#allocation73_spill] sm:$0xff] %v17193_v15  ;;  %13686 = vmatpush3.bf16.msra.mxu0 %v7762_v50  ;;  %v7753_v48 = vpack.c.bf16 %v17193_v15, %v17199_v32  ;;  %v17211_v7 = vmul.f32 %v14529_v60, %v17160_v30  ;;  %v8701_v15 = vld [vmem:[#allocation10 + $0x14] sm:$0xf] }
0x181a   : > { %13695 = vmatprep.subr.bf16.mxu0 %v14112_v25  ;;  %18328 = vst [vmem:[#allocation76_spill] sm:$0xff] %v17208_v5 }
0x181b   : > { %18329 = vst [vmem:[#allocation77_spill] sm:$0xff] %v17211_v7  ;;  %v7754_v24 = vpack.c.bf16 %v17208_v5, %v17211_v7 }
0x181c   : > { %13688 = vmatmul.mubr.msk.bf16.vlgmr.msra.gmra.mrb[216].mxu0 %vm1008_vm1, %v7752_v11 }
0x181d   : > { %13691 = vmatprep.mubr.msk.bf16.mxu0 %vm1008_vm1, %v7753_v48  ;;  %13696 = vmatpush3.bf16.msra.mxu0 %v14112_v25 }
0x181e   : > { %13697 = vmatprep.subr.bf16.mxu0 %v14113_v19 }
0x1821   : > { %13698 = vmatpush3.bf16.msra.mxu0 %v14113_v19 }
0x1824   : > { %13692 = vmatmul.mubr.msk.bf16.gmra.mrb[220].mxu0 %vm1008_vm1, %v7754_v24 }
0x18ef   : > { %v13689_v63 = vpop.f32.mrb[216].mxu0 }
0x18f0   : > { %v7813_v20 = vpop.f32.mrb[217].mxu0 }
0x18f1   : > { %v13690_v12 = vpop.f32.mrb[218].mxu0 }
0x18f2   : > { %v7845_v13 = vpack.c.bf16 %v13690_v12, %v13689_v63  ;;  %v7816_v39 = vpop.f32.mrb[219].mxu0 }
0x18f3   : > { %v7844_v4 = vpack.c.bf16 %v7816_v39, %v7813_v20 }
0x18f5   : > { %13699 = vmatprep.mubr.msk.bf16.mxu0 %vm910_vm0, %v7844_v4 }
0x18f6   : > { %13700 = vmatmul.mubr.msk.bf16.vlgmr.msra.gmra.mrb[200].mxu0 %vm910_vm0, %v7845_v13 }
0x18f7   : > { %v13693_v14 = vpop.f32.mrb[220].mxu0 }
0x18f8   : > { %v7829_v47 = vpop.f32.mrb[221].mxu0 }
0x18f9   : > { %v13694_v30 = vpop.f32.mrb[222].mxu0 }
0x18fa   : > { %v7847_v62 = vpack.c.bf16 %v13694_v30, %v13693_v14  ;;  %v7832_v61 = vpop.f32.mrb[223].mxu0 }
0x18fb   : > { %v7846_v37 = vpack.c.bf16 %v7832_v61, %v7829_v47 }
0x18fd   : > { %13703 = vmatprep.mubr.msk.bf16.mxu0 %vm910_vm0, %v7846_v37  ;;  %v8195_v37 = vld [vmem:[#allocation8 + $0x400] sm:$0xff] }
0x18fe   : > { %13704 = vmatmul.mubr.msk.bf16.gmra.mrb[204].mxu0 %vm910_vm0, %v7847_v62 }
0x18ff   : > { %8515 = vmatprep.mubr.bf16.mxu0 %v18296_v8 }
0x19c9   : > { %v13701_v36 = vpop.f32.mrb[200].mxu0 }
0x19ca   : > { %v7910_v50 = vpop.f32.mrb[201].mxu0  ;;  %v8056_v19 = vadd.f32 %v13701_v36, %v12189_v58  ;;  %v8197_v36 = vld [vmem:[#allocation8 + $0x440] sm:$0xff] }
0x19cb   : > { %v8054_v6 = vadd.f32 %v12189_v58, %v7910_v50  ;;  %v13702_v25 = vpop.f32.mrb[202].mxu0  ;;  %v12194_v50 = vcombine.low %v8195_v37, %v8197_v36 }
0x19cc   : > { %v7913_v11 = vpop.f32.mrb[203].mxu0  ;;  %v8064_v24 = vadd.f32 %v8056_v19, %v16487_v45  ;;  %v8057_v63 = vadd.f32 %v13702_v25, %v12189_v58  ;;  %v8198_v25 = vld [vmem:[#allocation8 + $0x448] sm:$0xff] }
0x19cd   : > { %v8062_v17 = vadd.f32 %v8054_v6, %v16478_v26  ;;  %v8055_v48 = vadd.f32 %v12189_v58, %v7913_v11  ;;  %v12195_v6 = vcombine.high %v8195_v37, %v8197_v36  ;;  %v8199_v11 = vld [vmem:[#allocation8 + $0x480] sm:$0xff] }
0x19ce   : > { %v8065_v4 = vadd.f32 %v8057_v63, %v16489_v41  ;;  %v8196_v41 = vld [vmem:[#allocation8 + $0x408] sm:$0xff] }
0x19cf   : > { %v8063_v60 = vadd.f32 %v8055_v48, %v16480_v18  ;;  %8074 = vadd.xlane.f32.xlu0 %v8062_v17  ;;  %v12196_v19 = vcombine.low %v8196_v41, %v8198_v25  ;;  %v8202_v63 = vld [vmem:[#allocation8 + $0x4c8] sm:$0xff]  ;;  %8410 = vmatprep.subr.bf16.mxu1 %v12195_v6 }
0x19d0   : > { %8411 = vmatpush1.bf16.msra.mxu1 %v12194_v50 }
0x19d1   : > { %8076 = vadd.xlane.f32.xlu1 %v8063_v60  ;;  %v13705_v20 = vpop.f32.mrb[204].mxu0 }
0x19d2   : > { %v7926_v12 = vpop.f32.mrb[205].mxu0  ;;  %v8060_v62 = vadd.f32 %v13705_v20, %v12189_v58 }
0x19d3   : > { %8078 = vadd.xlane.f32.xlu0 %v8064_v24  ;;  %v13706_v13 = vpop.f32.mrb[206].mxu0  ;;  %v8058_v14 = vadd.f32 %v12189_v58, %v7926_v12 }
0x19d4   : > { %v7929_v39 = vpop.f32.mrb[207].mxu0  ;;  %v8061_v30 = vadd.f32 %v13706_v13, %v12189_v58  ;;  %v8068_v61 = vadd.f32 %v8060_v62, %v16505_v38 }
0x19d5   : > { %v8059_v47 = vadd.f32 %v12189_v58, %v7929_v39  ;;  %v8066_v18 = vadd.f32 %v8058_v14, %v16496_v27  ;;  %v12197_v58 = vcombine.high %v8196_v41, %v8198_v25  ;;  %v8200_v27 = vld [vmem:[#allocation8 + $0x488] sm:$0xff] }
0x19d6   : > { %v8069_v45 = vadd.f32 %v8061_v30, %v16507_v23  ;;  %v12201_v23 = vcombine.high %v8200_v27, %v8202_v63  ;;  %v12200_v20 = vcombine.low %v8200_v27, %v8202_v63 }
0x19d7   : > { %v8067_v26 = vadd.f32 %v8059_v47, %v16498_v22  ;;  %8080 = vadd.xlane.f32.xlu0 %v8065_v4  ;;  %v8201_v22 = vld [vmem:[#allocation8 + $0x4c0] sm:$0xff]  ;;  %8483 = vmatprep.subr.bf16.mxu0 %v12197_v58 }
0x19d8   : > { %v12199_v48 = vcombine.high %v8199_v11, %v8201_v22  ;;  %v12198_v38 = vcombine.low %v8199_v11, %v8201_v22  ;;  %8484 = vmatpush1.bf16.msra.mxu0 %v12196_v19 }
0x19d9   : > { %8084 = vadd.xlane.f32.xlu1 %v8067_v26  ;;  %8485 = vmatprep.subr.bf16.mxu0 %v12201_v23 }
0x19da   : > { %8412 = vmatprep.subr.bf16.mxu1 %v12199_v48 }
0x19db   : > { %8082 = vadd.xlane.f32.xlu0 %v8066_v18  ;;  %8413 = vmatpush1.bf16.msra.mxu1 %v12198_v38 }
0x19dc   : > { %8486 = vmatpush1.bf16.msra.mxu0 %v12200_v20 }
0x19dd   : > { %8088 = vadd.xlane.f32.xlu1 %v8069_v45 }
0x19df   : > { %8086 = vadd.xlane.f32.xlu0 %v8068_v61 }
0x1a5c   : > { %v8075_v12 = vpop.xlane.xlu0 %8074 }
0x1a5d   : > { %v8090_v13 = vmul.f32 0.0078125, %v8075_v12 }
0x1a5e   : > { %v8077_v39 = vpop.xlane.xlu1 %8076 }
0x1a5f   : > { %v17232_v14 = vsub.f32 %v8062_v17, %v8090_v13  ;;  %v8091_v47 = vmul.f32 0.0078125, %v8077_v39 }
0x1a60   : > { %v8079_v30 = vpop.xlane.xlu0 %8078 }
0x1a61   : > { %v17234_v62 = vsub.f32 %v8063_v60, %v8091_v47  ;;  %v8092_v37 = vmul.f32 0.0078125, %v8079_v30  ;;  %v8106_v36 = vmul.f32 %v17232_v14, %v17232_v14  ;;  %v8203_v47 = vld [vmem:[#allocation8 + $0x500] sm:$0xff]  ;;  %v8204_v30 = vld [vmem:[#allocation8 + $0x508] sm:$0xff] }
0x1a63   : > { %v17238_v41 = vsub.f32 %v8064_v24, %v8092_v37  ;;  %8114 = vadd.xlane.f32.xlu0 %v8106_v36  ;;  %v8107_v50 = vmul.f32 %v17234_v62, %v17234_v62  ;;  %v8206_v36 = vld [vmem:[#allocation8 + $0x548] sm:$0xff] }
0x1a64   : > { %v8081_v6 = vpop.xlane.xlu0 %8080 }
0x1a65   : > { %v8093_v25 = vmul.f32 0.0078125, %v8081_v6  ;;  %8116 = vadd.xlane.f32.xlu1 %v8107_v50  ;;  %v8108_v17 = vmul.f32 %v17238_v41, %v17238_v41  ;;  %v12204_v6 = vcombine.low %v8204_v30, %v8206_v36 }
0x1a66   : > { %v8085_v11 = vpop.xlane.xlu1 %8084 }
0x1a67   : > { %v17244_v22 = vsub.f32 %v8065_v4, %v8093_v25  ;;  %v8095_v60 = vmul.f32 0.0078125, %v8085_v11  ;;  %8118 = vadd.xlane.f32.xlu0 %v8108_v17  ;;  %v12205_v25 = vcombine.high %v8204_v30, %v8206_v36  ;;  %v8209_v17 = vld [vmem:[#allocation8 + $0x5c0] sm:$0xff]  ;;  %v8208_v11 = vld [vmem:[#allocation8 + $0x588] sm:$0xff] }
0x1a68   : > { %v8083_v19 = vpop.xlane.xlu0 %8082  ;;  %v8217_v30 = vld [vmem:[#allocation8 + $0x6c0] sm:$0xff] }
0x1a69   : > { %v17246_v58 = vsub.f32 %v8067_v26, %v8095_v60  ;;  %v8094_v24 = vmul.f32 0.0078125, %v8083_v19  ;;  %v8109_v48 = vmul.f32 %v17244_v22, %v17244_v22  ;;  %8487 = vmatprep.subr.bf16.mxu0 %v12205_v25  ;;  %v8210_v19 = vld [vmem:[#allocation8 + $0x5c8] sm:$0xff] }
0x1a6a   : > { %v8089_v27 = vpop.xlane.xlu1 %8088  ;;  %8488 = vmatpush1.bf16.msra.mxu0 %v12204_v6 }
0x1a6b   : > { %v17250_v63 = vsub.f32 %v8066_v18, %v8094_v24  ;;  %v8097_v23 = vmul.f32 0.0078125, %v8089_v27  ;;  %8120 = vadd.xlane.f32.xlu1 %v8109_v48  ;;  %v8111_v26 = vmul.f32 %v17246_v58, %v17246_v58  ;;  %v12208_v48 = vcombine.low %v8208_v11, %v8210_v19 }
0x1a6c   : > { %v8087_v38 = vpop.xlane.xlu0 %8086  ;;  %v12209_v27 = vcombine.high %v8208_v11, %v8210_v19  ;;  %v8221_v11 = vld [vmem:[#allocation8 + $0x740] sm:$0xff] }
0x1a6d   : > { %v17252_v20 = vsub.f32 %v8069_v45, %v8097_v23  ;;  %v8096_v12 = vmul.f32 0.0078125, %v8087_v38  ;;  %v8110_v4 = vmul.f32 %v17250_v63, %v17250_v63  ;;  %v8205_v45 = vld [vmem:[#allocation8 + $0x540] sm:$0xff] }
0x1a6e   : > { %v12203_v37 = vcombine.high %v8203_v47, %v8205_v45  ;;  %v12202_v50 = vcombine.low %v8203_v47, %v8205_v45  ;;  %8489 = vmatprep.subr.bf16.mxu0 %v12209_v27  ;;  %v8211_v23 = vld [vmem:[#allocation8 + $0x600] sm:$0xff] }
0x1a6f   : > { %v17258_v13 = vsub.f32 %v8068_v61, %v8096_v12  ;;  %8122 = vadd.xlane.f32.xlu0 %v8110_v4  ;;  %8124 = vadd.xlane.f32.xlu1 %v8111_v26  ;;  %v8113_v39 = vmul.f32 %v17252_v20, %v17252_v20  ;;  %v8207_v61 = vld [vmem:[#allocation8 + $0x580] sm:$0xff]  ;;  %v8212_v12 = vld [vmem:[#allocation8 + $0x608] sm:$0xff] }
0x1a70   : > { %8414 = vmatprep.subr.bf16.mxu1 %v12203_v37  ;;  %v12207_v60 = vcombine.high %v8207_v61, %v8209_v17  ;;  %v12206_v24 = vcombine.low %v8207_v61, %v8209_v17  ;;  %v8213_v38 = vld [vmem:[#allocation8 + $0x640] sm:$0xff]  ;;  %8490 = vmatpush1.bf16.msra.mxu0 %v12208_v48  ;;  %v8214_v26 = vld [vmem:[#allocation8 + $0x648] sm:$0xff] }
0x1a71   : > { %v8112_v18 = vmul.f32 %v17258_v13, %v17258_v13  ;;  %8415 = vmatpush1.bf16.msra.mxu1 %v12202_v50  ;;  %v12211_v4 = vcombine.high %v8211_v23, %v8213_v38  ;;  %v12213_v47 = vcombine.high %v8212_v12, %v8214_v26  ;;  %v8215_v45 = vld [vmem:[#allocation8 + $0x680] sm:$0xff]  ;;  %v8216_v37 = vld [vmem:[#allocation8 + $0x688] sm:$0xff] }
0x1a72   : > { %8416 = vmatprep.subr.bf16.mxu1 %v12207_v60  ;;  %v12215_v36 = vcombine.high %v8215_v45, %v8217_v30  ;;  %v8218_v50 = vld [vmem:[#allocation8 + $0x6c8] sm:$0xff]  ;;  %v12214_v6 = vcombine.low %v8215_v45, %v8217_v30  ;;  %v8219_v17 = vld [vmem:[#allocation8 + $0x700] sm:$0xff] }
0x1a73   : > { %8126 = vadd.xlane.f32.xlu0 %v8112_v18  ;;  %8128 = vadd.xlane.f32.xlu1 %v8113_v39  ;;  %v12210_v18 = vcombine.low %v8211_v23, %v8213_v38  ;;  %v12212_v39 = vcombine.low %v8212_v12, %v8214_v26  ;;  %v12216_v25 = vcombine.low %v8216_v37, %v8218_v50  ;;  %v8220_v60 = vld [vmem:[#allocation8 + $0x708] sm:$0xff]  ;;  %v18330_v38 = vld [vmem:[#allocation32_spill] sm:$0xff]  ;;  %v8223_v12 = vld [vmem:[#allocation8 + $0x780] sm:$0xff] }
0x1a74   : > { %8491 = vmatprep.subr.bf16.mxu0 %v12213_v47  ;;  %v12217_v61 = vcombine.high %v8216_v37, %v8218_v50  ;;  %v12219_v19 = vcombine.high %v8219_v17, %v8221_v11  ;;  %v12218_v48 = vcombine.low %v8219_v17, %v8221_v11  ;;  %v8224_v26 = vld [vmem:[#allocation8 + $0x788] sm:$0xff]  ;;  %v18331_v37 = vld [vmem:[#allocation33_spill] sm:$0xff]  ;;  %v17270_v50 = vld [vmem:[#allocation8 + $0x410] sm:$0xff] }
0x1a75   : > { %8417 = vmatpush1.bf16.msra.mxu1 %v12206_v24  ;;  %8492 = vmatpush1.bf16.msra.mxu0 %v12212_v39  ;;  %v8222_v24 = vld [vmem:[#allocation8 + $0x748] sm:$0xff]  ;;  %v17278_v17 = vld [vmem:[#allocation8 + $0x458] sm:$0xff] }
0x1a76   : > { %8418 = vmatprep.subr.bf16.mxu1 %v12211_v4  ;;  %8493 = vmatprep.subr.bf16.mxu0 %v12217_v61  ;;  %v12220_v27 = vcombine.low %v8220_v60, %v8222_v24  ;;  %v12221_v23 = vcombine.high %v8220_v60, %v8222_v24  ;;  %v8225_v4 = vld [vmem:[#allocation8 + $0x7c0] sm:$0xff]  ;;  %v8226_v39 = vld [vmem:[#allocation8 + $0x7c8] sm:$0xff] }
0x1a77   : > { %v12222_v47 = vcombine.low %v8223_v12, %v8225_v4  ;;  %v12224_v45 = vcombine.low %v8224_v26, %v8226_v39  ;;  %v12225_v30 = vcombine.high %v8224_v26, %v8226_v39  ;;  %v18333_v24 = vld [vmem:[#allocation30_spill] sm:$0xff]  ;;  %v18342_v39 = vld [vmem:[#allocation51_spill] sm:$0xff] }
0x1a78   : > { %v18340_v26 = vld [vmem:[#allocation50_spill] sm:$0xff] }
0x1a79   : > { %8419 = vmatpush1.bf16.msra.mxu1 %v12210_v18  ;;  %8494 = vmatpush1.bf16.msra.mxu0 %v12216_v25  ;;  %v12223_v18 = vcombine.high %v8223_v12, %v8225_v4  ;;  %v17274_v25 = vld [vmem:[#allocation8 + $0x418] sm:$0xff]  ;;  %v18338_v12 = vld [vmem:[#allocation47_spill] sm:$0xff]  ;;  %v18339_v4 = vld [vmem:[#allocation46_spill] sm:$0xff] }
0x1a7a   : > { %8420 = vmatprep.subr.bf16.mxu1 %v12215_v36  ;;  %8495 = vmatprep.subr.bf16.mxu0 %v12221_v23  ;;  %v18332_v36 = vld [vmem:[#allocation31_spill] sm:$0xff]  ;;  %v18336_v23 = vld [vmem:[#allocation37_spill] sm:$0xff] }
0x1a7d   : > { %8421 = vmatpush1.bf16.msra.mxu1 %v12214_v6  ;;  %8496 = vmatpush1.bf16.msra.mxu0 %v12220_v27  ;;  %v17272_v6 = vld [vmem:[#allocation8 + $0x450] sm:$0xff] }
0x1a7e   : > { %8422 = vmatprep.subr.bf16.mxu1 %v12219_v19  ;;  %8497 = vmatprep.subr.bf16.mxu0 %v12225_v30  ;;  %v12227_v61 = vcombine.high %v17270_v50, %v17272_v6  ;;  %v12226_v11 = vcombine.low %v17270_v50, %v17272_v6  ;;  %v12229_v19 = vcombine.high %v17274_v25, %v17278_v17  ;;  %v18335_v27 = vld [vmem:[#allocation36_spill] sm:$0xff] }
0x1a7f   : > { %v18345_v30 = vld [vmem:[#allocation52_spill] sm:$0xff] }
0x1a81   : > { %8423 = vmatpush1.bf16.msra.mxu1 %v12218_v48  ;;  %8498 = vmatpush1.bf16.msra.mxu0 %v12224_v45  ;;  %v18334_v48 = vld [vmem:[#allocation35_spill] sm:$0xff]  ;;  %v18344_v45 = vld [vmem:[#allocation53_spill] sm:$0xff] }
0x1a82   : > { %8424 = vmatprep.subr.bf16.mxu1 %v12223_v18  ;;  %8956 = vmatprep.subr.bf16.mxu0 %v12229_v19  ;;  %v18341_v18 = vld [vmem:[#allocation48_spill] sm:$0xff] }
0x1a84   : > { %2486 = vrot.lane.b32.xlu1 %v18330_v38, %s14869_s14  ;;  %v18337_v38 = vld [vmem:[#allocation34_spill] sm:$0xff] }
0x1a85   : > { %8425 = vmatpush1.bf16.msra.mxu1 %v12222_v47  ;;  %v18343_v47 = vld [vmem:[#allocation49_spill] sm:$0xff] }
0x1a86   : > { %8883 = vmatprep.subr.bf16.mxu1 %v12227_v61 }
0x1a88   : > { %2488 = vrot.lane.b32.xlu1 %v18331_v37, %s14869_s14 }
0x1a89   : > { %2484 = vrot.lane.b32.xlu0 %v18332_v36, %s14869_s14 }
0x1a8c   : > { %2490 = vrot.lane.b32.xlu1 %v18333_v24, %s14869_s14 }
0x1a8d   : > { %2492 = vrot.lane.b32.xlu0 %v18334_v48, %s14869_s14 }
0x1a90   : > { %2494 = vrot.lane.b32.xlu1 %v18335_v27, %s14869_s14 }
0x1a91   : > { %2496 = vrot.lane.b32.xlu0 %v18336_v23, %s14869_s14 }
0x1a94   : > { %2498 = vrot.lane.b32.xlu1 %v18337_v38, %s14869_s14 }
0x1a95   : > { %2516 = vrot.lane.b32.xlu0 %v18338_v12, %s14869_s14 }
0x1a98   : > { %2518 = vrot.lane.b32.xlu1 %v18339_v4, %s14869_s14 }
0x1a99   : > { %2520 = vrot.lane.b32.xlu0 %v18340_v26, %s14869_s14 }
0x1a9c   : > { %2522 = vrot.lane.b32.xlu1 %v18341_v18, %s14869_s14 }
0x1a9d   : > { %2524 = vrot.lane.b32.xlu0 %v18342_v39, %s14869_s14  ;;  %v17323_v39 = vld [vmem:[%s18146_s5 + $0x1] ss:$0 sm:$0xff] }
0x1aa0   : > { %2526 = vrot.lane.b32.xlu1 %v18343_v47, %s14869_s14 }
0x1aa1   : > { %2528 = vrot.lane.b32.xlu0 %v18344_v45, %s14869_s14 }
0x1aa4   : > { %2530 = vrot.lane.b32.xlu1 %v18345_v30, %s14869_s14 }
0x1aa5   : > { %7957 = vrot.lane.b32.xlu0 %v16920_v53, %s14869_s14 }
0x1aa8   : > { %7959 = vrot.lane.b32.xlu1 %v16923_v2, %s14869_s14 }
0x1aa9   : > { %7961 = vrot.lane.b32.xlu0 %v16932_v35, %s14869_s14 }
0x1aac   : > { %7963 = vrot.lane.b32.xlu1 %v16935_v51, %s14869_s14 }
0x1af0   : > { %v8115_v37 = vpop.xlane.xlu0 %8114 }
0x1af1   : > { %v8130_v36 = vmul.f32 0.0078125, %v8115_v37 }
0x1af2   : > { %v8117_v61 = vpop.xlane.xlu1 %8116 }
0x1af3   : > { %v8138_v19 = vadd.f32 1e-05, %v8130_v36  ;;  %v8131_v24 = vmul.f32 0.0078125, %v8117_v61 }
0x1af4   : > { %v8119_v48 = vpop.xlane.xlu0 %8118 }
0x1af5   : > { %14530 = vrsqrt.f32 %v8138_v19  ;;  %v8139_v27 = vadd.f32 1e-05, %v8131_v24  ;;  %v8132_v23 = vmul.f32 0.0078125, %v8119_v48  ;;  %v17330_v48 = vld [vmem:[%s18293_s20 + $0x1] ss:$0 sm:$0xff] }
0x1af7   : > { %14532 = vrsqrt.f32 %v8139_v27  ;;  %v8140_v53 = vadd.f32 1e-05, %v8132_v23 }
0x1af8   : > { %v8121_v38 = vpop.xlane.xlu1 %8120 }
0x1af9   : > { %14534 = vrsqrt.f32 %v8140_v53  ;;  %v8133_v2 = vmul.f32 0.0078125, %v8121_v38 }
0x1afb   : > { %v8141_v12 = vadd.f32 1e-05, %v8133_v2 }
0x1afc   : > { %v8123_v35 = vpop.xlane.xlu0 %8122  ;;  %v8125_v4 = vpop.xlane.xlu1 %8124 }
0x1afd   : > { %14536 = vrsqrt.f32 %v8141_v12  ;;  %v8134_v51 = vmul.f32 0.0078125, %v8123_v35  ;;  %v8135_v26 = vmul.f32 0.0078125, %v8125_v4  ;;  %v8673_v4 = vld [vmem:[#allocation8 + $0x490] sm:$0xff] }
0x1aff   : > { %v14531_v18 = vpop.eup %14530  ;;  %v8142_v47 = vadd.f32 1e-05, %v8134_v51  ;;  %v8143_v45 = vadd.f32 1e-05, %v8135_v26  ;;  %v18346_v51 = vld [vmem:[#allocation23_spill] sm:$0xff] }
0x1b00   : > { %v8154_v30 = vmul.f32 %v14531_v18, %v17232_v14  ;;  %v8127_v37 = vpop.xlane.xlu0 %8126  ;;  %v8129_v36 = vpop.xlane.xlu1 %8128  ;;  %v18347_v18 = vld [vmem:[#allocation24_spill] sm:$0xff] }
0x1b01   : > { %v14533_v61 = vpop.eup %14532  ;;  %14538 = vrsqrt.f32 %v8142_v47  ;;  %v8136_v19 = vmul.f32 0.0078125, %v8127_v37  ;;  %v8137_v24 = vmul.f32 0.0078125, %v8129_v36  ;;  %v8675_v37 = vld [vmem:[#allocation8 + $0x4d0] sm:$0xff]  ;;  %v8674_v36 = vld [vmem:[#allocation8 + $0x498] sm:$0xff] }
0x1b02   : > { %v8168_v27 = vmul.f32 %v17323_v39, %v8154_v30  ;;  %v8155_v23 = vmul.f32 %v14533_v61, %v17234_v62  ;;  %14540 = vrsqrt.f32 %v8143_v45  ;;  %v8676_v30 = vld [vmem:[#allocation8 + $0x4d8] sm:$0xff] }
0x1b03   : > { %v14535_v53 = vpop.eup %14534  ;;  %v8144_v38 = vadd.f32 1e-05, %v8136_v19  ;;  %v8145_v14 = vadd.f32 1e-05, %v8137_v24 }
0x1b04   : > { %v8169_v2 = vmul.f32 %v17323_v39, %v8155_v23  ;;  %v2485_v12 = vpop.permute.xlu0 %2484  ;;  %v2487_v35 = vpop.permute.xlu1 %2486  ;;  %v17340_v62 = vadd.f32 %v17330_v48, %v8168_v27  ;;  %v8156_v61 = vmul.f32 %v14535_v53, %v17238_v41  ;;  %v12231_v41 = vcombine.high %v8673_v4, %v8675_v37 }
0x1b05   : > { %v2540_v26 = vsel %vm1008_vm1, %v18346_v51, %v2485_v12  ;;  %v2541_v47 = vsel %vm1008_vm1, %v18347_v18, %v2487_v35  ;;  %14542 = vrsqrt.f32 %v8144_v38  ;;  %v12233_v53 = vcombine.high %v8674_v36, %v8676_v30  ;;  %v17355_v38 = vld [vmem:[#allocation8 + $0x510] sm:$0xff]  ;;  %v18348_v35 = vld [vmem:[#allocation27_spill] sm:$0xff]  ;;  %v17363_v18 = vld [vmem:[#allocation8 + $0x518] sm:$0xff] }
0x1b06   : > { %v17343_v45 = vadd.f32 %v17330_v48, %v8169_v2  ;;  %2556 = vst [vmem:[%s17346_s12] sm:$0xff] %v2540_v26  ;;  %2558 = vst [vmem:[%s17346_s12 + $0x10] sm:$0xff] %v2541_v47  ;;  %14544 = vrsqrt.f32 %v8145_v14  ;;  %v17357_v12 = vld [vmem:[#allocation8 + $0x550] sm:$0xff]  ;;  %v18349_v26 = vld [vmem:[#allocation25_spill] sm:$0xff]  ;;  %v8170_v60 = vmul.f32 %v17323_v39, %v8156_v61 }
0x1b07   : > { %v14537_v19 = vpop.eup %14536  ;;  %v8680_v47 = vld [vmem:[#allocation8 + $0x558] sm:$0xff]  ;;  %v12235_v61 = vcombine.high %v17355_v38, %v17357_v12 }
0x1b08   : > { %v17352_v24 = vpack.c.bf16 %v17343_v45, %v17340_v62  ;;  %v8157_v27 = vmul.f32 %v14537_v19, %v17244_v22  ;;  %v2493_v23 = vpop.permute.xlu0 %2492  ;;  %v2489_v2 = vpop.permute.xlu1 %2488  ;;  %v12237_v6 = vcombine.high %v17363_v18, %v8680_v47 }
0x1b09   : > { %v2544_v51 = vsel %vm1008_vm1, %v18348_v35, %v2493_v23  ;;  %v2542_v14 = vsel %vm1008_vm1, %v18349_v26, %v2489_v2  ;;  %v18350_v23 = vcombine.low %v17274_v25, %v17278_v17  ;;  %v12230_v2 = vcombine.low %v8673_v4, %v8675_v37  ;;  %v8681_v25 = vld [vmem:[#allocation8 + $0x590] sm:$0xff]  ;;  %v18351_v4 = vld [vmem:[#allocation29_spill] sm:$0xff] }
0x1b0a   : > { %v8171_v22 = vmul.f32 %v17323_v39, %v8157_v27  ;;  %2564 = vst [vmem:[%s17346_s12 + $0x40] sm:$0xff] %v2544_v51  ;;  %2560 = vst [vmem:[%s17346_s12 + $0x20] sm:$0xff] %v2542_v14  ;;  %8443 = vmatmul.mubr.bf16.vlgmr.msra.gmra.mrb[224].mxu1 %v17352_v24  ;;  %8516 = vmatmul.mubr.bf16.vlgmr.msra.gmra.mrb[224].mxu0 %v17352_v24  ;;  %v12232_v35 = vcombine.low %v8674_v36, %v8676_v30  ;;  %v8683_v17 = vld [vmem:[#allocation8 + $0x5d0] sm:$0xff]  ;;  %v18352_v36 = vld [vmem:[#allocation22_spill] sm:$0xff] }
0x1b0b   : > { %v14539_v19 = vpop.eup %14538  ;;  %8884 = vmatpush1.bf16.msra.mxu1 %v12226_v11  ;;  %8957 = vmatpush1.bf16.msra.mxu0 %v18350_v23  ;;  %v12239_v23 = vcombine.high %v8681_v25, %v8683_v17 }
0x1b0c   : > { %v14541_v27 = vpop.eup %14540  ;;  %v17380_v51 = vadd.f32 %v17330_v48, %v8171_v22  ;;  %v8158_v26 = vmul.f32 %v14539_v19, %v17250_v63  ;;  %v2497_v14 = vpop.permute.xlu0 %2496  ;;  %8885 = vmatprep.subr.bf16.mxu1 %v12231_v41  ;;  %8958 = vmatprep.subr.bf16.mxu0 %v12233_v53  ;;  %v8682_v63 = vld [vmem:[#allocation8 + $0x598] sm:$0xff]  ;;  %v17392_v41 = vadd.f32 %v17330_v48, %v8170_v60 }
0x1b0d   : > { %v2491_v50 = vpop.permute.xlu1 %2490  ;;  %v8159_v11 = vmul.f32 %v14541_v27, %v17246_v58  ;;  %v2546_v37 = vsel %vm1008_vm1, %v18351_v4, %v2497_v14  ;;  %8452 = vmatprep.mubr.bf16.mxu1 %v18296_v8  ;;  %8525 = vmatprep.mubr.bf16.mxu0 %v18296_v8  ;;  %v8684_v22 = vld [vmem:[#allocation8 + $0x5d8] sm:$0xff]  ;;  %v12234_v58 = vcombine.low %v17355_v38, %v17357_v12  ;;  %v17400_v27 = vld [vmem:[#allocation8 + $0x610] sm:$0xff] }
0x1b0e   : > { %v2543_v30 = vsel %vm1008_vm1, %v18352_v36, %v2491_v50  ;;  %2568 = vst [vmem:[%s17346_s12 + $0x60] sm:$0xff] %v2546_v37  ;;  %v8172_v53 = vmul.f32 %v17323_v39, %v8158_v26  ;;  %v12236_v19 = vcombine.low %v17363_v18, %v8680_v47  ;;  %v17404_v60 = vpack.c.bf16 %v17380_v51, %v17392_v41  ;;  %v8688_v18 = vld [vmem:[#allocation8 + $0x658] sm:$0xff]  ;;  %v18353_v26 = vld [vmem:[#allocation38_spill] sm:$0xff]  ;;  %v18354_v36 = vld [vmem:[#allocation28_spill] sm:$0xff] }
0x1b0f   : > { %2562 = vst [vmem:[%s17346_s12 + $0x30] sm:$0xff] %v2543_v30  ;;  %8886 = vmatpush1.bf16.msra.mxu1 %v12230_v2  ;;  %8959 = vmatpush1.bf16.msra.mxu0 %v12232_v35  ;;  %v14543_v14 = vpop.eup %14542  ;;  %v8173_v50 = vmul.f32 %v17323_v39, %v8159_v11  ;;  %v12241_v12 = vcombine.high %v8682_v63, %v8684_v22  ;;  %v8687_v2 = vld [vmem:[#allocation8 + $0x650] sm:$0xff]  ;;  %v8686_v35 = vld [vmem:[#allocation8 + $0x618] sm:$0xff] }
0x1b10   : > { %v2517_v4 = vpop.permute.xlu0 %2516  ;;  %8887 = vmatprep.subr.bf16.mxu1 %v12235_v61  ;;  %8960 = vmatprep.subr.bf16.mxu0 %v12237_v6  ;;  %v14545_v47 = vpop.eup %14544  ;;  %v12238_v11 = vcombine.low %v8681_v25, %v8683_v17  ;;  %v12240_v61 = vcombine.low %v8682_v63, %v8684_v22  ;;  %v17416_v6 = vadd.f32 %v17330_v48, %v8172_v53  ;;  %v8691_v63 = vld [vmem:[#allocation8 + $0x6d0] sm:$0xff]  ;;  %v8690_v22 = vld [vmem:[#allocation8 + $0x698] sm:$0xff] }
0x1b11   : > { %v2495_v38 = vpop.permute.xlu1 %2494  ;;  %v2548_v37 = vsel %vm1008_vm1, %v18353_v26, %v2517_v4  ;;  %v12243_v42 = vcombine.high %v17400_v27, %v8687_v2  ;;  %v12245_v34 = vcombine.high %v8686_v35, %v8688_v18  ;;  %v8689_v4 = vld [vmem:[#allocation8 + $0x690] sm:$0xff]  ;;  %v8160_v26 = vmul.f32 %v14543_v14, %v17258_v13  ;;  %v18355_v53 = vld [vmem:[#allocation41_spill] sm:$0xff] }
0x1b12   : > { %v2545_v30 = vsel %vm1008_vm1, %v18354_v36, %v2495_v38  ;;  %2557 = vst [vmem:[%s17346_s12 + $0x8] sm:$0xff] %v2548_v37  ;;  %8453 = vmatmul.mubr.bf16.gmra.mrb[228].mxu1 %v17404_v60  ;;  %8526 = vmatmul.mubr.bf16.gmra.mrb[228].mxu0 %v17404_v60  ;;  %v17420_v38 = vadd.f32 %v17330_v48, %v8173_v50  ;;  %v18356_v36 = vld [vmem:[#allocation26_spill] sm:$0xff] }
0x1b13   : > { %2566 = vst [vmem:[%s17346_s12 + $0x50] sm:$0xff] %v2545_v30  ;;  %8888 = vmatpush1.bf16.msra.mxu1 %v12234_v58  ;;  %8961 = vmatpush1.bf16.msra.mxu0 %v12236_v19  ;;  %v8161_v37 = vmul.f32 %v14545_v47, %v17252_v20  ;;  %v8692_v58 = vld [vmem:[#allocation8 + $0x6d8] sm:$0xff]  ;;  %v12242_v20 = vcombine.low %v17400_v27, %v8687_v2  ;;  %v8693_v27 = vld [vmem:[#allocation8 + $0x710] sm:$0xff] }
0x1b14   : > { %v2521_v25 = vpop.permute.xlu0 %2520  ;;  %8889 = vmatprep.subr.bf16.mxu1 %v12239_v23  ;;  %8962 = vmatprep.subr.bf16.mxu0 %v12241_v12  ;;  %v12244_v13 = vcombine.low %v8686_v35, %v8688_v18  ;;  %v12247_v23 = vcombine.high %v8689_v4, %v8691_v63  ;;  %v12249_v14 = vcombine.high %v8690_v22, %v8692_v58  ;;  %v8695_v2 = vld [vmem:[#allocation8 + $0x750] sm:$0xff]  ;;  %v18358_v18 = vld [vmem:[#allocation39_spill] sm:$0xff] }
0x1b15   : > { %v2499_v17 = vpop.permute.xlu1 %2498  ;;  %v2550_v19 = vsel %vm1008_vm1, %v18355_v53, %v2521_v25  ;;  %8462 = vmatprep.mubr.bf16.mxu1 %v18296_v8  ;;  %8535 = vmatprep.mubr.bf16.mxu0 %v18296_v8  ;;  %v17435_v50 = vpack.c.bf16 %v17420_v38, %v17416_v6  ;;  %v8174_v12 = vmul.f32 %v17323_v39, %v8160_v26  ;;  %v8694_v53 = vld [vmem:[#allocation8 + $0x718] sm:$0xff] }
0x1b16   : > { %v2547_v30 = vsel %vm1008_vm1, %v18356_v36, %v2499_v17  ;;  %2561 = vst [vmem:[%s17346_s12 + $0x28] sm:$0xff] %v2550_v19  ;;  %v8175_v47 = vmul.f32 %v17323_v39, %v8161_v37  ;;  %v8696_v19 = vld [vmem:[#allocation8 + $0x758] sm:$0xff]  ;;  %v12251_v39 = vcombine.high %v8693_v27, %v8695_v2 }
0x1b17   : > { %2570 = vst [vmem:[%s17346_s12 + $0x70] sm:$0xff] %v2547_v30  ;;  %8890 = vmatpush1.bf16.msra.mxu1 %v12238_v11  ;;  %8963 = vmatpush1.bf16.msra.mxu0 %v12240_v61  ;;  %v18357_v11 = vld [vmem:[#allocation43_spill] sm:$0xff]  ;;  %v17448_v26 = vadd.f32 %v17330_v48, %v8174_v12 }
0x1b18   : > { %v2525_v25 = vpop.permute.xlu0 %2524  ;;  %8891 = vmatprep.subr.bf16.mxu1 %v12243_v42  ;;  %8964 = vmatprep.subr.bf16.mxu0 %v12245_v34  ;;  %v12246_v42 = vcombine.low %v8689_v4, %v8691_v63  ;;  %v12248_v34 = vcombine.low %v8690_v22, %v8692_v58  ;;  %v17451_v37 = vadd.f32 %v17330_v48, %v8175_v47  ;;  %v18361_v4 = vld [vmem:[#allocation40_spill] sm:$0xff]  ;;  %v8698_v58 = vld [vmem:[#allocation8 + $0x798] sm:$0xff] }
0x1b19   : > { %v2519_v17 = vpop.permute.xlu1 %2518  ;;  %v2552_v35 = vsel %vm1008_vm1, %v18357_v11, %v2525_v25  ;;  %v12253_v25 = vcombine.high %v8694_v53, %v8696_v19  ;;  %v18360_v11 = vld [vmem:[#allocation45_spill] sm:$0xff]  ;;  %v8699_v22 = vld [vmem:[#allocation8 + $0x7d0] sm:$0xff] }
0x1b1a   : > { %v2549_v61 = vsel %vm1008_vm1, %v18358_v18, %v2519_v17  ;;  %2565 = vst [vmem:[%s17346_s12 + $0x48] sm:$0xff] %v2552_v35  ;;  %8463 = vmatmul.mubr.bf16.gmra.mrb[232].mxu1 %v17435_v50  ;;  %8536 = vmatmul.mubr.bf16.gmra.mrb[232].mxu0 %v17435_v50  ;;  %18359 = vst [vmem:[#allocation32_spill] sm:$0xff] %v17451_v37  ;;  %v8697_v17 = vld [vmem:[#allocation8 + $0x790] sm:$0xff]  ;;  %v8700_v48 = vld [vmem:[#allocation8 + $0x7d8] sm:$0xff] }
0x1b1b   : > { %2559 = vst [vmem:[%s17346_s12 + $0x18] sm:$0xff] %v2549_v61  ;;  %8892 = vmatpush1.bf16.msra.mxu1 %v12242_v20  ;;  %8965 = vmatpush1.bf16.msra.mxu0 %v12244_v13  ;;  %v12250_v13 = vcombine.low %v8693_v27, %v8695_v2  ;;  %v12255_v35 = vcombine.high %v8697_v17, %v8699_v22 }
0x1b1c   : > { %v2529_v36 = vpop.permute.xlu0 %2528  ;;  %8893 = vmatprep.subr.bf16.mxu1 %v12247_v23  ;;  %8966 = vmatprep.subr.bf16.mxu0 %v12249_v14  ;;  %v12252_v23 = vcombine.low %v8694_v53, %v8696_v19  ;;  %v17463_v14 = vpack.c.bf16 %v17451_v37, %v17448_v26  ;;  %v12257_v18 = vcombine.high %v8698_v58, %v8700_v48 }
0x1b1d   : > { %v2523_v30 = vpop.permute.xlu1 %2522  ;;  %v2554_v20 = vsel %vm1008_vm1, %v18360_v11, %v2529_v36  ;;  %8472 = vmatprep.mubr.bf16.mxu1 %v18296_v8  ;;  %8545 = vmatprep.mubr.bf16.mxu0 %v18296_v8  ;;  %v18362_v36 = vld [vmem:[#allocation44_spill] sm:$0xff]  ;;  %v12254_v27 = vcombine.low %v8697_v17, %v8699_v22  ;;  %v12256_v2 = vcombine.low %v8698_v58, %v8700_v48  ;;  %v14116_v11 = vld [vmem:[#allocation11 + $0x500] sm:$0xff]   ;;  %v14120_v22 = vld [vmem:[#allocation11 + $0x508] sm:$0xff]  }
0x1b1e   : > { %v2551_v63 = vsel %vm1008_vm1, %v18361_v4, %v2523_v30  ;;  %2569 = vst [vmem:[%s17346_s12 + $0x68] sm:$0xff] %v2554_v20  ;;  %v14117_v20 = vld [vmem:[#allocation11 + $0x580] sm:$0xff]   ;;  %v14118_v4 = vld [vmem:[#allocation11 + $0x548] sm:$0xff]   ;;  %v14122_v48 = vld [vmem:[#allocation11 + $0x550] sm:$0xff]  }
0x1b1f   : > { %2563 = vst [vmem:[%s17346_s12 + $0x38] sm:$0xff] %v2551_v63  ;;  %8894 = vmatpush1.bf16.msra.mxu1 %v12246_v42  ;;  %8967 = vmatpush1.bf16.msra.mxu0 %v12248_v34  ;;  %v18363_v42 = vld [vmem:[#allocation42_spill] sm:$0xff]  ;;  %v14119_v63 = vld [vmem:[#allocation11 + $0x5c8] sm:$0xff]  }
0x1b20   : > { %v7958_v12 = vpop.permute.xlu0 %7957  ;;  %8895 = vmatprep.subr.bf16.mxu1 %v12251_v39  ;;  %8968 = vmatprep.subr.bf16.mxu0 %v12253_v25  ;;  %v14121_v58 = vld [vmem:[#allocation11 + $0x588] sm:$0xff]  }
0x1b21   : > { %v2527_v47 = vpop.permute.xlu1 %2526  ;;  %v8013_v61 = vsel %vm1008_vm1, %v16827_v46, %v7958_v12  ;;  %v14125_v12 = vld [vmem:[#allocation11 + $0x590] sm:$0xff]  }
0x1b22   : > { %v2553_v30 = vsel %vm1008_vm1, %v18362_v36, %v2527_v47  ;;  %12172 = vst [vmem:[%s17346_s12 + $0x80] sm:$0xff] %v8013_v61  ;;  %8473 = vmatmul.mubr.bf16.gmra.mrb[236].mxu1 %v17463_v14  ;;  %8546 = vmatmul.mubr.bf16.gmra.mrb[236].mxu0 %v17463_v14  ;;  %v14126_v47 = vld [vmem:[#allocation11 + $0x558] sm:$0xff]   ;;  %v14130_v36 = vld [vmem:[#allocation11 + $0x560] sm:$0xff]  }
0x1b23   : > { %2567 = vst [vmem:[%s17346_s12 + $0x58] sm:$0xff] %v2553_v30  ;;  %8896 = vmatpush1.bf16.msra.mxu1 %v12250_v13  ;;  %8969 = vmatpush1.bf16.msra.mxu0 %v12252_v23  ;;  %v14123_v13 = vld [vmem:[#allocation11 + $0x5d0] sm:$0xff]   ;;  %v14129_v61 = vld [vmem:[#allocation11 + $0x598] sm:$0xff]   ;;  %v14131_v30 = vld [vmem:[#allocation11 + $0x5e0] sm:$0xff]  }
0x1b24   : > { %v7962_v53 = vpop.permute.xlu0 %7961  ;;  %8897 = vmatprep.subr.bf16.mxu1 %v12255_v35  ;;  %8970 = vmatprep.subr.bf16.mxu0 %v12257_v18  ;;  %v14124_v23 = vld [vmem:[#allocation11 + $0x510] sm:$0xff]   ;;  %v14127_v35 = vld [vmem:[#allocation11 + $0x5d8] sm:$0xff]  }
0x1b25   : > { %v2531_v19 = vpop.permute.xlu1 %2530  ;;  %v8015_v46 = vsel %vm1008_vm1, %v16833_v55, %v7962_v53  ;;  %8915 = vmatprep.mubr.bf16.mxu1 %v18296_v8  ;;  %8988 = vmatprep.mubr.bf16.mxu0 %v18296_v8  ;;  %v14128_v18 = vld [vmem:[#allocation11 + $0x518] sm:$0xff]   ;;  %v14134_v53 = vld [vmem:[#allocation11 + $0x568] sm:$0xff]  }
0x1b26   : > { %v2555_v34 = vsel %vm1008_vm1, %v18363_v42, %v2531_v19  ;;  %12176 = vst [vmem:[%s17346_s12 + $0xa0] sm:$0xff] %v8015_v46  ;;  %v14135_v19 = vld [vmem:[#allocation11 + $0x5e8] sm:$0xff]  }
0x1b27   : > { %2571 = vst [vmem:[%s17346_s12 + $0x78] sm:$0xff] %v2555_v34  ;;  %8898 = vmatpush1.bf16.msra.mxu1 %v12254_v27  ;;  %8971 = vmatpush1.bf16.msra.mxu0 %v12256_v2  ;;  %v14132_v27 = vld [vmem:[#allocation11 + $0x520] sm:$0xff]   ;;  %v14136_v46 = vld [vmem:[#allocation11 + $0x528] sm:$0xff]   ;;  %v14138_v34 = vld [vmem:[#allocation11 + $0x570] sm:$0xff]  }
0x1b28   : > { %v14133_v2 = vld [vmem:[#allocation11 + $0x5a0] sm:$0xff]   ;;  %v14137_v42 = vld [vmem:[#allocation11 + $0x5a8] sm:$0xff]  }
0x1b29   : > { %v7960_v39 = vpop.permute.xlu1 %7959 }
0x1b2a   : > { %v8014_v25 = vsel %vm1008_vm1, %v16830_v52, %v7960_v39  ;;  %8916 = vmatmul.mubr.bf16.vlgmr.msra.gmra.mrb[240].mxu1 %v17352_v24  ;;  %8989 = vmatmul.mubr.bf16.vlgmr.msra.gmra.mrb[240].mxu0 %v17352_v24  ;;  %v14115_v52 = vld [vmem:[#allocation11 + $0x5c0] sm:$0xff]   ;;  %v14139_v39 = vld [vmem:[#allocation11 + $0x5f0] sm:$0xff]  }
0x1b2b   : > { %12174 = vst [vmem:[%s17346_s12 + $0x90] sm:$0xff] %v8014_v25  ;;  %8925 = vmatprep.mubr.bf16.mxu1 %v18296_v8  ;;  %8998 = vmatprep.mubr.bf16.mxu0 %v18296_v8  ;;  %v14140_v25 = vld [vmem:[#allocation11 + $0x530] sm:$0xff]  }
0x1b2c   : > { %13027 = vmatprep.subr.bf16.mxu0 %v14115_v52  ;;  %v14144_v52 = vld [vmem:[#allocation11 + $0x538] sm:$0xff]  }
0x1b2d   : > { %v7964_v55 = vpop.permute.xlu1 %7963  ;;  %13028 = vmatpush3.bf16.msra.mxu0 %v14117_v20  ;;  %v14146_v20 = vld [vmem:[#allocation11 + $0x440] sm:$0xff]  }
0x1b2e   : > { %v8016_v17 = vsel %vm1008_vm1, %v16822_v40, %v7964_v55  ;;  %v14114_v40 = vld [vmem:[#allocation11 + $0x540] sm:$0xff]   ;;  %13029 = vmatprep.subr.bf16.mxu0 %v14119_v63  ;;  %v14141_v55 = vld [vmem:[#allocation11 + $0x5b0] sm:$0xff]  }
0x1b2f   : > { %12178 = vst [vmem:[%s17346_s12 + $0xb0] sm:$0xff] %v8016_v17  ;;  %12987 = vmatprep.subr.bf16.mxu1 %v14114_v40  ;;  %v14142_v17 = vld [vmem:[#allocation11 + $0x578] sm:$0xff]   ;;  %v8228_v63 = vld [vmem:[#allocation10 + $0x10] sm:$0xf] }
0x1b30   : > { %12988 = vmatpush3.bf16.msra.mxu1 %v14116_v11  ;;  %v14143_v40 = vld [vmem:[#allocation11 + $0x5f8] sm:$0xff]  }
0x1b31   : > { %12989 = vmatprep.subr.bf16.mxu1 %v14118_v4  ;;  %13030 = vmatpush3.bf16.msra.mxu0 %v14121_v58  ;;  %v14145_v11 = vld [vmem:[#allocation11 + $0x5b8] sm:$0xff]   ;;  %v14147_v4 = vld [vmem:[#allocation11 + $0x4c0] sm:$0xff]   ;;  %v17505_v58 = vrot.slane %v8228_v63, %v15312_v57 }
0x1b32   : > { %8926 = vmatmul.mubr.bf16.gmra.mrb[244].mxu1 %v17404_v60  ;;  %8999 = vmatmul.mubr.bf16.gmra.mrb[244].mxu0 %v17404_v60 }
0x1b33   : > { %8935 = vmatprep.mubr.bf16.mxu1 %v18296_v8  ;;  %9008 = vmatprep.mubr.bf16.mxu0 %v18296_v8 }
0x1b34   : > { %12990 = vmatpush3.bf16.msra.mxu1 %v14120_v22  ;;  %13031 = vmatprep.subr.bf16.mxu0 %v14123_v13  ;;  %v17502_v22 = vrot.slane %v8228_v63, %v15240_v31  ;;  %v17511_v13 = vrot.slane %v8228_v63, %v16021_v44 }
0x1b35   : > { %12991 = vmatprep.subr.bf16.mxu1 %v14122_v48  ;;  %13032 = vmatpush3.bf16.msra.mxu0 %v14125_v12  ;;  %v17508_v48 = vrot.slane %v8228_v63, %v15248_v33 }
0x1b36   : > { %13033 = vmatprep.subr.bf16.mxu0 %v14127_v35 }
0x1b38   : > { %12992 = vmatpush3.bf16.msra.mxu1 %v14124_v23 }
0x1b39   : > { %12993 = vmatprep.subr.bf16.mxu1 %v14126_v47  ;;  %13034 = vmatpush3.bf16.msra.mxu0 %v14129_v61 }
0x1b3a   : > { %8936 = vmatmul.mubr.bf16.gmra.mrb[248].mxu1 %v17435_v50  ;;  %9009 = vmatmul.mubr.bf16.gmra.mrb[248].mxu0 %v17435_v50 }
0x1b3b   : > { %8945 = vmatprep.mubr.bf16.mxu1 %v18296_v8  ;;  %9018 = vmatprep.mubr.bf16.mxu0 %v18296_v8 }
0x1b3c   : > { %12994 = vmatpush3.bf16.msra.mxu1 %v14128_v18  ;;  %13035 = vmatprep.subr.bf16.mxu0 %v14131_v30 }
0x1b3d   : > { %12995 = vmatprep.subr.bf16.mxu1 %v14130_v36  ;;  %13036 = vmatpush3.bf16.msra.mxu0 %v14133_v2 }
0x1b3e   : > { %13037 = vmatprep.subr.bf16.mxu0 %v14135_v19 }
0x1b40   : > { %12996 = vmatpush3.bf16.msra.mxu1 %v14132_v27 }
0x1b41   : > { %12997 = vmatprep.subr.bf16.mxu1 %v14134_v53  ;;  %13038 = vmatpush3.bf16.msra.mxu0 %v14137_v42 }
0x1b42   : > { %8946 = vmatmul.mubr.bf16.gmra.mrb[252].mxu1 %v17463_v14  ;;  %9019 = vmatmul.mubr.bf16.gmra.mrb[252].mxu0 %v17463_v14 }
0x1b43   : > { %13039 = vmatprep.subr.bf16.mxu0 %v14139_v39 }
0x1b44   : > { %12998 = vmatpush3.bf16.msra.mxu1 %v14136_v46 }
0x1b45   : > { %12999 = vmatprep.subr.bf16.mxu1 %v14138_v34  ;;  %13040 = vmatpush3.bf16.msra.mxu0 %v14141_v55 }
0x1b46   : > { %13041 = vmatprep.subr.bf16.mxu0 %v14143_v40 }
0x1b48   : > { %13000 = vmatpush3.bf16.msra.mxu1 %v14140_v25 }
0x1b49   : > { %13001 = vmatprep.subr.bf16.mxu1 %v14142_v17  ;;  %13042 = vmatpush3.bf16.msra.mxu0 %v14145_v11 }
0x1b4a   : > { %13107 = vmatprep.subr.bf16.mxu0 %v14147_v4 }
0x1b4c   : > { %13002 = vmatpush3.bf16.msra.mxu1 %v14144_v52 }
0x1b4d   : > { %13067 = vmatprep.subr.bf16.mxu1 %v14146_v20 }
0x1bdd   : > { %v8444_v23 = vpop.f32.mrb[224].mxu1  ;;  %v8517_v12 = vpop.f32.mrb[224].mxu0 }
0x1bde   : > { %v8445_v47 = vadd.f32 %v8444_v23, %v17502_v22  ;;  %v8518_v35 = vadd.f32 %v8517_v12, %v17505_v58  ;;  %v8446_v18 = vpop.f32.mrb[225].mxu1  ;;  %v8519_v61 = vpop.f32.mrb[225].mxu0 }
0x1bdf   : > { %v8447_v36 = vadd.f32 %v8446_v18, %v17508_v48  ;;  %v8520_v30 = vadd.f32 %v8519_v61, %v17511_v13  ;;  %v8448_v27 = vpop.f32.mrb[226].mxu1  ;;  %v8521_v2 = vpop.f32.mrb[226].mxu0 }
0x1be0   : > { %v8449_v53 = vadd.f32 %v8448_v27, %v17502_v22  ;;  %v8522_v19 = vadd.f32 %v8521_v2, %v17505_v58  ;;  %v8450_v46 = vpop.f32.mrb[227].mxu1  ;;  %v8523_v42 = vpop.f32.mrb[227].mxu0  ;;  %v8556_v25 = vmax.f32 %v8445_v47, 0.0  ;;  %v8558_v55 = vmax.f32 %v8518_v35, 0.0 }
0x1be1   : > { %v8451_v34 = vadd.f32 %v8450_v46, %v17508_v48  ;;  %v8524_v39 = vadd.f32 %v8523_v42, %v17511_v13  ;;  %v8557_v52 = vmax.f32 %v8447_v36, 0.0  ;;  %v8559_v11 = vmax.f32 %v8520_v30, 0.0 }
0x1be2   : > { %v8560_v17 = vmax.f32 %v8449_v53, 0.0  ;;  %v8562_v40 = vmax.f32 %v8522_v19, 0.0 }
0x1be3   : > { %v8561_v20 = vmax.f32 %v8451_v34, 0.0  ;;  %v8563_v4 = vmax.f32 %v8524_v39, 0.0 }
0x1be4   : > { %v17521_v63 = vpack.c.bf16 %v8560_v17, %v8556_v25  ;;  %v17523_v23 = vpack.c.bf16 %v8562_v40, %v8558_v55 }
0x1be5   : > { %v17525_v12 = vpack.c.bf16 %v8561_v20, %v8557_v52  ;;  %v17527_v18 = vpack.c.bf16 %v8563_v4, %v8559_v11  ;;  %v8454_v61 = vpop.f32.mrb[228].mxu1  ;;  %v8527_v27 = vpop.f32.mrb[228].mxu0 }
0x1be6   : > { %v8455_v2 = vadd.f32 %v8454_v61, %v17502_v22  ;;  %v8528_v47 = vadd.f32 %v8527_v27, %v17505_v58  ;;  %v8456_v35 = vpop.f32.mrb[229].mxu1  ;;  %v8529_v53 = vpop.f32.mrb[229].mxu0 }
0x1be7   : > { %v8457_v36 = vadd.f32 %v8456_v35, %v17508_v48  ;;  %v8530_v30 = vadd.f32 %v8529_v53, %v17511_v13  ;;  %v8458_v19 = vpop.f32.mrb[230].mxu1  ;;  %v8531_v46 = vpop.f32.mrb[230].mxu0 }
0x1be8   : > { %v8459_v42 = vadd.f32 %v8458_v19, %v17502_v22  ;;  %v8532_v34 = vadd.f32 %v8531_v46, %v17505_v58  ;;  %v8460_v39 = vpop.f32.mrb[231].mxu1  ;;  %v8533_v25 = vpop.f32.mrb[231].mxu0  ;;  %v8564_v40 = vmax.f32 %v8455_v2, 0.0  ;;  %v8566_v52 = vmax.f32 %v8528_v47, 0.0 }
0x1be9   : > { %v8461_v55 = vadd.f32 %v8460_v39, %v17508_v48  ;;  %v8534_v17 = vadd.f32 %v8533_v25, %v17511_v13  ;;  %v8565_v4 = vmax.f32 %v8457_v36, 0.0  ;;  %v8567_v61 = vmax.f32 %v8530_v30, 0.0 }
0x1bea   : > { %v8568_v11 = vmax.f32 %v8459_v42, 0.0  ;;  %v8570_v20 = vmax.f32 %v8532_v34, 0.0 }
0x1beb   : > { %v8569_v27 = vmax.f32 %v8461_v55, 0.0  ;;  %v8571_v35 = vmax.f32 %v8534_v17, 0.0 }
0x1bec   : > { %v17537_v53 = vpack.c.bf16 %v8568_v11, %v8564_v40  ;;  %v17539_v56 = vpack.c.bf16 %v8570_v20, %v8566_v52 }
0x1bed   : > { %v17541_v19 = vpack.c.bf16 %v8569_v27, %v8565_v4  ;;  %v17543_v46 = vpack.c.bf16 %v8571_v35, %v8567_v61  ;;  %v8464_v10 = vpop.f32.mrb[232].mxu1  ;;  %v8537_v39 = vpop.f32.mrb[232].mxu0 }
0x1bee   : > { %v8465_v25 = vadd.f32 %v8464_v10, %v17502_v22  ;;  %v8538_v2 = vadd.f32 %v8537_v39, %v17505_v58  ;;  %v8466_v47 = vpop.f32.mrb[233].mxu1  ;;  %v8539_v42 = vpop.f32.mrb[233].mxu0 }
0x1bef   : > { %v8467_v36 = vadd.f32 %v8466_v47, %v17508_v48  ;;  %v8540_v30 = vadd.f32 %v8539_v42, %v17511_v13  ;;  %v8468_v34 = vpop.f32.mrb[234].mxu1  ;;  %v8541_v55 = vpop.f32.mrb[234].mxu0 }
0x1bf0   : > { %v8469_v17 = vadd.f32 %v8468_v34, %v17502_v22  ;;  %v8542_v40 = vadd.f32 %v8541_v55, %v17505_v58  ;;  %v8470_v52 = vpop.f32.mrb[235].mxu1  ;;  %v8543_v11 = vpop.f32.mrb[235].mxu0  ;;  %v8572_v4 = vmax.f32 %v8465_v25, 0.0  ;;  %v8574_v61 = vmax.f32 %v8538_v2, 0.0 }
0x1bf1   : > { %v8471_v20 = vadd.f32 %v8470_v52, %v17508_v48  ;;  %v8544_v10 = vadd.f32 %v8543_v11, %v17511_v13  ;;  %v8573_v39 = vmax.f32 %v8467_v36, 0.0  ;;  %v8575_v47 = vmax.f32 %v8540_v30, 0.0 }
0x1bf2   : > { %v8576_v27 = vmax.f32 %v8469_v17, 0.0  ;;  %v8578_v35 = vmax.f32 %v8542_v40, 0.0 }
0x1bf3   : > { %v8577_v5 = vmax.f32 %v8471_v20, 0.0  ;;  %v8579_v42 = vmax.f32 %v8544_v10, 0.0 }
0x1bf4   : > { %v17553_v0 = vpack.c.bf16 %v8576_v27, %v8572_v4  ;;  %v17555_v7 = vpack.c.bf16 %v8578_v35, %v8574_v61  ;;  %v17568_v27 = vrot.slane %v8701_v15, %v15240_v31 }
0x1bf5   : > { %v17557_v34 = vpack.c.bf16 %v8577_v5, %v8573_v39  ;;  %v17559_v55 = vpack.c.bf16 %v8579_v42, %v8575_v47  ;;  %v8474_v32 = vpop.f32.mrb[236].mxu1  ;;  %v8547_v52 = vpop.f32.mrb[236].mxu0  ;;  %v17576_v47 = vrot.slane %v8701_v15, %v15248_v33  ;;  %v17579_v42 = vrot.slane %v8701_v15, %v16021_v44 }
0x1bf6   : > { %v8475_v25 = vadd.f32 %v8474_v32, %v17502_v22  ;;  %v8548_v2 = vadd.f32 %v8547_v52, %v17505_v58  ;;  %v8476_v17 = vpop.f32.mrb[237].mxu1  ;;  %v8549_v36 = vpop.f32.mrb[237].mxu0  ;;  %v17571_v32 = vrot.slane %v8701_v15, %v15312_v57 }
0x1bf7   : > { %v8477_v30 = vadd.f32 %v8476_v17, %v17508_v48  ;;  %v8550_v40 = vadd.f32 %v8549_v36, %v17511_v13  ;;  %v8478_v11 = vpop.f32.mrb[238].mxu1  ;;  %v8551_v20 = vpop.f32.mrb[238].mxu0 }
0x1bf8   : > { %v8479_v5 = vadd.f32 %v8478_v11, %v17502_v22  ;;  %v8552_v10 = vadd.f32 %v8551_v20, %v17505_v58  ;;  %v8480_v4 = vpop.f32.mrb[239].mxu1  ;;  %v8553_v61 = vpop.f32.mrb[239].mxu0  ;;  %v8580_v22 = vmax.f32 %v8475_v25, 0.0  ;;  %v8582_v58 = vmax.f32 %v8548_v2, 0.0 }
0x1bf9   : > { %v8481_v35 = vadd.f32 %v8480_v4, %v17508_v48  ;;  %v8554_v39 = vadd.f32 %v8553_v61, %v17511_v13  ;;  %v8581_v36 = vmax.f32 %v8477_v30, 0.0  ;;  %v8583_v11 = vmax.f32 %v8550_v40, 0.0 }
0x1bfa   : > { %v8584_v52 = vmax.f32 %v8479_v5, 0.0  ;;  %v8586_v17 = vmax.f32 %v8552_v10, 0.0 }
0x1bfb   : > { %v8585_v20 = vmax.f32 %v8481_v35, 0.0  ;;  %v8587_v54 = vmax.f32 %v8554_v39, 0.0 }
0x1bfc   : > { %v17581_v16 = vpack.c.bf16 %v8584_v52, %v8580_v22  ;;  %v17583_v28 = vpack.c.bf16 %v8586_v17, %v8582_v58 }
0x1bfd   : > { %v17585_v48 = vpack.c.bf16 %v8585_v20, %v8581_v36  ;;  %v17587_v13 = vpack.c.bf16 %v8587_v54, %v8583_v11  ;;  %v8917_v4 = vpop.f32.mrb[240].mxu1  ;;  %v8990_v61 = vpop.f32.mrb[240].mxu0 }
0x1bfe   : > { %v8918_v15 = vadd.f32 %v8917_v4, %v17568_v27  ;;  %v8991_v25 = vadd.f32 %v8990_v61, %v17571_v32  ;;  %v8919_v2 = vpop.f32.mrb[241].mxu1  ;;  %v8992_v5 = vpop.f32.mrb[241].mxu0 }
0x1bff   : > { %v8920_v30 = vadd.f32 %v8919_v2, %v17576_v47  ;;  %v8993_v40 = vadd.f32 %v8992_v5, %v17579_v42  ;;  %v8921_v10 = vpop.f32.mrb[242].mxu1  ;;  %v8994_v35 = vpop.f32.mrb[242].mxu0 }
0x1c00   : > { %v8922_v39 = vadd.f32 %v8921_v10, %v17568_v27  ;;  %v8995_v22 = vadd.f32 %v8994_v35, %v17571_v32  ;;  %v8923_v54 = vpop.f32.mrb[243].mxu1  ;;  %v8996_v58 = vpop.f32.mrb[243].mxu0  ;;  %v9029_v36 = vmax.f32 %v8918_v15, 0.0  ;;  %v9031_v11 = vmax.f32 %v8991_v25, 0.0 }
0x1c01   : > { %v8924_v52 = vadd.f32 %v8923_v54, %v17576_v47  ;;  %v8997_v17 = vadd.f32 %v8996_v58, %v17579_v42  ;;  %v9030_v61 = vmax.f32 %v8920_v30, 0.0  ;;  %v9032_v2 = vmax.f32 %v8993_v40, 0.0 }
0x1c02   : > { %v9033_v20 = vmax.f32 %v8922_v39, 0.0  ;;  %v9035_v4 = vmax.f32 %v8995_v22, 0.0  ;;  %v14150_v39 = vld [vmem:[#allocation11 + $0x448] sm:$0xff]  }
0x1c03   : > { %v9034_v43 = vmax.f32 %v8924_v52, 0.0  ;;  %v9036_v5 = vmax.f32 %v8997_v17, 0.0  ;;  %v14151_v22 = vld [vmem:[#allocation11 + $0x4c8] sm:$0xff]  }
0x1c04   : > { %v9061_v37 = vpack.c.bf16 %v9033_v20, %v9029_v36  ;;  %v9063_v29 = vpack.c.bf16 %v9035_v4, %v9031_v11 }
0x1c05   : > { %v9062_v49 = vpack.c.bf16 %v9034_v43, %v9030_v61  ;;  %v9064_v10 = vpack.c.bf16 %v9036_v5, %v9032_v2  ;;  %v8927_v59 = vpop.f32.mrb[244].mxu1  ;;  %v9000_v35 = vpop.f32.mrb[244].mxu0  ;;  %v14152_v61 = vld [vmem:[#allocation11 + $0x408] sm:$0xff]  }
0x1c06   : > { %v8928_v54 = vadd.f32 %v8927_v59, %v17568_v27  ;;  %v9001_v58 = vadd.f32 %v9000_v35, %v17571_v32  ;;  %v8929_v15 = vpop.f32.mrb[245].mxu1  ;;  %v9002_v25 = vpop.f32.mrb[245].mxu0  ;;  %v14153_v2 = vld [vmem:[#allocation11 + $0x488] sm:$0xff]  }
0x1c07   : > { %v8930_v30 = vadd.f32 %v8929_v15, %v17576_v47  ;;  %v9003_v40 = vadd.f32 %v9002_v25, %v17579_v42  ;;  %v8931_v52 = vpop.f32.mrb[246].mxu1  ;;  %v9004_v17 = vpop.f32.mrb[246].mxu0  ;;  %9365 = vmatprep.mubr.bf16.mxu1 %v9062_v49  ;;  %9430 = vmatprep.mubr.bf16.mxu0 %v9064_v10  ;;  %v14154_v15 = vld [vmem:[#allocation11 + $0x450] sm:$0xff]  }
0x1c08   : > { %v8932_v43 = vadd.f32 %v8931_v52, %v17568_v27  ;;  %v9005_v36 = vadd.f32 %v9004_v17, %v17571_v32  ;;  %v8933_v11 = vpop.f32.mrb[247].mxu1  ;;  %v9006_v59 = vpop.f32.mrb[247].mxu0  ;;  %9366 = vmatmul.mubr.bf16.vlgmr.msra.gmra.mrb[0].mxu1 %v9061_v37  ;;  %9431 = vmatmul.mubr.bf16.vlgmr.msra.gmra.mrb[0].mxu0 %v9063_v29  ;;  %v9037_v5 = vmax.f32 %v8928_v54, 0.0  ;;  %v9039_v35 = vmax.f32 %v9001_v58, 0.0  ;;  %v14155_v25 = vld [vmem:[#allocation11 + $0x4d0] sm:$0xff]  }
0x1c09   : > { %v8934_v20 = vadd.f32 %v8933_v11, %v17576_v47  ;;  %v9007_v4 = vadd.f32 %v9006_v59, %v17579_v42  ;;  %13068 = vmatpush3.bf16.msra.mxu1 %v14148_v1  ;;  %13108 = vmatpush3.bf16.msra.mxu0 %v14149_v9  ;;  %v9038_v52 = vmax.f32 %v8930_v30, 0.0  ;;  %v9040_v17 = vmax.f32 %v9003_v40, 0.0  ;;  %v14156_v54 = vld [vmem:[#allocation11 + $0x410] sm:$0xff]   ;;  %v14158_v30 = vld [vmem:[#allocation11 + $0x458] sm:$0xff]  }
0x1c0a   : > { %v9041_v49 = vmax.f32 %v8932_v43, 0.0  ;;  %v9043_v10 = vmax.f32 %v9005_v36, 0.0  ;;  %13069 = vmatprep.subr.bf16.mxu1 %v14150_v39  ;;  %13109 = vmatprep.subr.bf16.mxu0 %v14151_v22  ;;  %v14157_v58 = vld [vmem:[#allocation11 + $0x490] sm:$0xff]   ;;  %v14159_v40 = vld [vmem:[#allocation11 + $0x4d8] sm:$0xff]  }
0x1c0b   : > { %v9042_v37 = vmax.f32 %v8934_v20, 0.0  ;;  %v9044_v29 = vmax.f32 %v9007_v4, 0.0 }
0x1c0c   : > { %v9065_v3 = vpack.c.bf16 %v9041_v49, %v9037_v5  ;;  %v9067_v11 = vpack.c.bf16 %v9043_v10, %v9039_v35 }
0x1c0d   : > { %v9066_v21 = vpack.c.bf16 %v9042_v37, %v9038_v52  ;;  %v9068_v59 = vpack.c.bf16 %v9044_v29, %v9040_v17  ;;  %v8937_v1 = vpop.f32.mrb[248].mxu1  ;;  %v9010_v9 = vpop.f32.mrb[248].mxu0  ;;  %13070 = vmatpush3.bf16.msra.mxu1 %v14152_v61  ;;  %13110 = vmatpush3.bf16.msra.mxu0 %v14153_v2  ;;  %v14160_v52 = vld [vmem:[#allocation11 + $0x418] sm:$0xff]  }
0x1c0e   : > { %v8938_v43 = vadd.f32 %v8937_v1, %v17568_v27  ;;  %v9011_v39 = vadd.f32 %v9010_v9, %v17571_v32  ;;  %v8939_v22 = vpop.f32.mrb[249].mxu1  ;;  %v9012_v36 = vpop.f32.mrb[249].mxu0  ;;  %13071 = vmatprep.subr.bf16.mxu1 %v14154_v15  ;;  %13111 = vmatprep.subr.bf16.mxu0 %v14155_v25  ;;  %v14161_v17 = vld [vmem:[#allocation11 + $0x498] sm:$0xff]   ;;  %v14162_v1 = vld [vmem:[#allocation11 + $0x460] sm:$0xff]  }
0x1c0f   : > { %v8940_v20 = vadd.f32 %v8939_v22, %v17576_v47  ;;  %v9013_v4 = vadd.f32 %v9012_v36, %v17579_v42  ;;  %v8941_v5 = vpop.f32.mrb[250].mxu1  ;;  %v9014_v35 = vpop.f32.mrb[250].mxu0  ;;  %9373 = vmatprep.mubr.bf16.mxu1 %v9066_v21  ;;  %9438 = vmatprep.mubr.bf16.mxu0 %v9068_v59  ;;  %v14163_v9 = vld [vmem:[#allocation11 + $0x4e0] sm:$0xff]  }
0x1c10   : > { %v8942_v61 = vadd.f32 %v8941_v5, %v17568_v27  ;;  %v9015_v2 = vadd.f32 %v9014_v35, %v17571_v32  ;;  %v8943_v49 = vpop.f32.mrb[251].mxu1  ;;  %v9016_v10 = vpop.f32.mrb[251].mxu0  ;;  %9374 = vmatmul.mubr.bf16.gmra.mrb[4].mxu1 %v9065_v3  ;;  %9439 = vmatmul.mubr.bf16.gmra.mrb[4].mxu0 %v9067_v11  ;;  %v9045_v37 = vmax.f32 %v8938_v43, 0.0  ;;  %v9047_v29 = vmax.f32 %v9011_v39, 0.0  ;;  %v14164_v43 = vld [vmem:[#allocation11 + $0x420] sm:$0xff]  }
0x1c11   : > { %v8944_v15 = vadd.f32 %v8943_v49, %v17576_v47  ;;  %v9017_v25 = vadd.f32 %v9016_v10, %v17579_v42  ;;  %13072 = vmatpush3.bf16.msra.mxu1 %v14156_v54  ;;  %13112 = vmatpush3.bf16.msra.mxu0 %v14157_v58  ;;  %v9046_v22 = vmax.f32 %v8940_v20, 0.0  ;;  %v9048_v36 = vmax.f32 %v9013_v4, 0.0  ;;  %v14165_v39 = vld [vmem:[#allocation11 + $0x4a0] sm:$0xff]   ;;  %v14166_v20 = vld [vmem:[#allocation11 + $0x468] sm:$0xff]  }
0x1c12   : > { %v9049_v21 = vmax.f32 %v8942_v61, 0.0  ;;  %v9051_v59 = vmax.f32 %v9015_v2, 0.0  ;;  %13073 = vmatprep.subr.bf16.mxu1 %v14158_v30  ;;  %13113 = vmatprep.subr.bf16.mxu0 %v14159_v40  ;;  %v14167_v4 = vld [vmem:[#allocation11 + $0x4e8] sm:$0xff]  }
0x1c13   : > { %v9050_v3 = vmax.f32 %v8944_v15, 0.0  ;;  %v9052_v11 = vmax.f32 %v9017_v25, 0.0 }
0x1c14   : > { %v9069_v5 = vpack.c.bf16 %v9049_v21, %v9045_v37  ;;  %v9071_v35 = vpack.c.bf16 %v9051_v59, %v9047_v29 }
0x1c15   : > { %v9070_v49 = vpack.c.bf16 %v9050_v3, %v9046_v22  ;;  %v9072_v10 = vpack.c.bf16 %v9052_v11, %v9048_v36  ;;  %v8947_v54 = vpop.f32.mrb[252].mxu1  ;;  %v9020_v58 = vpop.f32.mrb[252].mxu0  ;;  %13074 = vmatpush3.bf16.msra.mxu1 %v14160_v52  ;;  %13114 = vmatpush3.bf16.msra.mxu0 %v14161_v17  ;;  %v14168_v22 = vld [vmem:[#allocation11 + $0x428] sm:$0xff]  }
0x1c16   : > { %v8948_v61 = vadd.f32 %v8947_v54, %v17568_v27  ;;  %v9021_v30 = vadd.f32 %v9020_v58, %v17571_v32  ;;  %v8949_v40 = vpop.f32.mrb[253].mxu1  ;;  %v9022_v2 = vpop.f32.mrb[253].mxu0  ;;  %13075 = vmatprep.subr.bf16.mxu1 %v14162_v1  ;;  %13115 = vmatprep.subr.bf16.mxu0 %v14163_v9  ;;  %v14169_v36 = vld [vmem:[#allocation11 + $0x4a8] sm:$0xff]  }
0x1c17   : > { %v8950_v15 = vadd.f32 %v8949_v40, %v17576_v47  ;;  %v9023_v25 = vadd.f32 %v9022_v2, %v17579_v42  ;;  %v8951_v37 = vpop.f32.mrb[254].mxu1  ;;  %v9024_v29 = vpop.f32.mrb[254].mxu0  ;;  %9381 = vmatprep.mubr.bf16.mxu1 %v9070_v49  ;;  %9446 = vmatprep.mubr.bf16.mxu0 %v9072_v10 }
0x1c18   : > { %v8952_v52 = vadd.f32 %v8951_v37, %v17568_v27  ;;  %v9025_v17 = vadd.f32 %v9024_v29, %v17571_v32  ;;  %v8953_v21 = vpop.f32.mrb[255].mxu1  ;;  %v9026_v59 = vpop.f32.mrb[255].mxu0  ;;  %9382 = vmatmul.mubr.bf16.gmra.mrb[8].mxu1 %v9069_v5  ;;  %9447 = vmatmul.mubr.bf16.gmra.mrb[8].mxu0 %v9071_v35  ;;  %v9053_v3 = vmax.f32 %v8948_v61, 0.0  ;;  %v9055_v11 = vmax.f32 %v9021_v30, 0.0  ;;  %v14170_v27 = vld [vmem:[#allocation11 + $0x470] sm:$0xff]   ;;  %v14174_v61 = vld [vmem:[#allocation11 + $0x478] sm:$0xff]  }
0x1c19   : > { %v8954_v1 = vadd.f32 %v8953_v21, %v17576_v47  ;;  %v9027_v9 = vadd.f32 %v9026_v59, %v17579_v42  ;;  %13076 = vmatpush3.bf16.msra.mxu1 %v14164_v43  ;;  %13116 = vmatpush3.bf16.msra.mxu0 %v14165_v39  ;;  %v14171_v32 = vld [vmem:[#allocation11 + $0x4f0] sm:$0xff]   ;;  %v9054_v54 = vmax.f32 %v8950_v15, 0.0  ;;  %v9056_v58 = vmax.f32 %v9023_v25, 0.0  ;;  %v14175_v30 = vld [vmem:[#allocation11 + $0x4f8] sm:$0xff]   ;;  %v9786_v15 = vld [vmem:[#allocation8 + $0x428] sm:$0xff] }
0x1c1a   : > { %v9057_v49 = vmax.f32 %v8952_v52, 0.0  ;;  %v9059_v10 = vmax.f32 %v9025_v17, 0.0  ;;  %13077 = vmatprep.subr.bf16.mxu1 %v14166_v20  ;;  %13117 = vmatprep.subr.bf16.mxu0 %v14167_v4  ;;  %v14172_v43 = vld [vmem:[#allocation11 + $0x430] sm:$0xff]   ;;  %v9785_v20 = vld [vmem:[#allocation8 + $0x420] sm:$0xff]  ;;  %v9788_v25 = vld [vmem:[#allocation8 + $0x468] sm:$0xff] }
0x1c1b   : > { %v9058_v5 = vmax.f32 %v8954_v1, 0.0  ;;  %v9060_v35 = vmax.f32 %v9027_v9, 0.0  ;;  %v14173_v39 = vld [vmem:[#allocation11 + $0x4b0] sm:$0xff]   ;;  %v9787_v4 = vld [vmem:[#allocation8 + $0x460] sm:$0xff]  ;;  %v14176_v37 = vld [vmem:[#allocation11 + $0x438] sm:$0xff]   ;;  %v12325_v17 = vcombine.high %v9786_v15, %v9788_v25 }
0x1c1c   : > { %v9073_v40 = vpack.c.bf16 %v9057_v49, %v9053_v3  ;;  %v9075_v47 = vpack.c.bf16 %v9059_v10, %v9055_v11  ;;  %v14177_v29 = vld [vmem:[#allocation11 + $0x4b8] sm:$0xff]   ;;  %v12323_v52 = vcombine.high %v9785_v20, %v9787_v4  ;;  %v9789_v21 = vld [vmem:[#allocation8 + $0x4a0] sm:$0xff]  ;;  %v9790_v1 = vld [vmem:[#allocation8 + $0x4a8] sm:$0xff] }
0x1c1d   : > { %v9074_v2 = vpack.c.bf16 %v9058_v5, %v9054_v54  ;;  %v9076_v42 = vpack.c.bf16 %v9060_v35, %v9056_v58  ;;  %13078 = vmatpush3.bf16.msra.mxu1 %v14168_v22  ;;  %13118 = vmatpush3.bf16.msra.mxu0 %v14169_v36  ;;  %v9791_v59 = vld [vmem:[#allocation8 + $0x4e0] sm:$0xff]  ;;  %v9792_v9 = vld [vmem:[#allocation8 + $0x4e8] sm:$0xff]  ;;  %v12322_v22 = vcombine.low %v9785_v20, %v9787_v4 }
0x1c1e   : > { %13079 = vmatprep.subr.bf16.mxu1 %v14170_v27  ;;  %13119 = vmatprep.subr.bf16.mxu0 %v14171_v32  ;;  %v12324_v36 = vcombine.low %v9786_v15, %v9788_v25  ;;  %v12329_v3 = vcombine.high %v9790_v1, %v9792_v9  ;;  %v9795_v11 = vld [vmem:[#allocation8 + $0x560] sm:$0xff]  ;;  %v9794_v49 = vld [vmem:[#allocation8 + $0x528] sm:$0xff]  ;;  %v12326_v27 = vcombine.low %v9789_v21, %v9791_v59 }
0x1c1f   : > { %9389 = vmatprep.mubr.bf16.mxu1 %v9074_v2  ;;  %9454 = vmatprep.mubr.bf16.mxu0 %v9076_v42  ;;  %v9796_v10 = vld [vmem:[#allocation8 + $0x568] sm:$0xff]  ;;  %v12328_v32 = vcombine.low %v9790_v1, %v9792_v9  ;;  %v9799_v5 = vld [vmem:[#allocation8 + $0x5e0] sm:$0xff] }
0x1c20   : > { %9390 = vmatmul.mubr.bf16.gmra.mrb[12].mxu1 %v9073_v40  ;;  %9455 = vmatmul.mubr.bf16.gmra.mrb[12].mxu0 %v9075_v47  ;;  %v12333_v58 = vcombine.high %v9794_v49, %v9796_v10  ;;  %v9798_v35 = vld [vmem:[#allocation8 + $0x5a8] sm:$0xff]  ;;  %v9801_v2 = vld [vmem:[#allocation8 + $0x620] sm:$0xff] }
0x1c21   : > { %13080 = vmatpush3.bf16.msra.mxu1 %v14172_v43  ;;  %9687 = vmatprep.mubr.bf16.mxu1 %v17525_v12  ;;  %v12327_v12 = vcombine.high %v9789_v21, %v9791_v59  ;;  %v9800_v40 = vld [vmem:[#allocation8 + $0x5e8] sm:$0xff]  ;;  %v9803_v42 = vld [vmem:[#allocation8 + $0x660] sm:$0xff] }
0x1c22   : > { %13120 = vmatpush3.bf16.msra.mxu0 %v14173_v39  ;;  %9752 = vmatprep.mubr.bf16.mxu0 %v17527_v18  ;;  %v9793_v18 = vld [vmem:[#allocation8 + $0x520] sm:$0xff]  ;;  %v9802_v43 = vld [vmem:[#allocation8 + $0x628] sm:$0xff]  ;;  %v12339_v20 = vcombine.high %v9801_v2, %v9803_v42 }
0x1c23   : > { %13081 = vmatprep.subr.bf16.mxu1 %v14174_v61  ;;  %13121 = vmatprep.subr.bf16.mxu0 %v14175_v30  ;;  %v12331_v54 = vcombine.high %v9793_v18, %v9795_v11  ;;  %v9804_v39 = vld [vmem:[#allocation8 + $0x668] sm:$0xff]  ;;  %v12336_v30 = vcombine.low %v9798_v35, %v9800_v40  ;;  %v9805_v4 = vld [vmem:[#allocation8 + $0x6a0] sm:$0xff] }
0x1c24   : > { %v9807_v15 = vld [vmem:[#allocation8 + $0x6e0] sm:$0xff]  ;;  %v9806_v25 = vld [vmem:[#allocation8 + $0x6a8] sm:$0xff] }
0x1c25   : > { %13082 = vmatpush3.bf16.msra.mxu1 %v14176_v37  ;;  %v9808_v37 = vld [vmem:[#allocation8 + $0x6e8] sm:$0xff]  ;;  %v12342_v1 = vcombine.low %v9805_v4, %v9807_v15 }
0x1c26   : > { %13122 = vmatpush3.bf16.msra.mxu0 %v14177_v29  ;;  %9999 = vmatprep.subr.bf16.mxu1 %v12323_v52  ;;  %v12343_v29 = vcombine.high %v9805_v4, %v9807_v15  ;;  %v9809_v52 = vld [vmem:[#allocation8 + $0x720] sm:$0xff]  ;;  %v9810_v21 = vld [vmem:[#allocation8 + $0x728] sm:$0xff]  ;;  %v12344_v9 = vcombine.low %v9806_v25, %v9808_v37 }
0x1c27   : > { %10072 = vmatprep.subr.bf16.mxu0 %v12325_v17  ;;  %v9811_v17 = vld [vmem:[#allocation8 + $0x760] sm:$0xff]  ;;  %v9812_v59 = vld [vmem:[#allocation8 + $0x768] sm:$0xff] }
0x1c28   : > { %9688 = vmatmul.mubr.bf16.vlgmr.msra.gmra.mrb[16].mxu1 %v17521_v63  ;;  %v9797_v63 = vld [vmem:[#allocation8 + $0x5a0] sm:$0xff]  ;;  %v14200_v4 = vld [vmem:[#allocation11 + $0x628] sm:$0xff]  }
0x1c29   : > { %9753 = vmatmul.mubr.bf16.vlgmr.msra.gmra.mrb[16].mxu0 %v17523_v23  ;;  %9695 = vmatprep.mubr.bf16.mxu1 %v17541_v19  ;;  %v12330_v23 = vcombine.low %v9793_v18, %v9795_v11  ;;  %v12332_v19 = vcombine.low %v9794_v49, %v9796_v10  ;;  %v12335_v47 = vcombine.high %v9797_v63, %v9799_v5  ;;  %v9816_v18 = vld [vmem:[#allocation8 + $0x7e8] sm:$0xff] }
0x1c2a   : > { %9760 = vmatprep.mubr.bf16.mxu0 %v17543_v46  ;;  %10000 = vmatpush1.bf16.msra.mxu1 %v12322_v22  ;;  %v12337_v46 = vcombine.high %v9798_v35, %v9800_v40  ;;  %v12334_v61 = vcombine.low %v9797_v63, %v9799_v5  ;;  %v12347_v22 = vcombine.high %v9809_v52, %v9811_v17  ;;  %v14184_v63 = vld [vmem:[#allocation11 + $0x608] sm:$0xff]   ;;  %v14186_v35 = vld [vmem:[#allocation11 + $0x650] sm:$0xff]  }
0x1c2b   : > { %10073 = vmatpush1.bf16.msra.mxu0 %v12324_v36  ;;  %10001 = vmatprep.subr.bf16.mxu1 %v12327_v12  ;;  %v9813_v36 = vld [vmem:[#allocation8 + $0x7a0] sm:$0xff]  ;;  %v14185_v5 = vld [vmem:[#allocation11 + $0x688] sm:$0xff]   ;;  %v14187_v40 = vld [vmem:[#allocation11 + $0x6d0] sm:$0xff]  }
0x1c2c   : > { %10074 = vmatprep.subr.bf16.mxu0 %v12329_v3  ;;  %v9815_v12 = vld [vmem:[#allocation8 + $0x7e0] sm:$0xff]  ;;  %v9814_v3 = vld [vmem:[#allocation8 + $0x7a8] sm:$0xff] }
0x1c2d   : > { %v12351_v11 = vcombine.high %v9813_v36, %v9815_v12  ;;  %v12350_v49 = vcombine.low %v9813_v36, %v9815_v12  ;;  %v12352_v10 = vcombine.low %v9814_v3, %v9816_v18  ;;  %v14201_v15 = vld [vmem:[#allocation11 + $0x6a8] sm:$0xff]  }
0x1c2e   : > { %10002 = vmatpush1.bf16.msra.mxu1 %v12326_v27  ;;  %v14180_v27 = vld [vmem:[#allocation11 + $0x600] sm:$0xff]  }
0x1c2f   : > { %10075 = vmatpush1.bf16.msra.mxu0 %v12328_v32  ;;  %10003 = vmatprep.subr.bf16.mxu1 %v12331_v54  ;;  %v14181_v32 = vld [vmem:[#allocation11 + $0x680] sm:$0xff]   ;;  %v14182_v54 = vld [vmem:[#allocation11 + $0x648] sm:$0xff]  }
0x1c30   : > { %9696 = vmatmul.mubr.bf16.gmra.mrb[20].mxu1 %v17537_v53  ;;  %10076 = vmatprep.subr.bf16.mxu0 %v12333_v58  ;;  %v12341_v53 = vcombine.high %v9802_v43, %v9804_v39  ;;  %v14183_v58 = vld [vmem:[#allocation11 + $0x6c8] sm:$0xff]  }
0x1c31   : > { %9761 = vmatmul.mubr.bf16.gmra.mrb[20].mxu0 %v17539_v56  ;;  %9703 = vmatprep.mubr.bf16.mxu1 %v17557_v34  ;;  %v12338_v56 = vcombine.low %v9801_v2, %v9803_v42  ;;  %v12340_v34 = vcombine.low %v9802_v43, %v9804_v39  ;;  %v14192_v2 = vld [vmem:[#allocation11 + $0x618] sm:$0xff]   ;;  %v14194_v43 = vld [vmem:[#allocation11 + $0x660] sm:$0xff]  }
0x1c32   : > { %9768 = vmatprep.mubr.bf16.mxu0 %v17559_v55  ;;  %10004 = vmatpush1.bf16.msra.mxu1 %v12330_v23  ;;  %v12345_v55 = vcombine.high %v9806_v25, %v9808_v37  ;;  %v14188_v23 = vld [vmem:[#allocation11 + $0x610] sm:$0xff]   ;;  %v14193_v42 = vld [vmem:[#allocation11 + $0x698] sm:$0xff]   ;;  %v14195_v39 = vld [vmem:[#allocation11 + $0x6e0] sm:$0xff]  }
0x1c33   : > { %10077 = vmatpush1.bf16.msra.mxu0 %v12332_v19  ;;  %10005 = vmatprep.subr.bf16.mxu1 %v12335_v47  ;;  %v14189_v19 = vld [vmem:[#allocation11 + $0x690] sm:$0xff]   ;;  %v14190_v47 = vld [vmem:[#allocation11 + $0x658] sm:$0xff]  }
0x1c34   : > { %10078 = vmatprep.subr.bf16.mxu0 %v12337_v46  ;;  %v14191_v46 = vld [vmem:[#allocation11 + $0x6d8] sm:$0xff]   ;;  %v14202_v25 = vld [vmem:[#allocation11 + $0x670] sm:$0xff]  }
0x1c35   : > { %v14203_v37 = vld [vmem:[#allocation11 + $0x6f0] sm:$0xff]  }
0x1c36   : > { %10006 = vmatpush1.bf16.msra.mxu1 %v12334_v61  ;;  %v14196_v61 = vld [vmem:[#allocation11 + $0x620] sm:$0xff]  }
0x1c37   : > { %10079 = vmatpush1.bf16.msra.mxu0 %v12336_v30  ;;  %10007 = vmatprep.subr.bf16.mxu1 %v12339_v20  ;;  %v14197_v30 = vld [vmem:[#allocation11 + $0x6a0] sm:$0xff]   ;;  %v14198_v20 = vld [vmem:[#allocation11 + $0x668] sm:$0xff]  }
0x1c38   : > { %9704 = vmatmul.mubr.bf16.gmra.mrb[24].mxu1 %v17553_v0  ;;  %10080 = vmatprep.subr.bf16.mxu0 %v12341_v53  ;;  %v12349_v0 = vcombine.high %v9810_v21, %v9812_v59  ;;  %v14199_v53 = vld [vmem:[#allocation11 + $0x6e8] sm:$0xff]  }
0x1c39   : > { %9769 = vmatmul.mubr.bf16.gmra.mrb[32].mxu0 %v17555_v7  ;;  %9711 = vmatprep.mubr.bf16.mxu1 %v17585_v48  ;;  %v12346_v7 = vcombine.low %v9809_v52, %v9811_v17  ;;  %v12348_v48 = vcombine.low %v9810_v21, %v9812_v59  ;;  %v14208_v52 = vld [vmem:[#allocation11 + $0x638] sm:$0xff]   ;;  %v17653_v21 = vld [vmem:[#allocation8 + $0x430] sm:$0xff] }
0x1c3a   : > { %9776 = vmatprep.mubr.bf16.mxu0 %v17587_v13  ;;  %10008 = vmatpush1.bf16.msra.mxu1 %v12338_v56  ;;  %v12353_v13 = vcombine.high %v9814_v3, %v9816_v18  ;;  %v14204_v56 = vld [vmem:[#allocation11 + $0x630] sm:$0xff]   ;;  %v14209_v17 = vld [vmem:[#allocation11 + $0x6b8] sm:$0xff]  }
0x1c3b   : > { %10081 = vmatpush1.bf16.msra.mxu0 %v12340_v34  ;;  %10009 = vmatprep.subr.bf16.mxu1 %v12343_v29  ;;  %v14205_v34 = vld [vmem:[#allocation11 + $0x6b0] sm:$0xff]   ;;  %v14206_v29 = vld [vmem:[#allocation11 + $0x678] sm:$0xff]  }
0x1c3c   : > { %10082 = vmatprep.subr.bf16.mxu0 %v12345_v55  ;;  %v14207_v55 = vld [vmem:[#allocation11 + $0x6f8] sm:$0xff]   ;;  %v17655_v59 = vld [vmem:[#allocation8 + $0x470] sm:$0xff] }
0x1c3e   : > { %10010 = vmatpush1.bf16.msra.mxu1 %v12342_v1  ;;  %v17657_v1 = vld [vmem:[#allocation8 + $0x438] sm:$0xff] }
0x1c3f   : > { %10083 = vmatpush1.bf16.msra.mxu0 %v12344_v9  ;;  %10011 = vmatprep.subr.bf16.mxu1 %v12347_v22  ;;  %v12387_v9 = vcombine.high %v17653_v21, %v17655_v59  ;;  %v17661_v22 = vld [vmem:[#allocation8 + $0x478] sm:$0xff] }
0x1c40   : > { %9712 = vmatmul.mubr.bf16.gmra.mrb[28].mxu1 %v17581_v16  ;;  %10084 = vmatprep.subr.bf16.mxu0 %v12349_v0  ;;  %v14179_v16 = vld [vmem:[#allocation11 + $0x6c0] sm:$0xff]   ;;  %v12386_v0 = vcombine.low %v17653_v21, %v17655_v59  ;;  %v12388_v36 = vcombine.low %v17657_v1, %v17661_v22  ;;  %v12389_v12 = vcombine.high %v17657_v1, %v17661_v22  ;;  %v17740_v22 = vld [vmem:[#allocation8 + $0x5b8] sm:$0xff] }
0x1c41   : > { %9777 = vmatmul.mubr.bf16.gmra.mrb[36].mxu0 %v17583_v28  ;;  %10031 = vmatprep.mubr.bf16.mxu1 %v18296_v8  ;;  %v14178_v28 = vld [vmem:[#allocation11 + $0x640] sm:$0xff]  }
0x1c42   : > { %10012 = vmatpush1.bf16.msra.mxu1 %v12346_v7  ;;  %10104 = vmatprep.mubr.bf16.mxu0 %v18296_v8 }
0x1c43   : > { %10085 = vmatpush1.bf16.msra.mxu0 %v12348_v48  ;;  %10013 = vmatprep.subr.bf16.mxu1 %v12351_v11 }
0x1c44   : > { %10086 = vmatprep.subr.bf16.mxu0 %v12353_v13 }
0x1c46   : > { %10014 = vmatpush1.bf16.msra.mxu1 %v12350_v49 }
0x1c47   : > { %10087 = vmatpush1.bf16.msra.mxu0 %v12352_v10  ;;  %13147 = vmatprep.subr.bf16.mxu1 %v14178_v28 }
0x1c48   : > { %13187 = vmatprep.subr.bf16.mxu0 %v14179_v16 }
0x1c49   : > { %10032 = vmatmul.mubr.bf16.vlgmr.msra.gmra.mrb[32].mxu1 %v17352_v24 }
0x1c4a   : > { %10105 = vmatmul.mubr.bf16.vlgmr.msra.gmra.mrb[40].mxu0 %v17352_v24  ;;  %10041 = vmatprep.mubr.bf16.mxu1 %v18296_v8 }
0x1c4b   : > { %10114 = vmatprep.mubr.bf16.mxu0 %v18296_v8  ;;  %13148 = vmatpush3.bf16.msra.mxu1 %v14180_v27 }
0x1c4c   : > { %13188 = vmatpush3.bf16.msra.mxu0 %v14181_v32  ;;  %13149 = vmatprep.subr.bf16.mxu1 %v14182_v54 }
0x1c4d   : > { %13189 = vmatprep.subr.bf16.mxu0 %v14183_v58 }
0x1c4f   : > { %13150 = vmatpush3.bf16.msra.mxu1 %v14184_v63 }
0x1c50   : > { %13190 = vmatpush3.bf16.msra.mxu0 %v14185_v5  ;;  %13151 = vmatprep.subr.bf16.mxu1 %v14186_v35 }
0x1c51   : > { %10042 = vmatmul.mubr.bf16.gmra.mrb[36].mxu1 %v17404_v60  ;;  %13191 = vmatprep.subr.bf16.mxu0 %v14187_v40 }
0x1c52   : > { %10115 = vmatmul.mubr.bf16.gmra.mrb[44].mxu0 %v17404_v60  ;;  %10051 = vmatprep.mubr.bf16.mxu1 %v18296_v8 }
0x1c53   : > { %10124 = vmatprep.mubr.bf16.mxu0 %v18296_v8  ;;  %13152 = vmatpush3.bf16.msra.mxu1 %v14188_v23 }
0x1c54   : > { %13192 = vmatpush3.bf16.msra.mxu0 %v14189_v19  ;;  %13153 = vmatprep.subr.bf16.mxu1 %v14190_v47 }
0x1c55   : > { %13193 = vmatprep.subr.bf16.mxu0 %v14191_v46 }
0x1c57   : > { %13154 = vmatpush3.bf16.msra.mxu1 %v14192_v2 }
0x1c58   : > { %13194 = vmatpush3.bf16.msra.mxu0 %v14193_v42  ;;  %13155 = vmatprep.subr.bf16.mxu1 %v14194_v43 }
0x1c59   : > { %10052 = vmatmul.mubr.bf16.gmra.mrb[40].mxu1 %v17435_v50  ;;  %13195 = vmatprep.subr.bf16.mxu0 %v14195_v39 }
0x1c5a   : > { %10125 = vmatmul.mubr.bf16.gmra.mrb[24].mxu0 %v17435_v50  ;;  %10061 = vmatprep.mubr.bf16.mxu1 %v18296_v8 }
0x1c5b   : > { %10134 = vmatprep.mubr.bf16.mxu0 %v18296_v8  ;;  %13156 = vmatpush3.bf16.msra.mxu1 %v14196_v61 }
0x1c5c   : > { %13196 = vmatpush3.bf16.msra.mxu0 %v14197_v30  ;;  %13157 = vmatprep.subr.bf16.mxu1 %v14198_v20 }
0x1c5d   : > { %13197 = vmatprep.subr.bf16.mxu0 %v14199_v53 }
0x1c5f   : > { %13158 = vmatpush3.bf16.msra.mxu1 %v14200_v4 }
0x1c60   : > { %13198 = vmatpush3.bf16.msra.mxu0 %v14201_v15  ;;  %13159 = vmatprep.subr.bf16.mxu1 %v14202_v25 }
0x1c61   : > { %10062 = vmatmul.mubr.bf16.gmra.mrb[44].mxu1 %v17463_v14  ;;  %13199 = vmatprep.subr.bf16.mxu0 %v14203_v37 }
0x1c62   : > { %10135 = vmatmul.mubr.bf16.gmra.mrb[28].mxu0 %v17463_v14 }
0x1c63   : > { %13160 = vmatpush3.bf16.msra.mxu1 %v14204_v56 }
0x1c64   : > { %13200 = vmatpush3.bf16.msra.mxu0 %v14205_v34  ;;  %13161 = vmatprep.subr.bf16.mxu1 %v14206_v29 }
0x1c65   : > { %13201 = vmatprep.subr.bf16.mxu0 %v14207_v55 }
0x1c67   : > { %13162 = vmatpush3.bf16.msra.mxu1 %v14208_v52 }
0x1c68   : > { %13202 = vmatpush3.bf16.msra.mxu0 %v14209_v17  ;;  %10801 = vmatprep.subr.bf16.mxu1 %v12387_v9 }
0x1c69   : > { %10874 = vmatprep.subr.bf16.mxu0 %v12389_v12 }
0x1cdb   : > { %v13003_v3 = vpop.f32.mrb[0].mxu1  ;;  %v13043_v18 = vpop.f32.mrb[0].mxu0 }
0x1cdc   : > { %v13004_v7 = vpop.f32.mrb[1].mxu1  ;;  %v13044_v48 = vpop.f32.mrb[1].mxu0 }
0x1cdd   : > { %v13005_v11 = vadd.f32 %v13004_v7, %v13003_v3  ;;  %v13045_v13 = vadd.f32 %v13044_v48, %v13043_v18  ;;  %v13006_v49 = vpop.f32.mrb[2].mxu1  ;;  %v13046_v10 = vpop.f32.mrb[2].mxu0 }
0x1cde   : > { %v13007_v28 = vpop.f32.mrb[3].mxu1  ;;  %v13047_v16 = vpop.f32.mrb[3].mxu0 }
0x1cdf   : > { %v9433_v27 = vadd.f32 %v13045_v13, %v13005_v11  ;;  %v13008_v32 = vadd.f32 %v13007_v28, %v13006_v49  ;;  %v13048_v54 = vadd.f32 %v13047_v16, %v13046_v10 }
0x1ce1   : > { %v9436_v58 = vadd.f32 %v13048_v54, %v13008_v32 }
0x1ce3   : > { %v13009_v63 = vpop.f32.mrb[4].mxu1  ;;  %v13049_v5 = vpop.f32.mrb[4].mxu0 }
0x1ce4   : > { %v13010_v35 = vpop.f32.mrb[5].mxu1  ;;  %v13050_v40 = vpop.f32.mrb[5].mxu0 }
0x1ce5   : > { %v13011_v23 = vadd.f32 %v13010_v35, %v13009_v63  ;;  %v13051_v19 = vadd.f32 %v13050_v40, %v13049_v5  ;;  %v13012_v47 = vpop.f32.mrb[6].mxu1  ;;  %v13052_v46 = vpop.f32.mrb[6].mxu0 }
0x1ce6   : > { %v13013_v2 = vpop.f32.mrb[7].mxu1  ;;  %v13053_v42 = vpop.f32.mrb[7].mxu0 }
0x1ce7   : > { %v9441_v43 = vadd.f32 %v13051_v19, %v13011_v23  ;;  %v13014_v39 = vadd.f32 %v13013_v2, %v13012_v47  ;;  %v13054_v61 = vadd.f32 %v13053_v42, %v13052_v46 }
0x1ce9   : > { %v9444_v30 = vadd.f32 %v13054_v61, %v13014_v39 }
0x1ceb   : > { %v13015_v20 = vpop.f32.mrb[8].mxu1  ;;  %v13055_v53 = vpop.f32.mrb[8].mxu0 }
0x1cec   : > { %v13016_v4 = vpop.f32.mrb[9].mxu1  ;;  %v13056_v15 = vpop.f32.mrb[9].mxu0 }
0x1ced   : > { %v13017_v25 = vadd.f32 %v13016_v4, %v13015_v20  ;;  %v13057_v37 = vadd.f32 %v13056_v15, %v13055_v53  ;;  %v13018_v56 = vpop.f32.mrb[10].mxu1  ;;  %v13058_v34 = vpop.f32.mrb[10].mxu0 }
0x1cee   : > { %v13019_v29 = vpop.f32.mrb[11].mxu1  ;;  %v13059_v55 = vpop.f32.mrb[11].mxu0 }
0x1cef   : > { %v9449_v52 = vadd.f32 %v13057_v37, %v13017_v25  ;;  %v13020_v17 = vadd.f32 %v13019_v29, %v13018_v56  ;;  %v13060_v9 = vadd.f32 %v13059_v55, %v13058_v34 }
0x1cf1   : > { %v9452_v12 = vadd.f32 %v13060_v9, %v13020_v17 }
0x1cf3   : > { %v13021_v3 = vpop.f32.mrb[12].mxu1  ;;  %v13061_v18 = vpop.f32.mrb[12].mxu0 }
0x1cf4   : > { %v13022_v7 = vpop.f32.mrb[13].mxu1  ;;  %v13062_v48 = vpop.f32.mrb[13].mxu0 }
0x1cf5   : > { %v13023_v11 = vadd.f32 %v13022_v7, %v13021_v3  ;;  %v13063_v13 = vadd.f32 %v13062_v48, %v13061_v18  ;;  %v13024_v49 = vpop.f32.mrb[14].mxu1  ;;  %v13064_v10 = vpop.f32.mrb[14].mxu0 }
0x1cf6   : > { %v13025_v28 = vpop.f32.mrb[15].mxu1  ;;  %v13065_v16 = vpop.f32.mrb[15].mxu0 }
0x1cf7   : > { %v9457_v32 = vadd.f32 %v13063_v13, %v13023_v11  ;;  %v13026_v54 = vadd.f32 %v13025_v28, %v13024_v49  ;;  %v13066_v63 = vadd.f32 %v13065_v16, %v13064_v10 }
0x1cf9   : > { %v17669_v5 = vadd.f32 %v13066_v63, %v13026_v54 }
0x1cfb   : > { %v13083_v35 = vpop.f32.mrb[16].mxu1 }
0x1cfc   : > { %v13123_v40 = vpop.f32.mrb[16].mxu0  ;;  %v13084_v23 = vpop.f32.mrb[17].mxu1 }
0x1cfd   : > { %v13085_v19 = vadd.f32 %v13084_v23, %v13083_v35  ;;  %v13124_v47 = vpop.f32.mrb[17].mxu0  ;;  %v13086_v46 = vpop.f32.mrb[18].mxu1 }
0x1cfe   : > { %v13125_v2 = vadd.f32 %v13124_v47, %v13123_v40  ;;  %v13126_v42 = vpop.f32.mrb[18].mxu0  ;;  %v13087_v39 = vpop.f32.mrb[19].mxu1 }
0x1cff   : > { %v9690_v61 = vadd.f32 %v13085_v19, %v9433_v27  ;;  %v13088_v20 = vadd.f32 %v13087_v39, %v13086_v46  ;;  %v13127_v53 = vpop.f32.mrb[19].mxu0 }
0x1d00   : > { %v13128_v4 = vadd.f32 %v13127_v53, %v13126_v42 }
0x1d01   : > { %v17671_v15 = vadd.f32 %v13125_v2, %v9690_v61  ;;  %v9693_v25 = vadd.f32 %v13088_v20, %v9436_v58 }
0x1d03   : > { %v17673_v37 = vadd.f32 %v13128_v4, %v9693_v25  ;;  %v13089_v56 = vpop.f32.mrb[20].mxu1 }
0x1d04   : > { %v13129_v34 = vpop.f32.mrb[20].mxu0  ;;  %v13090_v29 = vpop.f32.mrb[21].mxu1 }
0x1d05   : > { %v13091_v55 = vadd.f32 %v13090_v29, %v13089_v56  ;;  %v13130_v17 = vpop.f32.mrb[21].mxu0  ;;  %v13092_v9 = vpop.f32.mrb[22].mxu1 }
0x1d06   : > { %v13131_v3 = vadd.f32 %v13130_v17, %v13129_v34  ;;  %v13132_v18 = vpop.f32.mrb[22].mxu0  ;;  %v13093_v7 = vpop.f32.mrb[23].mxu1 }
0x1d07   : > { %v9698_v48 = vadd.f32 %v13091_v55, %v9441_v43  ;;  %v13094_v11 = vadd.f32 %v13093_v7, %v13092_v9  ;;  %v13133_v27 = vpop.f32.mrb[23].mxu0  ;;  %v9817_v9 = vld [vmem:[#allocation10 + $0x18] sm:$0xf] }
0x1d08   : > { %v13134_v13 = vadd.f32 %v13133_v27, %v13132_v18  ;;  %v17690_v27 = vrot.slane %v9817_v9, %v15312_v57 }
0x1d09   : > { %v17675_v49 = vadd.f32 %v13131_v3, %v9698_v48  ;;  %v9701_v10 = vadd.f32 %v13094_v11, %v9444_v30  ;;  %v17687_v11 = vrot.slane %v9817_v9, %v15240_v31 }
0x1d0b   : > { %v17677_v28 = vadd.f32 %v13134_v13, %v9701_v10  ;;  %v13095_v58 = vpop.f32.mrb[24].mxu1  ;;  %v17693_v13 = vrot.slane %v9817_v9, %v15248_v33 }
0x1d0c   : > { %v13135_v16 = vpop.f32.mrb[32].mxu0  ;;  %v13096_v54 = vpop.f32.mrb[25].mxu1 }
0x1d0d   : > { %v13097_v63 = vadd.f32 %v13096_v54, %v13095_v58  ;;  %v13136_v35 = vpop.f32.mrb[33].mxu0  ;;  %v13098_v40 = vpop.f32.mrb[26].mxu1 }
0x1d0e   : > { %v13137_v23 = vadd.f32 %v13136_v35, %v13135_v16  ;;  %v13138_v19 = vpop.f32.mrb[34].mxu0  ;;  %v13099_v47 = vpop.f32.mrb[27].mxu1 }
0x1d0f   : > { %v9706_v46 = vadd.f32 %v13097_v63, %v9449_v52  ;;  %v13100_v2 = vadd.f32 %v13099_v47, %v13098_v40  ;;  %v13139_v43 = vpop.f32.mrb[35].mxu0 }
0x1d10   : > { %v13140_v42 = vadd.f32 %v13139_v43, %v13138_v19 }
0x1d11   : > { %v17679_v39 = vadd.f32 %v13137_v23, %v9706_v46  ;;  %v9709_v61 = vadd.f32 %v13100_v2, %v9452_v12 }
0x1d13   : > { %v17681_v20 = vadd.f32 %v13140_v42, %v9709_v61  ;;  %v13101_v30 = vpop.f32.mrb[28].mxu1 }
0x1d14   : > { %v13141_v53 = vpop.f32.mrb[36].mxu0  ;;  %v13102_v4 = vpop.f32.mrb[29].mxu1 }
0x1d15   : > { %v13103_v25 = vadd.f32 %v13102_v4, %v13101_v30  ;;  %v13142_v56 = vpop.f32.mrb[37].mxu0  ;;  %v13104_v34 = vpop.f32.mrb[30].mxu1 }
0x1d16   : > { %v13143_v29 = vadd.f32 %v13142_v56, %v13141_v53  ;;  %v13144_v55 = vpop.f32.mrb[38].mxu0  ;;  %v13105_v17 = vpop.f32.mrb[31].mxu1 }
0x1d17   : > { %v9714_v3 = vadd.f32 %v13103_v25, %v9457_v32  ;;  %v13106_v52 = vadd.f32 %v13105_v17, %v13104_v34  ;;  %v13145_v18 = vpop.f32.mrb[39].mxu0  ;;  %v17698_v32 = vrot.slane %v9817_v9, %v16021_v44  ;;  %v10593_v17 = vld [vmem:[#allocation8 + $0x4f0] sm:$0xff] }
0x1d18   : > { %v13146_v7 = vadd.f32 %v13145_v18, %v13144_v55  ;;  %v10591_v55 = vld [vmem:[#allocation8 + $0x4b0] sm:$0xff]  ;;  %v10592_v18 = vld [vmem:[#allocation8 + $0x4b8] sm:$0xff] }
0x1d19   : > { %v17683_v48 = vadd.f32 %v13143_v29, %v9714_v3  ;;  %v9717_v12 = vadd.f32 %v13106_v52, %v17669_v5 }
0x1d1b   : > { %v17695_v10 = vadd.f32 %v13146_v7, %v9717_v12  ;;  %v10594_v7 = vld [vmem:[#allocation8 + $0x4f8] sm:$0xff] }
0x1d1c   : > { %v10033_v58 = vpop.f32.mrb[32].mxu1 }
0x1d1d   : > { %v10034_v16 = vadd.f32 %v10033_v58, %v17687_v11  ;;  %v10106_v54 = vpop.f32.mrb[40].mxu0  ;;  %v10035_v63 = vpop.f32.mrb[33].mxu1 }
0x1d1e   : > { %v10107_v5 = vadd.f32 %v10106_v54, %v17690_v27  ;;  %v10036_v35 = vadd.f32 %v10035_v63, %v17693_v13  ;;  %v10108_v40 = vpop.f32.mrb[41].mxu0  ;;  %v10037_v23 = vpop.f32.mrb[34].mxu1 }
0x1d1f   : > { %v10109_v19 = vadd.f32 %v10108_v40, %v17698_v32  ;;  %v10038_v47 = vadd.f32 %v10037_v23, %v17687_v11  ;;  %v10110_v46 = vpop.f32.mrb[42].mxu0  ;;  %v10039_v2 = vpop.f32.mrb[35].mxu1  ;;  %v10145_v30 = vmax.f32 %v10034_v16, 0.0 }
0x1d20   : > { %v10111_v43 = vadd.f32 %v10110_v46, %v17690_v27  ;;  %v10040_v42 = vadd.f32 %v10039_v2, %v17693_v13  ;;  %v10112_v61 = vpop.f32.mrb[43].mxu0  ;;  %v10147_v25 = vmax.f32 %v10107_v5, 0.0  ;;  %v10146_v56 = vmax.f32 %v10036_v35, 0.0  ;;  %v17709_v5 = vld [vmem:[#allocation8 + $0x530] sm:$0xff] }
0x1d21   : > { %v10149_v53 = vmax.f32 %v10038_v47, 0.0  ;;  %v10113_v4 = vadd.f32 %v10112_v61, %v17698_v32  ;;  %v10148_v9 = vmax.f32 %v10109_v19, 0.0  ;;  %v12391_v47 = vcombine.high %v10591_v55, %v10593_v17  ;;  %v17711_v35 = vld [vmem:[#allocation8 + $0x570] sm:$0xff] }
0x1d22   : > { %v10151_v34 = vmax.f32 %v10111_v43, 0.0  ;;  %v10150_v29 = vmax.f32 %v10040_v42, 0.0  ;;  %v12390_v42 = vcombine.low %v10591_v55, %v10593_v17  ;;  %v12393_v61 = vcombine.high %v10592_v18, %v10594_v7 }
0x1d23   : > { %v10177_v3 = vpack.c.bf16 %v10149_v53, %v10145_v30  ;;  %v10152_v52 = vmax.f32 %v10113_v4, 0.0  ;;  %v17715_v30 = vld [vmem:[#allocation8 + $0x538] sm:$0xff]  ;;  %v12395_v55 = vcombine.high %v17709_v5, %v17711_v35  ;;  %v12394_v1 = vcombine.low %v17709_v5, %v17711_v35 }
0x1d24   : > { %v10179_v12 = vpack.c.bf16 %v10151_v34, %v10147_v25  ;;  %v10178_v58 = vpack.c.bf16 %v10150_v29, %v10146_v56  ;;  %v10043_v54 = vpop.f32.mrb[36].mxu1  ;;  %v17717_v53 = vld [vmem:[#allocation8 + $0x578] sm:$0xff]  ;;  %v12392_v29 = vcombine.low %v10592_v18, %v10594_v7  ;;  %v17734_v18 = vld [vmem:[#allocation8 + $0x5b0] sm:$0xff] }
0x1d25   : > { %v10180_v63 = vpack.c.bf16 %v10152_v52, %v10148_v9  ;;  %v10044_v16 = vadd.f32 %v10043_v54, %v17687_v11  ;;  %v10116_v40 = vpop.f32.mrb[44].mxu0  ;;  %v10045_v23 = vpop.f32.mrb[37].mxu1  ;;  %v17736_v7 = vld [vmem:[#allocation8 + $0x5f0] sm:$0xff] }
0x1d26   : > { %v10117_v46 = vadd.f32 %v10116_v40, %v17690_v27  ;;  %v10046_v19 = vadd.f32 %v10045_v23, %v17693_v13  ;;  %v10118_v2 = vpop.f32.mrb[45].mxu0  ;;  %v10047_v43 = vpop.f32.mrb[38].mxu1  ;;  %10481 = vmatprep.mubr.bf16.mxu1 %v10178_v58  ;;  %v12398_v35 = vcombine.low %v17734_v18, %v17736_v7 }
0x1d27   : > { %v10119_v4 = vadd.f32 %v10118_v2, %v17698_v32  ;;  %v10048_v25 = vadd.f32 %v10047_v43, %v17687_v11  ;;  %v10120_v56 = vpop.f32.mrb[46].mxu0  ;;  %10546 = vmatprep.mubr.bf16.mxu0 %v10180_v63  ;;  %v10049_v34 = vpop.f32.mrb[39].mxu1  ;;  %10482 = vmatmul.mubr.bf16.vlgmr.msra.gmra.mrb[48].mxu1 %v10177_v3  ;;  %v10153_v17 = vmax.f32 %v10044_v16, 0.0  ;;  %v12397_v3 = vcombine.high %v17715_v30, %v17717_v53 }
0x1d28   : > { %v10121_v9 = vadd.f32 %v10120_v56, %v17690_v27  ;;  %v10050_v52 = vadd.f32 %v10049_v34, %v17693_v13  ;;  %v10122_v58 = vpop.f32.mrb[47].mxu0  ;;  %10547 = vmatmul.mubr.bf16.vlgmr.msra.gmra.mrb[48].mxu0 %v10179_v12  ;;  %10802 = vmatpush1.bf16.msra.mxu1 %v12386_v0  ;;  %v10155_v21 = vmax.f32 %v10117_v46, 0.0  ;;  %v10154_v59 = vmax.f32 %v10046_v19, 0.0  ;;  %v17751_v56 = vld [vmem:[#allocation8 + $0x630] sm:$0xff] }
0x1d29   : > { %v10157_v54 = vmax.f32 %v10048_v25, 0.0  ;;  %v10123_v63 = vadd.f32 %v10122_v58, %v17698_v32  ;;  %10875 = vmatpush1.bf16.msra.mxu0 %v12388_v36  ;;  %10803 = vmatprep.subr.bf16.mxu1 %v12391_v47  ;;  %v10156_v16 = vmax.f32 %v10119_v4, 0.0  ;;  %v17742_v36 = vld [vmem:[#allocation8 + $0x5f8] sm:$0xff]  ;;  %v12396_v46 = vcombine.low %v17715_v30, %v17717_v53  ;;  %v17753_v34 = vld [vmem:[#allocation8 + $0x670] sm:$0xff] }
0x1d2a   : > { %v10159_v0 = vmax.f32 %v10121_v9, 0.0  ;;  %v10158_v12 = vmax.f32 %v10050_v52, 0.0  ;;  %10876 = vmatprep.subr.bf16.mxu0 %v12393_v61  ;;  %v12399_v19 = vcombine.high %v17734_v18, %v17736_v7  ;;  %v17759_v52 = vld [vmem:[#allocation8 + $0x638] sm:$0xff]  ;;  %v12400_v18 = vcombine.low %v17740_v22, %v17742_v36 }
0x1d2b   : > { %v10181_v40 = vpack.c.bf16 %v10157_v54, %v10153_v17  ;;  %v10160_v23 = vmax.f32 %v10123_v63, 0.0  ;;  %v17761_v58 = vld [vmem:[#allocation8 + $0x678] sm:$0xff] }
0x1d2c   : > { %v10183_v47 = vpack.c.bf16 %v10159_v0, %v10155_v21  ;;  %v10182_v2 = vpack.c.bf16 %v10158_v12, %v10154_v59  ;;  %v10053_v43 = vpop.f32.mrb[40].mxu1  ;;  %10804 = vmatpush1.bf16.msra.mxu1 %v12390_v42  ;;  %v12403_v59 = vcombine.high %v17751_v56, %v17753_v34 }
0x1d2d   : > { %v10184_v61 = vpack.c.bf16 %v10160_v23, %v10156_v16  ;;  %v10054_v4 = vadd.f32 %v10053_v43, %v17687_v11  ;;  %v10126_v25 = vpop.f32.mrb[24].mxu0  ;;  %10877 = vmatpush1.bf16.msra.mxu0 %v12392_v29  ;;  %v10055_v5 = vpop.f32.mrb[41].mxu1  ;;  %10805 = vmatprep.subr.bf16.mxu1 %v12395_v55  ;;  %v12401_v29 = vcombine.high %v17740_v22, %v17742_v36  ;;  %v17774_v23 = vld [vmem:[#allocation8 + $0x6b0] sm:$0xff] }
0x1d2e   : > { %v10127_v42 = vadd.f32 %v10126_v25, %v17690_v27  ;;  %v10056_v30 = vadd.f32 %v10055_v5, %v17693_v13  ;;  %v10128_v53 = vpop.f32.mrb[25].mxu0  ;;  %v10057_v9 = vpop.f32.mrb[42].mxu1  ;;  %10489 = vmatprep.mubr.bf16.mxu1 %v10182_v2  ;;  %10878 = vmatprep.subr.bf16.mxu0 %v12397_v3  ;;  %v17776_v22 = vld [vmem:[#allocation8 + $0x6f0] sm:$0xff]  ;;  %v12402_v25 = vcombine.low %v17751_v56, %v17753_v34 }
0x1d2f   : > { %v10129_v55 = vadd.f32 %v10128_v53, %v17698_v32  ;;  %v10058_v17 = vadd.f32 %v10057_v9, %v17687_v11  ;;  %v10130_v54 = vpop.f32.mrb[26].mxu0  ;;  %10554 = vmatprep.mubr.bf16.mxu0 %v10184_v61  ;;  %v10059_v63 = vpop.f32.mrb[43].mxu1  ;;  %10490 = vmatmul.mubr.bf16.gmra.mrb[52].mxu1 %v10181_v40  ;;  %v10161_v0 = vmax.f32 %v10054_v4, 0.0  ;;  %v12405_v40 = vcombine.high %v17759_v52, %v17761_v58  ;;  %v10611_v34 = vld [vmem:[#allocation8 + $0x730] sm:$0xff] }
0x1d30   : > { %v10131_v3 = vadd.f32 %v10130_v54, %v17690_v27  ;;  %v10060_v7 = vadd.f32 %v10059_v63, %v17693_v13  ;;  %v10132_v21 = vpop.f32.mrb[27].mxu0  ;;  %10555 = vmatmul.mubr.bf16.gmra.mrb[52].mxu0 %v10183_v47  ;;  %10806 = vmatpush1.bf16.msra.mxu1 %v12394_v1  ;;  %v10163_v36 = vmax.f32 %v10127_v42, 0.0  ;;  %v10162_v2 = vmax.f32 %v10056_v30, 0.0  ;;  %v10613_v63 = vld [vmem:[#allocation8 + $0x770] sm:$0xff] }
0x1d31   : > { %v10165_v12 = vmax.f32 %v10058_v17, 0.0  ;;  %v10133_v16 = vadd.f32 %v10132_v21, %v17698_v32  ;;  %10879 = vmatpush1.bf16.msra.mxu0 %v12396_v46  ;;  %10807 = vmatprep.subr.bf16.mxu1 %v12399_v19  ;;  %v10164_v43 = vmax.f32 %v10129_v55, 0.0  ;;  %v10608_v46 = vld [vmem:[#allocation8 + $0x6b8] sm:$0xff]  ;;  %v12404_v17 = vcombine.low %v17759_v52, %v17761_v58 }
0x1d32   : > { %v10167_v47 = vmax.f32 %v10131_v3, 0.0  ;;  %v10166_v1 = vmax.f32 %v10060_v7, 0.0  ;;  %10880 = vmatprep.subr.bf16.mxu0 %v12401_v29  ;;  %v10610_v19 = vld [vmem:[#allocation8 + $0x6f8] sm:$0xff]  ;;  %v12407_v42 = vcombine.high %v17774_v23, %v17776_v22  ;;  %v12406_v56 = vcombine.low %v17774_v23, %v17776_v22 }
0x1d33   : > { %v10185_v61 = vpack.c.bf16 %v10165_v12, %v10161_v0  ;;  %v10168_v4 = vmax.f32 %v10133_v16, 0.0  ;;  %v12409_v7 = vcombine.high %v10608_v46, %v10610_v19  ;;  %v10612_v21 = vld [vmem:[#allocation8 + $0x738] sm:$0xff]  ;;  %v12408_v23 = vcombine.low %v10608_v46, %v10610_v19  ;;  %v10615_v46 = vld [vmem:[#allocation8 + $0x7b0] sm:$0xff] }
0x1d34   : > { %v10187_v5 = vpack.c.bf16 %v10167_v47, %v10163_v36  ;;  %v10186_v53 = vpack.c.bf16 %v10166_v1, %v10162_v2  ;;  %v10063_v9 = vpop.f32.mrb[44].mxu1  ;;  %10808 = vmatpush1.bf16.msra.mxu1 %v12398_v35  ;;  %v10614_v0 = vld [vmem:[#allocation8 + $0x778] sm:$0xff] }
0x1d35   : > { %v10188_v30 = vpack.c.bf16 %v10168_v4, %v10164_v43  ;;  %v10064_v29 = vadd.f32 %v10063_v9, %v17687_v11  ;;  %v10136_v55 = vpop.f32.mrb[28].mxu0  ;;  %10881 = vmatpush1.bf16.msra.mxu0 %v12400_v18  ;;  %v10065_v54 = vpop.f32.mrb[45].mxu1  ;;  %10809 = vmatprep.subr.bf16.mxu1 %v12403_v59 }
0x1d36   : > { %v10137_v35 = vadd.f32 %v10136_v55, %v17690_v27  ;;  %v10066_v3 = vadd.f32 %v10065_v54, %v17693_v13  ;;  %v10138_v52 = vpop.f32.mrb[29].mxu0  ;;  %v10067_v58 = vpop.f32.mrb[46].mxu1  ;;  %10497 = vmatprep.mubr.bf16.mxu1 %v10186_v53  ;;  %10882 = vmatprep.subr.bf16.mxu0 %v12405_v40  ;;  %v12411_v40 = vcombine.high %v10611_v34, %v10613_v63 }
0x1d37   : > { %v10139_v18 = vadd.f32 %v10138_v52, %v17698_v32  ;;  %v10068_v59 = vadd.f32 %v10067_v58, %v17687_v11  ;;  %v10140_v12 = vpop.f32.mrb[30].mxu0  ;;  %10562 = vmatprep.mubr.bf16.mxu0 %v10188_v30  ;;  %v10069_v16 = vpop.f32.mrb[47].mxu1  ;;  %10498 = vmatmul.mubr.bf16.gmra.mrb[56].mxu1 %v10185_v61  ;;  %v10169_v47 = vmax.f32 %v10064_v29, 0.0  ;;  %v12413_v11 = vcombine.high %v10612_v21, %v10614_v0  ;;  %v14215_v58 = vld [vmem:[#allocation11 + $0x7c8] sm:$0xff]  }
0x1d38   : > { %v10141_v22 = vadd.f32 %v10140_v12, %v17690_v27  ;;  %v10070_v36 = vadd.f32 %v10069_v16, %v17693_v13  ;;  %v10142_v2 = vpop.f32.mrb[31].mxu0  ;;  %10563 = vmatmul.mubr.bf16.gmra.mrb[56].mxu0 %v10187_v5  ;;  %10810 = vmatpush1.bf16.msra.mxu1 %v12402_v25  ;;  %v10171_v4 = vmax.f32 %v10137_v35, 0.0  ;;  %v10170_v53 = vmax.f32 %v10066_v3, 0.0  ;;  %v10617_v27 = vld [vmem:[#allocation8 + $0x7f0] sm:$0xff]  ;;  %v10616_v5 = vld [vmem:[#allocation8 + $0x7b8] sm:$0xff] }
0x1d39   : > { %v10173_v1 = vmax.f32 %v10068_v59, 0.0  ;;  %v10143_v43 = vadd.f32 %v10142_v2, %v17698_v32  ;;  %10883 = vmatpush1.bf16.msra.mxu0 %v12404_v17  ;;  %10811 = vmatprep.subr.bf16.mxu1 %v12407_v42  ;;  %v10172_v19 = vmax.f32 %v10139_v18, 0.0  ;;  %v10618_v25 = vld [vmem:[#allocation8 + $0x7f8] sm:$0xff]  ;;  %v12410_v54 = vcombine.low %v10611_v34, %v10613_v63  ;;  %v14212_v34 = vld [vmem:[#allocation11 + $0x700] sm:$0xff]   ;;  %v14214_v63 = vld [vmem:[#allocation11 + $0x748] sm:$0xff]  }
0x1d3a   : > { %v10175_v9 = vmax.f32 %v10141_v22, 0.0  ;;  %v10174_v61 = vmax.f32 %v10070_v36, 0.0  ;;  %10884 = vmatprep.subr.bf16.mxu0 %v12409_v7  ;;  %v12412_v17 = vcombine.low %v10612_v21, %v10614_v0  ;;  %v12415_v42 = vcombine.high %v10615_v46, %v10617_v27  ;;  %v14216_v7 = vld [vmem:[#allocation11 + $0x708] sm:$0xff]   ;;  %v14219_v21 = vld [vmem:[#allocation11 + $0x7d0] sm:$0xff]   ;;  %v14222_v18 = vld [vmem:[#allocation11 + $0x758] sm:$0xff]  }
0x1d3b   : > { %v10189_v13 = vpack.c.bf16 %v10173_v1, %v10169_v47  ;;  %v10176_v30 = vmax.f32 %v10143_v43, 0.0  ;;  %v12417_v35 = vcombine.high %v10616_v5, %v10618_v25  ;;  %v12414_v3 = vcombine.low %v10615_v46, %v10617_v27  ;;  %v14220_v0 = vld [vmem:[#allocation11 + $0x710] sm:$0xff]   ;;  %v14223_v59 = vld [vmem:[#allocation11 + $0x7d8] sm:$0xff]   ;;  %v14227_v22 = vld [vmem:[#allocation11 + $0x7e0] sm:$0xff]  }
0x1d3c   : > { %v10191_v55 = vpack.c.bf16 %v10175_v9, %v10171_v4  ;;  %v10190_v29 = vpack.c.bf16 %v10174_v61, %v10170_v53  ;;  %10812 = vmatpush1.bf16.msra.mxu1 %v12406_v56  ;;  %v12416_v52 = vcombine.low %v10616_v5, %v10618_v25  ;;  %v14211_v56 = vld [vmem:[#allocation11 + $0x7c0] sm:$0xff]   ;;  %v14224_v12 = vld [vmem:[#allocation11 + $0x718] sm:$0xff]   ;;  %v14231_v47 = vld [vmem:[#allocation11 + $0x7e8] sm:$0xff]  }
0x1d3d   : > { %v10192_v32 = vpack.c.bf16 %v10176_v30, %v10172_v19  ;;  %10885 = vmatpush1.bf16.msra.mxu0 %v12408_v23  ;;  %10813 = vmatprep.subr.bf16.mxu1 %v12411_v40  ;;  %v14225_v16 = vld [vmem:[#allocation11 + $0x798] sm:$0xff]   ;;  %v14226_v23 = vld [vmem:[#allocation11 + $0x760] sm:$0xff]   ;;  %v14230_v40 = vld [vmem:[#allocation11 + $0x768] sm:$0xff]  }
0x1d3e   : > { %10505 = vmatprep.mubr.bf16.mxu1 %v10190_v29  ;;  %10886 = vmatprep.subr.bf16.mxu0 %v12413_v11  ;;  %v14228_v36 = vld [vmem:[#allocation11 + $0x720] sm:$0xff]   ;;  %v14232_v1 = vld [vmem:[#allocation11 + $0x728] sm:$0xff]   ;;  %v14234_v11 = vld [vmem:[#allocation11 + $0x770] sm:$0xff]  }
0x1d3f   : > { %10570 = vmatprep.mubr.bf16.mxu0 %v10192_v32  ;;  %10506 = vmatmul.mubr.bf16.gmra.mrb[60].mxu1 %v10189_v13  ;;  %v14229_v2 = vld [vmem:[#allocation11 + $0x7a0] sm:$0xff]   ;;  %v14233_v43 = vld [vmem:[#allocation11 + $0x7a8] sm:$0xff]   ;;  %v14235_v4 = vld [vmem:[#allocation11 + $0x7f0] sm:$0xff]  }
0x1d40   : > { %10571 = vmatmul.mubr.bf16.gmra.mrb[60].mxu0 %v10191_v55  ;;  %10814 = vmatpush1.bf16.msra.mxu1 %v12410_v54  ;;  %v14236_v53 = vld [vmem:[#allocation11 + $0x730] sm:$0xff]   ;;  %v14238_v61 = vld [vmem:[#allocation11 + $0x778] sm:$0xff]  }
0x1d41   : > { %10887 = vmatpush1.bf16.msra.mxu0 %v12412_v17  ;;  %10815 = vmatprep.subr.bf16.mxu1 %v12415_v42  ;;  %v14237_v9 = vld [vmem:[#allocation11 + $0x7b0] sm:$0xff]   ;;  %v14239_v46 = vld [vmem:[#allocation11 + $0x7f8] sm:$0xff]  }
0x1d42   : > { %10888 = vmatprep.subr.bf16.mxu0 %v12417_v35  ;;  %10833 = vmatprep.mubr.bf16.mxu1 %v18296_v8  ;;  %v14240_v27 = vld [vmem:[#allocation11 + $0x738] sm:$0xff]  }
0x1d43   : > { %10906 = vmatprep.mubr.bf16.mxu0 %v18296_v8  ;;  %v14241_v19 = vld [vmem:[#allocation11 + $0x7b8] sm:$0xff]  }
0x1d44   : > { %10816 = vmatpush1.bf16.msra.mxu1 %v12414_v3 }
0x1d45   : > { %10889 = vmatpush1.bf16.msra.mxu0 %v12416_v52 }
0x1d46   : > { %13267 = vmatprep.subr.bf16.mxu0 %v14211_v56 }
0x1d47   : > { %10834 = vmatmul.mubr.bf16.vlgmr.msra.gmra.mrb[64].mxu1 %v17352_v24 }
0x1d48   : > { %10907 = vmatmul.mubr.bf16.vlgmr.msra.gmra.mrb[64].mxu0 %v17352_v24  ;;  %10843 = vmatprep.mubr.bf16.mxu1 %v18296_v8  ;;  %v14210_v24 = vld [vmem:[#allocation11 + $0x740] sm:$0xff]  }
0x1d49   : > { %10916 = vmatprep.mubr.bf16.mxu0 %v18296_v8  ;;  %13227 = vmatprep.subr.bf16.mxu1 %v14210_v24 }
0x1d4a   : > { %13228 = vmatpush3.bf16.msra.mxu1 %v14212_v34 }
0x1d4b   : > { %13229 = vmatprep.subr.bf16.mxu1 %v14214_v63 }
0x1d4e   : > { %13230 = vmatpush3.bf16.msra.mxu1 %v14216_v7 }
0x1d4f   : > { %10844 = vmatmul.mubr.bf16.gmra.mrb[68].mxu1 %v17404_v60 }
0x1d50   : > { %10917 = vmatmul.mubr.bf16.gmra.mrb[68].mxu0 %v17404_v60  ;;  %10853 = vmatprep.mubr.bf16.mxu1 %v18296_v8  ;;  %v14213_v60 = vld [vmem:[#allocation11 + $0x780] sm:$0xff]  }
0x1d51   : > { %10926 = vmatprep.mubr.bf16.mxu0 %v18296_v8  ;;  %13268 = vmatpush3.bf16.msra.mxu0 %v14213_v60 }
0x1d52   : > { %13269 = vmatprep.subr.bf16.mxu0 %v14215_v58 }
0x1d57   : > { %10854 = vmatmul.mubr.bf16.gmra.mrb[72].mxu1 %v17435_v50 }
0x1d58   : > { %10927 = vmatmul.mubr.bf16.gmra.mrb[72].mxu0 %v17435_v50  ;;  %10863 = vmatprep.mubr.bf16.mxu1 %v18296_v8  ;;  %v14217_v50 = vld [vmem:[#allocation11 + $0x788] sm:$0xff]  }
0x1d59   : > { %10936 = vmatprep.mubr.bf16.mxu0 %v18296_v8  ;;  %13270 = vmatpush3.bf16.msra.mxu0 %v14217_v50  ;;  %v14218_v8 = vld [vmem:[#allocation11 + $0x750] sm:$0xff]  }
0x1d5a   : > { %13231 = vmatprep.subr.bf16.mxu1 %v14218_v8  ;;  %13271 = vmatprep.subr.bf16.mxu0 %v14219_v21 }
0x1d5b   : > { %13232 = vmatpush3.bf16.msra.mxu1 %v14220_v0 }
0x1d5c   : > { %13233 = vmatprep.subr.bf16.mxu1 %v14222_v18 }
0x1d5f   : > { %10864 = vmatmul.mubr.bf16.gmra.mrb[76].mxu1 %v17463_v14 }
0x1d60   : > { %10937 = vmatmul.mubr.bf16.gmra.mrb[76].mxu0 %v17463_v14  ;;  %v14221_v14 = vld [vmem:[#allocation11 + $0x790] sm:$0xff]   ;;  %13234 = vmatpush3.bf16.msra.mxu1 %v14224_v12 }
0x1d61   : > { %13272 = vmatpush3.bf16.msra.mxu0 %v14221_v14  ;;  %13235 = vmatprep.subr.bf16.mxu1 %v14226_v23 }
0x1d62   : > { %13273 = vmatprep.subr.bf16.mxu0 %v14223_v59 }
0x1d64   : > { %13236 = vmatpush3.bf16.msra.mxu1 %v14228_v36 }
0x1d65   : > { %13274 = vmatpush3.bf16.msra.mxu0 %v14225_v16  ;;  %13237 = vmatprep.subr.bf16.mxu1 %v14230_v40 }
0x1d66   : > { %13275 = vmatprep.subr.bf16.mxu0 %v14227_v22 }
0x1d68   : > { %13238 = vmatpush3.bf16.msra.mxu1 %v14232_v1 }
0x1d69   : > { %13276 = vmatpush3.bf16.msra.mxu0 %v14229_v2  ;;  %13239 = vmatprep.subr.bf16.mxu1 %v14234_v11 }
0x1d6a   : > { %13277 = vmatprep.subr.bf16.mxu0 %v14231_v47 }
0x1d6c   : > { %13240 = vmatpush3.bf16.msra.mxu1 %v14236_v53 }
0x1d6d   : > { %13278 = vmatpush3.bf16.msra.mxu0 %v14233_v43  ;;  %13241 = vmatprep.subr.bf16.mxu1 %v14238_v61 }
0x1d6e   : > { %13279 = vmatprep.subr.bf16.mxu0 %v14235_v4 }
0x1d70   : > { %13242 = vmatpush3.bf16.msra.mxu1 %v14240_v27 }
0x1d71   : > { %13280 = vmatpush3.bf16.msra.mxu0 %v14237_v9 }
0x1d72   : > { %13281 = vmatprep.subr.bf16.mxu0 %v14239_v46 }
0x1d75   : > { %13282 = vmatpush3.bf16.msra.mxu0 %v14241_v19 }
0x1dfa   : > { %v13163_v13 = vpop.f32.mrb[48].mxu1 }
0x1dfb   : > { %v13203_v30 = vpop.f32.mrb[48].mxu0  ;;  %v13164_v5 = vpop.f32.mrb[49].mxu1 }
0x1dfc   : > { %v13165_v25 = vadd.f32 %v13164_v5, %v13163_v13  ;;  %v13204_v55 = vpop.f32.mrb[49].mxu0  ;;  %v13166_v29 = vpop.f32.mrb[50].mxu1 }
0x1dfd   : > { %v13205_v54 = vadd.f32 %v13204_v55, %v13203_v30  ;;  %v13206_v32 = vpop.f32.mrb[50].mxu0  ;;  %v13167_v17 = vpop.f32.mrb[51].mxu1 }
0x1dfe   : > { %v13168_v42 = vadd.f32 %v13167_v17, %v13166_v29  ;;  %v13207_v35 = vpop.f32.mrb[51].mxu0  ;;  %v10619_v29 = vld [vmem:[#allocation10 + $0x1c] sm:$0xf] }
0x1dff   : > { %v10549_v3 = vadd.f32 %v13205_v54, %v13165_v25  ;;  %v13208_v52 = vadd.f32 %v13207_v35, %v13206_v32 }
0x1e01   : > { %v17811_v24 = vadd.f32 %v10549_v3, %v17671_v15  ;;  %v10552_v56 = vadd.f32 %v13208_v52, %v13168_v42 }
0x1e02   : > { %v13169_v34 = vpop.f32.mrb[52].mxu1 }
0x1e03   : > { %v17814_v60 = vadd.f32 %v10552_v56, %v17673_v37  ;;  %v13209_v63 = vpop.f32.mrb[52].mxu0  ;;  %v13170_v58 = vpop.f32.mrb[53].mxu1  ;;  %v17832_v56 = vrot.slane %v10619_v29, %v15312_v57 }
0x1e04   : > { %v13171_v7 = vadd.f32 %v13170_v58, %v13169_v34  ;;  %v13210_v50 = vpop.f32.mrb[53].mxu0  ;;  %v13172_v8 = vpop.f32.mrb[54].mxu1  ;;  %v17841_v58 = vrot.slane %v10619_v29, %v16021_v44 }
0x1e05   : > { %v13211_v21 = vadd.f32 %v13210_v50, %v13209_v63  ;;  %v13212_v0 = vpop.f32.mrb[54].mxu0  ;;  %v13173_v14 = vpop.f32.mrb[55].mxu1 }
0x1e06   : > { %v13174_v18 = vadd.f32 %v13173_v14, %v13172_v8  ;;  %v13213_v59 = vpop.f32.mrb[55].mxu0 }
0x1e07   : > { %v10557_v12 = vadd.f32 %v13211_v21, %v13171_v7  ;;  %v13214_v16 = vadd.f32 %v13213_v59, %v13212_v0 }
0x1e09   : > { %v17817_v15 = vadd.f32 %v10557_v12, %v17675_v49  ;;  %v10560_v23 = vadd.f32 %v13214_v16, %v13174_v18 }
0x1e0a   : > { %v13175_v22 = vpop.f32.mrb[56].mxu1 }
0x1e0b   : > { %v17820_v37 = vadd.f32 %v10560_v23, %v17677_v28  ;;  %v13215_v36 = vpop.f32.mrb[56].mxu0  ;;  %v13176_v2 = vpop.f32.mrb[57].mxu1 }
0x1e0c   : > { %v13177_v40 = vadd.f32 %v13176_v2, %v13175_v22  ;;  %v13216_v47 = vpop.f32.mrb[57].mxu0  ;;  %v13178_v1 = vpop.f32.mrb[58].mxu1 }
0x1e0d   : > { %v13217_v43 = vadd.f32 %v13216_v47, %v13215_v36  ;;  %v13218_v11 = vpop.f32.mrb[58].mxu0  ;;  %v13179_v4 = vpop.f32.mrb[59].mxu1 }
0x1e0e   : > { %v13180_v53 = vadd.f32 %v13179_v4, %v13178_v1  ;;  %v13219_v9 = vpop.f32.mrb[59].mxu0 }
0x1e0f   : > { %v10565_v61 = vadd.f32 %v13217_v43, %v13177_v40  ;;  %v13220_v46 = vadd.f32 %v13219_v9, %v13218_v11 }
0x1e11   : > { %v17823_v49 = vadd.f32 %v10565_v61, %v17679_v39  ;;  %v10568_v27 = vadd.f32 %v13220_v46, %v13180_v53  ;;  %v17829_v39 = vrot.slane %v10619_v29, %v15240_v31 }
0x1e12   : > { %v13181_v19 = vpop.f32.mrb[60].mxu1 }
0x1e13   : > { %v17826_v28 = vadd.f32 %v10568_v27, %v17681_v20  ;;  %v13221_v13 = vpop.f32.mrb[60].mxu0  ;;  %v13182_v30 = vpop.f32.mrb[61].mxu1  ;;  %v17835_v20 = vrot.slane %v10619_v29, %v15248_v33 }
0x1e14   : > { %v13183_v5 = vadd.f32 %v13182_v30, %v13181_v19  ;;  %v13222_v25 = vpop.f32.mrb[61].mxu0  ;;  %v13184_v55 = vpop.f32.mrb[62].mxu1 }
0x1e15   : > { %v13223_v54 = vadd.f32 %v13222_v25, %v13221_v13  ;;  %v13224_v32 = vpop.f32.mrb[62].mxu0  ;;  %v13185_v17 = vpop.f32.mrb[63].mxu1 }
0x1e16   : > { %v13186_v42 = vadd.f32 %v13185_v17, %v13184_v55  ;;  %v13225_v35 = vpop.f32.mrb[63].mxu0 }
0x1e17   : > { %v10573_v3 = vadd.f32 %v13223_v54, %v13183_v5  ;;  %v13226_v52 = vadd.f32 %v13225_v35, %v13224_v32 }
0x1e19   : > { %v17838_v34 = vadd.f32 %v10573_v3, %v17683_v48  ;;  %v10576_v63 = vadd.f32 %v13226_v52, %v13186_v42 }
0x1e1a   : > { %v10835_v7 = vpop.f32.mrb[64].mxu1 }
0x1e1b   : > { %v17844_v50 = vadd.f32 %v10576_v63, %v17695_v10  ;;  %v10836_v31 = vadd.f32 %v10835_v7, %v17829_v39  ;;  %v10908_v8 = vpop.f32.mrb[64].mxu0  ;;  %v10837_v21 = vpop.f32.mrb[65].mxu1 }
0x1e1c   : > { %v10909_v57 = vadd.f32 %v10908_v8, %v17832_v56  ;;  %v10838_v33 = vadd.f32 %v10837_v21, %v17835_v20  ;;  %v10910_v0 = vpop.f32.mrb[65].mxu0  ;;  %v10839_v14 = vpop.f32.mrb[66].mxu1 }
0x1e1d   : > { %v10911_v48 = vadd.f32 %v10910_v0, %v17841_v58  ;;  %v10840_v18 = vadd.f32 %v10839_v14, %v17829_v39  ;;  %v10912_v44 = vpop.f32.mrb[66].mxu0  ;;  %v10841_v59 = vpop.f32.mrb[67].mxu1  ;;  %v10947_v23 = vmax.f32 %v10836_v31, 0.0 }
0x1e1e   : > { %v10913_v12 = vadd.f32 %v10912_v44, %v17832_v56  ;;  %v10842_v10 = vadd.f32 %v10841_v59, %v17835_v20  ;;  %v10914_v16 = vpop.f32.mrb[67].mxu0  ;;  %v10949_v2 = vmax.f32 %v10909_v57, 0.0  ;;  %v10948_v40 = vmax.f32 %v10838_v33, 0.0 }
0x1e1f   : > { %v10951_v22 = vmax.f32 %v10840_v18, 0.0  ;;  %v10915_v36 = vadd.f32 %v10914_v16, %v17841_v58  ;;  %v10950_v43 = vmax.f32 %v10911_v48, 0.0 }
0x1e20   : > { %v10953_v47 = vmax.f32 %v10913_v12, 0.0  ;;  %v10952_v1 = vmax.f32 %v10842_v10, 0.0 }
0x1e21   : > { %v10979_v11 = vpack.c.bf16 %v10951_v22, %v10947_v23  ;;  %v10954_v4 = vmax.f32 %v10915_v36, 0.0 }
0x1e22   : > { %v10981_v53 = vpack.c.bf16 %v10953_v47, %v10949_v2  ;;  %v10980_v9 = vpack.c.bf16 %v10952_v1, %v10948_v40  ;;  %v10845_v61 = vpop.f32.mrb[68].mxu1 }
0x1e23   : > { %v10982_v46 = vpack.c.bf16 %v10954_v4, %v10950_v43  ;;  %v10846_v27 = vadd.f32 %v10845_v61, %v17829_v39  ;;  %v10918_v19 = vpop.f32.mrb[68].mxu0  ;;  %v10847_v13 = vpop.f32.mrb[69].mxu1 }
0x1e24   : > { %v10919_v30 = vadd.f32 %v10918_v19, %v17832_v56  ;;  %v10848_v5 = vadd.f32 %v10847_v13, %v17835_v20  ;;  %v10920_v25 = vpop.f32.mrb[69].mxu0  ;;  %v10849_v55 = vpop.f32.mrb[70].mxu1  ;;  %11283 = vmatprep.mubr.bf16.mxu1 %v10980_v9 }
0x1e25   : > { %v10921_v29 = vadd.f32 %v10920_v25, %v17841_v58  ;;  %v10850_v54 = vadd.f32 %v10849_v55, %v17829_v39  ;;  %v10922_v32 = vpop.f32.mrb[70].mxu0  ;;  %11348 = vmatprep.mubr.bf16.mxu0 %v10982_v46  ;;  %v10851_v17 = vpop.f32.mrb[71].mxu1  ;;  %11284 = vmatmul.mubr.bf16.vlgmr.msra.gmra.mrb[80].mxu1 %v10979_v11  ;;  %v10955_v52 = vmax.f32 %v10846_v27, 0.0 }
0x1e26   : > { %v10923_v42 = vadd.f32 %v10922_v32, %v17832_v56  ;;  %v10852_v35 = vadd.f32 %v10851_v17, %v17835_v20  ;;  %v10924_v3 = vpop.f32.mrb[71].mxu0  ;;  %11349 = vmatmul.mubr.bf16.vlgmr.msra.gmra.mrb[80].mxu0 %v10981_v53  ;;  %v10957_v31 = vmax.f32 %v10919_v30, 0.0  ;;  %v10956_v8 = vmax.f32 %v10848_v5, 0.0 }
0x1e27   : > { %v10959_v63 = vmax.f32 %v10850_v54, 0.0  ;;  %v10925_v7 = vadd.f32 %v10924_v3, %v17841_v58  ;;  %v10958_v33 = vmax.f32 %v10921_v29, 0.0 }
0x1e28   : > { %v10961_v21 = vmax.f32 %v10923_v42, 0.0  ;;  %v10960_v57 = vmax.f32 %v10852_v35, 0.0 }
0x1e29   : > { %v10983_v0 = vpack.c.bf16 %v10959_v63, %v10955_v52  ;;  %v10962_v14 = vmax.f32 %v10925_v7, 0.0 }
0x1e2a   : > { %v10985_v48 = vpack.c.bf16 %v10961_v21, %v10957_v31  ;;  %v10984_v18 = vpack.c.bf16 %v10960_v57, %v10956_v8  ;;  %v10855_v44 = vpop.f32.mrb[72].mxu1 }
0x1e2b   : > { %v10986_v59 = vpack.c.bf16 %v10962_v14, %v10958_v33  ;;  %v10856_v12 = vadd.f32 %v10855_v44, %v17829_v39  ;;  %v10928_v10 = vpop.f32.mrb[72].mxu0  ;;  %v10857_v16 = vpop.f32.mrb[73].mxu1 }
0x1e2c   : > { %v10929_v23 = vadd.f32 %v10928_v10, %v17832_v56  ;;  %v10858_v22 = vadd.f32 %v10857_v16, %v17835_v20  ;;  %v10930_v36 = vpop.f32.mrb[73].mxu0  ;;  %v10859_v2 = vpop.f32.mrb[74].mxu1  ;;  %11291 = vmatprep.mubr.bf16.mxu1 %v10984_v18 }
0x1e2d   : > { %v10931_v40 = vadd.f32 %v10930_v36, %v17841_v58  ;;  %v10860_v47 = vadd.f32 %v10859_v2, %v17829_v39  ;;  %v10932_v1 = vpop.f32.mrb[74].mxu0  ;;  %11356 = vmatprep.mubr.bf16.mxu0 %v10986_v59  ;;  %v10861_v43 = vpop.f32.mrb[75].mxu1  ;;  %11292 = vmatmul.mubr.bf16.gmra.mrb[84].mxu1 %v10983_v0  ;;  %v10963_v9 = vmax.f32 %v10856_v12, 0.0 }
0x1e2e   : > { %v10933_v11 = vadd.f32 %v10932_v1, %v17832_v56  ;;  %v10862_v4 = vadd.f32 %v10861_v43, %v17835_v20  ;;  %v10934_v53 = vpop.f32.mrb[75].mxu0  ;;  %11357 = vmatmul.mubr.bf16.gmra.mrb[84].mxu0 %v10985_v48  ;;  %v10965_v27 = vmax.f32 %v10929_v23, 0.0  ;;  %v10964_v19 = vmax.f32 %v10858_v22, 0.0 }
0x1e2f   : > { %v10967_v61 = vmax.f32 %v10860_v47, 0.0  ;;  %v10935_v46 = vadd.f32 %v10934_v53, %v17841_v58  ;;  %v10966_v5 = vmax.f32 %v10931_v40, 0.0 }
0x1e30   : > { %v10969_v13 = vmax.f32 %v10933_v11, 0.0  ;;  %v10968_v30 = vmax.f32 %v10862_v4, 0.0 }
0x1e31   : > { %v10987_v25 = vpack.c.bf16 %v10967_v61, %v10963_v9  ;;  %v10970_v55 = vmax.f32 %v10935_v46, 0.0 }
0x1e32   : > { %v10989_v29 = vpack.c.bf16 %v10969_v13, %v10965_v27  ;;  %v10988_v54 = vpack.c.bf16 %v10968_v30, %v10964_v19  ;;  %v10865_v32 = vpop.f32.mrb[76].mxu1  ;;  %v17881_v13 = vld [vmem:[%s18298_s11 + $0x1] ss:$0 sm:$0xff] }
0x1e33   : > { %v10990_v17 = vpack.c.bf16 %v10970_v55, %v10966_v5  ;;  %v10866_v42 = vadd.f32 %v10865_v32, %v17829_v39  ;;  %v10938_v35 = vpop.f32.mrb[76].mxu0  ;;  %v10867_v3 = vpop.f32.mrb[77].mxu1 }
0x1e34   : > { %v10939_v52 = vadd.f32 %v10938_v35, %v17832_v56  ;;  %v10868_v63 = vadd.f32 %v10867_v3, %v17835_v20  ;;  %v10940_v7 = vpop.f32.mrb[77].mxu0  ;;  %v10869_v31 = vpop.f32.mrb[78].mxu1  ;;  %11299 = vmatprep.mubr.bf16.mxu1 %v10988_v54 }
0x1e35   : > { %v10941_v8 = vadd.f32 %v10940_v7, %v17841_v58  ;;  %v10870_v21 = vadd.f32 %v10869_v31, %v17829_v39  ;;  %v10942_v57 = vpop.f32.mrb[78].mxu0  ;;  %11364 = vmatprep.mubr.bf16.mxu0 %v10990_v17  ;;  %v10871_v33 = vpop.f32.mrb[79].mxu1  ;;  %11300 = vmatmul.mubr.bf16.gmra.mrb[88].mxu1 %v10987_v25  ;;  %v10971_v18 = vmax.f32 %v10866_v42, 0.0 }
0x1e36   : > { %v10943_v0 = vadd.f32 %v10942_v57, %v17832_v56  ;;  %v10872_v14 = vadd.f32 %v10871_v33, %v17835_v20  ;;  %v10944_v48 = vpop.f32.mrb[79].mxu0  ;;  %11365 = vmatmul.mubr.bf16.gmra.mrb[88].mxu0 %v10989_v29  ;;  %v10973_v12 = vmax.f32 %v10939_v52, 0.0  ;;  %v10972_v10 = vmax.f32 %v10868_v63, 0.0 }
0x1e37   : > { %v10975_v44 = vmax.f32 %v10870_v21, 0.0  ;;  %v10945_v59 = vadd.f32 %v10944_v48, %v17841_v58  ;;  %v10974_v22 = vmax.f32 %v10941_v8, 0.0 }
0x1e38   : > { %v10977_v16 = vmax.f32 %v10943_v0, 0.0  ;;  %v10976_v23 = vmax.f32 %v10872_v14, 0.0 }
0x1e39   : > { %v10991_v39 = vpack.c.bf16 %v10975_v44, %v10971_v18  ;;  %v10978_v36 = vmax.f32 %v10945_v59, 0.0 }
0x1e3a   : > { %v10993_v2 = vpack.c.bf16 %v10977_v16, %v10973_v12  ;;  %v10992_v40 = vpack.c.bf16 %v10976_v23, %v10972_v10 }
0x1e3b   : > { %v10994_v47 = vpack.c.bf16 %v10978_v36, %v10974_v22 }
0x1e3c   : > { %11307 = vmatprep.mubr.bf16.mxu1 %v10992_v40 }
0x1e3d   : > { %11372 = vmatprep.mubr.bf16.mxu0 %v10994_v47  ;;  %11308 = vmatmul.mubr.bf16.gmra.mrb[92].mxu1 %v10991_v39 }
0x1e3e   : > { %11373 = vmatmul.mubr.bf16.gmra.mrb[92].mxu0 %v10993_v2 }
0x1ef8   : > { %v13243_v56 = vpop.f32.mrb[80].mxu1 }
0x1ef9   : > { %v13283_v20 = vpop.f32.mrb[80].mxu0  ;;  %v13244_v1 = vpop.f32.mrb[81].mxu1 }
0x1efa   : > { %v13245_v43 = vadd.f32 %v13244_v1, %v13243_v56  ;;  %v13284_v11 = vpop.f32.mrb[81].mxu0  ;;  %v13246_v58 = vpop.f32.mrb[82].mxu1 }
0x1efb   : > { %v13285_v4 = vadd.f32 %v13284_v11, %v13283_v20  ;;  %v13286_v53 = vpop.f32.mrb[82].mxu0  ;;  %v13247_v9 = vpop.f32.mrb[83].mxu1 }
0x1efc   : > { %v13248_v61 = vadd.f32 %v13247_v9, %v13246_v58  ;;  %v13287_v46 = vpop.f32.mrb[83].mxu0 }
0x1efd   : > { %v11351_v27 = vadd.f32 %v13285_v4, %v13245_v43  ;;  %v13288_v19 = vadd.f32 %v13287_v46, %v13286_v53 }
0x1eff   : > { %v11381_v30 = vadd.f32 %v11351_v27, %v17811_v24  ;;  %v11354_v5 = vadd.f32 %v13288_v19, %v13248_v61 }
0x1f00   : > { %v13249_v25 = vpop.f32.mrb[84].mxu1 }
0x1f01   : > { %v11382_v55 = vadd.f32 %v11354_v5, %v17814_v60  ;;  %v13289_v29 = vpop.f32.mrb[84].mxu0  ;;  %v13250_v54 = vpop.f32.mrb[85].mxu1  ;;  %v11397_v32 = vadd.f32 %v17881_v13, %v11381_v30 }
0x1f02   : > { %v13251_v17 = vadd.f32 %v13250_v54, %v13249_v25  ;;  %v13290_v42 = vpop.f32.mrb[85].mxu0  ;;  %v13252_v35 = vpop.f32.mrb[86].mxu1 }
0x1f03   : > { %v13291_v3 = vadd.f32 %v13290_v42, %v13289_v29  ;;  %v13292_v52 = vpop.f32.mrb[86].mxu0  ;;  %v13253_v63 = vpop.f32.mrb[87].mxu1  ;;  %v17887_v7 = vadd.f32 %v11397_v32, %v17340_v62  ;;  %v11398_v31 = vadd.f32 %v17881_v13, %v11382_v55  ;;  %v18365_v42 = vld [vmem:[#allocation58_spill] sm:$0xff] }
0x1f04   : > { %v13254_v24 = vadd.f32 %v13253_v63, %v13252_v35  ;;  %v13293_v8 = vpop.f32.mrb[87].mxu0  ;;  %v18371_v35 = vld [vmem:[#allocation32_spill] sm:$0xff] }
0x1f05   : > { %v11359_v21 = vadd.f32 %v13291_v3, %v13251_v17  ;;  %v13294_v57 = vadd.f32 %v13293_v8, %v13292_v52  ;;  %11417 = vadd.xlane.f32.xlu0 %v17887_v7  ;;  %v17892_v60 = vadd.f32 %v11398_v31, %v17343_v45  ;;  %v18364_v17 = vld [vmem:[#allocation60_spill] sm:$0xff] }
0x1f06   : > { %v18372_v52 = vld [vmem:[#allocation72_spill] sm:$0xff] }
0x1f07   : > { %v11383_v33 = vadd.f32 %v11359_v21, %v17817_v15  ;;  %v11362_v0 = vadd.f32 %v13294_v57, %v13254_v24  ;;  %11419 = vadd.xlane.f32.xlu1 %v17892_v60 }
0x1f08   : > { %v13255_v14 = vpop.f32.mrb[88].mxu1 }
0x1f09   : > { %v11384_v62 = vadd.f32 %v11362_v0, %v17820_v37  ;;  %v13295_v48 = vpop.f32.mrb[88].mxu0  ;;  %v13256_v18 = vpop.f32.mrb[89].mxu1  ;;  %v11399_v44 = vadd.f32 %v17881_v13, %v11383_v33 }
0x1f0a   : > { %v13257_v59 = vadd.f32 %v13256_v18, %v13255_v14  ;;  %v13296_v12 = vpop.f32.mrb[89].mxu0  ;;  %v13258_v10 = vpop.f32.mrb[90].mxu1 }
0x1f0b   : > { %v13297_v16 = vadd.f32 %v13296_v12, %v13295_v48  ;;  %v13298_v23 = vpop.f32.mrb[90].mxu0  ;;  %v13259_v22 = vpop.f32.mrb[91].mxu1  ;;  %v11407_v45 = vadd.f32 %v11399_v44, %v17392_v41  ;;  %v11400_v15 = vadd.f32 %v17881_v13, %v11384_v62 }
0x1f0c   : > { %v13260_v39 = vadd.f32 %v13259_v22, %v13258_v10  ;;  %v13299_v36 = vpop.f32.mrb[91].mxu0 }
0x1f0d   : > { %v11367_v2 = vadd.f32 %v13297_v16, %v13257_v59  ;;  %v13300_v40 = vadd.f32 %v13299_v36, %v13298_v23  ;;  %11421 = vadd.xlane.f32.xlu0 %v11407_v45  ;;  %v11408_v37 = vadd.f32 %v11400_v15, %v17380_v51  ;;  %v18373_v36 = vld [vmem:[#allocation54_spill] sm:$0xff] }
0x1f0f   : > { %v11385_v47 = vadd.f32 %v11367_v2, %v17823_v49  ;;  %v11370_v56 = vadd.f32 %v13300_v40, %v13260_v39  ;;  %11423 = vadd.xlane.f32.xlu1 %v11408_v37 }
0x1f10   : > { %v13261_v20 = vpop.f32.mrb[92].mxu1 }
0x1f11   : > { %v11386_v1 = vadd.f32 %v11370_v56, %v17826_v28  ;;  %v13301_v43 = vpop.f32.mrb[92].mxu0  ;;  %v13262_v11 = vpop.f32.mrb[93].mxu1  ;;  %v11401_v41 = vadd.f32 %v17881_v13, %v11385_v47 }
0x1f12   : > { %v13263_v58 = vadd.f32 %v13262_v11, %v13261_v20  ;;  %v13302_v4 = vpop.f32.mrb[93].mxu0  ;;  %v13264_v53 = vpop.f32.mrb[94].mxu1 }
0x1f13   : > { %v13303_v9 = vadd.f32 %v13302_v4, %v13301_v43  ;;  %v13304_v61 = vpop.f32.mrb[94].mxu0  ;;  %v13265_v46 = vpop.f32.mrb[95].mxu1  ;;  %v11409_v27 = vadd.f32 %v11401_v41, %v17416_v6  ;;  %v11402_v51 = vadd.f32 %v17881_v13, %v11386_v1  ;;  %v18374_v1 = vld [vmem:[#allocation56_spill] sm:$0xff]  ;;  %v18375_v41 = vld [vmem:[#allocation57_spill] sm:$0xff] }
0x1f14   : > { %v13266_v49 = vadd.f32 %v13265_v46, %v13264_v53  ;;  %v13305_v19 = vpop.f32.mrb[95].mxu0 }
0x1f15   : > { %v11375_v30 = vadd.f32 %v13303_v9, %v13263_v58  ;;  %v13306_v5 = vadd.f32 %v13305_v19, %v13304_v61  ;;  %11425 = vadd.xlane.f32.xlu0 %v11409_v27  ;;  %v11410_v28 = vadd.f32 %v11402_v51, %v17420_v38  ;;  %v18366_v38 = vld [vmem:[#allocation71_spill] sm:$0xff]  ;;  %v18376_v9 = vld [vmem:[#allocation62_spill] sm:$0xff] }
0x1f16   : > { %v18378_v19 = vld [vmem:[#allocation63_spill] sm:$0xff] }
0x1f17   : > { %v11387_v25 = vadd.f32 %v11375_v30, %v17838_v34  ;;  %v11378_v55 = vadd.f32 %v13306_v5, %v13266_v49  ;;  %11427 = vadd.xlane.f32.xlu1 %v11410_v28  ;;  %v18367_v34 = vld [vmem:[#allocation59_spill] sm:$0xff] }
0x1f19   : > { %v11388_v29 = vadd.f32 %v11378_v55, %v17844_v50  ;;  %v11403_v54 = vadd.f32 %v17881_v13, %v11387_v25  ;;  %v18368_v50 = vld [vmem:[#allocation61_spill] sm:$0xff] }
0x1f1a   : > { %v18380_v55 = vld [vmem:[#allocation73_spill] sm:$0xff] }
0x1f1b   : > { %v11411_v32 = vadd.f32 %v11403_v54, %v17448_v26  ;;  %v11404_v6 = vadd.f32 %v17881_v13, %v11388_v29  ;;  %v18369_v26 = vld [vmem:[#allocation70_spill] sm:$0xff]  ;;  %v18381_v29 = vld [vmem:[#allocation75_spill] sm:$0xff]  ;;  %v18382_v54 = vld [vmem:[#allocation77_spill] sm:$0xff] }
0x1f1c   : > { %v18370_v13 = vld [vmem:[#allocation74_spill] sm:$0xff] }
0x1f1d   : > { %11429 = vadd.xlane.f32.xlu0 %v11411_v32  ;;  %v17927_v3 = vadd.f32 %v11404_v6, %v18371_v35 }
0x1f28   : > { %7967 = vrot.lane.b32.xlu1 %v18364_v17, %s14869_s14 }
0x1f2c   : > { %7971 = vrot.lane.b32.xlu1 %v18365_v42, %s14869_s14 }
0x1f30   : > { %7991 = vrot.lane.b32.xlu1 %v18366_v38, %s14869_s14  ;;  %v18383_v38 = vld [vmem:[#allocation64_spill] sm:$0xff] }
0x1f33   : > { %7965 = vrot.lane.b32.xlu0 %v18367_v34, %s14869_s14 }
0x1f37   : > { %7969 = vrot.lane.b32.xlu0 %v18368_v50, %s14869_s14 }
0x1f3b   : > { %7989 = vrot.lane.b32.xlu0 %v18369_v26, %s14869_s14  ;;  %v18384_v26 = vld [vmem:[#allocation76_spill] sm:$0xff] }
0x1f3f   : > { %7993 = vrot.lane.b32.xlu0 %v18370_v13, %s14869_s14 }
0x1f54   : > { %11431 = vadd.xlane.f32.xlu1 %v17927_v3 }
0x1f65   : > { %7995 = vrot.lane.b32.xlu1 %v18372_v52, %s14869_s14 }
0x1f92   : > { %v11418_v63 = vpop.xlane.xlu0 %11417 }
0x1f93   : > { %v11433_v31 = vmul.f32 0.0078125, %v11418_v63 }
0x1f94   : > { %v11420_v24 = vpop.xlane.xlu1 %11419 }
0x1f95   : > { %v17933_v8 = vsub.f32 %v17887_v7, %v11433_v31  ;;  %v11434_v21 = vmul.f32 0.0078125, %v11420_v24 }
0x1f97   : > { %v17936_v57 = vsub.f32 %v17892_v60, %v11434_v21  ;;  %v11449_v33 = vmul.f32 %v17933_v8, %v17933_v8 }
0x1f99   : > { %11457 = vadd.xlane.f32.xlu0 %v11449_v33  ;;  %v11450_v0 = vmul.f32 %v17936_v57, %v17936_v57 }
0x1f9a   : > { %v11422_v14 = vpop.xlane.xlu0 %11421 }
0x1f9b   : > { %v11435_v62 = vmul.f32 0.0078125, %v11422_v14  ;;  %11459 = vadd.xlane.f32.xlu1 %v11450_v0 }
0x1f9c   : > { %v11424_v48 = vpop.xlane.xlu1 %11423 }
0x1f9d   : > { %v17942_v18 = vsub.f32 %v11407_v45, %v11435_v62  ;;  %v11436_v44 = vmul.f32 0.0078125, %v11424_v48 }
0x1f9f   : > { %v17944_v7 = vsub.f32 %v11408_v37, %v11436_v44  ;;  %v11451_v60 = vmul.f32 %v17942_v18, %v17942_v18  ;;  %v18002_v44 = vld [vmem:[%s18300_s25 + $0x1] ss:$0 sm:$0xff] }
0x1fa1   : > { %11461 = vadd.xlane.f32.xlu0 %v11451_v60  ;;  %v11452_v59 = vmul.f32 %v17944_v7, %v17944_v7 }
0x1fa2   : > { %v11426_v12 = vpop.xlane.xlu0 %11425 }
0x1fa3   : > { %v11437_v10 = vmul.f32 0.0078125, %v11426_v12  ;;  %11463 = vadd.xlane.f32.xlu1 %v11452_v59 }
0x1fa4   : > { %v11428_v16 = vpop.xlane.xlu1 %11427 }
0x1fa5   : > { %v17950_v23 = vsub.f32 %v11409_v27, %v11437_v10  ;;  %v11438_v22 = vmul.f32 0.0078125, %v11428_v16  ;;  %v18377_v27 = vld [vmem:[#allocation55_spill] sm:$0xff]  ;;  %v18008_v10 = vld [vmem:[%s18301_s27 + $0x1] ss:$0 sm:$0xff] }
0x1fa7   : > { %v17952_v45 = vsub.f32 %v11410_v28, %v11438_v22  ;;  %v11453_v15 = vmul.f32 %v17950_v23, %v17950_v23  ;;  %v18379_v28 = vld [vmem:[#allocation65_spill] sm:$0xff] }
0x1fa8   : > { %v7968_v39 = vpop.permute.xlu1 %7967 }
0x1fa9   : > { %v8018_v2 = vsel %vm1008_vm1, %v18373_v36, %v7968_v39  ;;  %11465 = vadd.xlane.f32.xlu0 %v11453_v15  ;;  %v11454_v40 = vmul.f32 %v17952_v45, %v17952_v45 }
0x1faa   : > { %12182 = vst [vmem:[%s17346_s12 + $0xd0] sm:$0xff] %v8018_v2  ;;  %v11430_v37 = vpop.xlane.xlu0 %11429 }
0x1fab   : > { %v11439_v47 = vmul.f32 0.0078125, %v11430_v37  ;;  %11467 = vadd.xlane.f32.xlu1 %v11454_v40 }
0x1fac   : > { %v7972_v56 = vpop.permute.xlu1 %7971 }
0x1fad   : > { %v17961_v20 = vsub.f32 %v11411_v32, %v11439_v47  ;;  %v8020_v43 = vsel %vm1008_vm1, %v18374_v1, %v7972_v56  ;;  %v18385_v1 = vld [vmem:[#allocation68_spill] sm:$0xff] }
0x1fae   : > { %12186 = vst [vmem:[%s17346_s12 + $0xf0] sm:$0xff] %v8020_v43  ;;  %v7966_v11 = vpop.permute.xlu0 %7965 }
0x1faf   : > { %v8017_v58 = vsel %vm1008_vm1, %v18375_v41, %v7966_v11  ;;  %v11455_v4 = vmul.f32 %v17961_v20, %v17961_v20 }
0x1fb0   : > { %12180 = vst [vmem:[%s17346_s12 + $0xc0] sm:$0xff] %v8017_v58  ;;  %v7992_v53 = vpop.permute.xlu1 %7991 }
0x1fb1   : > { %v8022_v61 = vsel %vm1008_vm1, %v18376_v9, %v7992_v53  ;;  %11469 = vadd.xlane.f32.xlu0 %v11455_v4 }
0x1fb2   : > { %12175 = vst [vmem:[%s17346_s12 + $0x98] sm:$0xff] %v8022_v61  ;;  %v7970_v46 = vpop.permute.xlu0 %7969 }
0x1fb3   : > { %v8019_v51 = vsel %vm1008_vm1, %v18377_v27, %v7970_v46 }
0x1fb4   : > { %12184 = vst [vmem:[%s17346_s12 + $0xe0] sm:$0xff] %v8019_v51 }
0x1fb6   : > { %v7990_v49 = vpop.permute.xlu0 %7989 }
0x1fb7   : > { %v8021_v30 = vsel %vm1008_vm1, %v18378_v19, %v7990_v49  ;;  %v18386_v49 = vld [vmem:[#allocation67_spill] sm:$0xff] }
0x1fb8   : > { %12173 = vst [vmem:[%s17346_s12 + $0x88] sm:$0xff] %v8021_v30 }
0x1fba   : > { %v7994_v5 = vpop.permute.xlu0 %7993 }
0x1fbb   : > { %v8023_v25 = vsel %vm1008_vm1, %v18379_v28, %v7994_v5 }
0x1fbc   : > { %12177 = vst [vmem:[%s17346_s12 + $0xa8] sm:$0xff] %v8023_v25  ;;  %7999 = vrot.lane.b32.xlu1 %v18380_v55, %s14869_s14  ;;  %v18387_v25 = vld [vmem:[#allocation69_spill] sm:$0xff] }
0x1fc7   : > { %7997 = vrot.lane.b32.xlu0 %v18381_v29, %s14869_s14 }
0x1fcb   : > { %8001 = vrot.lane.b32.xlu0 %v18382_v54, %s14869_s14 }
0x1fe1   : > { %v11432_v32 = vpop.xlane.xlu1 %11431 }
0x1fe2   : > { %v11440_v6 = vmul.f32 0.0078125, %v11432_v32 }
0x1fe4   : > { %v17990_v17 = vsub.f32 %v17927_v3, %v11440_v6 }
0x1fe5   : > { %v7996_v42 = vpop.permute.xlu1 %7995 }
0x1fe6   : > { %v8024_v34 = vsel %vm1008_vm1, %v18383_v38, %v7996_v42  ;;  %v11456_v50 = vmul.f32 %v17990_v17, %v17990_v17 }
0x1fe7   : > { %12179 = vst [vmem:[%s17346_s12 + $0xb8] sm:$0xff] %v8024_v34 }
0x1fe8   : > { %11471 = vadd.xlane.f32.xlu1 %v11456_v50 }
0x1ff9   : > { %8003 = vrot.lane.b32.xlu1 %v18384_v26, %s14869_s14  ;;  %s18388_s14 = sld [smem:[#allocation88_spill]] }
0x1fff   : > { %s18055_s6 = scalar_lea.hbm %s18388_s14, %s12466_s24  ;;  %s14744_s24 = sshll.u32 %s14871_s10, 4  ;;  %s14745_s24 = int_to_ptr.vmem [resolvable:$false] %s14744_s24 }
0x2000   : > { %s14746_s22 = scalar_lea.vmem %s14745_s24, 8192  ;;  %p14747_p11 = scmp.lt.s32.totalorder %s18057_s17, %s14745_s24 }
0x2001   : > { %p14748_p12 = scmp.lt.s32.totalorder %s14746_s22, %s14740_s1 }
0x2003   : > { %p14749_p13 = por %p14748_p12, %p14747_p11 }
0x2005   : > { %p14750_p8 = pnand %p14749_p13, %p14743_p1 }
0x2026   : > { %v11458_v13 = vpop.xlane.xlu0 %11457 }
0x2027   : > { %v11473_v35 = vmul.f32 0.0078125, %v11458_v13 }
0x2028   : > { %v11460_v52 = vpop.xlane.xlu1 %11459 }
0x2029   : > { %v11481_v63 = vadd.f32 1e-05, %v11473_v35  ;;  %v11474_v31 = vmul.f32 0.0078125, %v11460_v52  ;;  %v18389_v35 = vld [vmem:[#allocation66_spill] sm:$0xff] }
0x202b   : > { %14546 = vrsqrt.f32 %v11481_v63  ;;  %v11482_v3 = vadd.f32 1e-05, %v11474_v31 }
0x202d   : > { %14548 = vrsqrt.f32 %v11482_v3 }
0x202e   : > { %v11462_v24 = vpop.xlane.xlu0 %11461 }
0x202f   : > { %v11475_v21 = vmul.f32 0.0078125, %v11462_v24 }
0x2030   : > { %v11464_v33 = vpop.xlane.xlu1 %11463 }
0x2031   : > { %v11483_v0 = vadd.f32 1e-05, %v11475_v21  ;;  %v11476_v14 = vmul.f32 0.0078125, %v11464_v33 }
0x2033   : > { %14550 = vrsqrt.f32 %v11483_v0  ;;  %v11484_v62 = vadd.f32 1e-05, %v11476_v14 }
0x2035   : > { %v14547_v48 = vpop.eup %14546  ;;  %14552 = vrsqrt.f32 %v11484_v62 }
0x2036   : > { %v11497_v60 = vmul.f32 %v14547_v48, %v17933_v8  ;;  %v11466_v59 = vpop.xlane.xlu0 %11465 }
0x2037   : > { %v14549_v12 = vpop.eup %14548  ;;  %v11477_v16 = vmul.f32 0.0078125, %v11466_v59 }
0x2038   : > { %v11511_v22 = vmul.f32 %v18002_v44, %v11497_v60  ;;  %v11498_v15 = vmul.f32 %v14549_v12, %v17936_v57  ;;  %v11468_v39 = vpop.xlane.xlu1 %11467 }
0x2039   : > { %v11485_v36 = vadd.f32 1e-05, %v11477_v16  ;;  %v11478_v2 = vmul.f32 0.0078125, %v11468_v39 }
0x203a   : > { %v11525_v40 = vadd.f32 %v18008_v10, %v11511_v22  ;;  %v11512_v8 = vmul.f32 %v18002_v44, %v11498_v15 }
0x203b   : > { %14554 = vrsqrt.f32 %v11485_v36  ;;  %v11486_v37 = vadd.f32 1e-05, %v11478_v2 }
0x203c   : > { %11533 = vst [vmem:[%s18016_s26] sm:$0xff] %v11525_v40  ;;  %v11526_v47 = vadd.f32 %v18008_v10, %v11512_v8  ;;  %v8000_v56 = vpop.permute.xlu1 %7999 }
0x203d   : > { %v14551_v57 = vpop.eup %14550  ;;  %14556 = vrsqrt.f32 %v11486_v37  ;;  %v8026_v43 = vsel %vm1008_vm1, %v18385_v1, %v8000_v56 }
0x203e   : > { %11534 = vst [vmem:[%s18016_s26 + $0x8] sm:$0xff] %v11526_v47  ;;  %v11499_v11 = vmul.f32 %v14551_v57, %v17942_v18  ;;  %12183 = vst [vmem:[%s17346_s12 + $0xd8] sm:$0xff] %v8026_v43  ;;  %v11470_v41 = vpop.xlane.xlu0 %11469 }
0x203f   : > { %v14553_v58 = vpop.eup %14552  ;;  %v11479_v4 = vmul.f32 0.0078125, %v11470_v41 }
0x2040   : > { %v11513_v53 = vmul.f32 %v18002_v44, %v11499_v11  ;;  %v11500_v9 = vmul.f32 %v14553_v58, %v17944_v7 }
0x2041   : > { %v11487_v61 = vadd.f32 1e-05, %v11479_v4 }
0x2042   : > { %v11527_v46 = vadd.f32 %v18008_v10, %v11513_v53  ;;  %v11514_v27 = vmul.f32 %v18002_v44, %v11500_v9  ;;  %v7998_v51 = vpop.permute.xlu0 %7997 }
0x2043   : > { %14558 = vrsqrt.f32 %v11487_v61  ;;  %v8025_v18 = vsel %vm1008_vm1, %v18386_v49, %v7998_v51 }
0x2044   : > { %11535 = vst [vmem:[%s18016_s26 + $0x10] sm:$0xff] %v11527_v46  ;;  %v11528_v19 = vadd.f32 %v18008_v10, %v11514_v27  ;;  %12181 = vst [vmem:[%s17346_s12 + $0xc8] sm:$0xff] %v8025_v18 }
0x2045   : > { %v14555_v30 = vpop.eup %14554 }
0x2046   : > { %11536 = vst [vmem:[%s18016_s26 + $0x18] sm:$0xff] %v11528_v19  ;;  %v11501_v7 = vmul.f32 %v14555_v30, %v17950_v23  ;;  %v8002_v5 = vpop.permute.xlu0 %8001 }
0x2047   : > { %v14557_v28 = vpop.eup %14556  ;;  %v8027_v55 = vsel %vm1008_vm1, %v18387_v25, %v8002_v5 }
0x2048   : > { %v11515_v29 = vmul.f32 %v18002_v44, %v11501_v7  ;;  %v11502_v54 = vmul.f32 %v14557_v28, %v17952_v45  ;;  %12185 = vst [vmem:[%s17346_s12 + $0xe8] sm:$0xff] %v8027_v55 }
0x204a   : > { %v11529_v32 = vadd.f32 %v18008_v10, %v11515_v29  ;;  %v11516_v6 = vmul.f32 %v18002_v44, %v11502_v54 }
0x204c   : > { %11537 = vst [vmem:[%s18016_s26 + $0x20] sm:$0xff] %v11529_v32  ;;  %v11530_v23 = vadd.f32 %v18008_v10, %v11516_v6 }
0x204d   : > { %v14559_v42 = vpop.eup %14558 }
0x204e   : > { %11538 = vst [vmem:[%s18016_s26 + $0x28] sm:$0xff] %v11530_v23  ;;  %v11503_v38 = vmul.f32 %v14559_v42, %v17961_v20 }
0x2050   : > { %v11517_v34 = vmul.f32 %v18002_v44, %v11503_v38 }
0x2052   : > { %v11531_v50 = vadd.f32 %v18008_v10, %v11517_v34 }
0x2054   : > { %11539 = vst [vmem:[%s18016_s26 + $0x30] sm:$0xff] %v11531_v50 }
0x2075   : > { %v11472_v45 = vpop.xlane.xlu1 %11471 }
0x2076   : > { %v11480_v26 = vmul.f32 0.0078125, %v11472_v45 }
0x2078   : > { %v11488_v13 = vadd.f32 1e-05, %v11480_v26 }
0x2079   : > { %v8004_v20 = vpop.permute.xlu1 %8003 }
0x207a   : > { %14560 = vrsqrt.f32 %v11488_v13  ;;  %v8028_v52 = vsel %vm1008_vm1, %v18389_v35, %v8004_v20 }
0x207b   : > { %12187 = vst [vmem:[%s17346_s12 + $0xf8] sm:$0xff] %v8028_v52 }
0x207c   : > { %14753 = shalt.err (!%p14750_p8)
}
0x207d   : > { %s14754_s12 = scalar_lea.hbm %s18055_s6, 4096  ;;  %s14758_s10 = scalar_lea.hbm %s18388_s14, 8192 }
0x207e   : > { %p14755_p7 = scmp.ne.s32.totalorder %s18055_s6, %s14754_s12  ;;  %p14759_p3 = scmp.lt.u32.totalorder %s18055_s6, %s18388_s14 }
0x207f   : > { %p14760_p0 = scmp.lt.u32.totalorder %s14758_s10, %s14754_s12  ;;  %p14762_p6 = scmp.lt.u32.totalorder %s14754_s12, %s18055_s6 }
0x2080   : > { %p14756_p9 = pnand %p14755_p7, %p18390_p5 }
0x2081   : > { %p14761_p2 = por %p14760_p0, %p14759_p3 }
0x2082   : > { %p14757_p4 = pneg %p14756_p9 }
0x2083   : > { %p14763_p10 = por %p14762_p6, %p14761_p2 }
0x2085   : > { %p14764_p1 = pnand %p14763_p10, %p14757_p4 }
0x2087   : > { %14767 = shalt.err (!%p14764_p1)
}
0x2088   : > { %s14872_s1 = smov 256   ;;  %s14873_s0 = smov 16   ;;  %v14561_v63 = vpop.eup %14560 }
0x2089   : > { %s18391_s2 = scalar_lea.sflag [#allocation15], %s15192_s23  ;;  %v11504_v31 = vmul.f32 %v14561_v63, %v17990_v17  ;;  %s12465_s3 = sshll.u32 %s14973_s19, 10 }
0x208a   : > { %13810 = dma.vmem_to_hbm [thread:$0]  (%p18390_p5), %s18057_s17, 4096, %s18055_s6, %s18391_s2, %s14872_s1, %s14872_s1, %s14873_s0  }
0x208b   : > { %s11560_s22 = sshll.u32 %s18016_s26, 4  ;;  %v11518_v3 = vmul.f32 %v18002_v44, %v11504_v31  ;;  %s18392_s24 = sld [smem:[#allocation87_spill]]  ;;  %s18095_s22 = int_to_ptr.vmem [resolvable:$true] %s11560_s22 }
0x208c   : > { %s11542_s17 = scalar_lea.sflag [#allocation4], %s15192_s23  ;;  %s14768_s6 = scalar_lea.vmem %s18095_s22, 1024 }
0x208d   : > { %v11532_v24 = vadd.f32 %v18008_v10, %v11518_v3  ;;  %p14769_p11 = scmp.ne.s32.totalorder %s18095_s22, %s14768_s6  ;;  %s14874_s19 = smov [#allocation13]  }
0x208e   : > { %s14772_s1 = sshll.u32 %s14874_s19, 4  ;;  %s14773_s1 = int_to_ptr.vmem [resolvable:$false] %s14772_s1 }
0x208f   : > { %11540 = vst [vmem:[%s18016_s26 + $0x38] sm:$0xff] %v11532_v24  ;;  %p14770_p12 = pnand %p14769_p11, %p18390_p5  ;;  %s14774_s0 = scalar_lea.vmem %s14773_s1, 2048 }
0x2090   : > { %p14775_p8 = scmp.lt.s32.totalorder %s18095_s22, %s14773_s1  ;;  %p14776_p7 = scmp.lt.s32.totalorder %s14774_s0, %s14768_s6 }
0x2091   : > { %s18093_s4 = scalar_lea.hbm %s18392_s24, %s12465_s3  ;;  %p14771_p13 = pneg %p14770_p12 }
0x2092   : > { %p14777_p9 = por %p14776_p7, %p14775_p8 }
0x2094   : > { %p14778_p4 = pnand %p14777_p9, %p14771_p13 }
0x2096   : > { %14781 = shalt.err (!%p14778_p4)
}
0x2097   : > { %s14782_s26 = scalar_lea.hbm %s18093_s4, 1024  ;;  %s14786_s12 = scalar_lea.hbm %s18392_s24, 2048 }
0x2098   : > { %p14783_p3 = scmp.ne.s32.totalorder %s18093_s4, %s14782_s26  ;;  %p14787_p6 = scmp.lt.u32.totalorder %s18093_s4, %s18392_s24 }
0x2099   : > { %p14788_p10 = scmp.lt.u32.totalorder %s14786_s12, %s14782_s26  ;;  %p14790_p11 = scmp.lt.u32.totalorder %s14782_s26, %s18093_s4 }
0x209a   : > { %p14784_p0 = pnand %p14783_p3, %p18390_p5 }
0x209b   : > { %p14789_p1 = por %p14788_p10, %p14787_p6 }
0x209c   : > { %p14785_p2 = pneg %p14784_p0 }
0x209d   : > { %p14791_p12 = por %p14790_p11, %p14789_p1 }
0x209f   : > { %p14792_p13 = pnand %p14791_p12, %p14785_p2 }
0x20a1   : > { %14795 = shalt.err (!%p14792_p13)
}
0x20a2   : > { %s14875_s6 = smov 128   ;;  %s14876_s1 = smov 8  }
0x20a3   : > { %13809 = dma.vmem_to_hbm [thread:$0]  (%p18390_p5), %s18095_s22, 1024, %s18093_s4, %s11542_s17, %s14875_s6, %s14875_s6, %s14876_s1  }
0x20a4 PF: > { %s11591_s0 = sand.u32 1, %s14838_s29   ;;  %p18393_p8 = scmp.ne.s32.totalorder %s18249_s18, 0 }
0x20a5   : > { %p18394_p7 = scmp.ge.s32.totalorder %s14850_s16, 2  ;;  %s11592_s26 = scalar_lea.sflag [#allocation4], %s11591_s0 }
0x20a7   : > { %p13834_p9 = pnand %p18394_p7, %p18393_p8 }
0x20a9   : > { %14829 = dma.done.wait (!%p13834_p9), %s11592_s26, 1024  }
0x20aa   : > { %14831 = vsyncadd (!%p13834_p9), %s11592_s26, 4294966272  ;;  %s11601_s2 = scalar_lea.sflag [#allocation15], %s11591_s0 }
0x20ab   : > { %14833 = dma.done.wait (!%p13834_p9), %s11601_s2, 4096  }
0x20ac   : > { %14835 = vsyncadd (!%p13834_p9), %s11601_s2, 4294963200  ;;  %p34_p5 = scmp.ge.s32.totalorder %s15113_s21, 4   ;;  %s18395_s29 = smov %s14842_s30 }
0x20ad   : > { %s18396_s30 = smov %s14846_s15  ;;  %s18397_s15 = smov %s15124_s28 }
0x20ae   : > { %s18398_s16 = smov %s15113_s21  ;;  %36 = sbr.rel (!%p34_p5) target bundleno = 22 (0x16), region = 167 }
0x20b5   :  { %11606 = vsyncpa [#allocation3], 1 }
0x20b6   :  { %11608 = vsyncpa [#allocation3 + $0x1], 1 }
0x20b7   :  { %11609 = vsyncpa [#allocation6], 1 }
0x20b8   :  { %11610 = vsyncpa [#allocation9], 1 }
0x20b9   :  { %11611 = vsyncpa [#allocation12], 1 }
0x20ba   :  { %11612 = vsyncpa [#allocation4], 1 }
0x20bb   :  { %11614 = vsyncpa [#allocation4 + $0x1], 1 }
0x20bc   :  { %11615 = vsyncpa [#allocation15], 1 }
0x20bd   :  { %11617 = vsyncpa [#allocation15 + $0x1], 1 }

</bundles_post_ra>
